<compile_context>
chip_gen: v5e
topology: v5e:2x2
jax: 0.10.0
libtpu: 0.0.40
codegen_flags: <defaults>
</compile_context>

<pallas_src>
import functools

import jax
import jax.numpy as jnp
from jax.experimental import pallas as pl
from jax.experimental.pallas import tpu as pltpu


def down_kernel(x_ref, w1_ref, g1_ref, be1_ref, w2_ref, g2_ref, be2_ref,
                o_ref, pad1_ref, pad2_ref, acc1_ref,
                *, N, Hp, Wp, Cin, Cout):
    eps = 1e-5
    M = N * Hp * Wp
    inv_M = 1.0 / M
    f32 = jnp.float32
    bf16 = jnp.bfloat16

    # ---------------- MaxPool2d(kernel=2, stride=2) ----------------
    # x_ref is (4, N, Hp, Wp, Cin): the 2x2 window lives on the leading major
    # axis, so pooling is 4 aligned loads + elementwise maxes.
    pooled = jnp.maximum(jnp.maximum(x_ref[0], x_ref[1]),
                         jnp.maximum(x_ref[2], x_ref[3]))     # (N,Hp,Wp,Cin) bf16

    # ---------------- Conv2d(Cin, Cout, 3, padding=1) ----------------
    # Zero only the 1-px border of the padded scratch, then write the interior.
    pad1_ref[:, 0:1, :, :] = jnp.zeros((N, 1, Wp + 2, Cin), bf16)
    pad1_ref[:, Hp + 1:Hp + 2, :, :] = jnp.zeros((N, 1, Wp + 2, Cin), bf16)
    pad1_ref[:, :, 0:1, :] = jnp.zeros((N, Hp + 2, 1, Cin), bf16)
    pad1_ref[:, :, Wp + 1:Wp + 2, :] = jnp.zeros((N, Hp + 2, 1, Cin), bf16)
    pad1_ref[:, 1:Hp + 1, 1:Wp + 1, :] = pooled

    # 9-tap accumulation straight from the padded buffer (no im2col slab).
    for k in range(9):
        dy, dx = divmod(k, 3)
        tap = pad1_ref[:, dy:dy + Hp, dx:dx + Wp, :].reshape(M, Cin)
        part = jnp.dot(tap, w1_ref[k], preferred_element_type=f32)
        if k == 0:
            acc1_ref[...] = part
        else:
            acc1_ref[...] += part
    # Conv bias omitted: exactly cancelled by the training-mode BN mean.

    # -------- BatchNorm2d (batch stats, single pass) + ReLU --------
    a1 = acc1_ref[...]                                        # (M, Cout) f32
    s1 = jnp.sum(a1, axis=0, keepdims=True)
    ss1 = jnp.sum(a1 * a1, axis=0, keepdims=True)
    mu1 = s1 * inv_M
    var1 = jnp.maximum(ss1 * inv_M - mu1 * mu1, 0.0)
    scale1 = g1_ref[...] * jax.lax.rsqrt(var1 + eps)
    shift1 = be1_ref[...] - mu1 * scale1
    h = jnp.maximum(a1 * scale1 + shift1, 0.0)                # (M, Cout) f32

    # ---------------- Conv2d(Cout, Cout, 3, padding=1) ----------------
    pad2_ref[:, 0:1, :, :] = jnp.zeros((N, 1, Wp + 2, Cout), bf16)
    pad2_ref[:, Hp + 1:Hp + 2, :, :] = jnp.zeros((N, 1, Wp + 2, Cout), bf16)
    pad2_ref[:, :, 0:1, :] = jnp.zeros((N, Hp + 2, 1, Cout), bf16)
    pad2_ref[:, :, Wp + 1:Wp + 2, :] = jnp.zeros((N, Hp + 2, 1, Cout), bf16)
    pad2_ref[:, 1:Hp + 1, 1:Wp + 1, :] = h.astype(bf16).reshape(N, Hp, Wp, Cout)

    # Accumulate conv2 directly into the f32 output block.
    for k in range(9):
        dy, dx = divmod(k, 3)
        tap = pad2_ref[:, dy:dy + Hp, dx:dx + Wp, :].reshape(M, Cout)
        part = jnp.dot(tap, w2_ref[k], preferred_element_type=f32)
        if k == 0:
            o_ref[...] = part
        else:
            o_ref[...] += part

    # -------- BatchNorm2d (batch stats, single pass) + ReLU, in place --------
    a2 = o_ref[...]
    s2 = jnp.sum(a2, axis=0, keepdims=True)
    ss2 = jnp.sum(a2 * a2, axis=0, keepdims=True)
    mu2 = s2 * inv_M
    var2 = jnp.maximum(ss2 * inv_M - mu2 * mu2, 0.0)
    scale2 = g2_ref[...] * jax.lax.rsqrt(var2 + eps)
    shift2 = be2_ref[...] - mu2 * scale2
    o_ref[...] = jnp.maximum(a2 * scale2 + shift2, 0.0)


def down_forward(x_nchw, params):
    """Down.forward. Input NCHW (PyTorch convention), output NCHW."""
    N, Cin, H, W = x_nchw.shape
    assert H % 2 == 0 and W % 2 == 0
    Hp, Wp = H // 2, W // 2
    Cout = params["w1"].shape[-1]
    M = N * Hp * Wp

    # Fold NCHW->NHWC and the 2x2 pool windowing into ONE XLA transpose:
    # (N,Cin,H,W) -> (4, N, Hp, Wp, Cin), bf16 (conv operands are bf16 anyway).
    x6 = x_nchw.reshape(N, Cin, Hp, 2, Wp, 2)
    x6 = jnp.transpose(x6, (3, 5, 0, 2, 4, 1)).reshape(4, N, Hp, Wp, Cin)
    x6 = x6.astype(jnp.bfloat16)

    # HWIO (3,3,Ci,Co) -> (9,Ci,Co) matching the k = dy*3 + dx tap ordering.
    w1 = params["w1"].reshape(9, Cin, Cout).astype(jnp.bfloat16)
    w2 = params["w2"].reshape(9, Cout, Cout).astype(jnp.bfloat16)
    g1 = params["g1"].astype(jnp.float32)
    be1 = params["be1"].astype(jnp.float32)
    g2 = params["g2"].astype(jnp.float32)
    be2 = params["be2"].astype(jnp.float32)
    # params["b1"]/["b2"] (conv biases) are intentionally unused: they are
    # cancelled exactly by the training-mode BatchNorm mean subtraction.

    # ---- Generation-aware VMEM guard (single-block residency is required
    # because BatchNorm needs whole-batch statistics). Lane dims are rounded
    # to 128 to approximate the real tiled VMEM footprint. ----
    lane = lambda c: -(-c // 128) * 128
    ci_l, co_l = lane(Cin), lane(Cout)
    vmem_bytes = (
        N * H * W * ci_l * 2                                   # pooling-layout input (bf16)
        + N * (Hp + 2) * (Wp + 2) * (ci_l + co_l) * 2          # padded conv scratches (bf16)
        + 2 * M * co_l * 4                                     # acc1 scratch + output block (f32)
        + 2 * M * co_l * 4                                     # BN / activation temporaries (f32)
        + M * max(ci_l, co_l) * 2                              # materialized conv-tap operand (bf16)
        + 9 * (ci_l + co_l) * co_l * 2                         # weights (bf16)
    )
    try:
        vmem_cap = int(pltpu.get_tpu_info().vmem_capacity_bytes)
    except Exception:
        vmem_cap = 64 * 1024 * 1024   # conservative: assume v7x (64 MiB / core)
    budget = max(vmem_cap - 32 * 1024 * 1024, int(0.45 * vmem_cap))
    if vmem_bytes > budget:
        # TODO(synk): halo'd row-band grid + two-pass BatchNorm for big shapes.
        raise ValueError(
            f"Down block needs ~{vmem_bytes >> 20} MiB VMEM (> {budget >> 20} MiB "
            "budget); requires a halo-tiled grid with a two-pass BatchNorm.")
    vmem_limit = int(min(max(vmem_bytes + 16 * 1024 * 1024, 32 * 1024 * 1024),
                         vmem_cap - 8 * 1024 * 1024))

    vmem = pl.BlockSpec(memory_space=pltpu.MemorySpace.VMEM)
    kernel = functools.partial(down_kernel, N=N, Hp=Hp, Wp=Wp,
                               Cin=Cin, Cout=Cout)

    out2d = pl.pallas_call(
        kernel,
        out_shape=jax.ShapeDtypeStruct((M, Cout), jnp.float32),
        in_specs=[vmem] * 7,
        out_specs=vmem,
        scratch_shapes=[
            pltpu.VMEM((N, Hp + 2, Wp + 2, Cin), jnp.bfloat16),   # padded conv1 in
            pltpu.VMEM((N, Hp + 2, Wp + 2, Cout), jnp.bfloat16),  # padded conv2 in
            pltpu.VMEM((M, Cout), jnp.float32),                   # conv1 accumulator
        ],
        compiler_params=pltpu.CompilerParams(vmem_limit_bytes=vmem_limit),
    )(x6, w1, g1, be1, w2, g2, be2)

    y = out2d.reshape(N, Hp, Wp, Cout)
    return jnp.transpose(y, (0, 3, 1, 2))  # back to NCHW


def down_reference(x_nchw, params):
    """Pure-JAX f32 reference (PyTorch training-mode semantics)."""
    eps = 1e-5
    n, c, h, w = x_nchw.shape
    x = x_nchw.reshape(n, c, h // 2, 2, w // 2, 2).max(axis=(3, 5))

    def conv_bn_relu(x, w_hwio, b, g, be):
        y = jax.lax.conv_general_dilated(
            x, w_hwio, window_strides=(1, 1), padding="SAME",
            dimension_numbers=("NCHW", "HWIO", "NCHW"))
        y = y + b.reshape(1, -1, 1, 1)
        mu = y.mean(axis=(0, 2, 3), keepdims=True)
        var = ((y - mu) ** 2).mean(axis=(0, 2, 3), keepdims=True)
        y = (y - mu) * jax.lax.rsqrt(var + eps)
        y = y * g.reshape(1, -1, 1, 1) + be.reshape(1, -1, 1, 1)
        return jnp.maximum(y, 0.0)

    x = conv_bn_relu(x, params["w1"], params["b1"], params["g1"], params["be1"])
    return conv_bn_relu(x, params["w2"], params["b2"], params["g2"], params["be2"])


def init_params(key, c_in, c_out):
    ks = jax.random.split(key, 8)
    # Conv weights stored HWIO: (3, 3, Cin, Cout); PyTorch OIHW would be
    # transposed (2, 3, 1, 0) into this layout.
    w1 = 0.1 * jax.random.normal(ks[0], (3, 3, c_in, c_out), jnp.float32)
    b1 = 0.1 * jax.random.normal(ks[1], (1, c_out), jnp.float32)   # cancelled by BN
    g1 = 1.0 + 0.1 * jax.random.normal(ks[2], (1, c_out), jnp.float32)
    be1 = 0.1 * jax.random.normal(ks[3], (1, c_out), jnp.float32)
    w2 = 0.1 * jax.random.normal(ks[4], (3, 3, c_out, c_out), jnp.float32)
    b2 = 0.1 * jax.random.normal(ks[5], (1, c_out), jnp.float32)   # cancelled by BN
    g2 = 1.0 + 0.1 * jax.random.normal(ks[6], (1, c_out), jnp.float32)
    be2 = 0.1 * jax.random.normal(ks[7], (1, c_out), jnp.float32)
    return dict(w1=w1, b1=b1, g1=g1, be1=be1, w2=w2, b2=b2, g2=g2, be2=be2)


if __name__ == "__main__":
    key = jax.random.PRNGKey(0)
    k_x, k_p = jax.random.split(key)

    N, C_IN, C_OUT, H, W = 2, 4, 8, 16, 16
    x = jax.random.normal(k_x, (N, C_IN, H, W), jnp.float32)  # NCHW like PyTorch
    params = init_params(k_p, C_IN, C_OUT)

    y = down_forward(x, params)
    jax.block_until_ready(y)

    assert y.shape == (N, C_OUT, H // 2, W // 2), y.shape
    assert bool(jnp.all(jnp.isfinite(y)))

    # Loose tolerance: kernel feeds the MXU bf16 operands, reference is f32.
    y_ref = down_reference(x, params)
    max_err = float(jnp.max(jnp.abs(y - y_ref)))
    assert max_err < 0.15, f"max abs error vs reference: {max_err}"

    print("KERNEL_OK")
</pallas_src>

<mosaic_0001>
module attributes {stable_mosaic.version = 11 : i64} {
  func.func @down_kernel(%arg0: memref<4x2x8x8x4xbf16, #tpu.memory_space<vmem>>, %arg1: memref<9x4x8xbf16, #tpu.memory_space<vmem>>, %arg2: memref<1x8xf32, #tpu.memory_space<vmem>>, %arg3: memref<1x8xf32, #tpu.memory_space<vmem>>, %arg4: memref<9x8x8xbf16, #tpu.memory_space<vmem>>, %arg5: memref<1x8xf32, #tpu.memory_space<vmem>>, %arg6: memref<1x8xf32, #tpu.memory_space<vmem>>, %arg7: memref<128x8xf32, #tpu.memory_space<vmem>>, %arg8: memref<2x10x10x4xbf16, #tpu.memory_space<vmem>>, %arg9: memref<2x10x10x8xbf16, #tpu.memory_space<vmem>>, %arg10: memref<128x8xf32, #tpu.memory_space<vmem>>) attributes {dimension_semantics = [], scalar_prefetch = 0 : i64, scratch_operands = 3 : i64, tpu.core_type = #tpu.core_type<tc>} {
    %c0 = arith.constant 0 : index
    %c0_0 = arith.constant 0 : index
    %c0_1 = arith.constant 0 : index
    %c0_2 = arith.constant 0 : index
    %c0_3 = arith.constant 0 : index
    %0 = vector.load %arg0[%c0, %c0_0, %c0_1, %c0_2, %c0_3] : memref<4x2x8x8x4xbf16, #tpu.memory_space<vmem>>, vector<1x2x8x8x4xbf16>
    %1 = vector.shape_cast %0 : vector<1x2x8x8x4xbf16> to vector<2x8x8x4xbf16>
    %c1 = arith.constant 1 : index
    %c0_4 = arith.constant 0 : index
    %c0_5 = arith.constant 0 : index
    %c0_6 = arith.constant 0 : index
    %c0_7 = arith.constant 0 : index
    %2 = vector.load %arg0[%c1, %c0_4, %c0_5, %c0_6, %c0_7] : memref<4x2x8x8x4xbf16, #tpu.memory_space<vmem>>, vector<1x2x8x8x4xbf16>
    %3 = vector.shape_cast %2 : vector<1x2x8x8x4xbf16> to vector<2x8x8x4xbf16>
    %4 = arith.maximumf %1, %3 : vector<2x8x8x4xbf16>
    %c2 = arith.constant 2 : index
    %c0_8 = arith.constant 0 : index
    %c0_9 = arith.constant 0 : index
    %c0_10 = arith.constant 0 : index
    %c0_11 = arith.constant 0 : index
    %5 = vector.load %arg0[%c2, %c0_8, %c0_9, %c0_10, %c0_11] : memref<4x2x8x8x4xbf16, #tpu.memory_space<vmem>>, vector<1x2x8x8x4xbf16>
    %6 = vector.shape_cast %5 : vector<1x2x8x8x4xbf16> to vector<2x8x8x4xbf16>
    %c3 = arith.constant 3 : index
    %c0_12 = arith.constant 0 : index
    %c0_13 = arith.constant 0 : index
    %c0_14 = arith.constant 0 : index
    %c0_15 = arith.constant 0 : index
    %7 = vector.load %arg0[%c3, %c0_12, %c0_13, %c0_14, %c0_15] : memref<4x2x8x8x4xbf16, #tpu.memory_space<vmem>>, vector<1x2x8x8x4xbf16>
    %8 = vector.shape_cast %7 : vector<1x2x8x8x4xbf16> to vector<2x8x8x4xbf16>
    %9 = arith.maximumf %6, %8 : vector<2x8x8x4xbf16>
    %10 = arith.maximumf %4, %9 : vector<2x8x8x4xbf16>
    %cst = arith.constant 0.000000e+00 : bf16
    %11 = vector.broadcast %cst : bf16 to vector<2x1x10x4xbf16>
    %c0_16 = arith.constant 0 : index
    %c0_17 = arith.constant 0 : index
    %c0_18 = arith.constant 0 : index
    %c0_19 = arith.constant 0 : index
    %12 = vector.load %arg8[%c0_16, %c0_17, %c0_18, %c0_19] : memref<2x10x10x4xbf16, #tpu.memory_space<vmem>>, vector<2x1x10x4xbf16>
    tpu.vector_store %arg8[%c0_16, %c0_17, %c0_18, %c0_19], %11 {strides = array<i32>} : memref<2x10x10x4xbf16, #tpu.memory_space<vmem>>, vector<2x1x10x4xbf16>,
    %cst_20 = arith.constant 0.000000e+00 : bf16
    %13 = vector.broadcast %cst_20 : bf16 to vector<2x1x10x4xbf16>
    %c0_21 = arith.constant 0 : index
    %c9 = arith.constant 9 : index
    %c0_22 = arith.constant 0 : index
    %c0_23 = arith.constant 0 : index
    %14 = vector.load %arg8[%c0_21, %c9, %c0_22, %c0_23] : memref<2x10x10x4xbf16, #tpu.memory_space<vmem>>, vector<2x1x10x4xbf16>
    tpu.vector_store %arg8[%c0_21, %c9, %c0_22, %c0_23], %13 {strides = array<i32>} : memref<2x10x10x4xbf16, #tpu.memory_space<vmem>>, vector<2x1x10x4xbf16>,
    %cst_24 = arith.constant 0.000000e+00 : bf16
    %15 = vector.broadcast %cst_24 : bf16 to vector<2x10x1x4xbf16>
    %c0_25 = arith.constant 0 : index
    %c0_26 = arith.constant 0 : index
    %c0_27 = arith.constant 0 : index
    %c0_28 = arith.constant 0 : index
    %16 = vector.load %arg8[%c0_25, %c0_26, %c0_27, %c0_28] : memref<2x10x10x4xbf16, #tpu.memory_space<vmem>>, vector<2x10x1x4xbf16>
    tpu.vector_store %arg8[%c0_25, %c0_26, %c0_27, %c0_28], %15 {strides = array<i32>} : memref<2x10x10x4xbf16, #tpu.memory_space<vmem>>, vector<2x10x1x4xbf16>,
    %cst_29 = arith.constant 0.000000e+00 : bf16
    %17 = vector.broadcast %cst_29 : bf16 to vector<2x10x1x4xbf16>
    %c0_30 = arith.constant 0 : index
    %c0_31 = arith.constant 0 : index
    %c9_32 = arith.constant 9 : index
    %c0_33 = arith.constant 0 : index
    %18 = vector.load %arg8[%c0_30, %c0_31, %c9_32, %c0_33] : memref<2x10x10x4xbf16, #tpu.memory_space<vmem>>, vector<2x10x1x4xbf16>
    tpu.vector_store %arg8[%c0_30, %c0_31, %c9_32, %c0_33], %17 {strides = array<i32>} : memref<2x10x10x4xbf16, #tpu.memory_space<vmem>>, vector<2x10x1x4xbf16>,
    %c0_34 = arith.constant 0 : index
    %c1_35 = arith.constant 1 : index
    %c1_36 = arith.constant 1 : index
    %c0_37 = arith.constant 0 : index
    %19 = vector.load %arg8[%c0_34, %c1_35, %c1_36, %c0_37] : memref<2x10x10x4xbf16, #tpu.memory_space<vmem>>, vector<2x8x8x4xbf16>
    tpu.vector_store %arg8[%c0_34, %c1_35, %c1_36, %c0_37], %10 {strides = array<i32>} : memref<2x10x10x4xbf16, #tpu.memory_space<vmem>>, vector<2x8x8x4xbf16>,
    %c0_38 = arith.constant 0 : index
    %c0_39 = arith.constant 0 : index
    %c0_40 = arith.constant 0 : index
    %c0_41 = arith.constant 0 : index
    %20 = vector.load %arg8[%c0_38, %c0_39, %c0_40, %c0_41] : memref<2x10x10x4xbf16, #tpu.memory_space<vmem>>, vector<2x8x8x4xbf16>
    %21 = vector.shape_cast %20 : vector<2x8x8x4xbf16> to vector<128x4xbf16>
    %c0_42 = arith.constant 0 : index
    %c0_43 = arith.constant 0 : index
    %c0_44 = arith.constant 0 : index
    %22 = vector.load %arg1[%c0_42, %c0_43, %c0_44] : memref<9x4x8xbf16, #tpu.memory_space<vmem>>, vector<1x4x8xbf16>
    %23 = vector.shape_cast %22 : vector<1x4x8xbf16> to vector<4x8xbf16>
    %cst_45 = arith.constant dense<0.000000e+00> : vector<128x8xf32>
    %24 = tpu.matmul %21, %23, %cst_45 {dimension_numbers = #tpu.dot_dimension_numbers<[1], [0], [0], [1], [0, 0, 1, 1], [], []>} : vector<128x4xbf16>, vector<4x8xbf16>, vector<128x8xf32> -> vector<128x8xf32>
    %c0_46 = arith.constant 0 : index
    %c0_47 = arith.constant 0 : index
    %25 = vector.load %arg10[%c0_46, %c0_47] : memref<128x8xf32, #tpu.memory_space<vmem>>, vector<128x8xf32>
    tpu.vector_store %arg10[%c0_46, %c0_47], %24 {strides = array<i32>} : memref<128x8xf32, #tpu.memory_space<vmem>>, vector<128x8xf32>,
    %c0_48 = arith.constant 0 : index
    %c0_49 = arith.constant 0 : index
    %c1_50 = arith.constant 1 : index
    %c0_51 = arith.constant 0 : index
    %26 = vector.load %arg8[%c0_48, %c0_49, %c1_50, %c0_51] : memref<2x10x10x4xbf16, #tpu.memory_space<vmem>>, vector<2x8x8x4xbf16>
    %27 = vector.shape_cast %26 : vector<2x8x8x4xbf16> to vector<128x4xbf16>
    %c1_52 = arith.constant 1 : index
    %c0_53 = arith.constant 0 : index
    %c0_54 = arith.constant 0 : index
    %28 = vector.load %arg1[%c1_52, %c0_53, %c0_54] : memref<9x4x8xbf16, #tpu.memory_space<vmem>>, vector<1x4x8xbf16>
    %29 = vector.shape_cast %28 : vector<1x4x8xbf16> to vector<4x8xbf16>
    %cst_55 = arith.constant dense<0.000000e+00> : vector<128x8xf32>
    %30 = tpu.matmul %27, %29, %cst_55 {dimension_numbers = #tpu.dot_dimension_numbers<[1], [0], [0], [1], [0, 0, 1, 1], [], []>} : vector<128x4xbf16>, vector<4x8xbf16>, vector<128x8xf32> -> vector<128x8xf32>
    %c0_56 = arith.constant 0 : index
    %c0_57 = arith.constant 0 : index
    %31 = vector.load %arg10[%c0_56, %c0_57] : memref<128x8xf32, #tpu.memory_space<vmem>>, vector<128x8xf32>
    %32 = arith.addf %31, %30 : vector<128x8xf32>
    %c0_58 = arith.constant 0 : index
    %c0_59 = arith.constant 0 : index
    %33 = vector.load %arg10[%c0_58, %c0_59] : memref<128x8xf32, #tpu.memory_space<vmem>>, vector<128x8xf32>
    tpu.vector_store %arg10[%c0_58, %c0_59], %32 {strides = array<i32>} : memref<128x8xf32, #tpu.memory_space<vmem>>, vector<128x8xf32>,
    %c0_60 = arith.constant 0 : index
    %c0_61 = arith.constant 0 : index
    %c2_62 = arith.constant 2 : index
    %c0_63 = arith.constant 0 : index
    %34 = vector.load %arg8[%c0_60, %c0_61, %c2_62, %c0_63] : memref<2x10x10x4xbf16, #tpu.memory_space<vmem>>, vector<2x8x8x4xbf16>
    %35 = vector.shape_cast %34 : vector<2x8x8x4xbf16> to vector<128x4xbf16>
    %c2_64 = arith.constant 2 : index
    %c0_65 = arith.constant 0 : index
    %c0_66 = arith.constant 0 : index
    %36 = vector.load %arg1[%c2_64, %c0_65, %c0_66] : memref<9x4x8xbf16, #tpu.memory_space<vmem>>, vector<1x4x8xbf16>
    %37 = vector.shape_cast %36 : vector<1x4x8xbf16> to vector<4x8xbf16>
    %cst_67 = arith.constant dense<0.000000e+00> : vector<128x8xf32>
    %38 = tpu.matmul %35, %37, %cst_67 {dimension_numbers = #tpu.dot_dimension_numbers<[1], [0], [0], [1], [0, 0, 1, 1], [], []>} : vector<128x4xbf16>, vector<4x8xbf16>, vector<128x8xf32> -> vector<128x8xf32>
    %c0_68 = arith.constant 0 : index
    %c0_69 = arith.constant 0 : index
    %39 = vector.load %arg10[%c0_68, %c0_69] : memref<128x8xf32, #tpu.memory_space<vmem>>, vector<128x8xf32>
    %40 = arith.addf %39, %38 : vector<128x8xf32>
    %c0_70 = arith.constant 0 : index
    %c0_71 = arith.constant 0 : index
    %41 = vector.load %arg10[%c0_70, %c0_71] : memref<128x8xf32, #tpu.memory_space<vmem>>, vector<128x8xf32>
    tpu.vector_store %arg10[%c0_70, %c0_71], %40 {strides = array<i32>} : memref<128x8xf32, #tpu.memory_space<vmem>>, vector<128x8xf32>,
    %c0_72 = arith.constant 0 : index
    %c1_73 = arith.constant 1 : index
    %c0_74 = arith.constant 0 : index
    %c0_75 = arith.constant 0 : index
    %42 = vector.load %arg8[%c0_72, %c1_73, %c0_74, %c0_75] : memref<2x10x10x4xbf16, #tpu.memory_space<vmem>>, vector<2x8x8x4xbf16>
    %43 = vector.shape_cast %42 : vector<2x8x8x4xbf16> to vector<128x4xbf16>
    %c3_76 = arith.constant 3 : index
    %c0_77 = arith.constant 0 : index
    %c0_78 = arith.constant 0 : index
    %44 = vector.load %arg1[%c3_76, %c0_77, %c0_78] : memref<9x4x8xbf16, #tpu.memory_space<vmem>>, vector<1x4x8xbf16>
    %45 = vector.shape_cast %44 : vector<1x4x8xbf16> to vector<4x8xbf16>
    %cst_79 = arith.constant dense<0.000000e+00> : vector<128x8xf32>
    %46 = tpu.matmul %43, %45, %cst_79 {dimension_numbers = #tpu.dot_dimension_numbers<[1], [0], [0], [1], [0, 0, 1, 1], [], []>} : vector<128x4xbf16>, vector<4x8xbf16>, vector<128x8xf32> -> vector<128x8xf32>
    %c0_80 = arith.constant 0 : index
    %c0_81 = arith.constant 0 : index
    %47 = vector.load %arg10[%c0_80, %c0_81] : memref<128x8xf32, #tpu.memory_space<vmem>>, vector<128x8xf32>
    %48 = arith.addf %47, %46 : vector<128x8xf32>
    %c0_82 = arith.constant 0 : index
    %c0_83 = arith.constant 0 : index
    %49 = vector.load %arg10[%c0_82, %c0_83] : memref<128x8xf32, #tpu.memory_space<vmem>>, vector<128x8xf32>
    tpu.vector_store %arg10[%c0_82, %c0_83], %48 {strides = array<i32>} : memref<128x8xf32, #tpu.memory_space<vmem>>, vector<128x8xf32>,
    %c0_84 = arith.constant 0 : index
    %c1_85 = arith.constant 1 : index
    %c1_86 = arith.constant 1 : index
    %c0_87 = arith.constant 0 : index
    %50 = vector.load %arg8[%c0_84, %c1_85, %c1_86, %c0_87] : memref<2x10x10x4xbf16, #tpu.memory_space<vmem>>, vector<2x8x8x4xbf16>
    %51 = vector.shape_cast %50 : vector<2x8x8x4xbf16> to vector<128x4xbf16>
    %c4 = arith.constant 4 : index
    %c0_88 = arith.constant 0 : index
    %c0_89 = arith.constant 0 : index
    %52 = vector.load %arg1[%c4, %c0_88, %c0_89] : memref<9x4x8xbf16, #tpu.memory_space<vmem>>, vector<1x4x8xbf16>
    %53 = vector.shape_cast %52 : vector<1x4x8xbf16> to vector<4x8xbf16>
    %cst_90 = arith.constant dense<0.000000e+00> : vector<128x8xf32>
    %54 = tpu.matmul %51, %53, %cst_90 {dimension_numbers = #tpu.dot_dimension_numbers<[1], [0], [0], [1], [0, 0, 1, 1], [], []>} : vector<128x4xbf16>, vector<4x8xbf16>, vector<128x8xf32> -> vector<128x8xf32>
    %c0_91 = arith.constant 0 : index
    %c0_92 = arith.constant 0 : index
    %55 = vector.load %arg10[%c0_91, %c0_92] : memref<128x8xf32, #tpu.memory_space<vmem>>, vector<128x8xf32>
    %56 = arith.addf %55, %54 : vector<128x8xf32>
    %c0_93 = arith.constant 0 : index
    %c0_94 = arith.constant 0 : index
    %57 = vector.load %arg10[%c0_93, %c0_94] : memref<128x8xf32, #tpu.memory_space<vmem>>, vector<128x8xf32>
    tpu.vector_store %arg10[%c0_93, %c0_94], %56 {strides = array<i32>} : memref<128x8xf32, #tpu.memory_space<vmem>>, vector<128x8xf32>,
    %c0_95 = arith.constant 0 : index
    %c1_96 = arith.constant 1 : index
    %c2_97 = arith.constant 2 : index
    %c0_98 = arith.constant 0 : index
    %58 = vector.load %arg8[%c0_95, %c1_96, %c2_97, %c0_98] : memref<2x10x10x4xbf16, #tpu.memory_space<vmem>>, vector<2x8x8x4xbf16>
    %59 = vector.shape_cast %58 : vector<2x8x8x4xbf16> to vector<128x4xbf16>
    %c5 = arith.constant 5 : index
    %c0_99 = arith.constant 0 : index
    %c0_100 = arith.constant 0 : index
    %60 = vector.load %arg1[%c5, %c0_99, %c0_100] : memref<9x4x8xbf16, #tpu.memory_space<vmem>>, vector<1x4x8xbf16>
    %61 = vector.shape_cast %60 : vector<1x4x8xbf16> to vector<4x8xbf16>
    %cst_101 = arith.constant dense<0.000000e+00> : vector<128x8xf32>
    %62 = tpu.matmul %59, %61, %cst_101 {dimension_numbers = #tpu.dot_dimension_numbers<[1], [0], [0], [1], [0, 0, 1, 1], [], []>} : vector<128x4xbf16>, vector<4x8xbf16>, vector<128x8xf32> -> vector<128x8xf32>
    %c0_102 = arith.constant 0 : index
    %c0_103 = arith.constant 0 : index
    %63 = vector.load %arg10[%c0_102, %c0_103] : memref<128x8xf32, #tpu.memory_space<vmem>>, vector<128x8xf32>
    %64 = arith.addf %63, %62 : vector<128x8xf32>
    %c0_104 = arith.constant 0 : index
    %c0_105 = arith.constant 0 : index
    %65 = vector.load %arg10[%c0_104, %c0_105] : memref<128x8xf32, #tpu.memory_space<vmem>>, vector<128x8xf32>
    tpu.vector_store %arg10[%c0_104, %c0_105], %64 {strides = array<i32>} : memref<128x8xf32, #tpu.memory_space<vmem>>, vector<128x8xf32>,
    %c0_106 = arith.constant 0 : index
    %c2_107 = arith.constant 2 : index
    %c0_108 = arith.constant 0 : index
    %c0_109 = arith.constant 0 : index
    %66 = vector.load %arg8[%c0_106, %c2_107, %c0_108, %c0_109] : memref<2x10x10x4xbf16, #tpu.memory_space<vmem>>, vector<2x8x8x4xbf16>
    %67 = vector.shape_cast %66 : vector<2x8x8x4xbf16> to vector<128x4xbf16>
    %c6 = arith.constant 6 : index
    %c0_110 = arith.constant 0 : index
    %c0_111 = arith.constant 0 : index
    %68 = vector.load %arg1[%c6, %c0_110, %c0_111] : memref<9x4x8xbf16, #tpu.memory_space<vmem>>, vector<1x4x8xbf16>
    %69 = vector.shape_cast %68 : vector<1x4x8xbf16> to vector<4x8xbf16>
    %cst_112 = arith.constant dense<0.000000e+00> : vector<128x8xf32>
    %70 = tpu.matmul %67, %69, %cst_112 {dimension_numbers = #tpu.dot_dimension_numbers<[1], [0], [0], [1], [0, 0, 1, 1], [], []>} : vector<128x4xbf16>, vector<4x8xbf16>, vector<128x8xf32> -> vector<128x8xf32>
    %c0_113 = arith.constant 0 : index
    %c0_114 = arith.constant 0 : index
    %71 = vector.load %arg10[%c0_113, %c0_114] : memref<128x8xf32, #tpu.memory_space<vmem>>, vector<128x8xf32>
    %72 = arith.addf %71, %70 : vector<128x8xf32>
    %c0_115 = arith.constant 0 : index
    %c0_116 = arith.constant 0 : index
    %73 = vector.load %arg10[%c0_115, %c0_116] : memref<128x8xf32, #tpu.memory_space<vmem>>, vector<128x8xf32>
    tpu.vector_store %arg10[%c0_115, %c0_116], %72 {strides = array<i32>} : memref<128x8xf32, #tpu.memory_space<vmem>>, vector<128x8xf32>,
    %c0_117 = arith.constant 0 : index
    %c2_118 = arith.constant 2 : index
    %c1_119 = arith.constant 1 : index
    %c0_120 = arith.constant 0 : index
    %74 = vector.load %arg8[%c0_117, %c2_118, %c1_119, %c0_120] : memref<2x10x10x4xbf16, #tpu.memory_space<vmem>>, vector<2x8x8x4xbf16>
    %75 = vector.shape_cast %74 : vector<2x8x8x4xbf16> to vector<128x4xbf16>
    %c7 = arith.constant 7 : index
    %c0_121 = arith.constant 0 : index
    %c0_122 = arith.constant 0 : index
    %76 = vector.load %arg1[%c7, %c0_121, %c0_122] : memref<9x4x8xbf16, #tpu.memory_space<vmem>>, vector<1x4x8xbf16>
    %77 = vector.shape_cast %76 : vector<1x4x8xbf16> to vector<4x8xbf16>
    %cst_123 = arith.constant dense<0.000000e+00> : vector<128x8xf32>
    %78 = tpu.matmul %75, %77, %cst_123 {dimension_numbers = #tpu.dot_dimension_numbers<[1], [0], [0], [1], [0, 0, 1, 1], [], []>} : vector<128x4xbf16>, vector<4x8xbf16>, vector<128x8xf32> -> vector<128x8xf32>
    %c0_124 = arith.constant 0 : index
    %c0_125 = arith.constant 0 : index
    %79 = vector.load %arg10[%c0_124, %c0_125] : memref<128x8xf32, #tpu.memory_space<vmem>>, vector<128x8xf32>
    %80 = arith.addf %79, %78 : vector<128x8xf32>
    %c0_126 = arith.constant 0 : index
    %c0_127 = arith.constant 0 : index
    %81 = vector.load %arg10[%c0_126, %c0_127] : memref<128x8xf32, #tpu.memory_space<vmem>>, vector<128x8xf32>
    tpu.vector_store %arg10[%c0_126, %c0_127], %80 {strides = array<i32>} : memref<128x8xf32, #tpu.memory_space<vmem>>, vector<128x8xf32>,
    %c0_128 = arith.constant 0 : index
    %c2_129 = arith.constant 2 : index
    %c2_130 = arith.constant 2 : index
    %c0_131 = arith.constant 0 : index
    %82 = vector.load %arg8[%c0_128, %c2_129, %c2_130, %c0_131] : memref<2x10x10x4xbf16, #tpu.memory_space<vmem>>, vector<2x8x8x4xbf16>
    %83 = vector.shape_cast %82 : vector<2x8x8x4xbf16> to vector<128x4xbf16>
    %c8 = arith.constant 8 : index
    %c0_132 = arith.constant 0 : index
    %c0_133 = arith.constant 0 : index
    %84 = vector.load %arg1[%c8, %c0_132, %c0_133] : memref<9x4x8xbf16, #tpu.memory_space<vmem>>, vector<1x4x8xbf16>
    %85 = vector.shape_cast %84 : vector<1x4x8xbf16> to vector<4x8xbf16>
    %cst_134 = arith.constant dense<0.000000e+00> : vector<128x8xf32>
    %86 = tpu.matmul %83, %85, %cst_134 {dimension_numbers = #tpu.dot_dimension_numbers<[1], [0], [0], [1], [0, 0, 1, 1], [], []>} : vector<128x4xbf16>, vector<4x8xbf16>, vector<128x8xf32> -> vector<128x8xf32>
    %c0_135 = arith.constant 0 : index
    %c0_136 = arith.constant 0 : index
    %87 = vector.load %arg10[%c0_135, %c0_136] : memref<128x8xf32, #tpu.memory_space<vmem>>, vector<128x8xf32>
    %88 = arith.addf %87, %86 : vector<128x8xf32>
    %c0_137 = arith.constant 0 : index
    %c0_138 = arith.constant 0 : index
    %89 = vector.load %arg10[%c0_137, %c0_138] : memref<128x8xf32, #tpu.memory_space<vmem>>, vector<128x8xf32>
    tpu.vector_store %arg10[%c0_137, %c0_138], %88 {strides = array<i32>} : memref<128x8xf32, #tpu.memory_space<vmem>>, vector<128x8xf32>,
    %c0_139 = arith.constant 0 : index
    %c0_140 = arith.constant 0 : index
    %90 = vector.load %arg10[%c0_139, %c0_140] : memref<128x8xf32, #tpu.memory_space<vmem>>, vector<128x8xf32>
    %cst_141 = arith.constant dense<0.000000e+00> : vector<8xf32>
    %91 = vector.multi_reduction <add>, %90, %cst_141 [0] : vector<128x8xf32> to vector<8xf32>
    %92 = vector.shape_cast %91 : vector<8xf32> to vector<1x8xf32>
    %93 = arith.mulf %90, %90 : vector<128x8xf32>
    %cst_142 = arith.constant dense<0.000000e+00> : vector<8xf32>
    %94 = vector.multi_reduction <add>, %93, %cst_142 [0] : vector<128x8xf32> to vector<8xf32>
    %95 = vector.shape_cast %94 : vector<8xf32> to vector<1x8xf32>
    %cst_143 = arith.constant 7.812500e-03 : f32
    %96 = vector.broadcast %cst_143 : f32 to vector<1x8xf32>
    %97 = arith.mulf %92, %96 : vector<1x8xf32>
    %cst_144 = arith.constant 7.812500e-03 : f32
    %98 = vector.broadcast %cst_144 : f32 to vector<1x8xf32>
    %99 = arith.mulf %95, %98 : vector<1x8xf32>
    %100 = arith.mulf %97, %97 : vector<1x8xf32>
    %101 = arith.subf %99, %100 : vector<1x8xf32>
    %cst_145 = arith.constant 0.000000e+00 : f32
    %102 = vector.broadcast %cst_145 : f32 to vector<1x8xf32>
    %103 = arith.maximumf %101, %102 : vector<1x8xf32>
    %c0_146 = arith.constant 0 : index
    %c0_147 = arith.constant 0 : index
    %104 = vector.load %arg2[%c0_146, %c0_147] : memref<1x8xf32, #tpu.memory_space<vmem>>, vector<1x8xf32>
    %cst_148 = arith.constant 9.99999974E-6 : f32
    %105 = vector.broadcast %cst_148 : f32 to vector<1x8xf32>
    %106 = arith.addf %103, %105 : vector<1x8xf32>
    %107 = math.rsqrt %106 : vector<1x8xf32>
    %108 = arith.mulf %104, %107 : vector<1x8xf32>
    %c0_149 = arith.constant 0 : index
    %c0_150 = arith.constant 0 : index
    %109 = vector.load %arg3[%c0_149, %c0_150] : memref<1x8xf32, #tpu.memory_space<vmem>>, vector<1x8xf32>
    %110 = arith.mulf %97, %108 : vector<1x8xf32>
    %111 = arith.subf %109, %110 : vector<1x8xf32>
    %112 = vector.broadcast %108 : vector<1x8xf32> to vector<128x8xf32>
    %113 = arith.mulf %90, %112 : vector<128x8xf32>
    %114 = vector.broadcast %111 : vector<1x8xf32> to vector<128x8xf32>
    %115 = arith.addf %113, %114 : vector<128x8xf32>
    %cst_151 = arith.constant 0.000000e+00 : f32
    %116 = vector.broadcast %cst_151 : f32 to vector<128x8xf32>
    %117 = arith.maximumf %115, %116 : vector<128x8xf32>
    %cst_152 = arith.constant 0.000000e+00 : bf16
    %118 = vector.broadcast %cst_152 : bf16 to vector<2x1x10x8xbf16>
    %c0_153 = arith.constant 0 : index
    %c0_154 = arith.constant 0 : index
    %c0_155 = arith.constant 0 : index
    %c0_156 = arith.constant 0 : index
    %119 = vector.load %arg9[%c0_153, %c0_154, %c0_155, %c0_156] : memref<2x10x10x8xbf16, #tpu.memory_space<vmem>>, vector<2x1x10x8xbf16>
    tpu.vector_store %arg9[%c0_153, %c0_154, %c0_155, %c0_156], %118 {strides = array<i32>} : memref<2x10x10x8xbf16, #tpu.memory_space<vmem>>, vector<2x1x10x8xbf16>,
    %cst_157 = arith.constant 0.000000e+00 : bf16
    %120 = vector.broadcast %cst_157 : bf16 to vector<2x1x10x8xbf16>
    %c0_158 = arith.constant 0 : index
    %c9_159 = arith.constant 9 : index
    %c0_160 = arith.constant 0 : index
    %c0_161 = arith.constant 0 : index
    %121 = vector.load %arg9[%c0_158, %c9_159, %c0_160, %c0_161] : memref<2x10x10x8xbf16, #tpu.memory_space<vmem>>, vector<2x1x10x8xbf16>
    tpu.vector_store %arg9[%c0_158, %c9_159, %c0_160, %c0_161], %120 {strides = array<i32>} : memref<2x10x10x8xbf16, #tpu.memory_space<vmem>>, vector<2x1x10x8xbf16>,
    %cst_162 = arith.constant 0.000000e+00 : bf16
    %122 = vector.broadcast %cst_162 : bf16 to vector<2x10x1x8xbf16>
    %c0_163 = arith.constant 0 : index
    %c0_164 = arith.constant 0 : index
    %c0_165 = arith.constant 0 : index
    %c0_166 = arith.constant 0 : index
    %123 = vector.load %arg9[%c0_163, %c0_164, %c0_165, %c0_166] : memref<2x10x10x8xbf16, #tpu.memory_space<vmem>>, vector<2x10x1x8xbf16>
    tpu.vector_store %arg9[%c0_163, %c0_164, %c0_165, %c0_166], %122 {strides = array<i32>} : memref<2x10x10x8xbf16, #tpu.memory_space<vmem>>, vector<2x10x1x8xbf16>,
    %cst_167 = arith.constant 0.000000e+00 : bf16
    %124 = vector.broadcast %cst_167 : bf16 to vector<2x10x1x8xbf16>
    %c0_168 = arith.constant 0 : index
    %c0_169 = arith.constant 0 : index
    %c9_170 = arith.constant 9 : index
    %c0_171 = arith.constant 0 : index
    %125 = vector.load %arg9[%c0_168, %c0_169, %c9_170, %c0_171] : memref<2x10x10x8xbf16, #tpu.memory_space<vmem>>, vector<2x10x1x8xbf16>
    tpu.vector_store %arg9[%c0_168, %c0_169, %c9_170, %c0_171], %124 {strides = array<i32>} : memref<2x10x10x8xbf16, #tpu.memory_space<vmem>>, vector<2x10x1x8xbf16>,
    %126 = arith.truncf %117 : vector<128x8xf32> to vector<128x8xbf16>
    %127 = vector.shape_cast %126 : vector<128x8xbf16> to vector<2x8x8x8xbf16>
    %c0_172 = arith.constant 0 : index
    %c1_173 = arith.constant 1 : index
    %c1_174 = arith.constant 1 : index
    %c0_175 = arith.constant 0 : index
    %128 = vector.load %arg9[%c0_172, %c1_173, %c1_174, %c0_175] : memref<2x10x10x8xbf16, #tpu.memory_space<vmem>>, vector<2x8x8x8xbf16>
    tpu.vector_store %arg9[%c0_172, %c1_173, %c1_174, %c0_175], %127 {strides = array<i32>} : memref<2x10x10x8xbf16, #tpu.memory_space<vmem>>, vector<2x8x8x8xbf16>,
    %c0_176 = arith.constant 0 : index
    %c0_177 = arith.constant 0 : index
    %c0_178 = arith.constant 0 : index
    %c0_179 = arith.constant 0 : index
    %129 = vector.load %arg9[%c0_176, %c0_177, %c0_178, %c0_179] : memref<2x10x10x8xbf16, #tpu.memory_space<vmem>>, vector<2x8x8x8xbf16>
    %130 = vector.shape_cast %129 : vector<2x8x8x8xbf16> to vector<128x8xbf16>
    %c0_180 = arith.constant 0 : index
    %c0_181 = arith.constant 0 : index
    %c0_182 = arith.constant 0 : index
    %131 = vector.load %arg4[%c0_180, %c0_181, %c0_182] : memref<9x8x8xbf16, #tpu.memory_space<vmem>>, vector<1x8x8xbf16>
    %132 = vector.shape_cast %131 : vector<1x8x8xbf16> to vector<8x8xbf16>
    %cst_183 = arith.constant dense<0.000000e+00> : vector<128x8xf32>
    %133 = tpu.matmul %130, %132, %cst_183 {dimension_numbers = #tpu.dot_dimension_numbers<[1], [0], [0], [1], [0, 0, 1, 1], [], []>} : vector<128x8xbf16>, vector<8x8xbf16>, vector<128x8xf32> -> vector<128x8xf32>
    %c0_184 = arith.constant 0 : index
    %c0_185 = arith.constant 0 : index
    %134 = vector.load %arg7[%c0_184, %c0_185] : memref<128x8xf32, #tpu.memory_space<vmem>>, vector<128x8xf32>
    tpu.vector_store %arg7[%c0_184, %c0_185], %133 {strides = array<i32>} : memref<128x8xf32, #tpu.memory_space<vmem>>, vector<128x8xf32>,
    %c0_186 = arith.constant 0 : index
    %c0_187 = arith.constant 0 : index
    %c1_188 = arith.constant 1 : index
    %c0_189 = arith.constant 0 : index
    %135 = vector.load %arg9[%c0_186, %c0_187, %c1_188, %c0_189] : memref<2x10x10x8xbf16, #tpu.memory_space<vmem>>, vector<2x8x8x8xbf16>
    %136 = vector.shape_cast %135 : vector<2x8x8x8xbf16> to vector<128x8xbf16>
    %c1_190 = arith.constant 1 : index
    %c0_191 = arith.constant 0 : index
    %c0_192 = arith.constant 0 : index
    %137 = vector.load %arg4[%c1_190, %c0_191, %c0_192] : memref<9x8x8xbf16, #tpu.memory_space<vmem>>, vector<1x8x8xbf16>
    %138 = vector.shape_cast %137 : vector<1x8x8xbf16> to vector<8x8xbf16>
    %cst_193 = arith.constant dense<0.000000e+00> : vector<128x8xf32>
    %139 = tpu.matmul %136, %138, %cst_193 {dimension_numbers = #tpu.dot_dimension_numbers<[1], [0], [0], [1], [0, 0, 1, 1], [], []>} : vector<128x8xbf16>, vector<8x8xbf16>, vector<128x8xf32> -> vector<128x8xf32>
    %c0_194 = arith.constant 0 : index
    %c0_195 = arith.constant 0 : index
    %140 = vector.load %arg7[%c0_194, %c0_195] : memref<128x8xf32, #tpu.memory_space<vmem>>, vector<128x8xf32>
    %141 = arith.addf %140, %139 : vector<128x8xf32>
    %c0_196 = arith.constant 0 : index
    %c0_197 = arith.constant 0 : index
    %142 = vector.load %arg7[%c0_196, %c0_197] : memref<128x8xf32, #tpu.memory_space<vmem>>, vector<128x8xf32>
    tpu.vector_store %arg7[%c0_196, %c0_197], %141 {strides = array<i32>} : memref<128x8xf32, #tpu.memory_space<vmem>>, vector<128x8xf32>,
    %c0_198 = arith.constant 0 : index
    %c0_199 = arith.constant 0 : index
    %c2_200 = arith.constant 2 : index
    %c0_201 = arith.constant 0 : index
    %143 = vector.load %arg9[%c0_198, %c0_199, %c2_200, %c0_201] : memref<2x10x10x8xbf16, #tpu.memory_space<vmem>>, vector<2x8x8x8xbf16>
    %144 = vector.shape_cast %143 : vector<2x8x8x8xbf16> to vector<128x8xbf16>
    %c2_202 = arith.constant 2 : index
    %c0_203 = arith.constant 0 : index
    %c0_204 = arith.constant 0 : index
    %145 = vector.load %arg4[%c2_202, %c0_203, %c0_204] : memref<9x8x8xbf16, #tpu.memory_space<vmem>>, vector<1x8x8xbf16>
    %146 = vector.shape_cast %145 : vector<1x8x8xbf16> to vector<8x8xbf16>
    %cst_205 = arith.constant dense<0.000000e+00> : vector<128x8xf32>
    %147 = tpu.matmul %144, %146, %cst_205 {dimension_numbers = #tpu.dot_dimension_numbers<[1], [0], [0], [1], [0, 0, 1, 1], [], []>} : vector<128x8xbf16>, vector<8x8xbf16>, vector<128x8xf32> -> vector<128x8xf32>
    %c0_206 = arith.constant 0 : index
    %c0_207 = arith.constant 0 : index
    %148 = vector.load %arg7[%c0_206, %c0_207] : memref<128x8xf32, #tpu.memory_space<vmem>>, vector<128x8xf32>
    %149 = arith.addf %148, %147 : vector<128x8xf32>
    %c0_208 = arith.constant 0 : index
    %c0_209 = arith.constant 0 : index
    %150 = vector.load %arg7[%c0_208, %c0_209] : memref<128x8xf32, #tpu.memory_space<vmem>>, vector<128x8xf32>
    tpu.vector_store %arg7[%c0_208, %c0_209], %149 {strides = array<i32>} : memref<128x8xf32, #tpu.memory_space<vmem>>, vector<128x8xf32>,
    %c0_210 = arith.constant 0 : index
    %c1_211 = arith.constant 1 : index
    %c0_212 = arith.constant 0 : index
    %c0_213 = arith.constant 0 : index
    %151 = vector.load %arg9[%c0_210, %c1_211, %c0_212, %c0_213] : memref<2x10x10x8xbf16, #tpu.memory_space<vmem>>, vector<2x8x8x8xbf16>
    %152 = vector.shape_cast %151 : vector<2x8x8x8xbf16> to vector<128x8xbf16>
    %c3_214 = arith.constant 3 : index
    %c0_215 = arith.constant 0 : index
    %c0_216 = arith.constant 0 : index
    %153 = vector.load %arg4[%c3_214, %c0_215, %c0_216] : memref<9x8x8xbf16, #tpu.memory_space<vmem>>, vector<1x8x8xbf16>
    %154 = vector.shape_cast %153 : vector<1x8x8xbf16> to vector<8x8xbf16>
    %cst_217 = arith.constant dense<0.000000e+00> : vector<128x8xf32>
    %155 = tpu.matmul %152, %154, %cst_217 {dimension_numbers = #tpu.dot_dimension_numbers<[1], [0], [0], [1], [0, 0, 1, 1], [], []>} : vector<128x8xbf16>, vector<8x8xbf16>, vector<128x8xf32> -> vector<128x8xf32>
    %c0_218 = arith.constant 0 : index
    %c0_219 = arith.constant 0 : index
    %156 = vector.load %arg7[%c0_218, %c0_219] : memref<128x8xf32, #tpu.memory_space<vmem>>, vector<128x8xf32>
    %157 = arith.addf %156, %155 : vector<128x8xf32>
    %c0_220 = arith.constant 0 : index
    %c0_221 = arith.constant 0 : index
    %158 = vector.load %arg7[%c0_220, %c0_221] : memref<128x8xf32, #tpu.memory_space<vmem>>, vector<128x8xf32>
    tpu.vector_store %arg7[%c0_220, %c0_221], %157 {strides = array<i32>} : memref<128x8xf32, #tpu.memory_space<vmem>>, vector<128x8xf32>,
    %c0_222 = arith.constant 0 : index
    %c1_223 = arith.constant 1 : index
    %c1_224 = arith.constant 1 : index
    %c0_225 = arith.constant 0 : index
    %159 = vector.load %arg9[%c0_222, %c1_223, %c1_224, %c0_225] : memref<2x10x10x8xbf16, #tpu.memory_space<vmem>>, vector<2x8x8x8xbf16>
    %160 = vector.shape_cast %159 : vector<2x8x8x8xbf16> to vector<128x8xbf16>
    %c4_226 = arith.constant 4 : index
    %c0_227 = arith.constant 0 : index
    %c0_228 = arith.constant 0 : index
    %161 = vector.load %arg4[%c4_226, %c0_227, %c0_228] : memref<9x8x8xbf16, #tpu.memory_space<vmem>>, vector<1x8x8xbf16>
    %162 = vector.shape_cast %161 : vector<1x8x8xbf16> to vector<8x8xbf16>
    %cst_229 = arith.constant dense<0.000000e+00> : vector<128x8xf32>
    %163 = tpu.matmul %160, %162, %cst_229 {dimension_numbers = #tpu.dot_dimension_numbers<[1], [0], [0], [1], [0, 0, 1, 1], [], []>} : vector<128x8xbf16>, vector<8x8xbf16>, vector<128x8xf32> -> vector<128x8xf32>
    %c0_230 = arith.constant 0 : index
    %c0_231 = arith.constant 0 : index
    %164 = vector.load %arg7[%c0_230, %c0_231] : memref<128x8xf32, #tpu.memory_space<vmem>>, vector<128x8xf32>
    %165 = arith.addf %164, %163 : vector<128x8xf32>
    %c0_232 = arith.constant 0 : index
    %c0_233 = arith.constant 0 : index
    %166 = vector.load %arg7[%c0_232, %c0_233] : memref<128x8xf32, #tpu.memory_space<vmem>>, vector<128x8xf32>
    tpu.vector_store %arg7[%c0_232, %c0_233], %165 {strides = array<i32>} : memref<128x8xf32, #tpu.memory_space<vmem>>, vector<128x8xf32>,
    %c0_234 = arith.constant 0 : index
    %c1_235 = arith.constant 1 : index
    %c2_236 = arith.constant 2 : index
    %c0_237 = arith.constant 0 : index
    %167 = vector.load %arg9[%c0_234, %c1_235, %c2_236, %c0_237] : memref<2x10x10x8xbf16, #tpu.memory_space<vmem>>, vector<2x8x8x8xbf16>
    %168 = vector.shape_cast %167 : vector<2x8x8x8xbf16> to vector<128x8xbf16>
    %c5_238 = arith.constant 5 : index
    %c0_239 = arith.constant 0 : index
    %c0_240 = arith.constant 0 : index
    %169 = vector.load %arg4[%c5_238, %c0_239, %c0_240] : memref<9x8x8xbf16, #tpu.memory_space<vmem>>, vector<1x8x8xbf16>
    %170 = vector.shape_cast %169 : vector<1x8x8xbf16> to vector<8x8xbf16>
    %cst_241 = arith.constant dense<0.000000e+00> : vector<128x8xf32>
    %171 = tpu.matmul %168, %170, %cst_241 {dimension_numbers = #tpu.dot_dimension_numbers<[1], [0], [0], [1], [0, 0, 1, 1], [], []>} : vector<128x8xbf16>, vector<8x8xbf16>, vector<128x8xf32> -> vector<128x8xf32>
    %c0_242 = arith.constant 0 : index
    %c0_243 = arith.constant 0 : index
    %172 = vector.load %arg7[%c0_242, %c0_243] : memref<128x8xf32, #tpu.memory_space<vmem>>, vector<128x8xf32>
    %173 = arith.addf %172, %171 : vector<128x8xf32>
    %c0_244 = arith.constant 0 : index
    %c0_245 = arith.constant 0 : index
    %174 = vector.load %arg7[%c0_244, %c0_245] : memref<128x8xf32, #tpu.memory_space<vmem>>, vector<128x8xf32>
    tpu.vector_store %arg7[%c0_244, %c0_245], %173 {strides = array<i32>} : memref<128x8xf32, #tpu.memory_space<vmem>>, vector<128x8xf32>,
    %c0_246 = arith.constant 0 : index
    %c2_247 = arith.constant 2 : index
    %c0_248 = arith.constant 0 : index
    %c0_249 = arith.constant 0 : index
    %175 = vector.load %arg9[%c0_246, %c2_247, %c0_248, %c0_249] : memref<2x10x10x8xbf16, #tpu.memory_space<vmem>>, vector<2x8x8x8xbf16>
    %176 = vector.shape_cast %175 : vector<2x8x8x8xbf16> to vector<128x8xbf16>
    %c6_250 = arith.constant 6 : index
    %c0_251 = arith.constant 0 : index
    %c0_252 = arith.constant 0 : index
    %177 = vector.load %arg4[%c6_250, %c0_251, %c0_252] : memref<9x8x8xbf16, #tpu.memory_space<vmem>>, vector<1x8x8xbf16>
    %178 = vector.shape_cast %177 : vector<1x8x8xbf16> to vector<8x8xbf16>
    %cst_253 = arith.constant dense<0.000000e+00> : vector<128x8xf32>
    %179 = tpu.matmul %176, %178, %cst_253 {dimension_numbers = #tpu.dot_dimension_numbers<[1], [0], [0], [1], [0, 0, 1, 1], [], []>} : vector<128x8xbf16>, vector<8x8xbf16>, vector<128x8xf32> -> vector<128x8xf32>
    %c0_254 = arith.constant 0 : index
    %c0_255 = arith.constant 0 : index
    %180 = vector.load %arg7[%c0_254, %c0_255] : memref<128x8xf32, #tpu.memory_space<vmem>>, vector<128x8xf32>
    %181 = arith.addf %180, %179 : vector<128x8xf32>
    %c0_256 = arith.constant 0 : index
    %c0_257 = arith.constant 0 : index
    %182 = vector.load %arg7[%c0_256, %c0_257] : memref<128x8xf32, #tpu.memory_space<vmem>>, vector<128x8xf32>
    tpu.vector_store %arg7[%c0_256, %c0_257], %181 {strides = array<i32>} : memref<128x8xf32, #tpu.memory_space<vmem>>, vector<128x8xf32>,
    %c0_258 = arith.constant 0 : index
    %c2_259 = arith.constant 2 : index
    %c1_260 = arith.constant 1 : index
    %c0_261 = arith.constant 0 : index
    %183 = vector.load %arg9[%c0_258, %c2_259, %c1_260, %c0_261] : memref<2x10x10x8xbf16, #tpu.memory_space<vmem>>, vector<2x8x8x8xbf16>
    %184 = vector.shape_cast %183 : vector<2x8x8x8xbf16> to vector<128x8xbf16>
    %c7_262 = arith.constant 7 : index
    %c0_263 = arith.constant 0 : index
    %c0_264 = arith.constant 0 : index
    %185 = vector.load %arg4[%c7_262, %c0_263, %c0_264] : memref<9x8x8xbf16, #tpu.memory_space<vmem>>, vector<1x8x8xbf16>
    %186 = vector.shape_cast %185 : vector<1x8x8xbf16> to vector<8x8xbf16>
    %cst_265 = arith.constant dense<0.000000e+00> : vector<128x8xf32>
    %187 = tpu.matmul %184, %186, %cst_265 {dimension_numbers = #tpu.dot_dimension_numbers<[1], [0], [0], [1], [0, 0, 1, 1], [], []>} : vector<128x8xbf16>, vector<8x8xbf16>, vector<128x8xf32> -> vector<128x8xf32>
    %c0_266 = arith.constant 0 : index
    %c0_267 = arith.constant 0 : index
    %188 = vector.load %arg7[%c0_266, %c0_267] : memref<128x8xf32, #tpu.memory_space<vmem>>, vector<128x8xf32>
    %189 = arith.addf %188, %187 : vector<128x8xf32>
    %c0_268 = arith.constant 0 : index
    %c0_269 = arith.constant 0 : index
    %190 = vector.load %arg7[%c0_268, %c0_269] : memref<128x8xf32, #tpu.memory_space<vmem>>, vector<128x8xf32>
    tpu.vector_store %arg7[%c0_268, %c0_269], %189 {strides = array<i32>} : memref<128x8xf32, #tpu.memory_space<vmem>>, vector<128x8xf32>,
    %c0_270 = arith.constant 0 : index
    %c2_271 = arith.constant 2 : index
    %c2_272 = arith.constant 2 : index
    %c0_273 = arith.constant 0 : index
    %191 = vector.load %arg9[%c0_270, %c2_271, %c2_272, %c0_273] : memref<2x10x10x8xbf16, #tpu.memory_space<vmem>>, vector<2x8x8x8xbf16>
    %192 = vector.shape_cast %191 : vector<2x8x8x8xbf16> to vector<128x8xbf16>
    %c8_274 = arith.constant 8 : index
    %c0_275 = arith.constant 0 : index
    %c0_276 = arith.constant 0 : index
    %193 = vector.load %arg4[%c8_274, %c0_275, %c0_276] : memref<9x8x8xbf16, #tpu.memory_space<vmem>>, vector<1x8x8xbf16>
    %194 = vector.shape_cast %193 : vector<1x8x8xbf16> to vector<8x8xbf16>
    %cst_277 = arith.constant dense<0.000000e+00> : vector<128x8xf32>
    %195 = tpu.matmul %192, %194, %cst_277 {dimension_numbers = #tpu.dot_dimension_numbers<[1], [0], [0], [1], [0, 0, 1, 1], [], []>} : vector<128x8xbf16>, vector<8x8xbf16>, vector<128x8xf32> -> vector<128x8xf32>
    %c0_278 = arith.constant 0 : index
    %c0_279 = arith.constant 0 : index
    %196 = vector.load %arg7[%c0_278, %c0_279] : memref<128x8xf32, #tpu.memory_space<vmem>>, vector<128x8xf32>
    %197 = arith.addf %196, %195 : vector<128x8xf32>
    %c0_280 = arith.constant 0 : index
    %c0_281 = arith.constant 0 : index
    %198 = vector.load %arg7[%c0_280, %c0_281] : memref<128x8xf32, #tpu.memory_space<vmem>>, vector<128x8xf32>
    tpu.vector_store %arg7[%c0_280, %c0_281], %197 {strides = array<i32>} : memref<128x8xf32, #tpu.memory_space<vmem>>, vector<128x8xf32>,
    %c0_282 = arith.constant 0 : index
    %c0_283 = arith.constant 0 : index
    %199 = vector.load %arg7[%c0_282, %c0_283] : memref<128x8xf32, #tpu.memory_space<vmem>>, vector<128x8xf32>
    %cst_284 = arith.constant dense<0.000000e+00> : vector<8xf32>
    %200 = vector.multi_reduction <add>, %199, %cst_284 [0] : vector<128x8xf32> to vector<8xf32>
    %201 = vector.shape_cast %200 : vector<8xf32> to vector<1x8xf32>
    %202 = arith.mulf %199, %199 : vector<128x8xf32>
    %cst_285 = arith.constant dense<0.000000e+00> : vector<8xf32>
    %203 = vector.multi_reduction <add>, %202, %cst_285 [0] : vector<128x8xf32> to vector<8xf32>
    %204 = vector.shape_cast %203 : vector<8xf32> to vector<1x8xf32>
    %cst_286 = arith.constant 7.812500e-03 : f32
    %205 = vector.broadcast %cst_286 : f32 to vector<1x8xf32>
    %206 = arith.mulf %201, %205 : vector<1x8xf32>
    %cst_287 = arith.constant 7.812500e-03 : f32
    %207 = vector.broadcast %cst_287 : f32 to vector<1x8xf32>
    %208 = arith.mulf %204, %207 : vector<1x8xf32>
    %209 = arith.mulf %206, %206 : vector<1x8xf32>
    %210 = arith.subf %208, %209 : vector<1x8xf32>
    %cst_288 = arith.constant 0.000000e+00 : f32
    %211 = vector.broadcast %cst_288 : f32 to vector<1x8xf32>
    %212 = arith.maximumf %210, %211 : vector<1x8xf32>
    %c0_289 = arith.constant 0 : index
    %c0_290 = arith.constant 0 : index
    %213 = vector.load %arg5[%c0_289, %c0_290] : memref<1x8xf32, #tpu.memory_space<vmem>>, vector<1x8xf32>
    %cst_291 = arith.constant 9.99999974E-6 : f32
    %214 = vector.broadcast %cst_291 : f32 to vector<1x8xf32>
    %215 = arith.addf %212, %214 : vector<1x8xf32>
    %216 = math.rsqrt %215 : vector<1x8xf32>
    %217 = arith.mulf %213, %216 : vector<1x8xf32>
    %c0_292 = arith.constant 0 : index
    %c0_293 = arith.constant 0 : index
    %218 = vector.load %arg6[%c0_292, %c0_293] : memref<1x8xf32, #tpu.memory_space<vmem>>, vector<1x8xf32>
    %219 = arith.mulf %206, %217 : vector<1x8xf32>
    %220 = arith.subf %218, %219 : vector<1x8xf32>
    %221 = vector.broadcast %217 : vector<1x8xf32> to vector<128x8xf32>
    %222 = arith.mulf %199, %221 : vector<128x8xf32>
    %223 = vector.broadcast %220 : vector<1x8xf32> to vector<128x8xf32>
    %224 = arith.addf %222, %223 : vector<128x8xf32>
    %cst_294 = arith.constant 0.000000e+00 : f32
    %225 = vector.broadcast %cst_294 : f32 to vector<128x8xf32>
    %226 = arith.maximumf %224, %225 : vector<128x8xf32>
    %c0_295 = arith.constant 0 : index
    %c0_296 = arith.constant 0 : index
    %227 = vector.load %arg7[%c0_295, %c0_296] : memref<128x8xf32, #tpu.memory_space<vmem>>, vector<128x8xf32>
    tpu.vector_store %arg7[%c0_295, %c0_296], %226 {strides = array<i32>} : memref<128x8xf32, #tpu.memory_space<vmem>>, vector<128x8xf32>,
    return
  }
}

</mosaic_0001>

<bundles_post_ra>
// kernel: tpu_custom_call.1
= control target key start
LH: loop header
LB: loop body
LE: loop exit
PB: predicated region body
PF: predicated region fallthrough
CT: control target
= control target key end

     0   :  { %vm763_vm0 = vcmask 1041408   ;;  %vm286_vm1 = vcmask 27648   ;;  %vm288_vm2 = vcmask 24576   ;;  %v333_v0 = vld [vmem:[#allocation2 + $0x58] sm:$0x1]  ;;  %v7328_v4 = vmov 0   ;;  %s10408_s1 = inlined_call_operand.vmem [shape: bf16[9,4,8], index: 1, kind: input, shape index: {}]   ;;  %s10409_s0 = inlined_call_operand.vmem [shape: bf16[4,2,8,8,4], index: 0, kind: input, shape index: {}]   ;;  %s10410_s4 = inlined_call_operand.vmem [shape: bf16[9,8,8], index: 4, kind: input, shape index: {}]   ;;  %s10411_s2 = inlined_call_operand.vmem [shape: f32[1,8], index: 2, kind: input, shape index: {}]   ;;  %s10412_s3 = inlined_call_operand.vmem [shape: f32[1,8], index: 3, kind: input, shape index: {}]   ;;  %s10413_s7 = inlined_call_operand.vmem [shape: f32[128,8], index: 7, kind: output, shape index: {}]   ;;  %s10414_s5 = inlined_call_operand.vmem [shape: f32[1,8], index: 5, kind: input, shape index: {}]   ;;  %s10415_s6 = inlined_call_operand.vmem [shape: f32[1,8], index: 6, kind: input, shape index: {}]  }
   0x1   :  { %v697_v1 = vld [vmem:[%s10408_s1] sm:$0x3]  ;;  %290 = vst.msk [vmem:[#allocation2 + $0x50] sm:$0xf] %vm286_vm1, %v7328_v4  ;;  %vm298_vm3 = vsmask.f32 256 }
   0x2   :  { %v7289_v2 = vld [vmem:[%s10409_s0 + $0x20] sm:$0xff]   ;;  %v765_v5 = vsel %vm763_vm0, %v697_v1, 0  ;;  %v7390_v10 = vld [vmem:[%s10409_s0 + $0x28] sm:$0xff]   ;;  %vm7394_vm4 = vmand %vm288_vm2, %vm298_vm3  ;;  %vm360_vm5 = vsmask.f32 7938  ;;  %vm3439_vm7 = vcmask 57344  }
   0x3   :  { %v7297_v3 = vld [vmem:[%s10409_s0 + $0x60] sm:$0xff]   ;;  %v7176_v6 = vunpack.c.l.bf16 %v7289_v2  ;;  %7317 = vmatpush.bf16.msra.mxu2 %v765_v5  ;;  %287 = vst.msk [vmem:[#allocation2] sm:$0xf] %vm286_vm1, %v7328_v4  ;;  %774 = vmatpush.bf16.msra.mxu0 %v765_v5  ;;  %v7403_v14 = vld [vmem:[%s10409_s0 + $0x68] sm:$0xff]   ;;  %v334_v16 = vsel %vm7394_vm4, 0, %v333_v0  ;;  %vm7409_vm6 = vmand %vm288_vm2, %vm360_vm5  ;;  %v7177_v19 = vunpack.c.h.bf16 %v7289_v2  ;;  %v7180_v23 = vunpack.c.l.bf16 %v7390_v10 }
   0x4   :  { %v7208_v7 = vunpack.c.l.bf16 %v7297_v3  ;;  %v7305_v8 = vld [vmem:[%s10409_s0 + $0xa0] sm:$0xff]   ;;  %289 = vst.msk [vmem:[#allocation2 + $0x4] sm:$0x1] %vm288_vm2, %v7328_v4  ;;  %v7209_v24 = vunpack.c.h.bf16 %v7297_v3  ;;  %v7426_v25 = vld [vmem:[%s10409_s0 + $0xa8] sm:$0xff]   ;;  %vm7430_vm8 = vmand %vm3439_vm7, %vm298_vm3  ;;  %v7212_v29 = vunpack.c.l.bf16 %v7403_v14  ;;  %v7181_v46 = vunpack.c.h.bf16 %v7390_v10 }
   0x5   :  { %v7313_v9 = vld [vmem:[%s10409_s0 + $0xe0] sm:$0xff]   ;;  %v7240_v11 = vunpack.c.l.bf16 %v7305_v8  ;;  %335 = vst [vmem:[#allocation2 + $0x58] sm:$0x1] %v334_v16  ;;  %v7437_v28 = vld [vmem:[#allocation2 + $0x5c] sm:$0x1]  ;;  %v7241_v30 = vunpack.c.h.bf16 %v7305_v8  ;;  %v7244_v31 = vunpack.c.l.bf16 %v7426_v25  ;;  %v7444_v32 = vld [vmem:[%s10409_s0 + $0xe8] sm:$0xff]   ;;  %v7213_v57 = vunpack.c.h.bf16 %v7403_v14 }
   0x6   :  { %v7272_v12 = vunpack.c.l.bf16 %v7313_v9  ;;  %v100_v15 = vmax.f32 %v7176_v6, %v7208_v7  ;;  %v6727_v18 = vld [vmem:[%s10408_s1 + $0x4] sm:$0x3]  ;;  %v6702_v22 = vld [vmem:[%s10408_s1 + $0x2] sm:$0x3]  ;;  %291 = vst.msk [vmem:[#allocation2 + $0x54] sm:$0x1] %vm288_vm2, %v7328_v4  ;;  %v101_v37 = vmax.f32 %v7177_v19, %v7209_v24  ;;  %v102_v38 = vmax.f32 %v7180_v23, %v7212_v29  ;;  %vm7510_vm9 = vmand %vm286_vm1, %vm360_vm5 }
   0x7   :  { %v1424_v21 = vsel %vm763_vm0, %v6727_v18, 0  ;;  %v1143_v27 = vsel %vm763_vm0, %v6702_v22, 0  ;;  %293 = vst.msk [vmem:[#allocation2 + $0x48] sm:$0xf] %vm286_vm1, %v7328_v4  ;;  %v396_v34 = vsel %vm7409_vm6, 0, %v7437_v28  ;;  %v7454_v35 = vld [vmem:[%s10409_s0] sm:$0xff]   ;;  %v7273_v39 = vunpack.c.h.bf16 %v7313_v9 }
   0x8   :  { %v198_v20 = vmax.f32 %v7240_v11, %v7272_v12  ;;  %1433 = vmatpush.bf16.msrb.mxu2 %v1424_v21  ;;  %7318 = vmatpush.bf16.msra.mxu3 %v1143_v27  ;;  %v330_v36 = vld [vmem:[#allocation2 + $0x50] sm:$0x1]  ;;  %294 = vst.msk [vmem:[#allocation2 + $0x4c] sm:$0x1] %vm288_vm2, %v7328_v4  ;;  %v7276_v40 = vunpack.c.l.bf16 %v7444_v32  ;;  %v7463_v43 = vld [vmem:[#allocation2 + $0x60] sm:$0x1]  ;;  %v7160_v44 = vunpack.c.l.bf16 %v7454_v35  ;;  %v7505_v3 = vmax.f32 %v7181_v46, %v7213_v57 }
   0x9   :  { %1152 = vmatpush.bf16.msra.mxu1 %v1143_v27  ;;  %v331_v42 = vsel %vm7394_vm4, 0, %v330_v36  ;;  %295 = vst.msk [vmem:[#allocation2 + $0x98] sm:$0xf] %vm286_vm1, %v7328_v4  ;;  %v7469_v45 = vld [vmem:[%s10409_s0 + $0x40] sm:$0xff]   ;;  %v199_v47 = vmax.f32 %v7241_v30, %v7273_v39  ;;  %v337_v49 = vsel %vm7394_vm4, 0, %v7463_v43  ;;  %v7245_v5 = vunpack.c.h.bf16 %v7426_v25  ;;  %v7522_v12 = vld [vmem:[%s10409_s0 + $0x30] sm:$0xff]  }
   0xa   :  { %v262_v33 = vmax.f32 %v100_v15, %v198_v20  ;;  %332 = vst [vmem:[#allocation2 + $0x50] sm:$0x1] %v331_v42  ;;  %v200_v48 = vmax.f32 %v7244_v31, %v7276_v40  ;;  %v7475_v50 = vld [vmem:[#allocation2 + $0x68] sm:$0x1]  ;;  %v7192_v51 = vunpack.c.l.bf16 %v7469_v45  ;;  %v7481_v52 = vld [vmem:[%s10409_s0 + $0x80] sm:$0xff]   ;;  %v7184_v19 = vunpack.c.l.bf16 %v7522_v12  ;;  %v7571_v57 = vld [vmem:[%s10409_s0 + $0xf0] sm:$0xff]  }
   0xb   :  { %296 = vst.msk [vmem:[#allocation2 + $0x9c] sm:$0x1] %vm288_vm2, %v7328_v4  ;;  %v6736_v55 = vld [vmem:[%s10408_s1 + $0x6] sm:$0x3]  ;;  %v7224_v56 = vunpack.c.l.bf16 %v7481_v52  ;;  %v263_v60 = vmax.f32 %v101_v37, %v199_v47  ;;  %v340_v62 = vsel %vm7394_vm4, 0, %v7475_v50  ;;  %vm738_vm12 = vcmask 31744  }
   0xc   :  { %v278_v41 = vpack.c.bf16 %v262_v33, %v262_v33  ;;  %v633_v58 = vld [vmem:[#allocation2 + $0x58] sm:$0xf]  ;;  %3440 = vst.msk [vmem:[#allocation3 + $0x4] sm:$0x1] %vm3439_vm7, %v7328_v4  ;;  %v1606_v59 = vsel %vm763_vm0, %v6736_v55, 0  ;;  %v264_v61 = vmax.f32 %v102_v38, %v200_v48  ;;  %v92_v1 = vmax.f32 %v7160_v44, %v7192_v51  ;;  %v7503_v2 = vld [vmem:[%s10409_s0 + $0xc0] sm:$0xff]  }
   0xd   :  { %3442 = vst.msk [vmem:[#allocation3 + $0x54] sm:$0x1] %vm3439_vm7, %v7328_v4  ;;  %v392_v0 = vld [vmem:[#allocation2 + $0x54] sm:$0x1]  ;;  %1615 = vmatpush.bf16.msrb.mxu3 %v1606_v59  ;;  %vm865_vm10 = vsmask.f32 3328  ;;  %v279_v8 = vpack.c.bf16 %v263_v60, %v263_v60  ;;  %v7256_v10 = vunpack.c.l.bf16 %v7503_v2  ;;  %v7277_v29 = vunpack.c.h.bf16 %v7444_v32 }
   0xe   :  { %v487_v53 = vshrl.u32 %v278_v41, 16  ;;  %v490_v54 = vshll.u32 %v278_v41, 16  ;;  %3445 = vst.msk [vmem:[#allocation3 + $0x4c] sm:$0x1] %vm3439_vm7, %v7328_v4  ;;  %v393_v7 = vsel %vm7409_vm6, 0, %v392_v0  ;;  %v280_v9 = vpack.c.bf16 %v264_v61, %v264_v61  ;;  %v7556_v44 = vld [vmem:[%s10409_s0 + $0xb0] sm:$0xff]  }
   0xf   :  { %vm866_vm11 = vsmask.f32 7440  ;;  %v300_v11 = vld [vmem:[#allocation2] sm:$0x1]  ;;  %3447 = vst.msk [vmem:[#allocation3 + $0x9c] sm:$0x1] %vm3439_vm7, %v7328_v4  ;;  %v190_v27 = vmax.f32 %v7224_v56, %v7256_v10  ;;  %v7161_v30 = vunpack.c.h.bf16 %v7454_v35  ;;  %v201_v32 = vmax.f32 %v7245_v5, %v7277_v29 }
  0x10   :  { %v7496_v63 = vrot.slane %v487_v53, 7  ;;  %v301_v16 = vsel %vm7394_vm4, 0, %v300_v11  ;;  %v303_v18 = vld [vmem:[#allocation2 + $0x8] sm:$0x1]  ;;  %394 = vst [vmem:[#allocation2 + $0x54] sm:$0x1] %v393_v7  ;;  %v7193_v35 = vunpack.c.h.bf16 %v7469_v45  ;;  %v7248_v56 = vunpack.c.l.bf16 %v7556_v44  ;;  %vm7583_vm13 = vmor %vm865_vm10, %vm866_vm11 }
  0x11   :  { %v495_v20 = vshrl.u32 %v279_v8, 16  ;;  %v498_v21 = vshll.u32 %v279_v8, 16  ;;  %v503_v22 = vshrl.u32 %v280_v9, 16  ;;  %v506_v23 = vshll.u32 %v280_v9, 16  ;;  %397 = vst [vmem:[#allocation2 + $0x5c] sm:$0x1] %v396_v34 }
  0x12   :  { %v492_v14 = vor.u32 %v490_v54, %v7496_v63  ;;  %v493_v15 = vrot.slane %v7496_v63, 4  ;;  %v849_v25 = vld [vmem:[#allocation2 + $0x50] sm:$0xf]  ;;  %338 = vst [vmem:[#allocation2 + $0x60] sm:$0x1] %v337_v49  ;;  %v254_v38 = vmax.f32 %v92_v1, %v190_v27  ;;  %v304_v39 = vsel %vm7394_vm4, 0, %v303_v18 }
  0x13   :  { %v981_v31 = vshrl.u32 %v849_v25, 16  ;;  %v984_v33 = vshll.u32 %v849_v25, 16  ;;  %v7539_v36 = vrot.slane %v495_v20, 7  ;;  %v7541_v37 = vrot.slane %v503_v22, 7  ;;  %v362_v28 = vld [vmem:[#allocation2 + $0x4] sm:$0x1] }
  0x14   :  { %v634_v24 = vsel %vm7510_vm9, %v492_v14, %v633_v58  ;;  %v7548_v34 = vld [vmem:[%s10409_s0 + $0x70] sm:$0xff]   ;;  %341 = vst [vmem:[#allocation2 + $0x68] sm:$0x1] %v340_v62  ;;  %v270_v49 = vpack.c.bf16 %v254_v38, %v254_v38  ;;  %v363_v45 = vsel %vm7409_vm6, 0, %v362_v28  ;;  %v365_v50 = vld [vmem:[#allocation2 + $0xc] sm:$0x1]  ;;  %v7280_v61 = vunpack.c.l.bf16 %v7571_v57 }
  0x15   :  { %635 = vst [vmem:[#allocation2 + $0x58] sm:$0xf] %v634_v24  ;;  %v983_v40 = vrot.slane %v981_v31, 4  ;;  %v986_v41 = vrot.slane %v984_v33, 5  ;;  %v500_v42 = vor.u32 %v498_v21, %v7539_v36  ;;  %v501_v43 = vrot.slane %v7539_v36, 4  ;;  %v7595_v29 = vld [vmem:[%s10409_s0 + $0x8] sm:$0xff]  }
  0x16   :  { %v6680_v46 = vld [vmem:[#allocation2 + $0x50] sm:$0xf]  ;;  %v508_v47 = vor.u32 %v506_v23, %v7541_v37  ;;  %v509_v48 = vrot.slane %v7541_v37, 4  ;;  %302 = vst [vmem:[#allocation2] sm:$0x1] %v301_v16  ;;  %v366_v53 = vsel %vm7409_vm6, 0, %v365_v50  ;;  %v7216_v55 = vunpack.c.l.bf16 %v7548_v34 }
  0x17   :  { %v987_v51 = vor.u32 %v986_v41, %v983_v40  ;;  %305 = vst [vmem:[#allocation2 + $0x8] sm:$0x1] %v304_v39  ;;  %v7564_v54 = vld [vmem:[#allocation2 + $0x64] sm:$0x1]  ;;  %v850_v58 = vld [vmem:[#allocation2 + $0x54] sm:$0x1]  ;;  %v265_v62 = vmax.f32 %v7505_v3, %v201_v32  ;;  %v7575_v8 = vmax.f32 %v7161_v30, %v7193_v35  ;;  %v202_v18 = vmax.f32 %v7248_v56, %v7280_v61 }
  0x18   :  { %v423_v59 = vshrl.u32 %v270_v49, 16  ;;  %v426_v60 = vshll.u32 %v270_v49, 16  ;;  %364 = vst [vmem:[#allocation2 + $0x4] sm:$0x1] %v363_v45  ;;  %v636_v0 = vld [vmem:[#allocation2 + $0x5c] sm:$0x1]  ;;  %v104_v7 = vmax.f32 %v7184_v19, %v7216_v55 }
  0x19   :  { %v988_v1 = vrot.slane %v987_v51, 4  ;;  %v990_v5 = vshll.u32 %v850_v58, 16  ;;  %367 = vst [vmem:[#allocation2 + $0xc] sm:$0x1] %v366_v53  ;;  %v637_v10 = vsel %vm7394_vm4, %v493_v15, %v636_v0  ;;  %v399_v16 = vsel %vm7409_vm6, 0, %v7564_v54  ;;  %v7605_v28 = vld [vmem:[%s10409_s0 + $0x48] sm:$0xff]  }
  0x1a   :  { %v425_v3 = vrot.slane %v423_v59, 7  ;;  %638 = vst [vmem:[#allocation2 + $0x5c] sm:$0x1] %v637_v10  ;;  %v639_v22 = vld [vmem:[#allocation2 + $0x60] sm:$0xf]  ;;  %v266_v25 = vmax.f32 %v104_v7, %v202_v18  ;;  %v7590_v27 = vpack.c.bf16 %v265_v62, %v265_v62  ;;  %v7164_v53 = vunpack.c.l.bf16 %v7595_v29  ;;  %v7625_v0 = vld [vmem:[%s10409_s0 + $0x88] sm:$0xff]  }
  0x1b   :  { %v992_v20 = vrot.slane %v990_v5, 5  ;;  %v645_v15 = vld [vmem:[#allocation2 + $0x68] sm:$0xf]  ;;  %v640_v38 = vsel %vm7510_vm9, %v500_v42, %v639_v22  ;;  %v401_v50 = vld [vmem:[#allocation2 + $0x6c] sm:$0x1]  ;;  %v7225_v58 = vunpack.c.h.bf16 %v7481_v52  ;;  %v7257_v10 = vunpack.c.h.bf16 %v7503_v2 }
  0x1c   :  { %v7114_v9 = vld [vmem:[#allocation2 + $0x54] sm:$0xf0]  ;;  %v428_v23 = vor.u32 %v426_v60, %v425_v3  ;;  %v429_v24 = vrot.slane %v425_v3, 4  ;;  %641 = vst [vmem:[#allocation2 + $0x60] sm:$0xf] %v640_v38  ;;  %v646_v35 = vsel %vm7510_vm9, %v508_v47, %v645_v15  ;;  %v7613_v51 = vpack.c.bf16 %v266_v25, %v266_v25 }
  0x1d   :  { %v851_v11 = vld [vmem:[#allocation2 + $0x58] sm:$0xf]  ;;  %v6681_v19 = vor.u32 %v7114_v9, %v6680_v46  ;;  %v993_v30 = vsel %vm7583_vm13, %v988_v1, %v992_v20  ;;  %v833_v39 = vld [vmem:[#allocation2] sm:$0xf]  ;;  %647 = vst [vmem:[#allocation2 + $0x68] sm:$0xf] %v646_v35  ;;  %v7196_v47 = vunpack.c.l.bf16 %v7605_v28  ;;  %v7228_v9 = vunpack.c.l.bf16 %v7625_v0 }
  0x1e   :  { %v995_v63 = vshrl.u32 %v851_v11, 16  ;;  %v998_v21 = vshll.u32 %v851_v11, 16  ;;  %v7607_v32 = vunpack.c.l.b16 %v993_v30  ;;  %v585_v40 = vld [vmem:[#allocation2 + $0x8] sm:$0xf]  ;;  %v869_v41 = vshrl.u32 %v833_v39, 16 }
  0x1f   :  { %6698 = vmatmul.msk.bf16.vlgmr.msra.gmra.mxu2 %vm738_vm12, %v6681_v19  ;;  %v872_v46 = vshll.u32 %v833_v39, 16  ;;  %v586_v42 = vsel %vm7510_vm9, %v428_v23, %v585_v40  ;;  %v834_v45 = vld [vmem:[#allocation2 + $0x4] sm:$0x1]  ;;  %400 = vst [vmem:[#allocation2 + $0x64] sm:$0x1] %v399_v16  ;;  %v402_v62 = vsel %vm7409_vm6, 0, %v401_v50  ;;  %v7630_v7 = vmax.f32 %v7164_v53, %v7196_v47 }
  0x20   :  { %v997_v31 = vrot.slane %v995_v63, 4  ;;  %v1000_v33 = vrot.slane %v998_v21, 5  ;;  %587 = vst [vmem:[#allocation2 + $0x8] sm:$0xf] %v586_v42  ;;  %v588_v54 = vld [vmem:[#allocation2 + $0xc] sm:$0x1]  ;;  %v191_v22 = vmax.f32 %v7225_v58, %v7257_v10  ;;  %v7185_v15 = vunpack.c.h.bf16 %v7522_v12 }
  0x21   :  { %v871_v55 = vrot.slane %v869_v41, 4  ;;  %v874_v56 = vrot.slane %v872_v46, 5  ;;  %v589_v60 = vsel %vm7394_vm4, %v429_v24, %v588_v54  ;;  %v878_v61 = vshll.u32 %v834_v45, 16  ;;  %v852_v1 = vld [vmem:[#allocation2 + $0x5c] sm:$0x1] }
  0x22   :  { %v1001_v49 = vor.u32 %v1000_v33, %v997_v31  ;;  %590 = vst [vmem:[#allocation2 + $0xc] sm:$0x1] %v589_v60  ;;  %v6777_v52 = vld [vmem:[%s10408_s1 + $0x8] sm:$0x3]  ;;  %v1004_v11 = vshll.u32 %v852_v1, 16  ;;  %v511_v18 = vshrl.u32 %v7590_v27, 16  ;;  %v7217_v30 = vunpack.c.h.bf16 %v7548_v34 }
  0x23   :  { %v875_v5 = vor.u32 %v874_v56, %v871_v55  ;;  %v880_v3 = vrot.slane %v878_v61, 5  ;;  %403 = vst [vmem:[#allocation2 + $0x6c] sm:$0x1] %v402_v62  ;;  %v2012_v16 = vsel %vm763_vm0, %v6777_v52, 0  ;;  %v6664_v19 = vld [vmem:[#allocation2] sm:$0xf]  ;;  %v7249_v31 = vunpack.c.h.bf16 %v7556_v44 }
  0x24   :  { %v1002_v59 = vrot.slane %v1001_v49, 4  ;;  %2021 = vmatpush.bf16.msrb.mxu0 %v2012_v16  ;;  %v342_v63 = vld [vmem:[#allocation2 + $0x70] sm:$0x1]  ;;  %v514_v21 = vshll.u32 %v7590_v27, 16  ;;  %v1006_v23 = vrot.slane %v1004_v11, 5  ;;  %v255_v41 = vmax.f32 %v7575_v8, %v191_v22 }
  0x25   :  { %v876_v20 = vrot.slane %v875_v5, 4  ;;  %v6684_v24 = vld [vmem:[#allocation2 + $0x60] sm:$0xf]  ;;  %v343_v2 = vsel %vm7394_vm4, 0, %v342_v63  ;;  %v7115_v33 = vld [vmem:[#allocation2 + $0x64] sm:$0xf0] }
  0x26   :  { %v853_v25 = vld [vmem:[#allocation2 + $0x60] sm:$0xf]  ;;  %v855_v39 = vld [vmem:[#allocation2 + $0x68] sm:$0xf]  ;;  %v345_v40 = vld [vmem:[#allocation2 + $0x78] sm:$0x1]  ;;  %v1007_v46 = vsel %vm7583_vm13, %v1002_v59, %v1006_v23  ;;  %v6685_v49 = vor.u32 %v7115_v33, %v6684_v24 }
  0x27   :  { %v881_v38 = vsel %vm7583_vm13, %v876_v20, %v880_v3  ;;  %v1009_v35 = vshrl.u32 %v853_v25, 16  ;;  %v1012_v27 = vshll.u32 %v853_v25, 16  ;;  %v7110_v42 = vld [vmem:[#allocation2 + $0x4] sm:$0xf0]  ;;  %v1023_v53 = vshrl.u32 %v855_v39, 16 }
  0x28   :  { %v835_v45 = vld [vmem:[#allocation2 + $0x8] sm:$0xf]  ;;  %v7647_v50 = vunpack.c.l.b16 %v881_v38  ;;  %v1103_v54 = vunpack.c.l.b16 %v1007_v46  ;;  %v6665_v55 = vor.u32 %v7110_v42, %v6664_v19  ;;  %v642_v58 = vld [vmem:[#allocation2 + $0x64] sm:$0x1]  ;;  %344 = vst [vmem:[#allocation2 + $0x70] sm:$0x1] %v343_v2  ;;  %v271_v46 = vpack.c.bf16 %v255_v41, %v255_v41 }
  0x29   :  { %v883_v56 = vshrl.u32 %v835_v45, 16  ;;  %v886_v47 = vshll.u32 %v835_v45, 16  ;;  %v836_v60 = vld [vmem:[#allocation2 + $0xc] sm:$0x1]  ;;  %v643_v8 = vsel %vm7394_vm4, %v501_v43, %v642_v58  ;;  %v1011_v61 = vrot.slane %v1009_v35, 4  ;;  %v7292_v35 = vld [vmem:[%s10409_s0 + $0x38] sm:$0xff]  }
  0x2a   :  { %v1014_v59 = vrot.slane %v1012_v27, 5  ;;  %v1025_v62 = vrot.slane %v1023_v53, 4  ;;  %v1114_v1 = vpack.c.b16 %v1103_v54, %v7607_v32  ;;  %6694 = vmatmul.msk.bf16.vlgmr.msra.gmra.mxu0 %vm738_vm12, %v6665_v55  ;;  %v892_v10 = vshll.u32 %v836_v60, 16  ;;  %644 = vst [vmem:[#allocation2 + $0x64] sm:$0x1] %v643_v8  ;;  %v7662_v43 = vld [vmem:[%s10409_s0 + $0xc8] sm:$0xff]  }
  0x2b   :  { %v885_v5 = vrot.slane %v883_v56, 4  ;;  %v888_v52 = vrot.slane %v886_v47, 5  ;;  %v648_v11 = vld [vmem:[#allocation2 + $0x6c] sm:$0x1]  ;;  %v1026_v16 = vshll.u32 %v855_v39, 16  ;;  %v346_v36 = vsel %vm7394_vm4, 0, %v345_v40 }
  0x2c   :  { %v1015_v3 = vor.u32 %v1014_v59, %v1011_v61  ;;  %v7657_v19 = vrot.slane %v511_v18, 7  ;;  %6707 = vmatmul.msk.bf16.vlgmr.msra.gmra.mxu3 %vm738_vm12, %v1114_v1  ;;  %v894_v20 = vrot.slane %v892_v10, 5  ;;  %v649_v63 = vsel %vm7394_vm4, %v509_v48, %v648_v11  ;;  %347 = vst [vmem:[#allocation2 + $0x78] sm:$0x1] %v346_v36  ;;  %v306_v23 = vld [vmem:[#allocation2 + $0x10] sm:$0x1] }
  0x2d   :  { %v889_v32 = vor.u32 %v888_v52, %v885_v5  ;;  %v519_v22 = vshrl.u32 %v7613_v51, 16  ;;  %650 = vst [vmem:[#allocation2 + $0x6c] sm:$0x1] %v649_v63  ;;  %v1028_v24 = vrot.slane %v1026_v16, 5  ;;  %v522_v37 = vshll.u32 %v7613_v51, 16  ;;  %v7300_v41 = vld [vmem:[%s10409_s0 + $0x78] sm:$0xff]  }
  0x2e   :  { %v1016_v18 = vrot.slane %v1015_v3, 4  ;;  %v516_v25 = vor.u32 %v514_v21, %v7657_v19  ;;  %v517_v2 = vrot.slane %v7657_v19, 4  ;;  %v7260_v48 = vunpack.c.l.bf16 %v7662_v43  ;;  %v309_v39 = vld [vmem:[#allocation2 + $0x18] sm:$0x1]  ;;  %v368_v42 = vld [vmem:[#allocation2 + $0x14] sm:$0x1] }
  0x2f   :  { %6699 = vmatmul.msk.bf16.gmra.mxu2 %vm738_vm12, %v6685_v49  ;;  %v890_v33 = vrot.slane %v889_v32, 4  ;;  %v7673_v38 = vrot.slane %v519_v22, 7  ;;  %v1029_v27 = vor.u32 %v1028_v24, %v1025_v62  ;;  %v651_v40 = vld [vmem:[#allocation2 + $0x70] sm:$0xf]  ;;  %v307_v21 = vsel %vm7394_vm4, 0, %v306_v23 }
  0x30   :  { %v310_v49 = vsel %vm7394_vm4, 0, %v309_v39  ;;  %v652_v54 = vsel %vm7510_vm9, %v516_v25, %v651_v40  ;;  %308 = vst [vmem:[#allocation2 + $0x10] sm:$0x1] %v307_v21  ;;  %v371_v55 = vld [vmem:[#allocation2 + $0x1c] sm:$0x1]  ;;  %v192_v60 = vmax.f32 %v7228_v9, %v7260_v48  ;;  %v431_v8 = vshrl.u32 %v271_v46, 16 }
  0x31   :  { %v895_v51 = vsel %vm7583_vm13, %v890_v33, %v894_v20  ;;  %v524_v45 = vor.u32 %v522_v37, %v7673_v38  ;;  %v525_v53 = vrot.slane %v7673_v38, 4  ;;  %v854_v47 = vld [vmem:[#allocation2 + $0x64] sm:$0x1]  ;;  %v1030_v58 = vrot.slane %v1029_v27, 4  ;;  %653 = vst [vmem:[#allocation2 + $0x70] sm:$0xf] %v652_v54 }
  0x32   :  { %v1095_v56 = vunpack.c.l.b16 %v895_v51  ;;  %v1018_v61 = vshll.u32 %v854_v47, 16  ;;  %311 = vst [vmem:[#allocation2 + $0x18] sm:$0x1] %v310_v49  ;;  %v434_v59 = vshll.u32 %v271_v46, 16  ;;  %v369_v62 = vsel %vm7409_vm6, 0, %v368_v42  ;;  %v7308_v9 = vld [vmem:[%s10409_s0 + $0xb8] sm:$0xff]  }
  0x33   :  { %v372_v1 = vsel %vm7409_vm6, 0, %v371_v55  ;;  %v657_v52 = vld [vmem:[#allocation2 + $0x78] sm:$0xf]  ;;  %v256_v10 = vmax.f32 %v7630_v7, %v192_v60  ;;  %v433_v11 = vrot.slane %v431_v8, 7  ;;  %370 = vst [vmem:[#allocation2 + $0x14] sm:$0x1] %v369_v62  ;;  %v7188_v3 = vunpack.c.l.bf16 %v7292_v35 }
  0x34   :  { %v1110_v5 = vpack.c.b16 %v1095_v56, %v7647_v50  ;;  %v856_v16 = vld [vmem:[#allocation2 + $0x6c] sm:$0x1]  ;;  %v1020_v36 = vrot.slane %v1018_v61, 5  ;;  %v658_v32 = vsel %vm7510_vm9, %v524_v45, %v657_v52  ;;  %373 = vst [vmem:[#allocation2 + $0x1c] sm:$0x1] %v372_v1  ;;  %v7220_v20 = vunpack.c.l.bf16 %v7300_v41  ;;  %v7316_v7 = vld [vmem:[%s10409_s0 + $0xf8] sm:$0xff]  }
  0x35   :  { %v105_v50 = vmax.f32 %v7185_v15, %v7217_v30  ;;  %v1032_v63 = vshll.u32 %v856_v16, 16  ;;  %659 = vst [vmem:[#allocation2 + $0x78] sm:$0xf] %v658_v32  ;;  %v272_v22 = vpack.c.bf16 %v256_v10, %v256_v10  ;;  %v436_v23 = vor.u32 %v434_v59, %v433_v11  ;;  %v404_v25 = vld [vmem:[#allocation2 + $0x74] sm:$0x1] }
  0x36   :  { %6703 = vmatmul.msk.bf16.vlgmr.msra.gmra.mxu1 %vm738_vm12, %v1110_v5  ;;  %v437_v24 = vrot.slane %v433_v11, 4  ;;  %v1021_v33 = vsel %vm7583_vm13, %v1016_v18, %v1020_v36  ;;  %v405_v34 = vsel %vm7409_vm6, 0, %v404_v25  ;;  %v407_v12 = vld [vmem:[#allocation2 + $0x7c] sm:$0x1]  ;;  %v106_v15 = vmax.f32 %v7188_v3, %v7220_v20  ;;  %v348_v37 = vld [vmem:[#allocation2 + $0x80] sm:$0x1] }
  0x37   :  { %v7252_v30 = vunpack.c.l.bf16 %v7308_v9  ;;  %v1034_v48 = vrot.slane %v1032_v63, 5  ;;  %v1104_v39 = vunpack.c.l.b16 %v1021_v33  ;;  %v439_v35 = vshrl.u32 %v272_v22, 16  ;;  %v591_v40 = vld [vmem:[#allocation2 + $0x10] sm:$0xf]  ;;  %406 = vst [vmem:[#allocation2 + $0x74] sm:$0x1] %v405_v34 }
  0x38   :  { %v442_v27 = vshll.u32 %v272_v22, 16  ;;  %v7721_v46 = vld [vmem:[%s10409_s0 + $0x10] sm:$0xff]   ;;  %v592_v18 = vsel %vm7510_vm9, %v436_v23, %v591_v40  ;;  %v408_v49 = vsel %vm7409_vm6, 0, %v407_v12  ;;  %v7281_v42 = vunpack.c.h.bf16 %v7571_v57 }
  0x39   :  { %v6688_v21 = vld [vmem:[#allocation2 + $0x70] sm:$0xf]  ;;  %v7284_v51 = vunpack.c.l.bf16 %v7316_v7  ;;  %v1035_v45 = vsel %vm7583_vm13, %v1030_v58, %v1034_v48  ;;  %v441_v54 = vrot.slane %v439_v35, 7  ;;  %593 = vst [vmem:[#allocation2 + $0x10] sm:$0xf] %v592_v18  ;;  %v349_v41 = vsel %vm7394_vm4, 0, %v348_v37 }
  0x3a   :  { %v597_v55 = vld [vmem:[#allocation2 + $0x18] sm:$0xf]  ;;  %v7165_v56 = vunpack.c.h.bf16 %v7595_v29  ;;  %v1105_v47 = vunpack.c.l.b16 %v1035_v45  ;;  %v594_v60 = vld [vmem:[#allocation2 + $0x14] sm:$0x1]  ;;  %409 = vst [vmem:[#allocation2 + $0x7c] sm:$0x1] %v408_v49  ;;  %v203_v61 = vmax.f32 %v7249_v31, %v7281_v42  ;;  %v7168_v59 = vunpack.c.l.bf16 %v7721_v46 }
  0x3b   :  { %v857_v8 = vld [vmem:[#allocation2 + $0x70] sm:$0xf]  ;;  %v204_v57 = vmax.f32 %v7252_v30, %v7284_v51  ;;  %v444_v62 = vor.u32 %v442_v27, %v441_v54  ;;  %v445_v1 = vrot.slane %v441_v54, 4  ;;  %v595_v29 = vsel %vm7394_vm4, %v437_v24, %v594_v60  ;;  %v600_v5 = vld [vmem:[#allocation2 + $0x1c] sm:$0x1] }
  0x3c   :  { %v7739_v58 = vld [vmem:[%s10409_s0 + $0x50] sm:$0xff]   ;;  %v1037_v52 = vshrl.u32 %v857_v8, 16  ;;  %350 = vst [vmem:[#allocation2 + $0x80] sm:$0x1] %v349_v41  ;;  %v1115_v10 = vpack.c.b16 %v1105_v47, %v1104_v39  ;;  %v7116_v11 = vld [vmem:[#allocation2 + $0x74] sm:$0xf0]  ;;  %v267_v31 = vmax.f32 %v105_v50, %v203_v61  ;;  %v7197_v9 = vunpack.c.h.bf16 %v7605_v28 }
  0x3d   :  { %596 = vst [vmem:[#allocation2 + $0x14] sm:$0x1] %v595_v29  ;;  %v859_v44 = vld [vmem:[#allocation2 + $0x78] sm:$0xf]  ;;  %v268_v3 = vmax.f32 %v106_v15, %v204_v57  ;;  %v6689_v16 = vor.u32 %v7116_v11, %v6688_v21  ;;  %v598_v36 = vsel %vm7510_vm9, %v444_v62, %v597_v55  ;;  %v601_v32 = vsel %vm7394_vm4, %v445_v1, %v600_v5  ;;  %v351_v7 = vld [vmem:[#allocation2 + $0x88] sm:$0x1] }
  0x3e   :  { %v1039_v20 = vrot.slane %v1037_v52, 4  ;;  %6708 = vmatmul.msk.bf16.gmra.mxu3 %vm738_vm12, %v1115_v10  ;;  %599 = vst [vmem:[#allocation2 + $0x18] sm:$0xf] %v598_v36  ;;  %v1040_v63 = vshll.u32 %v857_v8, 16  ;;  %v1051_v22 = vshrl.u32 %v859_v44, 16  ;;  %v1054_v23 = vshll.u32 %v859_v44, 16 }
  0x3f   :  { %v283_v24 = vpack.c.bf16 %v267_v31, %v267_v31  ;;  %v7752_v28 = vld [vmem:[%s10409_s0 + $0x90] sm:$0xff]   ;;  %6700 = vmatmul.msk.bf16.gmra.mxu2 %vm738_vm12, %v6689_v16  ;;  %602 = vst [vmem:[#allocation2 + $0x1c] sm:$0x1] %v601_v32  ;;  %v7755_v25 = vpack.c.bf16 %v268_v3, %v268_v3  ;;  %v352_v33 = vsel %vm7394_vm4, 0, %v351_v7  ;;  %v7200_v34 = vunpack.c.l.bf16 %v7739_v58  ;;  %v312_v16 = vld [vmem:[#allocation2 + $0x20] sm:$0x1] }
  0x40   :  { %v654_v50 = vld [vmem:[#allocation2 + $0x74] sm:$0x1]  ;;  %v7760_v12 = vmax.f32 %v7165_v56, %v7197_v9  ;;  %v837_v15 = vld [vmem:[#allocation2 + $0x10] sm:$0xf]  ;;  %v1042_v37 = vrot.slane %v1040_v63, 5  ;;  %v1053_v48 = vrot.slane %v1051_v22, 4  ;;  %v7229_v39 = vunpack.c.h.bf16 %v7625_v0 }
  0x41   :  { %v655_v30 = vsel %vm7394_vm4, %v517_v2, %v654_v50  ;;  %v7770_v35 = vld [vmem:[%s10409_s0 + $0xd0] sm:$0xff]   ;;  %v897_v27 = vshrl.u32 %v837_v15, 16  ;;  %v900_v40 = vshll.u32 %v837_v15, 16  ;;  %v660_v21 = vld [vmem:[#allocation2 + $0x7c] sm:$0x1]  ;;  %v7772_v18 = vmax.f32 %v7168_v59, %v7200_v34 }
  0x42   :  { %656 = vst [vmem:[#allocation2 + $0x74] sm:$0x1] %v655_v30  ;;  %v7232_v19 = vunpack.c.l.bf16 %v7752_v28  ;;  %v6668_v49 = vld [vmem:[#allocation2 + $0x10] sm:$0xf]  ;;  %v661_v2 = vsel %vm7394_vm4, %v525_v53, %v660_v21  ;;  %v1043_v0 = vor.u32 %v1042_v37, %v1039_v20  ;;  %v1056_v42 = vrot.slane %v1054_v23, 5 }
  0x43   :  { %353 = vst [vmem:[#allocation2 + $0x88] sm:$0x1] %v352_v33  ;;  %v527_v51 = vshrl.u32 %v283_v24, 16  ;;  %v899_v54 = vrot.slane %v897_v27, 4  ;;  %v902_v55 = vrot.slane %v900_v40, 5  ;;  %v7261_v41 = vunpack.c.h.bf16 %v7662_v43 }
  0x44   :  { %v838_v45 = vld [vmem:[#allocation2 + $0x14] sm:$0x1]  ;;  %662 = vst [vmem:[#allocation2 + $0x7c] sm:$0x1] %v661_v2  ;;  %v7264_v56 = vunpack.c.l.bf16 %v7770_v35  ;;  %v1044_v60 = vrot.slane %v1043_v0, 4  ;;  %v1057_v8 = vor.u32 %v1056_v42, %v1053_v48  ;;  %v530_v59 = vshll.u32 %v283_v24, 16 }
  0x45   :  { %v906_v47 = vshll.u32 %v838_v45, 16  ;;  %v7781_v61 = vrot.slane %v527_v51, 7  ;;  %v7111_v38 = vld [vmem:[#allocation2 + $0x14] sm:$0xf0]  ;;  %v903_v53 = vor.u32 %v902_v55, %v899_v54  ;;  %v535_v62 = vshrl.u32 %v7755_v25, 16 }
  0x46   :  { %v839_v57 = vld [vmem:[#allocation2 + $0x18] sm:$0xf]  ;;  %v193_v1 = vmax.f32 %v7229_v39, %v7261_v41  ;;  %v6669_v29 = vor.u32 %v7111_v38, %v6668_v49  ;;  %v840_v5 = vld [vmem:[#allocation2 + $0x1c] sm:$0x1]  ;;  %v1058_v31 = vrot.slane %v1057_v8, 4  ;;  %v538_v50 = vshll.u32 %v7755_v25, 16 }
  0x47   :  { %v908_v52 = vrot.slane %v906_v47, 5  ;;  %v911_v10 = vshrl.u32 %v839_v57, 16  ;;  %v914_v11 = vshll.u32 %v839_v57, 16  ;;  %v904_v43 = vrot.slane %v903_v53, 4  ;;  %v663_v9 = vld [vmem:[#allocation2 + $0x80] sm:$0xf] }
  0x48   :  { %v920_v44 = vshll.u32 %v840_v5, 16  ;;  %v532_v3 = vor.u32 %v530_v59, %v7781_v61  ;;  %6695 = vmatmul.msk.bf16.gmra.mxu0 %vm738_vm12, %v6669_v29  ;;  %v533_v7 = vrot.slane %v7781_v61, 4  ;;  %v7787_v63 = vrot.slane %v535_v62, 7  ;;  %v315_v33 = vld [vmem:[#allocation2 + $0x28] sm:$0x1] }
  0x49   :  { %v913_v36 = vrot.slane %v911_v10, 4  ;;  %v916_v32 = vrot.slane %v914_v11, 5  ;;  %v858_v20 = vld [vmem:[#allocation2 + $0x74] sm:$0x1]  ;;  %v909_v22 = vsel %vm7583_vm13, %v904_v43, %v908_v52  ;;  %v194_v49 = vmax.f32 %v7232_v19, %v7264_v56  ;;  %v374_v2 = vld [vmem:[#allocation2 + $0x24] sm:$0x1] }
  0x4a   :  { %v922_v23 = vrot.slane %v920_v44, 5  ;;  %v1046_v24 = vshll.u32 %v858_v20, 16  ;;  %v1096_v15 = vunpack.c.l.b16 %v909_v22  ;;  %v541_v37 = vrot.slane %v7787_v63, 4  ;;  %v669_v39 = vld [vmem:[#allocation2 + $0x88] sm:$0xf]  ;;  %v7821_v10 = vld [vmem:[%s10409_s0 + $0x18] sm:$0xff]  }
  0x4b   :  { %v917_v34 = vor.u32 %v916_v32, %v913_v36  ;;  %v860_v30 = vld [vmem:[#allocation2 + $0x7c] sm:$0x1]  ;;  %v664_v48 = vsel %vm7510_vm9, %v532_v3, %v663_v9  ;;  %v540_v21 = vor.u32 %v538_v50, %v7787_v63  ;;  %v257_v25 = vmax.f32 %v7760_v12, %v193_v1  ;;  %v377_v45 = vld [vmem:[#allocation2 + $0x2c] sm:$0x1]  ;;  %v410_v56 = vld [vmem:[#allocation2 + $0x84] sm:$0x1] }
  0x4c   :  { %v1048_v27 = vrot.slane %v1046_v24, 5  ;;  %v1060_v40 = vshll.u32 %v860_v30, 16  ;;  %665 = vst [vmem:[#allocation2 + $0x80] sm:$0xf] %v664_v48  ;;  %v313_v42 = vsel %vm7394_vm4, 0, %v312_v16  ;;  %v316_v51 = vsel %vm7394_vm4, 0, %v315_v33 }
  0x4d   :  { %v918_v0 = vrot.slane %v917_v34, 4  ;;  %v670_v41 = vsel %vm7510_vm9, %v540_v21, %v669_v39  ;;  %v258_v19 = vmax.f32 %v7772_v18, %v194_v49  ;;  %314 = vst [vmem:[#allocation2 + $0x20] sm:$0x1] %v313_v42  ;;  %v273_v8 = vpack.c.bf16 %v257_v25, %v257_v25  ;;  %v413_v57 = vld [vmem:[#allocation2 + $0x8c] sm:$0x1]  ;;  %v7828_v3 = vld [vmem:[%s10409_s0 + $0x58] sm:$0xff]  }
  0x4e   :  { %v1049_v54 = vsel %vm7583_vm13, %v1044_v60, %v1048_v27  ;;  %v1062_v55 = vrot.slane %v1060_v40, 5  ;;  %671 = vst [vmem:[#allocation2 + $0x88] sm:$0xf] %v670_v41  ;;  %v375_v38 = vsel %vm7409_vm6, 0, %v374_v2  ;;  %v378_v18 = vsel %vm7409_vm6, 0, %v377_v45 }
  0x4f   :  { %v923_v12 = vsel %vm7583_vm13, %v918_v0, %v922_v23  ;;  %v1106_v47 = vunpack.c.l.b16 %v1049_v54  ;;  %v274_v59 = vpack.c.bf16 %v258_v19, %v258_v19  ;;  %317 = vst [vmem:[#allocation2 + $0x28] sm:$0x1] %v316_v51  ;;  %v447_v1 = vshrl.u32 %v273_v8, 16  ;;  %v7816_v52 = vld [vmem:[#allocation2] sm:$0xe] }
  0x50   :  { %v1097_v53 = vunpack.c.l.b16 %v923_v12  ;;  %v1063_v60 = vsel %vm7583_vm13, %v1058_v31, %v1062_v55  ;;  %v450_v29 = vshll.u32 %v273_v8, 16  ;;  %376 = vst [vmem:[#allocation2 + $0x24] sm:$0x1] %v375_v38  ;;  %v411_v5 = vsel %vm7409_vm6, 0, %v410_v56  ;;  %v1243_v23 = vld [vmem:[#allocation2 + $0x4] sm:$0x1] }
  0x51   :  { %v1107_v62 = vunpack.c.l.b16 %v1063_v60  ;;  %v455_v43 = vshrl.u32 %v274_v59, 16  ;;  %v458_v44 = vshll.u32 %v274_v59, 16  ;;  %379 = vst [vmem:[#allocation2 + $0x2c] sm:$0x1] %v378_v18  ;;  %v414_v31 = vsel %vm7409_vm6, 0, %v413_v57  ;;  %v7858_v59 = vld [vmem:[%s10409_s0 + $0xd8] sm:$0xff]  }
  0x52   :  { %v1111_v11 = vpack.c.b16 %v1097_v53, %v1096_v15  ;;  %v449_v36 = vrot.slane %v447_v1, 7  ;;  %412 = vst [vmem:[#allocation2 + $0x84] sm:$0x1] %v411_v5  ;;  %vm1306_vm14 = vcmask 1042432   ;;  %v7169_v32 = vunpack.c.h.bf16 %v7721_v46  ;;  %v1244_v24 = vld [vmem:[#allocation2 + $0x8] sm:$0xe] }
  0x53   :  { %v1116_v9 = vpack.c.b16 %v1107_v62, %v1106_v47  ;;  %v6692_v16 = vld [vmem:[#allocation2 + $0x80] sm:$0xf]  ;;  %v457_v20 = vrot.slane %v455_v43, 7  ;;  %415 = vst [vmem:[#allocation2 + $0x8c] sm:$0x1] %v414_v31  ;;  %vm1307_vm15 = vcmask 1046532   ;;  %v7172_v50 = vunpack.c.l.bf16 %v7821_v10 }
  0x54   :  { %6704 = vmatmul.msk.bf16.gmra.mxu1 %vm738_vm12, %v1111_v11  ;;  %v861_v22 = vld [vmem:[#allocation2 + $0x80] sm:$0xf]  ;;  %v7201_v33 = vunpack.c.h.bf16 %v7739_v58  ;;  %v452_v34 = vor.u32 %v450_v29, %v449_v36  ;;  %v453_v15 = vrot.slane %v449_v36, 4  ;;  %v6711_v49 = vrot.slane %v7816_v52, 9  ;;  %v1245_v45 = vld [vmem:[#allocation2 + $0xc] sm:$0x1]  ;;  %vm7843_vm1 = vmor %vm1306_vm14, %vm1307_vm15 }
  0x55   :  { %6709 = vmatmul.msk.bf16.gmra.mxu3 %vm738_vm12, %v1116_v9  ;;  %v603_v30 = vld [vmem:[#allocation2 + $0x20] sm:$0xf]  ;;  %v1065_v48 = vshrl.u32 %v861_v22, 16  ;;  %v1068_v39 = vshll.u32 %v861_v22, 16  ;;  %v7117_v46 = vld [vmem:[#allocation2 + $0x84] sm:$0xf0]  ;;  %v460_v27 = vor.u32 %v458_v44, %v457_v20  ;;  %v7204_v2 = vunpack.c.l.bf16 %v7828_v3 }
  0x56   :  { %v461_v40 = vrot.slane %v457_v20, 4  ;;  %v863_v21 = vld [vmem:[#allocation2 + $0x88] sm:$0xf]  ;;  %v6693_v0 = vor.u32 %v7117_v46, %v6692_v16  ;;  %v604_v25 = vsel %vm7510_vm9, %v452_v34, %v603_v30  ;;  %v97_v12 = vmax.f32 %v7169_v32, %v7201_v33  ;;  %v7850_v47 = vld [vmem:[%s10409_s0 + $0x98] sm:$0xff]   ;;  %v6811_v61 = vld [vmem:[%s10408_s1 + $0xc] sm:$0x3] }
  0x57   :  { %v609_v58 = vld [vmem:[#allocation2 + $0x28] sm:$0xf]  ;;  %v1067_v42 = vrot.slane %v1065_v48, 4  ;;  %v1070_v51 = vrot.slane %v1068_v39, 5  ;;  %605 = vst [vmem:[#allocation2 + $0x20] sm:$0xf] %v604_v25  ;;  %v98_v5 = vmax.f32 %v7172_v50, %v7204_v2  ;;  %v7236_v63 = vunpack.c.l.bf16 %v7850_v47 }
  0x58   :  { %v610_v54 = vsel %vm7510_vm9, %v460_v27, %v609_v58  ;;  %v606_v55 = vld [vmem:[#allocation2 + $0x24] sm:$0x1]  ;;  %v1079_v41 = vshrl.u32 %v863_v21, 16  ;;  %v1082_v19 = vshll.u32 %v863_v21, 16  ;;  %6701 = vmatmul.msk.bf16.gmra.mxu2 %vm738_vm12, %v6693_v0  ;;  %v612_v38 = vld [vmem:[#allocation2 + $0x2c] sm:$0x1]  ;;  %v7268_v50 = vunpack.c.l.bf16 %v7858_v59 }
  0x59   :  { %611 = vst [vmem:[#allocation2 + $0x28] sm:$0xf] %v610_v54  ;;  %v607_v8 = vsel %vm7394_vm4, %v453_v15, %v606_v55  ;;  %v1071_v57 = vor.u32 %v1070_v51, %v1067_v42  ;;  %v1311_v53 = vrot.slane %v1243_v23, 5  ;;  %v6712_v60 = vrot.slane %v1244_v24, 9  ;;  %v666_v62 = vld [vmem:[#allocation2 + $0x84] sm:$0x1] }
  0x5a   :  { %608 = vst [vmem:[#allocation2 + $0x24] sm:$0x1] %v607_v8  ;;  %v613_v18 = vsel %vm7394_vm4, %v461_v40, %v612_v38  ;;  %v1081_v1 = vrot.slane %v1079_v41, 4  ;;  %v1084_v29 = vrot.slane %v1082_v19, 5  ;;  %v667_v52 = vsel %vm7394_vm4, %v533_v7, %v666_v62  ;;  %v672_v11 = vld [vmem:[#allocation2 + $0x8c] sm:$0x1] }
  0x5b   :  { %614 = vst [vmem:[#allocation2 + $0x2c] sm:$0x1] %v613_v18  ;;  %v7866_v43 = vrot.slane %v1071_v57, 4  ;;  %v1312_v44 = vsel %vm7843_vm1, %v6711_v49, %v1311_v53  ;;  %v1315_v31 = vrot.slane %v1245_v45, 5  ;;  %v673_v9 = vsel %vm7394_vm4, %v541_v37, %v672_v11  ;;  %v318_v32 = vld [vmem:[#allocation2 + $0x30] sm:$0x1] }
  0x5c   :  { %668 = vst [vmem:[#allocation2 + $0x84] sm:$0x1] %v667_v52  ;;  %v1085_v16 = vor.u32 %v1084_v29, %v1081_v1  ;;  %v1375_v36 = vunpack.c.l.b16 %v1312_v44  ;;  %v7233_v7 = vunpack.c.h.bf16 %v7752_v28  ;;  %v2473_v22 = vsel %vm763_vm0, %v6811_v61, 0  ;;  %v321_v25 = vld [vmem:[#allocation2 + $0x38] sm:$0x1] }
  0x5d   :  { %674 = vst [vmem:[#allocation2 + $0x8c] sm:$0x1] %v673_v9  ;;  %v1316_v20 = vsel %vm7843_vm1, %v6712_v60, %v1315_v31  ;;  %v7265_v23 = vunpack.c.h.bf16 %v7770_v35  ;;  %2482 = vmatpush.bf16.msra.mxu2 %v2473_v22  ;;  %v319_v28 = vsel %vm7394_vm4, 0, %v318_v32  ;;  %v196_v40 = vmax.f32 %v7236_v63, %v7268_v50  ;;  %v380_v11 = vld [vmem:[#allocation2 + $0x34] sm:$0x1] }
  0x5e   :  { %v7883_v37 = vrot.slane %v1085_v16, 4  ;;  %v1376_v24 = vunpack.c.l.b16 %v1316_v20  ;;  %v6672_v33 = vld [vmem:[#allocation2 + $0x20] sm:$0xf]  ;;  %320 = vst [vmem:[#allocation2 + $0x30] sm:$0x1] %v319_v28  ;;  %v322_v52 = vsel %vm7394_vm4, 0, %v321_v25 }
  0x5f   :  { %v841_v34 = vld [vmem:[#allocation2 + $0x20] sm:$0xf]  ;;  %v195_v15 = vmax.f32 %v7233_v7, %v7265_v23  ;;  %v260_v54 = vmax.f32 %v98_v5, %v196_v40  ;;  %323 = vst [vmem:[#allocation2 + $0x38] sm:$0x1] %v322_v52  ;;  %v381_v63 = vsel %vm7409_vm6, 0, %v380_v11  ;;  %vm3927_vm2 = vcmask 1043456  }
  0x60   :  { %v7112_v30 = vld [vmem:[#allocation2 + $0x24] sm:$0xf0]  ;;  %v925_v39 = vshrl.u32 %v841_v34, 16  ;;  %v928_v46 = vshll.u32 %v841_v34, 16  ;;  %v1391_v27 = vpack.c.b16 %v1376_v24, %v1375_v36  ;;  %v383_v23 = vld [vmem:[#allocation2 + $0x3c] sm:$0x1] }
  0x61   :  { %v843_v48 = vld [vmem:[#allocation2 + $0x28] sm:$0xf]  ;;  %v6673_v35 = vor.u32 %v7112_v30, %v6672_v33  ;;  %v842_v21 = vld [vmem:[#allocation2 + $0x24] sm:$0x1]  ;;  %v259_v0 = vmax.f32 %v97_v12, %v195_v15  ;;  %v276_v62 = vpack.c.bf16 %v260_v54, %v260_v54  ;;  %v6852_v24 = vld [vmem:[%s10408_s1 + $0xe] sm:$0x3] }
  0x62   :  { %v939_v49 = vshrl.u32 %v843_v48, 16  ;;  %v942_v2 = vshll.u32 %v843_v48, 16  ;;  %v844_v58 = vld [vmem:[#allocation2 + $0x2c] sm:$0x1]  ;;  %v927_v42 = vrot.slane %v925_v39, 4  ;;  %v930_v51 = vrot.slane %v928_v46, 5 }
  0x63   :  { %v934_v45 = vshll.u32 %v842_v21, 16  ;;  %6696 = vmatmul.msk.bf16.gmra.mxu0 %vm738_vm12, %v6673_v35  ;;  %v948_v19 = vshll.u32 %v844_v58, 16  ;;  %v862_v8 = vld [vmem:[#allocation2 + $0x84] sm:$0x1]  ;;  %v275_v38 = vpack.c.bf16 %v259_v0, %v259_v0  ;;  %v471_v61 = vshrl.u32 %v276_v62, 16 }
  0x64   :  { %v941_v55 = vrot.slane %v939_v49, 4  ;;  %v944_v41 = vrot.slane %v942_v2, 5  ;;  %v931_v57 = vor.u32 %v930_v51, %v927_v42  ;;  %v864_v60 = vld [vmem:[#allocation2 + $0x8c] sm:$0x1]  ;;  %v1074_v18 = vshll.u32 %v862_v8, 16 }
  0x65   :  { %v936_v53 = vrot.slane %v934_v45, 5  ;;  %v950_v12 = vrot.slane %v948_v19, 5  ;;  %v1088_v29 = vshll.u32 %v864_v60, 16  ;;  %v463_v31 = vshrl.u32 %v275_v38, 16  ;;  %382 = vst [vmem:[#allocation2 + $0x34] sm:$0x1] %v381_v63 }
  0x66   :  { %v945_v1 = vor.u32 %v944_v41, %v941_v55  ;;  %v932_v5 = vrot.slane %v931_v57, 4  ;;  %v1076_v44 = vrot.slane %v1074_v18, 5  ;;  %v466_v9 = vshll.u32 %v275_v38, 16  ;;  %v1246_v15 = vld [vmem:[#allocation2 + $0x10] sm:$0xe] }
  0x67   :  { %v1090_v36 = vrot.slane %v1088_v29, 5  ;;  %v474_v7 = vshll.u32 %v276_v62, 16  ;;  %v465_v22 = vrot.slane %v463_v31, 7  ;;  %v1705_v30 = vld [vmem:[#allocation2 + $0x8] sm:$0xf]  ;;  %v473_v2 = vrot.slane %v471_v61, 7 }
  0x68   :  { %v946_v16 = vrot.slane %v945_v1, 4  ;;  %v937_v32 = vsel %vm7583_vm13, %v932_v5, %v936_v53  ;;  %v1077_v20 = vsel %vm7583_vm13, %v7866_v43, %v1076_v44  ;;  %6728 = vmatmul.msk.bf16.vlgmr.msrb.gmra.mxu2 %vm738_vm12, %v1391_v27  ;;  %v615_v43 = vld [vmem:[#allocation2 + $0x30] sm:$0xf]  ;;  %v1247_v40 = vld [vmem:[#allocation2 + $0x14] sm:$0x1]  ;;  %v384_v0 = vsel %vm7409_vm6, 0, %v383_v23 }
  0x69   :  { %v1098_v28 = vunpack.c.l.b16 %v937_v32  ;;  %v1091_v33 = vsel %vm7583_vm13, %v7883_v37, %v1090_v36  ;;  %v1108_v34 = vunpack.c.l.b16 %v1077_v20  ;;  %v468_v46 = vor.u32 %v466_v9, %v465_v22  ;;  %v1248_v35 = vld [vmem:[#allocation2 + $0x18] sm:$0xe]  ;;  %v1249_v21 = vld [vmem:[#allocation2 + $0x1c] sm:$0x1]  ;;  %v1706_v25 = vld [vmem:[#allocation2 + $0xc] sm:$0x1] }
  0x6a   :  { %v951_v50 = vsel %vm7583_vm13, %v946_v16, %v950_v12  ;;  %v1109_v39 = vunpack.c.l.b16 %v1091_v33  ;;  %v469_v49 = vrot.slane %v465_v22, 4  ;;  %v2879_v37 = vsel %vm763_vm0, %v6852_v24, 0  ;;  %385 = vst [vmem:[#allocation2 + $0x3c] sm:$0x1] %v384_v0  ;;  %v1707_v45 = vld [vmem:[#allocation2 + $0x10] sm:$0xf] }
  0x6b   :  { %v1099_v48 = vunpack.c.l.b16 %v951_v50  ;;  %v616_v42 = vsel %vm7510_vm9, %v468_v46, %v615_v43  ;;  %2888 = vmatpush.bf16.msra.mxu3 %v2879_v37  ;;  %v6713_v51 = vrot.slane %v1246_v15, 9  ;;  %v476_v54 = vor.u32 %v474_v7, %v473_v2  ;;  %v621_v41 = vld [vmem:[#allocation2 + $0x38] sm:$0xf]  ;;  %v6877_v12 = vld [vmem:[%s10408_s1 + $0x10] sm:$0x3] }
  0x6c   :  { %v1117_v27 = vpack.c.b16 %v1109_v39, %v1108_v34  ;;  %v477_v55 = vrot.slane %v473_v2, 4  ;;  %617 = vst [vmem:[#allocation2 + $0x30] sm:$0xf] %v616_v42  ;;  %v1319_v19 = vrot.slane %v1247_v40, 5  ;;  %v6714_v8 = vrot.slane %v1248_v35, 9 }
  0x6d   :  { %v1112_v58 = vpack.c.b16 %v1099_v48, %v1098_v28  ;;  %v1323_v38 = vrot.slane %v1249_v21, 5  ;;  %v1738_v57 = vshrl.u32 %v1705_v30, 16  ;;  %v1741_v53 = vshll.u32 %v1705_v30, 16  ;;  %v618_v29 = vld [vmem:[#allocation2 + $0x34] sm:$0x1] }
  0x6e   :  { %6710 = vmatmul.msk.bf16.gmra.mxu3 %vm738_vm12, %v1117_v27  ;;  %v622_v60 = vsel %vm7510_vm9, %v476_v54, %v621_v41  ;;  %v1320_v18 = vsel %vm7843_vm1, %v6713_v51, %v1319_v19  ;;  %v1747_v62 = vshll.u32 %v1706_v25, 16  ;;  %v1752_v1 = vshrl.u32 %v1707_v45, 16  ;;  %v1708_v16 = vld [vmem:[#allocation2 + $0x14] sm:$0x1]  ;;  %v1250_v32 = vld [vmem:[#allocation2 + $0x20] sm:$0xe] }
  0x6f   :  { %6705 = vmatmul.msk.bf16.gmra.mxu1 %vm738_vm12, %v1112_v58  ;;  %623 = vst [vmem:[#allocation2 + $0x38] sm:$0xf] %v622_v60  ;;  %v1324_v52 = vsel %vm7843_vm1, %v6714_v8, %v1323_v38  ;;  %v1740_v11 = vrot.slane %v1738_v57, 4  ;;  %v1743_v5 = vrot.slane %v1741_v53, 5  ;;  %v619_v44 = vsel %vm7394_vm4, %v469_v49, %v618_v29  ;;  %v1251_v23 = vld [vmem:[#allocation2 + $0x24] sm:$0x1] }
  0x70   :  { %v1377_v31 = vunpack.c.l.b16 %v1320_v18  ;;  %v1378_v9 = vunpack.c.l.b16 %v1324_v52  ;;  %620 = vst [vmem:[#allocation2 + $0x34] sm:$0x1] %v619_v44  ;;  %v7925_v61 = vrot.slane %v1747_v62, 5  ;;  %v1755_v7 = vshll.u32 %v1707_v45, 16  ;;  %v6739_v28 = vld [vmem:[#allocation2 + $0x8] sm:$0xf] }
  0x71   :  { %v1744_v36 = vor.u32 %v1743_v5, %v1740_v11  ;;  %v624_v20 = vld [vmem:[#allocation2 + $0x3c] sm:$0x1]  ;;  %v1754_v22 = vrot.slane %v1752_v1, 4  ;;  %v3157_v63 = vsel %vm763_vm0, %v6877_v12, 0  ;;  %v7118_v33 = vld [vmem:[#allocation2 + $0xc] sm:$0xf0] }
  0x72   :  { %v625_v24 = vsel %vm7394_vm4, %v477_v55, %v624_v20  ;;  %v1757_v34 = vrot.slane %v1755_v7, 5  ;;  %v1761_v43 = vshll.u32 %v1708_v16, 16  ;;  %3166 = vmatpush.bf16.msra.mxu0 %v3157_v63  ;;  %v1252_v15 = vld [vmem:[#allocation2 + $0x28] sm:$0xe]  ;;  %v1392_v46 = vpack.c.b16 %v1378_v9, %v1377_v31  ;;  %v1253_v35 = vld [vmem:[#allocation2 + $0x2c] sm:$0x1] }
  0x73   :  { %v845_v50 = vld [vmem:[#allocation2 + $0x30] sm:$0xf]  ;;  %626 = vst [vmem:[#allocation2 + $0x3c] sm:$0x1] %v625_v24  ;;  %v1745_v40 = vrot.slane %v1744_v36, 4  ;;  %v6715_v21 = vrot.slane %v1250_v32, 9  ;;  %v6740_v41 = vor.u32 %v7118_v33, %v6739_v28 }
  0x74   :  { %v6676_v30 = vld [vmem:[#allocation2 + $0x30] sm:$0xf]  ;;  %v953_v48 = vshrl.u32 %v845_v50, 16  ;;  %v956_v39 = vshll.u32 %v845_v50, 16  ;;  %v6802_v49 = vld [vmem:[%s10408_s1 + $0xa] sm:$0x3]  ;;  %v1758_v58 = vor.u32 %v1757_v34, %v1754_v22 }
  0x75   :  { %v1327_v45 = vrot.slane %v1251_v23, 5  ;;  %v6716_v19 = vrot.slane %v1252_v15, 9  ;;  %v2290_v8 = vsel %vm763_vm0, %v6802_v49, 0  ;;  %v1709_v38 = vld [vmem:[#allocation2 + $0x18] sm:$0xf]  ;;  %v1331_v18 = vrot.slane %v1253_v35, 5 }
  0x76   :  { %v7113_v2 = vld [vmem:[#allocation2 + $0x34] sm:$0xf0]  ;;  %v955_v37 = vrot.slane %v953_v48, 4  ;;  %v958_v25 = vrot.slane %v956_v39, 5  ;;  %2299 = vmatpush.bf16.msrb.mxu1 %v2290_v8  ;;  %v1759_v1 = vrot.slane %v1758_v58, 4  ;;  %v1763_v12 = vrot.slane %v1761_v43, 5 }
  0x77   :  { %v847_v0 = vld [vmem:[#allocation2 + $0x38] sm:$0xf]  ;;  %v6677_v27 = vor.u32 %v7113_v2, %v6676_v30  ;;  %v846_v54 = vld [vmem:[#allocation2 + $0x34] sm:$0x1]  ;;  %v1711_v29 = vld [vmem:[#allocation2 + $0x20] sm:$0xf]  ;;  %v1750_v16 = vsel %vm7583_vm13, %v1745_v40, %v7925_v61  ;;  %v1328_v32 = vsel %vm7843_vm1, %v6715_v21, %v1327_v45  ;;  %v1332_v20 = vsel %vm7843_vm1, %v6716_v19, %v1331_v18 }
  0x78   :  { %v967_v42 = vshrl.u32 %v847_v0, 16  ;;  %v970_v51 = vshll.u32 %v847_v0, 16  ;;  %v959_v55 = vor.u32 %v958_v25, %v955_v37  ;;  %6729 = vmatmul.msk.bf16.gmra.mxu2 %vm738_vm12, %v1392_v46  ;;  %v962_v57 = vshll.u32 %v846_v54, 16  ;;  %v1710_v30 = vld [vmem:[#allocation2 + $0x1c] sm:$0x1] }
  0x79   :  { %6697 = vmatmul.msk.bf16.gmra.mxu0 %vm738_vm12, %v6677_v27  ;;  %v1766_v44 = vshrl.u32 %v1709_v38, 16  ;;  %v1769_v31 = vshll.u32 %v1709_v38, 16  ;;  %v1764_v63 = vsel %vm7583_vm13, %v1759_v1, %v1763_v12  ;;  %v1780_v23 = vshrl.u32 %v1711_v29, 16  ;;  %v2111_v35 = vld [vmem:[#allocation2 + $0x8] sm:$0xe] }
  0x7a   :  { %v969_v53 = vrot.slane %v967_v42, 4  ;;  %v972_v60 = vrot.slane %v970_v51, 5  ;;  %v960_v62 = vrot.slane %v959_v55, 4  ;;  %v848_v52 = vld [vmem:[#allocation2 + $0x3c] sm:$0x1]  ;;  %v964_v11 = vrot.slane %v962_v57, 5 }
  0x7b   :  { %v976_v9 = vshll.u32 %v848_v52, 16  ;;  %v1783_v24 = vshll.u32 %v1711_v29, 16  ;;  %v1768_v61 = vrot.slane %v1766_v44, 4  ;;  %v1771_v28 = vrot.slane %v1769_v31, 5  ;;  %v2112_v21 = vld [vmem:[#allocation2 + $0xc] sm:$0x1] }
  0x7c   :  { %v973_v5 = vor.u32 %v972_v60, %v969_v53  ;;  %v965_v36 = vsel %vm7583_vm13, %v960_v62, %v964_v11  ;;  %v1963_v34 = vunpack.c.l.b16 %v1750_v16  ;;  %v1379_v43 = vunpack.c.l.b16 %v1328_v32  ;;  %v1712_v49 = vld [vmem:[#allocation2 + $0x24] sm:$0x1]  ;;  %v2113_v25 = vld [vmem:[#allocation2 + $0x10] sm:$0xe]  ;;  %v2114_v58 = vld [vmem:[#allocation2 + $0x14] sm:$0x1] }
  0x7d   :  { %v978_v22 = vrot.slane %v976_v9, 5  ;;  %v1100_v50 = vunpack.c.l.b16 %v965_v36  ;;  %v1380_v15 = vunpack.c.l.b16 %v1332_v20  ;;  %v1964_v39 = vunpack.c.l.b16 %v1764_v63  ;;  %v1254_v45 = vld [vmem:[#allocation2 + $0x30] sm:$0xe]  ;;  %v1255_v54 = vld [vmem:[#allocation2 + $0x34] sm:$0x1] }
  0x7e   :  { %v974_v7 = vrot.slane %v973_v5, 4  ;;  %6769 = vmatmul.msk.bf16.vlgmr.msrb.gmra.mxu3 %vm738_vm12, %v6740_v41  ;;  %v1782_v46 = vrot.slane %v1780_v23, 4  ;;  %v1785_v40 = vrot.slane %v1783_v24, 5  ;;  %v1772_v0 = vor.u32 %v1771_v28, %v1768_v61  ;;  %v6743_v41 = vld [vmem:[#allocation2 + $0x18] sm:$0xf] }
  0x7f   :  { %v1775_v37 = vshll.u32 %v1710_v30, 16  ;;  %v1393_v27 = vpack.c.b16 %v1380_v15, %v1379_v43  ;;  %v6786_v42 = vrot.slane %v2111_v35, 9  ;;  %v2177_v51 = vrot.slane %v2112_v21, 5  ;;  %v7119_v19 = vld [vmem:[#allocation2 + $0x1c] sm:$0xf0] }
  0x80   :  { %v979_v33 = vsel %vm7583_vm13, %v974_v7, %v978_v22  ;;  %v1979_v55 = vpack.c.b16 %v1964_v39, %v1963_v34  ;;  %v1786_v8 = vor.u32 %v1785_v40, %v1782_v46  ;;  %v1789_v38 = vshll.u32 %v1712_v49, 16  ;;  %v1256_v60 = vld [vmem:[#allocation2 + $0x38] sm:$0xe]  ;;  %v1257_v18 = vld [vmem:[#allocation2 + $0x3c] sm:$0x1] }
  0x81   :  { %v1101_v48 = vunpack.c.l.b16 %v979_v33  ;;  %v6787_v57 = vrot.slane %v2113_v25, 9  ;;  %v2181_v53 = vrot.slane %v2114_v58, 5  ;;  %v1773_v62 = vrot.slane %v1772_v0, 4  ;;  %v1713_v16 = vld [vmem:[#allocation2 + $0x28] sm:$0xf] }
  0x82   :  { %v1777_v1 = vrot.slane %v1775_v37, 5  ;;  %v6717_v12 = vrot.slane %v1254_v45, 9  ;;  %v1335_v29 = vrot.slane %v1255_v54, 5  ;;  %v6744_v52 = vor.u32 %v7119_v19, %v6743_v41  ;;  %v1715_v22 = vld [vmem:[#allocation2 + $0x30] sm:$0xf] }
  0x83   :  { %v1113_v2 = vpack.c.b16 %v1101_v48, %v1100_v50  ;;  %v2178_v11 = vsel %vm7843_vm1, %v6786_v42, %v2177_v51  ;;  %v1787_v5 = vrot.slane %v1786_v8, 4  ;;  %v1791_v44 = vrot.slane %v1789_v38, 5  ;;  %v324_v61 = vld [vmem:[#allocation2 + $0x40] sm:$0x1]  ;;  %v1716_v40 = vld [vmem:[#allocation2 + $0x34] sm:$0x1] }
  0x84   :  { %v6718_v31 = vrot.slane %v1256_v60, 9  ;;  %v1339_v9 = vrot.slane %v1257_v18, 5  ;;  %v2182_v36 = vsel %vm7843_vm1, %v6787_v57, %v2181_v53  ;;  %v1778_v7 = vsel %vm7583_vm13, %v1773_v62, %v1777_v1  ;;  %v2115_v0 = vld [vmem:[#allocation2 + $0x18] sm:$0xe]  ;;  %v2117_v42 = vld [vmem:[#allocation2 + $0x20] sm:$0xe] }
  0x85   :  { %6706 = vmatmul.msk.bf16.gmra.mxu1 %vm738_vm12, %v1113_v2  ;;  %v2241_v32 = vunpack.c.l.b16 %v2178_v11  ;;  %v1336_v20 = vsel %vm7843_vm1, %v6717_v12, %v1335_v29  ;;  %v1794_v63 = vshrl.u32 %v1713_v16, 16  ;;  %v1797_v23 = vshll.u32 %v1713_v16, 16  ;;  %v2118_v54 = vld [vmem:[#allocation2 + $0x24] sm:$0x1]  ;;  %v6747_v38 = vld [vmem:[#allocation2 + $0x28] sm:$0xf] }
  0x86   :  { %v7173_v24 = vunpack.c.h.bf16 %v7821_v10  ;;  %v7205_v50 = vunpack.c.h.bf16 %v7828_v3  ;;  %v1792_v28 = vsel %vm7583_vm13, %v1787_v5, %v1791_v44  ;;  %v2242_v33 = vunpack.c.l.b16 %v2182_v36  ;;  %v386_v10 = vld [vmem:[#allocation2 + $0x44] sm:$0x1]  ;;  %v1714_v3 = vld [vmem:[#allocation2 + $0x2c] sm:$0x1]  ;;  %v7120_v57 = vld [vmem:[#allocation2 + $0x2c] sm:$0xf0] }
  0x87   :  { %v1340_v34 = vsel %vm7843_vm1, %v6718_v31, %v1339_v9  ;;  %v7237_v43 = vunpack.c.h.bf16 %v7850_v47  ;;  %v1808_v15 = vshrl.u32 %v1715_v22, 16  ;;  %v1811_v30 = vshll.u32 %v1715_v22, 16  ;;  %v1259_v11 = vld [vmem:[#allocation2 + $0x54] sm:$0x1]  ;;  %v1260_v9 = vld [vmem:[#allocation2 + $0x58] sm:$0xe] }
  0x88   :  { %6730 = vmatmul.msk.bf16.gmra.mxu2 %vm738_vm12, %v1393_v27  ;;  %v99_v48 = vmax.f32 %v7173_v24, %v7205_v50  ;;  %v7269_v39 = vunpack.c.h.bf16 %v7858_v59  ;;  %v1381_v46 = vunpack.c.l.b16 %v1336_v20  ;;  %v325_v35 = vsel %vm7394_vm4, 0, %v324_v61  ;;  %v2116_v27 = vld [vmem:[#allocation2 + $0x1c] sm:$0x1]  ;;  %v2133_v6 = vld [vmem:[#allocation2 + $0x70] sm:$0xe] }
  0x89   :  { %6778 = vmatmul.msk.bf16.vlgmr.msrb.gmra.mxu0 %vm738_vm12, %v1979_v55  ;;  %v1382_v21 = vunpack.c.l.b16 %v1340_v34  ;;  %v1796_v49 = vrot.slane %v1794_v63, 4  ;;  %v1799_v2 = vrot.slane %v1797_v23, 5  ;;  %326 = vst [vmem:[#allocation2 + $0x40] sm:$0x1] %v325_v35  ;;  %v1965_v25 = vunpack.c.l.b16 %v1778_v7  ;;  %v1261_v16 = vld [vmem:[#allocation2 + $0x5c] sm:$0x1] }
  0x8a   :  { %v197_v37 = vmax.f32 %v7237_v43, %v7269_v39  ;;  %v1966_v47 = vunpack.c.l.b16 %v1792_v28  ;;  %v2257_v58 = vpack.c.b16 %v2242_v33, %v2241_v32  ;;  %v387_v59 = vsel %vm7409_vm6, 0, %v386_v10  ;;  %v2599_v17 = vld [vmem:[#allocation2 + $0x8c] sm:$0x1] }
  0x8b   :  { %v1810_v51 = vrot.slane %v1808_v15, 4  ;;  %v1813_v45 = vrot.slane %v1811_v30, 5  ;;  %388 = vst [vmem:[#allocation2 + $0x44] sm:$0x1] %v387_v59  ;;  %v1803_v41 = vshll.u32 %v1714_v3, 16  ;;  %v1817_v19 = vshll.u32 %v1716_v40, 16 }
  0x8c   :  { %v261_v55 = vmax.f32 %v99_v48, %v197_v37  ;;  %v6788_v8 = vrot.slane %v2115_v0, 9  ;;  %v1394_v53 = vpack.c.b16 %v1382_v21, %v1381_v46  ;;  %v1800_v60 = vor.u32 %v1799_v2, %v1796_v49  ;;  %v1717_v48 = vld [vmem:[#allocation2 + $0x38] sm:$0xf]  ;;  %v1718_v37 = vld [vmem:[#allocation2 + $0x3c] sm:$0x1] }
  0x8d   :  { %v2185_v18 = vrot.slane %v2116_v27, 5  ;;  %v1980_v1 = vpack.c.b16 %v1966_v47, %v1965_v25  ;;  %v6789_v12 = vrot.slane %v2117_v42, 9  ;;  %v2189_v29 = vrot.slane %v2118_v54, 5  ;;  %v2119_v27 = vld [vmem:[#allocation2 + $0x28] sm:$0xe] }
  0x8e   :  { %6770 = vmatmul.msk.bf16.gmra.mxu3 %vm738_vm12, %v6744_v52  ;;  %v277_v62 = vpack.c.bf16 %v261_v55, %v261_v55  ;;  %v1258_v52 = vld [vmem:[#allocation2 + $0x50] sm:$0xe]  ;;  %v1814_v5 = vor.u32 %v1813_v45, %v1810_v51  ;;  %v1805_v36 = vrot.slane %v1803_v41, 5  ;;  %v1819_v7 = vrot.slane %v1817_v19, 5  ;;  %v2120_v42 = vld [vmem:[#allocation2 + $0x2c] sm:$0x1] }
  0x8f   :  { %v1801_v32 = vrot.slane %v1800_v60, 4  ;;  %v6719_v22 = vrot.slane %v1258_v52, 9  ;;  %v1343_v63 = vrot.slane %v1259_v11, 5  ;;  %v6748_v23 = vor.u32 %v7120_v57, %v6747_v38  ;;  %v2121_v59 = vld [vmem:[#allocation2 + $0x30] sm:$0xe] }
  0x90   :  { %v479_v44 = vshrl.u32 %v277_v62, 16  ;;  %v482_v31 = vshll.u32 %v277_v62, 16  ;;  %v2186_v24 = vsel %vm7843_vm1, %v6788_v8, %v2185_v18  ;;  %v627_v50 = vld [vmem:[#allocation2 + $0x40] sm:$0xf]  ;;  %v6720_v61 = vrot.slane %v1260_v9, 9 }
  0x91   :  { %v1347_v28 = vrot.slane %v1261_v16, 5  ;;  %v1815_v34 = vrot.slane %v1814_v5, 4  ;;  %v2190_v43 = vsel %vm7843_vm1, %v6789_v12, %v2189_v29  ;;  %v2243_v39 = vunpack.c.l.b16 %v2186_v24  ;;  %v2122_v8 = vld [vmem:[#allocation2 + $0x34] sm:$0x1]  ;;  %v6751_v60 = vld [vmem:[#allocation2 + $0x38] sm:$0xf] }
  0x92   :  { %v481_v20 = vrot.slane %v479_v44, 7  ;;  %v630_v33 = vld [vmem:[#allocation2 + $0x44] sm:$0x1]  ;;  %v1806_v3 = vsel %vm7583_vm13, %v1801_v32, %v1805_v36  ;;  %v2244_v40 = vunpack.c.l.b16 %v2190_v43  ;;  %v1344_v35 = vsel %vm7843_vm1, %v6719_v22, %v1343_v63  ;;  %v1264_v44 = vld [vmem:[#allocation2 + $0x68] sm:$0xe] }
  0x93   :  { %v1348_v21 = vsel %vm7843_vm1, %v6720_v61, %v1347_v28  ;;  %v1820_v49 = vsel %vm7583_vm13, %v1815_v34, %v1819_v7  ;;  %vm816_vm0 = vcmask 64512   ;;  %v1822_v2 = vshrl.u32 %v1717_v48, 16  ;;  %v1263_v12 = vld [vmem:[#allocation2 + $0x64] sm:$0x1]  ;;  %v1265_v7 = vld [vmem:[#allocation2 + $0x6c] sm:$0x1] }
  0x94   :  { %v484_v15 = vor.u32 %v482_v31, %v481_v20  ;;  %v485_v30 = vrot.slane %v481_v20, 4  ;;  %v1825_v0 = vshll.u32 %v1717_v48, 16  ;;  %v1383_v25 = vunpack.c.l.b16 %v1344_v35  ;;  %v1721_v61 = vld [vmem:[#allocation2 + $0x58] sm:$0xf] }
  0x95   :  { %6803 = vmatmul.msk.bf16.vlgmr.msrb.gmra.mxu1 %vm738_vm12, %v2257_v58  ;;  %v1384_v47 = vunpack.c.l.b16 %v1348_v21  ;;  %v1967_v51 = vunpack.c.l.b16 %v1806_v3  ;;  %v1968_v45 = vunpack.c.l.b16 %v1820_v49  ;;  %v2258_v54 = vpack.c.b16 %v2244_v40, %v2243_v39 }
  0x96   :  { %v628_v10 = vsel %vm7510_vm9, %v484_v15, %v627_v50  ;;  %v631_v46 = vsel %vm7394_vm4, %v485_v30, %v630_v33  ;;  %v1824_v55 = vrot.slane %v1822_v2, 4  ;;  %v1827_v41 = vrot.slane %v1825_v0, 5  ;;  %v1723_v15 = vld [vmem:[#allocation2 + $0x60] sm:$0xf] }
  0x97   :  { %629 = vst [vmem:[#allocation2 + $0x40] sm:$0xf] %v628_v10  ;;  %v1831_v19 = vshll.u32 %v1718_v37, 16  ;;  %v6790_v38 = vrot.slane %v2119_v27, 9  ;;  %v2193_v57 = vrot.slane %v2120_v42, 5  ;;  %v1395_v18 = vpack.c.b16 %v1384_v47, %v1383_v25 }
  0x98   :  { %6731 = vmatmul.msk.bf16.gmra.mxu2 %vm738_vm12, %v1394_v53  ;;  %632 = vst [vmem:[#allocation2 + $0x44] sm:$0x1] %v631_v46  ;;  %v6791_v53 = vrot.slane %v2121_v59, 9  ;;  %v1981_v29 = vpack.c.b16 %v1968_v45, %v1967_v51  ;;  %v1828_v9 = vor.u32 %v1827_v41, %v1824_v55  ;;  %v2197_v36 = vrot.slane %v2122_v8, 5  ;;  %v1722_v59 = vld [vmem:[#allocation2 + $0x5c] sm:$0x1] }
  0x99   :  { %6779 = vmatmul.msk.bf16.gmra.mxu0 %vm738_vm12, %v1980_v1  ;;  %v1262_v1 = vld [vmem:[#allocation2 + $0x60] sm:$0xe]  ;;  %v1833_v63 = vrot.slane %v1831_v19, 5  ;;  %v1351_v50 = vrot.slane %v1263_v12, 5  ;;  %v6722_v34 = vrot.slane %v1264_v44, 9  ;;  %v1355_v43 = vrot.slane %v1265_v7, 5 }
  0x9a   :  { %v6721_v24 = vrot.slane %v1262_v1, 9  ;;  %v1829_v30 = vrot.slane %v1828_v9, 4  ;;  %v2194_v39 = vsel %vm7843_vm1, %v6790_v38, %v2193_v57  ;;  %v2198_v10 = vsel %vm7843_vm1, %v6791_v53, %v2197_v36  ;;  %v1724_v8 = vld [vmem:[#allocation2 + $0x64] sm:$0x1]  ;;  %v2123_v1 = vld [vmem:[#allocation2 + $0x38] sm:$0xe] }
  0x9b   :  { %v1850_v3 = vshrl.u32 %v1721_v61, 16  ;;  %v1853_v40 = vshll.u32 %v1721_v61, 16  ;;  %v1864_v21 = vshrl.u32 %v1723_v15, 16  ;;  %v1867_v49 = vshll.u32 %v1723_v15, 16  ;;  %v2124_v12 = vld [vmem:[#allocation2 + $0x3c] sm:$0x1] }
  0x9c   :  { %v1352_v35 = vsel %vm7843_vm1, %v6721_v24, %v1351_v50  ;;  %v2245_v2 = vunpack.c.l.b16 %v2194_v39  ;;  %v2246_v0 = vunpack.c.l.b16 %v2198_v10  ;;  %v1356_v37 = vsel %vm7843_vm1, %v6722_v34, %v1355_v43  ;;  %v7122_v36 = vld [vmem:[#allocation2 + $0x5c] sm:$0xf0]  ;;  %v1266_v50 = vld [vmem:[#allocation2 + $0x70] sm:$0xe]  ;;  %v1267_v61 = vld [vmem:[#allocation2 + $0x74] sm:$0x1] }
  0x9d   :  { %v1834_v25 = vsel %vm7583_vm13, %v1829_v30, %v1833_v63  ;;  %v1385_v42 = vunpack.c.l.b16 %v1352_v35  ;;  %v1852_v51 = vrot.slane %v1850_v3, 4  ;;  %v1855_v45 = vrot.slane %v1853_v40, 5  ;;  %v1725_v39 = vld [vmem:[#allocation2 + $0x68] sm:$0xf] }
  0x9e   :  { %6771 = vmatmul.msk.bf16.gmra.mxu3 %vm738_vm12, %v6748_v23  ;;  %v1719_v62 = vld [vmem:[#allocation2 + $0x40] sm:$0xf]  ;;  %v1386_v41 = vunpack.c.l.b16 %v1356_v37  ;;  %v1866_v38 = vrot.slane %v1864_v21, 4  ;;  %v1869_v57 = vrot.slane %v1867_v49, 5  ;;  %v1859_v44 = vshll.u32 %v1722_v59, 16  ;;  %v7324_v59 = vld [vmem:[%s10409_s0 + $0x38] sm:$0xff]  }
  0x9f   :  { %v1720_v52 = vld [vmem:[#allocation2 + $0x44] sm:$0x1]  ;;  %v1836_v11 = vshrl.u32 %v1719_v62, 16  ;;  %v1839_v5 = vshll.u32 %v1719_v62, 16  ;;  %v7121_v31 = vld [vmem:[#allocation2 + $0x3c] sm:$0xf0]  ;;  %v2259_v62 = vpack.c.b16 %v2246_v0, %v2245_v2 }
  0xa0   :  { %v1845_v16 = vshll.u32 %v1720_v52, 16  ;;  %v6752_v28 = vor.u32 %v7121_v31, %v6751_v60  ;;  %v1969_v60 = vunpack.c.l.b16 %v1834_v25  ;;  %v2126_v52 = vld [vmem:[#allocation2 + $0x44] sm:$0x1]  ;;  %v1873_v31 = vshll.u32 %v1724_v8, 16  ;;  %v1727_v49 = vld [vmem:[#allocation2 + $0x70] sm:$0xf] }
  0xa1   :  { %v1838_v32 = vrot.slane %v1836_v11, 4  ;;  %v1841_v20 = vrot.slane %v1839_v5, 5  ;;  %v1856_v5 = vor.u32 %v1855_v45, %v1852_v51  ;;  %v1396_v7 = vpack.c.b16 %v1386_v41, %v1385_v42 }
  0xa2   :  { %v796_v58 = vpop.f32.mrf.mxu2  ;;  %v1847_v48 = vrot.slane %v1845_v16, 5  ;;  %v6755_v16 = vld [vmem:[#allocation2 + $0x58] sm:$0xf]  ;;  %v2205_v24 = vrot.slane %v2126_v52, 5  ;;  %v1861_v15 = vrot.slane %v1859_v44, 5  ;;  %v6723_v2 = vrot.slane %v1266_v50, 9 }
  0xa3   :  { %825 = vst.msk [vmem:[#allocation4 + $0x40] sm:$0xff] %vm816_vm0, %v796_v58  ;;  %v1842_v33 = vor.u32 %v1841_v20, %v1838_v32  ;;  %v1870_v32 = vor.u32 %v1869_v57, %v1866_v38  ;;  %v6792_v20 = vrot.slane %v2123_v1, 9  ;;  %v6756_v34 = vor.u32 %v7122_v36, %v6755_v16  ;;  %v7325_v38 = vld [vmem:[%s10409_s0 + $0x78] sm:$0xff]   ;;  %v2129_v50 = vld [vmem:[#allocation2 + $0x60] sm:$0xe] }
  0xa4   :  { %v1857_v43 = vrot.slane %v1856_v5, 4  ;;  %v1359_v0 = vrot.slane %v1267_v61, 5  ;;  %v1881_v42 = vshll.u32 %v1725_v39, 16  ;;  %v7189_v51 = vunpack.c.h.bf16 %v7324_v59  ;;  %v1728_v5 = vld [vmem:[#allocation2 + $0x74] sm:$0x1] }
  0xa5   :  { %6804 = vmatmul.msk.bf16.gmra.mxu1 %vm738_vm12, %v2258_v54  ;;  %v1843_v46 = vrot.slane %v1842_v33, 4  ;;  %v1269_v33 = vld [vmem:[#allocation2 + $0x7c] sm:$0x1]  ;;  %v1871_v10 = vrot.slane %v1870_v32, 4  ;;  %v1895_v41 = vshll.u32 %v1727_v49, 16  ;;  %v7221_v57 = vunpack.c.h.bf16 %v7325_v38 }
  0xa6   :  { %v1363_v25 = vrot.slane %v1269_v33, 5  ;;  %v1862_v45 = vsel %vm7583_vm13, %v1857_v43, %v1861_v15  ;;  %v2127_v32 = vld [vmem:[#allocation2 + $0x58] sm:$0xe]  ;;  %v2130_v61 = vld [vmem:[#allocation2 + $0x64] sm:$0x1]  ;;  %vm3437_vm3 = vcmask 60416  }
  0xa7   :  { %v776_v22 = vpop.f32.mrf.mxu0  ;;  %v1848_v47 = vsel %vm7583_vm13, %v1843_v46, %v1847_v48  ;;  %v1875_v46 = vrot.slane %v1873_v31, 5  ;;  %v1883_v31 = vrot.slane %v1881_v42, 5  ;;  %v1272_v42 = vld [vmem:[#allocation2 + $0x88] sm:$0xe]  ;;  %v1273_v59 = vld [vmem:[#allocation2 + $0x8c] sm:$0x1]  ;;  %vm8552_vm10 = vmand %vm3437_vm3, %vm360_vm5 }
  0xa8   :  { %6732 = vmatmul.msk.bf16.gmra.mxu2 %vm738_vm12, %v1395_v18  ;;  %817 = vst.msk [vmem:[#allocation4] sm:$0xff] %vm816_vm0, %v776_v22  ;;  %v1970_v18 = vunpack.c.l.b16 %v1848_v47  ;;  %v2201_v22 = vrot.slane %v2124_v12, 5  ;;  %v1726_v12 = vld [vmem:[#allocation2 + $0x6c] sm:$0x1] }
  0xa9   :  { %6780 = vmatmul.msk.bf16.gmra.mxu0 %vm738_vm12, %v1981_v29  ;;  %v2125_v29 = vld [vmem:[#allocation2 + $0x40] sm:$0xe]  ;;  %v1887_v15 = vshll.u32 %v1726_v12, 16  ;;  %3438 = vst.msk [vmem:[#allocation3] sm:$0xf] %vm3437_vm3, %v7328_v4 }
  0xaa   :  { %v798_v23 = vpop.f32.mrf.mxu2  ;;  %v1202_v27 = vld [vmem:[#allocation4 + $0x40] sm:$0xff]  ;;  %v1982_v63 = vpack.c.b16 %v1970_v18, %v1969_v60  ;;  %v2202_v3 = vsel %vm7843_vm1, %v6792_v20, %v2201_v22  ;;  %v1971_v22 = vunpack.c.l.b16 %v1862_v45  ;;  %3441 = vst.msk [vmem:[#allocation3 + $0x50] sm:$0xf] %vm3437_vm3, %v7328_v4 }
  0xab   :  { %826 = vst.msk [vmem:[#allocation4 + $0x48] sm:$0xff] %vm816_vm0, %v798_v23  ;;  %v6793_v23 = vrot.slane %v2125_v29, 9  ;;  %v2247_v8 = vunpack.c.l.b16 %v2202_v3  ;;  %v7327_v29 = vld [vmem:[%s10409_s0 + $0xf8] sm:$0xff]  }
  0xac   :  { %v7285_v52 = vunpack.c.h.bf16 %v7327_v29  ;;  %3444 = vst.msk [vmem:[#allocation3 + $0x48] sm:$0xf] %vm3437_vm3, %v7328_v4 }
  0xad   :  { %v2206_v47 = vsel %vm7843_vm1, %v6793_v23, %v2205_v24  ;;  %v2128_v24 = vld [vmem:[#allocation2 + $0x5c] sm:$0x1]  ;;  %3446 = vst.msk [vmem:[#allocation3 + $0x98] sm:$0xf] %vm3437_vm3, %v7328_v4 }
  0xae   :  { %6772 = vmatmul.msk.bf16.gmra.mxu3 %vm738_vm12, %v6752_v28  ;;  %v1268_v28 = vld [vmem:[#allocation2 + $0x78] sm:$0xe]  ;;  %v2248_v18 = vunpack.c.l.b16 %v2206_v47 }
  0xaf   :  { %v1174_v58 = vpop.f32.mrf.mxu3  ;;  %v778_v54 = vpop.f32.mrf.mxu0  ;;  %v1194_v53 = vld [vmem:[#allocation4] sm:$0xff]  ;;  %v6724_v37 = vrot.slane %v1268_v28, 9 }
  0xb0   :  { %v1218_v55 = vadd.f32 %v1202_v27, %v1174_v58  ;;  %818 = vst.msk [vmem:[#allocation4 + $0x8] sm:$0xff] %vm816_vm0, %v778_v54  ;;  %v1878_v27 = vshrl.u32 %v1725_v39, 16  ;;  %v2260_v33 = vpack.c.b16 %v2248_v18, %v2247_v8  ;;  %v6726_v18 = vrot.slane %v1272_v42, 9  ;;  %v2132_v42 = vld [vmem:[#allocation2 + $0x6c] sm:$0x1] }
  0xb1   :  { %v1364_v1 = vsel %vm7843_vm1, %v6724_v37, %v1363_v25  ;;  %v1270_v25 = vld [vmem:[#allocation2 + $0x80] sm:$0xe] }
  0xb2   :  { %v801_v19 = vpop.f32.mrf.mxu2  ;;  %1234 = vst.msk [vmem:[#allocation4 + $0x40] sm:$0xff] %vm816_vm0, %v1218_v55  ;;  %v1203_v48 = vld [vmem:[#allocation4 + $0x48] sm:$0xff]  ;;  %v1892_v55 = vshrl.u32 %v1727_v49, 16  ;;  %v1880_v44 = vrot.slane %v1878_v27, 4  ;;  %v1388_v23 = vunpack.c.l.b16 %v1364_v1  ;;  %v2213_v49 = vrot.slane %v2130_v61, 5 }
  0xb3   :  { %827 = vst.msk [vmem:[#allocation4 + $0x50] sm:$0xff] %vm816_vm0, %v801_v19  ;;  %v1154_v11 = vpop.f32.mrf.mxu1  ;;  %v1876_v19 = vsel %vm7583_vm13, %v1871_v10, %v1875_v46  ;;  %v6794_v46 = vrot.slane %v2127_v32, 9  ;;  %v1271_v27 = vld [vmem:[#allocation2 + $0x84] sm:$0x1] }
  0xb4   :  { %v1210_v9 = vadd.f32 %v1194_v53, %v1154_v11  ;;  %v7326_v53 = vld [vmem:[%s10409_s0 + $0xb8] sm:$0xff]   ;;  %v354_v11 = vld [vmem:[#allocation2 + $0x90] sm:$0x1]  ;;  %v1894_v36 = vrot.slane %v1892_v55, 4  ;;  %v1972_v28 = vunpack.c.l.b16 %v1876_v19  ;;  %v1884_v10 = vor.u32 %v1883_v31, %v1880_v44 }
  0xb5   :  { %6805 = vmatmul.msk.bf16.gmra.mxu1 %vm738_vm12, %v2259_v62  ;;  %v7253_v60 = vunpack.c.h.bf16 %v7326_v53  ;;  %v1360_v62 = vsel %vm7843_vm1, %v6723_v2, %v1359_v0  ;;  %v355_v16 = vsel %vm7394_vm4, 0, %v354_v11  ;;  %v416_v2 = vld [vmem:[#allocation2 + $0x94] sm:$0x1]  ;;  %v6759_v0 = vld [vmem:[#allocation2 + $0x68] sm:$0xf]  ;;  %v6725_v53 = vrot.slane %v1270_v25, 9 }
  0xb6   :  { %1226 = vst.msk [vmem:[#allocation4] sm:$0xff] %vm816_vm0, %v1210_v9  ;;  %v107_v9 = vmax.f32 %v7189_v51, %v7221_v57  ;;  %v1983_v47 = vpack.c.b16 %v1972_v28, %v1971_v22  ;;  %v7123_v51 = vld [vmem:[#allocation2 + $0x6c] sm:$0xf0]  ;;  %v1885_v45 = vrot.slane %v1884_v10, 4 }
  0xb7   :  { %v1176_v30 = vpop.f32.mrf.mxu3  ;;  %v1195_v21 = vld [vmem:[#allocation4 + $0x8] sm:$0xff]  ;;  %v205_v20 = vmax.f32 %v7253_v60, %v7285_v52  ;;  %356 = vst [vmem:[#allocation2 + $0x90] sm:$0x1] %v355_v16  ;;  %v1367_v60 = vrot.slane %v1271_v27, 5  ;;  %v6760_v1 = vor.u32 %v7123_v51, %v6759_v0  ;;  %v1729_v52 = vld [vmem:[#allocation2 + $0x78] sm:$0xf] }
  0xb8   :  { %6733 = vmatmul.msk.bf16.gmra.mxu2 %vm738_vm12, %v1396_v7  ;;  %v1219_v40 = vadd.f32 %v1203_v48, %v1176_v30  ;;  %v1897_v7 = vrot.slane %v1895_v41, 5  ;;  %v1901_v30 = vshll.u32 %v1728_v5, 16  ;;  %v417_v41 = vsel %vm7409_vm6, 0, %v416_v2  ;;  %v1730_v0 = vld [vmem:[#allocation2 + $0x7c] sm:$0x1] }
  0xb9   :  { %6781 = vmatmul.msk.bf16.gmra.mxu0 %vm738_vm12, %v1982_v63  ;;  %v1387_v63 = vunpack.c.l.b16 %v1360_v62  ;;  %v269_v3 = vmax.f32 %v107_v9, %v205_v20  ;;  %v1371_v62 = vrot.slane %v1273_v59, 5  ;;  %418 = vst [vmem:[#allocation2 + $0x94] sm:$0x1] %v417_v41  ;;  %v1731_v9 = vld [vmem:[#allocation2 + $0x80] sm:$0xf]  ;;  %v1368_v22 = vsel %vm7843_vm1, %v6725_v53, %v1367_v60 }
  0xba   :  { %v803_v35 = vpop.f32.mrf.mxu2  ;;  %1235 = vst.msk [vmem:[#allocation4 + $0x48] sm:$0xff] %vm816_vm0, %v1219_v40  ;;  %v1204_v43 = vld [vmem:[#allocation4 + $0x50] sm:$0xff]  ;;  %v1898_v40 = vor.u32 %v1897_v7, %v1894_v36  ;;  %v1903_v8 = vrot.slane %v1901_v30, 5  ;;  %v1920_v28 = vshrl.u32 %v1731_v9, 16  ;;  %v2131_v27 = vld [vmem:[#allocation2 + $0x68] sm:$0xe] }
  0xbb   :  { %828 = vst.msk [vmem:[#allocation4 + $0x58] sm:$0xff] %vm816_vm0, %v803_v35  ;;  %v1156_v58 = vpop.f32.mrf.mxu1  ;;  %v2209_v35 = vrot.slane %v2128_v24, 5  ;;  %v1397_v37 = vpack.c.b16 %v1388_v23, %v1387_v63  ;;  %v285_v55 = vpack.c.bf16 %v269_v3, %v269_v3  ;;  %v1372_v63 = vsel %vm7843_vm1, %v6726_v18, %v1371_v62  ;;  %v2134_v59 = vld [vmem:[#allocation2 + $0x74] sm:$0x1]  ;;  %v7124_v41 = vld [vmem:[#allocation2 + $0x7c] sm:$0xf0] }
  0xbc   :  { %v1211_v54 = vadd.f32 %v1195_v21, %v1156_v58  ;;  %v6795_v21 = vrot.slane %v2129_v50, 9  ;;  %v1899_v19 = vrot.slane %v1898_v40, 4  ;;  %v1906_v23 = vshrl.u32 %v1729_v52, 16 }
  0xbd   :  { %v2210_v38 = vsel %vm7843_vm1, %v6794_v46, %v2209_v35  ;;  %v543_v11 = vshrl.u32 %v285_v55, 16  ;;  %v546_v16 = vshll.u32 %v285_v55, 16  ;;  %v1909_v24 = vshll.u32 %v1729_v52, 16  ;;  %v6763_v55 = vld [vmem:[#allocation2 + $0x78] sm:$0xf] }
  0xbe   :  { %6773 = vmatmul.msk.bf16.gmra.mxu3 %vm738_vm12, %v6756_v34  ;;  %1227 = vst.msk [vmem:[#allocation4 + $0x8] sm:$0xff] %vm816_vm0, %v1211_v54  ;;  %v1889_v54 = vrot.slane %v1887_v15, 5  ;;  %v2214_v57 = vsel %vm7843_vm1, %v6795_v21, %v2213_v49  ;;  %v1904_v36 = vsel %vm7583_vm13, %v1899_v19, %v1903_v8  ;;  %v2249_v7 = vunpack.c.l.b16 %v2210_v38  ;;  %v675_v50 = vld [vmem:[#allocation2 + $0x90] sm:$0xf] }
  0xbf   :  { %v2250_v32 = vunpack.c.l.b16 %v2214_v57  ;;  %v545_v20 = vrot.slane %v543_v11, 7  ;;  %v1389_v3 = vunpack.c.l.b16 %v1368_v22  ;;  %v1390_v40 = vunpack.c.l.b16 %v1372_v63 }
  0xc0   :  { %v1890_v5 = vsel %vm7583_vm13, %v1885_v45, %v1889_v54  ;;  %v1908_v35 = vrot.slane %v1906_v23, 4  ;;  %v1911_v21 = vrot.slane %v1909_v24, 5  ;;  %v678_v49 = vld [vmem:[#allocation2 + $0x94] sm:$0x1]  ;;  %v1922_v25 = vrot.slane %v1920_v28, 4 }
  0xc1   :  { %v1179_v34 = vpop.f32.mrf.mxu3  ;;  %v1973_v30 = vunpack.c.l.b16 %v1890_v5  ;;  %v1398_v51 = vpack.c.b16 %v1390_v40, %v1389_v3  ;;  %v1915_v45 = vshll.u32 %v1730_v0, 16  ;;  %v6796_v53 = vrot.slane %v2131_v27, 9 }
  0xc2   :  { %v1220_v48 = vadd.f32 %v1204_v43, %v1179_v34  ;;  %v806_v39 = vpop.f32.mrf.mxu2  ;;  %v1205_v29 = vld [vmem:[#allocation4 + $0x58] sm:$0xff]  ;;  %v548_v34 = vor.u32 %v546_v16, %v545_v20  ;;  %v549_v43 = vrot.slane %v545_v20, 4  ;;  %v1912_v19 = vor.u32 %v1911_v21, %v1908_v35 }
  0xc3   :  { %829 = vst.msk [vmem:[#allocation4 + $0x60] sm:$0xff] %vm816_vm0, %v806_v39  ;;  %v2261_v39 = vpack.c.b16 %v2250_v32, %v2249_v7  ;;  %v2217_v60 = vrot.slane %v2132_v42, 5  ;;  %v6797_v18 = vrot.slane %v2133_v6, 9  ;;  %v2221_v62 = vrot.slane %v2134_v59, 5  ;;  %v6814_v59 = vld [vmem:[#allocation2 + $0x10] sm:$0xf] }
  0xc4   :  { %1236 = vst.msk [vmem:[#allocation4 + $0x50] sm:$0xff] %vm816_vm0, %v1220_v48  ;;  %v1974_v48 = vunpack.c.l.b16 %v1904_v36  ;;  %v676_v10 = vsel %vm7510_vm9, %v548_v34, %v675_v50  ;;  %v6764_v52 = vor.u32 %v7124_v41, %v6763_v55  ;;  %v1913_v16 = vrot.slane %v1912_v19, 4  ;;  %v2138_v19 = vld [vmem:[#allocation2 + $0x84] sm:$0x1] }
  0xc5   :  { %6806 = vmatmul.msk.bf16.gmra.mxu1 %vm738_vm12, %v2260_v33  ;;  %v781_v58 = vpop.f32.mrf.mxu0  ;;  %v1923_v33 = vshll.u32 %v1731_v9, 16  ;;  %677 = vst [vmem:[#allocation2 + $0x90] sm:$0xf] %v676_v10  ;;  %v2218_v32 = vsel %vm7843_vm1, %v6796_v53, %v2217_v60  ;;  %v2222_v20 = vsel %vm7843_vm1, %v6797_v18, %v2221_v62 }
  0xc6   :  { %819 = vst.msk [vmem:[#allocation4 + $0x10] sm:$0xff] %vm816_vm0, %v781_v58  ;;  %v679_v58 = vsel %vm7394_vm4, %v549_v43, %v678_v49  ;;  %v1984_v54 = vpack.c.b16 %v1974_v48, %v1973_v30  ;;  %v2251_v28 = vunpack.c.l.b16 %v2218_v32  ;;  %v2574_v43 = vld [vmem:[#allocation2 + $0x18] sm:$0xf]  ;;  %v1734_v48 = vld [vmem:[#allocation2 + $0x8c] sm:$0x1] }
  0xc7   :  { %680 = vst [vmem:[#allocation2 + $0x94] sm:$0x1] %v679_v58  ;;  %v2622_v58 = vshll.u32 %v2574_v43, 16  ;;  %v1943_v55 = vshll.u32 %v1734_v48, 16 }
  0xc8   :  { %6734 = vmatmul.msk.bf16.gmra.mxu2 %vm738_vm12, %v1397_v37  ;;  %v1732_v37 = vld [vmem:[#allocation2 + $0x84] sm:$0x1] }
  0xc9   :  { %6782 = vmatmul.msk.bf16.gmra.mxu0 %vm738_vm12, %v1983_v47  ;;  %v1181_v12 = vpop.f32.mrf.mxu3  ;;  %v1925_v47 = vrot.slane %v1923_v33, 5  ;;  %v1929_v38 = vshll.u32 %v1732_v37, 16  ;;  %v2252_v33 = vunpack.c.l.b16 %v2222_v20 }
  0xca   :  { %v1221_v44 = vadd.f32 %v1205_v29, %v1181_v12  ;;  %v808_v31 = vpop.f32.mrf.mxu2  ;;  %v1206_v12 = vld [vmem:[#allocation4 + $0x60] sm:$0xff]  ;;  %v1733_v29 = vld [vmem:[#allocation2 + $0x88] sm:$0xf] }
  0xcb   :  { %830 = vst.msk [vmem:[#allocation4 + $0x68] sm:$0xff] %vm816_vm0, %v808_v31  ;;  %v1926_v8 = vor.u32 %v1925_v47, %v1922_v25  ;;  %v1931_v7 = vrot.slane %v1929_v38, 5  ;;  %v1934_v22 = vshrl.u32 %v1733_v29, 16  ;;  %v1937_v63 = vshll.u32 %v1733_v29, 16  ;;  %v2136_v25 = vld [vmem:[#allocation2 + $0x7c] sm:$0x1] }
  0xcc   :  { %1237 = vst.msk [vmem:[#allocation4 + $0x58] sm:$0xff] %vm816_vm0, %v1221_v44  ;;  %v1917_v44 = vrot.slane %v1915_v45, 5  ;;  %v1735_v31 = vld [vmem:[#allocation2 + $0x90] sm:$0xf]  ;;  %v2619_v47 = vshrl.u32 %v2574_v43, 16  ;;  %v2262_v6 = vpack.c.b16 %v2252_v33, %v2251_v28  ;;  %v2225_v53 = vrot.slane %v2136_v25, 5 }
  0xcd   :  { %v783_v61 = vpop.f32.mrf.mxu0  ;;  %v1196_v15 = vld [vmem:[#allocation4 + $0x10] sm:$0xff]  ;;  %v1927_v36 = vrot.slane %v1926_v8, 4  ;;  %v1948_v24 = vshrl.u32 %v1735_v31, 16  ;;  %v1951_v50 = vshll.u32 %v1735_v31, 16  ;;  %v1939_v10 = vrot.slane %v1937_v63, 5 }
  0xce   :  { %6774 = vmatmul.msk.bf16.gmra.mxu3 %vm738_vm12, %v6760_v1  ;;  %820 = vst.msk [vmem:[#allocation4 + $0x18] sm:$0xff] %vm816_vm0, %v783_v61  ;;  %v2572_v61 = vld [vmem:[#allocation2 + $0x10] sm:$0xf]  ;;  %v1736_v35 = vld [vmem:[#allocation2 + $0x94] sm:$0x1]  ;;  %v2624_v29 = vrot.slane %v2622_v58, 5 }
  0xcf   :  { %v1932_v30 = vsel %vm7583_vm13, %v1927_v36, %v1931_v7  ;;  %v1950_v21 = vrot.slane %v1948_v24, 4  ;;  %v1953_v49 = vrot.slane %v1951_v50, 5  ;;  %v2608_v0 = vshll.u32 %v2572_v61, 16  ;;  %v2137_v45 = vld [vmem:[#allocation2 + $0x80] sm:$0xe] }
  0xd0   :  { %v1976_v42 = vunpack.c.l.b16 %v1932_v30  ;;  %v1957_v41 = vshll.u32 %v1736_v35, 16  ;;  %v2575_v31 = vld [vmem:[#allocation2 + $0x1c] sm:$0x1]  ;;  %v1945_v36 = vrot.slane %v1943_v55, 5  ;;  %v2140_v55 = vld [vmem:[#allocation2 + $0x8c] sm:$0x1] }
  0xd1   :  { %v1159_v46 = vpop.f32.mrf.mxu1  ;;  %v2610_v18 = vrot.slane %v2608_v0, 5 }
  0xd2   :  { %v1212_v2 = vadd.f32 %v1196_v15, %v1159_v46  ;;  %v1207_v34 = vld [vmem:[#allocation4 + $0x68] sm:$0xff]  ;;  %v1918_v15 = vsel %vm7583_vm13, %v1913_v16, %v1917_v44  ;;  %v2135_v46 = vld [vmem:[#allocation2 + $0x78] sm:$0xe]  ;;  %v2229_v44 = vrot.slane %v2138_v19, 5  ;;  %v1959_v7 = vrot.slane %v1957_v41, 5 }
  0xd3   :  { %v1975_v27 = vunpack.c.l.b16 %v1918_v15  ;;  %v6798_v8 = vrot.slane %v2135_v46, 9  ;;  %v2141_v41 = vld [vmem:[#allocation2 + $0x90] sm:$0xe] }
  0xd4   :  { %1228 = vst.msk [vmem:[#allocation4 + $0x10] sm:$0xff] %vm816_vm0, %v1212_v2  ;;  %v2605_v2 = vshrl.u32 %v2572_v61, 16  ;;  %v2628_v61 = vshll.u32 %v2575_v31, 16 }
  0xd5   :  { %6807 = vmatmul.msk.bf16.gmra.mxu1 %vm738_vm12, %v2261_v39  ;;  %v1197_v57 = vld [vmem:[#allocation4 + $0x18] sm:$0xff]  ;;  %v1936_v39 = vrot.slane %v1934_v22, 4  ;;  %v2226_v22 = vsel %vm7843_vm1, %v6798_v8, %v2225_v53 }
  0xd6   :  { %v2607_v60 = vrot.slane %v2605_v2, 4  ;;  %v2253_v15 = vunpack.c.l.b16 %v2226_v22  ;;  %v2576_v2 = vld [vmem:[#allocation2 + $0x20] sm:$0xf] }
  0xd7   :  { %v2633_v19 = vshrl.u32 %v2576_v2, 16 }
  0xd8   :  { %v1184_v1 = vpop.f32.mrf.mxu3  ;;  %6735 = vmatmul.msk.bf16.gmra.mxu2 %vm738_vm12, %v1398_v51  ;;  %v7126_v51 = vld [vmem:[#allocation2 + $0x14] sm:$0xf0]  ;;  %v2611_v63 = vor.u32 %v2610_v18, %v2607_v60 }
  0xd9   :  { %v1222_v11 = vadd.f32 %v1206_v12, %v1184_v1  ;;  %v1161_v5 = vpop.f32.mrf.mxu1  ;;  %6783 = vmatmul.msk.bf16.gmra.mxu0 %vm738_vm12, %v1984_v54  ;;  %v1940_v54 = vor.u32 %v1939_v10, %v1936_v39  ;;  %v6815_v62 = vor.u32 %v7126_v51, %v6814_v59  ;;  %v2573_v1 = vld [vmem:[#allocation2 + $0x14] sm:$0x1]  ;;  %v2621_v12 = vrot.slane %v2619_v47, 4  ;;  %v1475_v39 = vld [vmem:[#allocation4] sm:$0xff]  ;;  %v2578_v47 = vld [vmem:[#allocation2 + $0x28] sm:$0xf] }
  0xda   :  { %v1213_v9 = vadd.f32 %v1197_v57, %v1161_v5  ;;  %v1954_v57 = vor.u32 %v1953_v49, %v1950_v21  ;;  %v6799_v5 = vrot.slane %v2137_v45, 9  ;;  %v2612_v46 = vrot.slane %v2611_v63, 4 }
  0xdb   :  { %1238 = vst.msk [vmem:[#allocation4 + $0x60] sm:$0xff] %vm816_vm0, %v1222_v11  ;;  %v811_v23 = vpop.f32.mrf.mxu2  ;;  %v6767_v11 = vld [vmem:[#allocation2 + $0x88] sm:$0xf]  ;;  %v1941_v16 = vrot.slane %v1940_v54, 4  ;;  %v2625_v50 = vor.u32 %v2624_v29, %v2621_v12  ;;  %v2630_v49 = vrot.slane %v2628_v61, 5  ;;  %v2647_v53 = vshrl.u32 %v2578_v47, 16 }
  0xdc   :  { %1229 = vst.msk [vmem:[#allocation4 + $0x18] sm:$0xff] %vm816_vm0, %v1213_v9  ;;  %v7125_v9 = vld [vmem:[#allocation2 + $0x8c] sm:$0xf0]  ;;  %v1955_v20 = vrot.slane %v1954_v57, 4  ;;  %v2230_v33 = vsel %vm7843_vm1, %v6799_v5, %v2229_v44  ;;  %v2636_v57 = vshll.u32 %v2576_v2, 16  ;;  %v2650_v60 = vshll.u32 %v2578_v47, 16 }
  0xdd   :  { %831 = vst.msk [vmem:[#allocation4 + $0x70] sm:$0xff] %vm816_vm0, %v811_v23  ;;  %v2614_v23 = vshll.u32 %v2573_v1, 16  ;;  %v6768_v28 = vor.u32 %v7125_v9, %v6767_v11  ;;  %v1946_v43 = vsel %vm7583_vm13, %v1941_v16, %v1945_v36  ;;  %v2254_v35 = vunpack.c.l.b16 %v2230_v33  ;;  %v2579_v61 = vld [vmem:[#allocation2 + $0x2c] sm:$0x1]  ;;  %v2981_v33 = vld [vmem:[#allocation2 + $0x1c] sm:$0x1] }
  0xde   :  { %6775 = vmatmul.msk.bf16.gmra.mxu3 %vm738_vm12, %v6764_v52  ;;  %v1985_v52 = vpack.c.b16 %v1976_v42, %v1975_v27  ;;  %v1960_v10 = vsel %vm7583_vm13, %v1955_v20, %v1959_v7  ;;  %v2626_v21 = vrot.slane %v2625_v50, 4  ;;  %v6818_v27 = vld [vmem:[#allocation2 + $0x20] sm:$0xf]  ;;  %v7127_v42 = vld [vmem:[#allocation2 + $0x24] sm:$0xf0]  ;;  %v2233_v9 = vrot.slane %v2140_v55, 5 }
  0xdf   :  { %v1978_v25 = vunpack.c.l.b16 %v1960_v10  ;;  %v2263_v45 = vpack.c.b16 %v2254_v35, %v2253_v15  ;;  %v6819_v5 = vor.u32 %v7127_v42, %v6818_v27  ;;  %v6801_v16 = vrot.slane %v2141_v41, 9  ;;  %v2577_v7 = vld [vmem:[#allocation2 + $0x24] sm:$0x1]  ;;  %v2979_v50 = vld [vmem:[#allocation2 + $0x14] sm:$0x1] }
  0xe0   :  { %v786_v3 = vpop.f32.mrf.mxu0  ;;  %v1186_v40 = vpop.f32.mrf.mxu3  ;;  %v2631_v54 = vsel %vm7583_vm13, %v2626_v21, %v2630_v49  ;;  %v2635_v20 = vrot.slane %v2633_v19, 4  ;;  %v2638_v22 = vrot.slane %v2636_v57, 5  ;;  %v2649_v63 = vrot.slane %v2647_v53, 4  ;;  %v2580_v27 = vld [vmem:[#allocation2 + $0x30] sm:$0xf] }
  0xe1   :  { %821 = vst.msk [vmem:[#allocation4 + $0x20] sm:$0xff] %vm816_vm0, %v786_v3  ;;  %v1223_v37 = vadd.f32 %v1207_v34, %v1186_v40  ;;  %v2616_v3 = vrot.slane %v2614_v23, 5  ;;  %v2831_v11 = vunpack.c.l.b16 %v2631_v54  ;;  %v2652_v23 = vrot.slane %v2650_v60, 5  ;;  %v7128_v57 = vld [vmem:[#allocation2 + $0x34] sm:$0xf0] }
  0xe2   :  { %v3044_v21 = vrot.slane %v2979_v50, 5  ;;  %v3048_v2 = vrot.slane %v2981_v33, 5  ;;  %v2661_v53 = vshrl.u32 %v2580_v27, 16 }
  0xe3   :  { %1239 = vst.msk [vmem:[#allocation4 + $0x68] sm:$0xff] %vm816_vm0, %v1223_v37  ;;  %v813_v38 = vpop.f32.mrf.mxu2  ;;  %v1977_v37 = vunpack.c.l.b16 %v1946_v43  ;;  %v2617_v58 = vsel %vm7583_vm13, %v2612_v46, %v2616_v3  ;;  %v2639_v46 = vor.u32 %v2638_v22, %v2635_v20  ;;  %v2653_v3 = vor.u32 %v2652_v23, %v2649_v63  ;;  %v2985_v20 = vld [vmem:[#allocation2 + $0x2c] sm:$0x1] }
  0xe4   :  { %832 = vst.msk [vmem:[#allocation4 + $0x78] sm:$0xff] %vm816_vm0, %v813_v38  ;;  %v1208_v0 = vld [vmem:[#allocation4 + $0x70] sm:$0xff]  ;;  %v2830_v1 = vunpack.c.l.b16 %v2617_v58  ;;  %v389_v22 = vld [vmem:[#allocation2 + $0x4c] sm:$0x1] }
  0xe5   :  { %6808 = vmatmul.msk.bf16.gmra.mxu1 %vm738_vm12, %v2262_v6  ;;  %v2139_v6 = vld [vmem:[#allocation2 + $0x88] sm:$0xe]  ;;  %v2142_v38 = vld [vmem:[#allocation2 + $0x94] sm:$0x1]  ;;  %v2640_v42 = vrot.slane %v2639_v46, 4  ;;  %v390_v33 = vsel %vm7409_vm6, 0, %v389_v22 }
  0xe6   :  { %v6800_v44 = vrot.slane %v2139_v6, 9  ;;  %v2237_v36 = vrot.slane %v2142_v38, 5  ;;  %v2846_v15 = vpack.c.b16 %v2831_v11, %v2830_v1  ;;  %v327_v38 = vld [vmem:[#allocation2 + $0x48] sm:$0x1]  ;;  %v2664_v1 = vshll.u32 %v2580_v27, 16 }
  0xe7   :  { %v328_v60 = vsel %vm7394_vm4, 0, %v327_v38  ;;  %391 = vst [vmem:[#allocation2 + $0x4c] sm:$0x1] %v390_v33  ;;  %v2583_v46 = vld [vmem:[#allocation2 + $0x3c] sm:$0x1] }
  0xe8   :  { %v788_v32 = vpop.f32.mrf.mxu0  ;;  %v1198_v24 = vld [vmem:[#allocation4 + $0x20] sm:$0xff]  ;;  %6844 = vmatmul.msk.bf16.vlgmr.msra.gmra.mxu2 %vm738_vm12, %v6815_v62  ;;  %v1986_v62 = vpack.c.b16 %v1978_v25, %v1977_v37  ;;  %v1477_v37 = vld [vmem:[#allocation4 + $0x10] sm:$0xff]  ;;  %329 = vst [vmem:[#allocation2 + $0x48] sm:$0x1] %v328_v60  ;;  %v2684_v27 = vshll.u32 %v2583_v46, 16 }
  0xe9   :  { %822 = vst.msk [vmem:[#allocation4 + $0x28] sm:$0xff] %vm816_vm0, %v788_v32  ;;  %6784 = vmatmul.msk.bf16.gmra.mxu0 %vm738_vm12, %v1985_v52  ;;  %v1476_v52 = vld [vmem:[#allocation4 + $0x8] sm:$0xff]  ;;  %v2978_v32 = vld [vmem:[#allocation2 + $0x10] sm:$0xe] }
  0xea   :  { %v6861_v35 = vrot.slane %v2978_v32, 9  ;;  %v2984_v32 = vld [vmem:[#allocation2 + $0x28] sm:$0xe] }
  0xeb   :  { %v1435_v48 = vpop.f32.mrf.mxu2  ;;  %v1209_v43 = vld [vmem:[#allocation4 + $0x78] sm:$0xff] }
  0xec   :  { %v1164_v34 = vpop.f32.mrf.mxu1  ;;  %v1491_v40 = vadd.f32 %v1475_v39, %v1435_v48  ;;  %v2238_v48 = vsel %vm7843_vm1, %v6801_v16, %v2237_v36  ;;  %v2642_v39 = vshll.u32 %v2577_v7, 16  ;;  %v3045_v41 = vsel %vm7843_vm1, %v6861_v35, %v3044_v21 }
  0xed   :  { %v1214_v30 = vadd.f32 %v1198_v24, %v1164_v34  ;;  %v2256_v58 = vunpack.c.l.b16 %v2238_v48  ;;  %v3108_v11 = vunpack.c.l.b16 %v3045_v41 }
  0xee   :  { %6776 = vmatmul.msk.bf16.gmra.mxu3 %vm738_vm12, %v6768_v28  ;;  %1507 = vst.msk [vmem:[#allocation4] sm:$0xff] %vm816_vm0, %v1491_v40  ;;  %v2980_v28 = vld [vmem:[#allocation2 + $0x18] sm:$0xe]  ;;  %v2656_v40 = vshll.u32 %v2579_v61, 16  ;;  %v2644_v6 = vrot.slane %v2642_v39, 5 }
  0xef   :  { %1230 = vst.msk [vmem:[#allocation4 + $0x20] sm:$0xff] %vm816_vm0, %v1214_v30  ;;  %v2234_v30 = vsel %vm7843_vm1, %v6800_v44, %v2233_v9  ;;  %v6862_v49 = vrot.slane %v2980_v28, 9  ;;  %v2983_v9 = vld [vmem:[#allocation2 + $0x24] sm:$0x1]  ;;  %v2581_v61 = vld [vmem:[#allocation2 + $0x34] sm:$0x1] }
  0xf0   :  { %v1199_v51 = vld [vmem:[#allocation4 + $0x28] sm:$0xff]  ;;  %v2255_v47 = vunpack.c.l.b16 %v2234_v30  ;;  %v2645_v36 = vsel %vm7583_vm13, %v2640_v42, %v2644_v6  ;;  %v2663_v28 = vrot.slane %v2661_v53, 4  ;;  %v3052_v21 = vrot.slane %v2983_v9, 5  ;;  %v6826_v9 = vld [vmem:[#allocation2 + $0x40] sm:$0xf] }
  0xf1   :  { %v1189_v59 = vpop.f32.mrf.mxu3  ;;  %v3049_v19 = vsel %vm7843_vm1, %v6862_v49, %v3048_v2  ;;  %v2832_v39 = vunpack.c.l.b16 %v2645_v36  ;;  %v6864_v49 = vrot.slane %v2984_v32, 9  ;;  %v3056_v2 = vrot.slane %v2985_v20, 5 }
  0xf2   :  { %v1224_v8 = vadd.f32 %v1208_v0, %v1189_v59  ;;  %v2654_v59 = vrot.slane %v2653_v3, 4  ;;  %v2264_v44 = vpack.c.b16 %v2256_v58, %v2255_v47 }
  0xf3   :  { %v1437_v29 = vpop.f32.mrf.mxu2 }
  0xf4   :  { %v1166_v18 = vpop.f32.mrf.mxu1  ;;  %1240 = vst.msk [vmem:[#allocation4 + $0x70] sm:$0xff] %vm816_vm0, %v1224_v8  ;;  %v1492_v31 = vadd.f32 %v1476_v52, %v1437_v29  ;;  %v6822_v8 = vld [vmem:[#allocation2 + $0x30] sm:$0xf] }
  0xf5   :  { %v1215_v12 = vadd.f32 %v1199_v51, %v1166_v18  ;;  %6809 = vmatmul.msk.bf16.gmra.mxu1 %vm738_vm12, %v2263_v45  ;;  %v2658_v51 = vrot.slane %v2656_v40, 5  ;;  %v2582_v45 = vld [vmem:[#allocation2 + $0x38] sm:$0xf]  ;;  %v1657_v55 = vld [vmem:[#allocation4] sm:$0xff]  ;;  %v6823_v50 = vor.u32 %v7128_v57, %v6822_v8  ;;  %v3057_v8 = vsel %vm7843_vm1, %v6864_v49, %v3056_v2 }
  0xf6   :  { %v791_v24 = vpop.f32.mrf.mxu0  ;;  %1508 = vst.msk [vmem:[#allocation4 + $0x8] sm:$0xff] %vm816_vm0, %v1492_v31  ;;  %v2678_v29 = vshll.u32 %v2582_v45, 16  ;;  %v2982_v31 = vld [vmem:[#allocation2 + $0x20] sm:$0xe] }
  0xf7   :  { %1231 = vst.msk [vmem:[#allocation4 + $0x28] sm:$0xff] %vm816_vm0, %v1215_v12  ;;  %v2675_v12 = vshrl.u32 %v2582_v45, 16  ;;  %v2659_v7 = vsel %vm7583_vm13, %v2654_v59, %v2658_v51  ;;  %v6863_v35 = vrot.slane %v2982_v31, 9 }
  0xf8   :  { %823 = vst.msk [vmem:[#allocation4 + $0x30] sm:$0xff] %vm816_vm0, %v791_v24  ;;  %6845 = vmatmul.msk.bf16.gmra.mxu2 %vm738_vm12, %v6819_v5  ;;  %v3109_v5 = vunpack.c.l.b16 %v3049_v19  ;;  %v1478_v24 = vld [vmem:[#allocation4 + $0x18] sm:$0xff]  ;;  %v2680_v30 = vrot.slane %v2678_v29, 5  ;;  %v1479_v19 = vld [vmem:[#allocation4 + $0x20] sm:$0xff]  ;;  %v2586_v29 = vld [vmem:[#allocation2 + $0x48] sm:$0xf] }
  0xf9   :  { %v1191_v34 = vpop.f32.mrf.mxu3  ;;  %6785 = vmatmul.msk.bf16.gmra.mxu0 %vm738_vm12, %v1986_v62  ;;  %v3053_v45 = vsel %vm7843_vm1, %v6863_v35, %v3052_v21  ;;  %v2703_v20 = vshrl.u32 %v2586_v29, 16  ;;  %v2706_v22 = vshll.u32 %v2586_v29, 16 }
  0xfa   :  { %v1225_v10 = vadd.f32 %v1209_v43, %v1191_v34  ;;  %v2666_v43 = vrot.slane %v2664_v1, 5  ;;  %v3124_v48 = vpack.c.b16 %v3109_v5, %v3108_v11  ;;  %v3111_v11 = vunpack.c.l.b16 %v3057_v8 }
  0xfb   :  { %v1440_v0 = vpop.f32.mrf.mxu2  ;;  %v2708_v35 = vrot.slane %v2706_v22, 5 }
  0xfc   :  { %1241 = vst.msk [vmem:[#allocation4 + $0x78] sm:$0xff] %vm816_vm0, %v1225_v10  ;;  %v1493_v25 = vadd.f32 %v1477_v37, %v1440_v0  ;;  %v2833_v10 = vunpack.c.l.b16 %v2659_v7  ;;  %v2670_v0 = vshll.u32 %v2581_v61, 16  ;;  %v2667_v47 = vor.u32 %v2666_v43, %v2663_v28  ;;  %v7129_v7 = vld [vmem:[#allocation2 + $0x44] sm:$0xf0] }
  0xfd   :  { %v1658_v40 = vld [vmem:[#allocation4 + $0x8] sm:$0xff] }
  0xfe   :  { %6853 = vmatmul.msk.bf16.vlgmr.msra.gmra.mxu3 %vm738_vm12, %v2846_v15  ;;  %v793_v54 = vpop.f32.mrf.mxu0  ;;  %1509 = vst.msk [vmem:[#allocation4 + $0x10] sm:$0xff] %vm816_vm0, %v1493_v25  ;;  %v2677_v15 = vrot.slane %v2675_v12, 4  ;;  %v2847_v6 = vpack.c.b16 %v2833_v10, %v2832_v39  ;;  %v2672_v38 = vrot.slane %v2670_v0, 5  ;;  %v2668_v53 = vrot.slane %v2667_v47, 4  ;;  %v1480_v28 = vld [vmem:[#allocation4 + $0x28] sm:$0xff] }
  0xff   :  { %824 = vst.msk [vmem:[#allocation4 + $0x38] sm:$0xff] %vm816_vm0, %v793_v54  ;;  %v1200_v18 = vld [vmem:[#allocation4 + $0x30] sm:$0xff]  ;;  %v2585_v39 = vld [vmem:[#allocation2 + $0x44] sm:$0x1]  ;;  %v2587_v0 = vld [vmem:[#allocation2 + $0x4c] sm:$0x1] }
 0x100   :  { %v2681_v58 = vor.u32 %v2680_v30, %v2677_v15  ;;  %v6827_v15 = vor.u32 %v7129_v7, %v6826_v9  ;;  %v2986_v30 = vld [vmem:[#allocation2 + $0x30] sm:$0xe]  ;;  %v2588_v9 = vld [vmem:[#allocation2 + $0x60] sm:$0xf] }
 0x101   :  { %v1617_v62 = vpop.f32.mrf.mxu3 }
 0x102   :  { %v1673_v52 = vadd.f32 %v1657_v55, %v1617_v62  ;;  %v1169_v16 = vpop.f32.mrf.mxu1  ;;  %v2682_v60 = vrot.slane %v2681_v58, 4  ;;  %v2584_v62 = vld [vmem:[#allocation2 + $0x40] sm:$0xf] }
 0x103   :  { %v1216_v63 = vadd.f32 %v1200_v18, %v1169_v16  ;;  %v1442_v23 = vpop.f32.mrf.mxu2  ;;  %v2686_v18 = vrot.slane %v2684_v27, 5  ;;  %v2689_v16 = vshrl.u32 %v2584_v62, 16  ;;  %v2692_v32 = vshll.u32 %v2584_v62, 16 }
 0x104   :  { %1689 = vst.msk [vmem:[#allocation4] sm:$0xff] %vm816_vm0, %v1673_v52  ;;  %v1494_v34 = vadd.f32 %v1478_v24, %v1442_v23  ;;  %v3110_v52 = vunpack.c.l.b16 %v3053_v45  ;;  %v6865_v27 = vrot.slane %v2986_v30, 9 }
 0x105   :  { %1232 = vst.msk [vmem:[#allocation4 + $0x30] sm:$0xff] %vm816_vm0, %v1216_v63  ;;  %6810 = vmatmul.msk.bf16.gmra.mxu1 %vm738_vm12, %v2264_v44  ;;  %v1659_v12 = vld [vmem:[#allocation4 + $0x10] sm:$0xff]  ;;  %v2673_v44 = vsel %vm7583_vm13, %v2668_v53, %v2672_v38  ;;  %v2687_v31 = vsel %vm7583_vm13, %v2682_v60, %v2686_v18  ;;  %v2691_v46 = vrot.slane %v2689_v16, 4  ;;  %v2590_v16 = vld [vmem:[#allocation2 + $0x68] sm:$0xf] }
 0x106   :  { %v2023_v3 = vpop.f32.mrf.mxu0  ;;  %1510 = vst.msk [vmem:[#allocation4 + $0x18] sm:$0xff] %vm816_vm0, %v1494_v34  ;;  %v1201_v37 = vld [vmem:[#allocation4 + $0x38] sm:$0xff]  ;;  %v2834_v34 = vunpack.c.l.b16 %v2673_v44  ;;  %v2835_v43 = vunpack.c.l.b16 %v2687_v31 }
 0x108   :  { %6846 = vmatmul.msk.bf16.gmra.mxu2 %vm738_vm12, %v6823_v50  ;;  %v3125_v50 = vpack.c.b16 %v3111_v11, %v3110_v52  ;;  %v2848_v58 = vpack.c.b16 %v2835_v43, %v2834_v34  ;;  %v2731_v34 = vshrl.u32 %v2590_v16, 16  ;;  %v2734_v43 = vshll.u32 %v2590_v16, 16 }
 0x109   :  { %v1619_v25 = vpop.f32.mrf.mxu3  ;;  %6878 = vmatmul.msk.bf16.vlgmr.msra.gmra.mxu0 %vm738_vm12, %v3124_v48  ;;  %v2987_v48 = vld [vmem:[#allocation2 + $0x34] sm:$0x1] }
 0x10a   :  { %v1674_v42 = vadd.f32 %v1658_v40, %v1619_v25  ;;  %v1171_v59 = vpop.f32.mrf.mxu1  ;;  %v2705_v40 = vrot.slane %v2703_v20, 4  ;;  %v2989_v25 = vld [vmem:[#allocation2 + $0x3c] sm:$0x1] }
 0x10b   :  { %v2063_v51 = vld [vmem:[#allocation4] sm:$0xff]  ;;  %v1217_v54 = vadd.f32 %v1201_v37, %v1171_v59  ;;  %v1445_v41 = vpop.f32.mrf.mxu2  ;;  %v2988_v37 = vld [vmem:[#allocation2 + $0x38] sm:$0xe]  ;;  %v3064_v8 = vrot.slane %v2989_v25, 5 }
 0x10c   :  { %v2079_v55 = vadd.f32 %v2063_v51, %v2023_v3  ;;  %1690 = vst.msk [vmem:[#allocation4 + $0x8] sm:$0xff] %vm816_vm0, %v1674_v42  ;;  %v1495_v57 = vadd.f32 %v1479_v19, %v1445_v41  ;;  %v2694_v3 = vrot.slane %v2692_v32, 5  ;;  %v3060_v42 = vrot.slane %v2987_v48, 5  ;;  %v1481_v53 = vld [vmem:[#allocation4 + $0x30] sm:$0xff] }
 0x10d   :  { %1233 = vst.msk [vmem:[#allocation4 + $0x38] sm:$0xff] %vm816_vm0, %v1217_v54  ;;  %v1660_v2 = vld [vmem:[#allocation4 + $0x18] sm:$0xff]  ;;  %v2709_v45 = vor.u32 %v2708_v35, %v2705_v40  ;;  %v2712_v54 = vshll.u32 %v2587_v0, 16  ;;  %v6866_v19 = vrot.slane %v2988_v37, 9  ;;  %v2990_v35 = vld [vmem:[#allocation2 + $0x40] sm:$0xe] }
 0x10e   :  { %6854 = vmatmul.msk.bf16.gmra.mxu3 %vm738_vm12, %v2847_v6  ;;  %2095 = vst.msk [vmem:[#allocation4] sm:$0xff] %vm816_vm0, %v2079_v55  ;;  %v2025_v1 = vpop.f32.mrf.mxu0  ;;  %v2698_v6 = vshll.u32 %v2585_v39, 16  ;;  %v2695_v51 = vor.u32 %v2694_v3, %v2691_v46  ;;  %v3061_v62 = vsel %vm7843_vm1, %v6865_v27, %v3060_v42  ;;  %v2992_v0 = vld [vmem:[#allocation2 + $0x48] sm:$0xe]  ;;  %v2993_v37 = vld [vmem:[#allocation2 + $0x4c] sm:$0x1] }
 0x10f   :  { %1511 = vst.msk [vmem:[#allocation4 + $0x20] sm:$0xff] %vm816_vm0, %v1495_v57  ;;  %v2710_v52 = vrot.slane %v2709_v45, 4  ;;  %v2714_v11 = vrot.slane %v2712_v54, 5  ;;  %v3065_v31 = vsel %vm7843_vm1, %v6866_v19, %v3064_v8  ;;  %v3112_v7 = vunpack.c.l.b16 %v3061_v62 }
 0x110   :  { %v2696_v29 = vrot.slane %v2695_v51, 4  ;;  %v3113_v20 = vunpack.c.l.b16 %v3065_v31  ;;  %v2733_v42 = vrot.slane %v2731_v34, 4  ;;  %v2591_v51 = vld [vmem:[#allocation2 + $0x6c] sm:$0x1]  ;;  %v6868_v8 = vrot.slane %v2992_v0, 9 }
 0x111   :  { %v1622_v5 = vpop.f32.mrf.mxu3 }
 0x112   :  { %v1675_v36 = vadd.f32 %v1659_v12, %v1622_v5  ;;  %v2301_v23 = vpop.f32.mrf.mxu1 }
 0x113   :  { %v2064_v63 = vld [vmem:[#allocation4 + $0x8] sm:$0xff]  ;;  %v1447_v61 = vpop.f32.mrf.mxu2 }
 0x114   :  { %v2080_v24 = vadd.f32 %v2064_v63, %v2025_v1  ;;  %1691 = vst.msk [vmem:[#allocation4 + $0x10] sm:$0xff] %vm816_vm0, %v1675_v36  ;;  %v1496_v33 = vadd.f32 %v1480_v28, %v1447_v61  ;;  %v2700_v1 = vrot.slane %v2698_v6, 5  ;;  %v2715_v63 = vsel %vm7583_vm13, %v2710_v52, %v2714_v11  ;;  %v1482_v48 = vld [vmem:[#allocation4 + $0x38] sm:$0xff]  ;;  %v1483_v52 = vld [vmem:[#allocation4 + $0x40] sm:$0xff] }
 0x115   :  { %v2341_v10 = vld [vmem:[#allocation4] sm:$0xff]  ;;  %v2717_v28 = vshrl.u32 %v2588_v9, 16  ;;  %v2837_v3 = vunpack.c.l.b16 %v2715_v63  ;;  %v2736_v6 = vrot.slane %v2734_v43, 5 }
 0x116   :  { %2096 = vst.msk [vmem:[#allocation4 + $0x8] sm:$0xff] %vm816_vm0, %v2080_v24  ;;  %v2028_v21 = vpop.f32.mrf.mxu0  ;;  %v2357_v49 = vadd.f32 %v2341_v10, %v2301_v23  ;;  %v1661_v44 = vld [vmem:[#allocation4 + $0x20] sm:$0xff]  ;;  %v2701_v22 = vsel %vm7583_vm13, %v2696_v29, %v2700_v1  ;;  %v7130_v24 = vld [vmem:[#allocation2 + $0x64] sm:$0xf0]  ;;  %v2740_v1 = vshll.u32 %v2591_v51, 16 }
 0x117   :  { %1512 = vst.msk [vmem:[#allocation4 + $0x28] sm:$0xff] %vm816_vm0, %v1496_v33  ;;  %v6830_v23 = vld [vmem:[#allocation2 + $0x60] sm:$0xf]  ;;  %v2720_v33 = vshll.u32 %v2588_v9, 16  ;;  %v2836_v46 = vunpack.c.l.b16 %v2701_v22  ;;  %v2737_v62 = vor.u32 %v2736_v6, %v2733_v42  ;;  %v2593_v42 = vld [vmem:[#allocation2 + $0x74] sm:$0x1] }
 0x118   :  { %2373 = vst.msk [vmem:[#allocation4] sm:$0xff] %vm816_vm0, %v2357_v49  ;;  %6847 = vmatmul.msk.bf16.gmra.mxu2 %vm738_vm12, %v6827_v15  ;;  %v6831_v40 = vor.u32 %v7130_v24, %v6830_v23  ;;  %v2742_v23 = vrot.slane %v2740_v1, 5  ;;  %v6834_v24 = vld [vmem:[#allocation2 + $0x70] sm:$0xf] }
 0x119   :  { %v1624_v47 = vpop.f32.mrf.mxu3  ;;  %6879 = vmatmul.msk.bf16.gmra.mxu0 %vm738_vm12, %v3125_v50  ;;  %v2722_v27 = vrot.slane %v2720_v33, 5  ;;  %v2849_v54 = vpack.c.b16 %v2837_v3, %v2836_v46  ;;  %v2738_v63 = vrot.slane %v2737_v62, 4  ;;  %v2754_v62 = vshll.u32 %v2593_v42, 16 }
 0x11a   :  { %v1676_v59 = vadd.f32 %v1660_v2, %v1624_v47  ;;  %v2303_v41 = vpop.f32.mrf.mxu1  ;;  %v3126_v2 = vpack.c.b16 %v3113_v20, %v3112_v7 }
 0x11b   :  { %v2065_v55 = vld [vmem:[#allocation4 + $0x10] sm:$0xff]  ;;  %v1450_v57 = vpop.f32.mrf.mxu2 }
 0x11c   :  { %v2081_v38 = vadd.f32 %v2065_v55, %v2028_v21  ;;  %1692 = vst.msk [vmem:[#allocation4 + $0x18] sm:$0xff] %vm816_vm0, %v1676_v59  ;;  %v1497_v18 = vadd.f32 %v1481_v53, %v1450_v57  ;;  %v2991_v21 = vld [vmem:[#allocation2 + $0x44] sm:$0x1]  ;;  %v6867_v55 = vrot.slane %v2990_v35, 9  ;;  %v2994_v35 = vld [vmem:[#allocation2 + $0x60] sm:$0xe] }
 0x11d   :  { %v2342_v60 = vld [vmem:[#allocation4 + $0x8] sm:$0xff]  ;;  %v2589_v59 = vld [vmem:[#allocation2 + $0x64] sm:$0x1]  ;;  %v3068_v19 = vrot.slane %v2991_v21, 5 }
 0x11e   :  { %2097 = vst.msk [vmem:[#allocation4 + $0x10] sm:$0xff] %vm816_vm0, %v2081_v38  ;;  %v2358_v12 = vadd.f32 %v2342_v60, %v2303_v41  ;;  %6855 = vmatmul.msk.bf16.gmra.mxu3 %vm738_vm12, %v2848_v58  ;;  %v2030_v5 = vpop.f32.mrf.mxu0  ;;  %v1662_v47 = vld [vmem:[#allocation4 + $0x28] sm:$0xff]  ;;  %v2719_v58 = vrot.slane %v2717_v28, 4  ;;  %v3072_v38 = vrot.slane %v2993_v37, 5  ;;  %v7131_v28 = vld [vmem:[#allocation2 + $0x74] sm:$0xf0] }
 0x11f   :  { %1513 = vst.msk [vmem:[#allocation4 + $0x30] sm:$0xff] %vm816_vm0, %v1497_v18  ;;  %v2726_v18 = vshll.u32 %v2589_v59, 16  ;;  %v3069_v9 = vsel %vm7843_vm1, %v6867_v55, %v3068_v19  ;;  %v2995_v21 = vld [vmem:[#allocation2 + $0x64] sm:$0x1]  ;;  %v6835_v0 = vor.u32 %v7131_v28, %v6834_v24  ;;  %v2996_v37 = vld [vmem:[#allocation2 + $0x68] sm:$0xe] }
 0x120   :  { %2374 = vst.msk [vmem:[#allocation4 + $0x8] sm:$0xff] %vm816_vm0, %v2358_v12  ;;  %v2723_v60 = vor.u32 %v2722_v27, %v2719_v58  ;;  %v3073_v16 = vsel %vm7843_vm1, %v6868_v8, %v3072_v38  ;;  %v2595_v19 = vld [vmem:[#allocation2 + $0x7c] sm:$0x1]  ;;  %v2596_v28 = vld [vmem:[#allocation2 + $0x80] sm:$0xf] }
 0x121   :  { %v1627_v36 = vpop.f32.mrf.mxu3  ;;  %v2728_v22 = vrot.slane %v2726_v18, 5 }
 0x122   :  { %v1677_v32 = vadd.f32 %v1661_v44, %v1627_v36  ;;  %v2306_v61 = vpop.f32.mrf.mxu1  ;;  %v2592_v44 = vld [vmem:[#allocation2 + $0x70] sm:$0xf]  ;;  %v2594_v36 = vld [vmem:[#allocation2 + $0x78] sm:$0xf]  ;;  %v2724_v20 = vrot.slane %v2723_v60, 4  ;;  %v6870_v60 = vrot.slane %v2996_v37, 9 }
 0x123   :  { %v2066_v50 = vld [vmem:[#allocation4 + $0x18] sm:$0xff]  ;;  %v1452_v30 = vpop.f32.mrf.mxu2  ;;  %v2748_v33 = vshll.u32 %v2592_v44, 16  ;;  %v2759_v34 = vshrl.u32 %v2594_v36, 16  ;;  %v2762_v43 = vshll.u32 %v2594_v36, 16  ;;  %v1485_v36 = vld [vmem:[#allocation4 + $0x50] sm:$0xff] }
 0x124   :  { %v2082_v15 = vadd.f32 %v2066_v50, %v2030_v5  ;;  %1693 = vst.msk [vmem:[#allocation4 + $0x20] sm:$0xff] %vm816_vm0, %v1677_v32  ;;  %v1498_v10 = vadd.f32 %v1482_v48, %v1452_v30  ;;  %v2745_v50 = vshrl.u32 %v2592_v44, 16  ;;  %v3114_v30 = vunpack.c.l.b16 %v3069_v9 }
 0x125   :  { %v2343_v39 = vld [vmem:[#allocation4 + $0x10] sm:$0xff]  ;;  %v3115_v48 = vunpack.c.l.b16 %v3073_v16  ;;  %v2729_v3 = vsel %vm7583_vm13, %v2724_v20, %v2728_v22  ;;  %v2750_v6 = vrot.slane %v2748_v33, 5  ;;  %v2761_v59 = vrot.slane %v2759_v34, 4 }
 0x126   :  { %2098 = vst.msk [vmem:[#allocation4 + $0x18] sm:$0xff] %vm816_vm0, %v2082_v15  ;;  %v2359_v49 = vadd.f32 %v2343_v39, %v2306_v61  ;;  %v2033_v25 = vpop.f32.mrf.mxu0  ;;  %v1663_v32 = vld [vmem:[#allocation4 + $0x30] sm:$0xff]  ;;  %v1484_v39 = vld [vmem:[#allocation4 + $0x48] sm:$0xff]  ;;  %v2764_v51 = vrot.slane %v2762_v43, 5  ;;  %v2838_v55 = vunpack.c.l.b16 %v2729_v3  ;;  %v2756_v20 = vrot.slane %v2754_v62, 5 }
 0x127   :  { %1514 = vst.msk [vmem:[#allocation4 + $0x38] sm:$0xff] %vm816_vm0, %v1498_v10  ;;  %v2598_v43 = vld [vmem:[#allocation2 + $0x88] sm:$0xf] }
 0x128   :  { %2375 = vst.msk [vmem:[#allocation4 + $0x10] sm:$0xff] %vm816_vm0, %v2359_v49  ;;  %6848 = vmatmul.msk.bf16.gmra.mxu2 %vm738_vm12, %v6831_v40  ;;  %v2743_v40 = vsel %vm7583_vm13, %v2738_v63, %v2742_v23  ;;  %v2790_v37 = vshll.u32 %v2598_v43, 16 }
 0x129   :  { %v1629_v45 = vpop.f32.mrf.mxu3  ;;  %6880 = vmatmul.msk.bf16.gmra.mxu0 %vm738_vm12, %v3126_v2 }
 0x12a   :  { %v1678_v41 = vadd.f32 %v1662_v47, %v1629_v45  ;;  %v2308_v53 = vpop.f32.mrf.mxu1  ;;  %v2747_v47 = vrot.slane %v2745_v50, 4  ;;  %v2792_v62 = vrot.slane %v2790_v37, 5 }
 0x12b   :  { %v2067_v57 = vld [vmem:[#allocation4 + $0x20] sm:$0xff]  ;;  %v1455_v29 = vpop.f32.mrf.mxu2 }
 0x12c   :  { %v2083_v12 = vadd.f32 %v2067_v57, %v2033_v25  ;;  %1694 = vst.msk [vmem:[#allocation4 + $0x28] sm:$0xff] %vm816_vm0, %v1678_v41  ;;  %v1499_v5 = vadd.f32 %v1483_v52, %v1455_v29  ;;  %v2997_v25 = vld [vmem:[#allocation2 + $0x6c] sm:$0x1]  ;;  %v2839_v41 = vunpack.c.l.b16 %v2743_v40  ;;  %v6869_v57 = vrot.slane %v2994_v35, 9  ;;  %v6838_v40 = vld [vmem:[#allocation2 + $0x80] sm:$0xf] }
 0x12d   :  { %v2344_v11 = vld [vmem:[#allocation4 + $0x18] sm:$0xff]  ;;  %v3080_v18 = vrot.slane %v2997_v25, 5  ;;  %v2765_v29 = vor.u32 %v2764_v51, %v2761_v59  ;;  %v2768_v52 = vshll.u32 %v2595_v19, 16  ;;  %v2773_v35 = vshrl.u32 %v2596_v28, 16  ;;  %v2998_v51 = vld [vmem:[#allocation2 + $0x70] sm:$0xe] }
 0x12e   :  { %2099 = vst.msk [vmem:[#allocation4 + $0x20] sm:$0xff] %vm816_vm0, %v2083_v12  ;;  %v2360_v31 = vadd.f32 %v2344_v11, %v2308_v53  ;;  %6856 = vmatmul.msk.bf16.gmra.mxu3 %vm738_vm12, %v2849_v54  ;;  %v2035_v7 = vpop.f32.mrf.mxu0  ;;  %v3127_v54 = vpack.c.b16 %v3115_v48, %v3114_v30  ;;  %v1664_v38 = vld [vmem:[#allocation4 + $0x38] sm:$0xff]  ;;  %v3076_v53 = vrot.slane %v2995_v21, 5  ;;  %v2751_v12 = vor.u32 %v2750_v6, %v2747_v47 }
 0x12f   :  { %1515 = vst.msk [vmem:[#allocation4 + $0x40] sm:$0xff] %vm816_vm0, %v1499_v5  ;;  %v2850_v5 = vpack.c.b16 %v2839_v41, %v2838_v55  ;;  %v2766_v24 = vrot.slane %v2765_v29, 4  ;;  %v2770_v50 = vrot.slane %v2768_v52, 5  ;;  %v1486_v6 = vld [vmem:[#allocation4 + $0x58] sm:$0xff] }
 0x130   :  { %2376 = vst.msk [vmem:[#allocation4 + $0x18] sm:$0xff] %vm816_vm0, %v2360_v31  ;;  %v2752_v23 = vrot.slane %v2751_v12, 4  ;;  %v3000_v29 = vld [vmem:[#allocation2 + $0x78] sm:$0xe]  ;;  %v3001_v52 = vld [vmem:[#allocation2 + $0x7c] sm:$0x1] }
 0x131   :  { %v1632_v61 = vpop.f32.mrf.mxu3  ;;  %v2771_v3 = vsel %vm7583_vm13, %v2766_v24, %v2770_v50 }
 0x132   :  { %v1679_v15 = vadd.f32 %v1663_v32, %v1632_v61  ;;  %v2311_v46 = vpop.f32.mrf.mxu1  ;;  %v3081_v32 = vsel %vm7843_vm1, %v6870_v60, %v3080_v18  ;;  %v2841_v41 = vunpack.c.l.b16 %v2771_v3 }
 0x133   :  { %v2068_v10 = vld [vmem:[#allocation4 + $0x28] sm:$0xff]  ;;  %v1457_v2 = vpop.f32.mrf.mxu2  ;;  %v3117_v48 = vunpack.c.l.b16 %v3081_v32  ;;  %v2796_v32 = vshll.u32 %v2599_v17, 16 }
 0x134   :  { %v2084_v49 = vadd.f32 %v2068_v10, %v2035_v7  ;;  %1695 = vst.msk [vmem:[#allocation4 + $0x30] sm:$0xff] %vm816_vm0, %v1679_v15  ;;  %v1500_v27 = vadd.f32 %v1484_v39, %v1457_v2  ;;  %v3077_v7 = vsel %vm7843_vm1, %v6869_v57, %v3076_v53  ;;  %v357_v15 = vld [vmem:[#allocation2 + $0x98] sm:$0x1]  ;;  %v2776_v2 = vshll.u32 %v2596_v28, 16  ;;  %v2597_v53 = vld [vmem:[#allocation2 + $0x84] sm:$0x1] }
 0x135   :  { %v2345_v58 = vld [vmem:[#allocation4 + $0x20] sm:$0xff]  ;;  %v3116_v30 = vunpack.c.l.b16 %v3077_v7  ;;  %v358_v39 = vsel %vm7394_vm4, 0, %v357_v15  ;;  %vm8466_vm4 = vmand %vm3439_vm7, %vm360_vm5 }
 0x136   :  { %2100 = vst.msk [vmem:[#allocation4 + $0x28] sm:$0xff] %vm816_vm0, %v2084_v49  ;;  %v2361_v45 = vadd.f32 %v2345_v58, %v2311_v46  ;;  %v2038_v8 = vpop.f32.mrf.mxu0  ;;  %v1665_v34 = vld [vmem:[#allocation4 + $0x40] sm:$0xff]  ;;  %v2757_v46 = vsel %vm7583_vm13, %v2752_v23, %v2756_v20  ;;  %v7132_v49 = vld [vmem:[#allocation2 + $0x84] sm:$0xf0]  ;;  %v419_v58 = vld [vmem:[#allocation2 + $0x9c] sm:$0x1] }
 0x137   :  { %1516 = vst.msk [vmem:[#allocation4 + $0x48] sm:$0xff] %vm816_vm0, %v1500_v27  ;;  %v3128_v27 = vpack.c.b16 %v3117_v48, %v3116_v30  ;;  %v2840_v59 = vunpack.c.l.b16 %v2757_v46  ;;  %v6839_v19 = vor.u32 %v7132_v49, %v6838_v40  ;;  %v2778_v60 = vrot.slane %v2776_v2, 5  ;;  %v2600_v40 = vld [vmem:[#allocation2 + $0x90] sm:$0xf] }
 0x138   :  { %2377 = vst.msk [vmem:[#allocation4 + $0x20] sm:$0xff] %vm816_vm0, %v2361_v45  ;;  %6849 = vmatmul.msk.bf16.gmra.mxu2 %vm738_vm12, %v6835_v0  ;;  %v2787_v0 = vshrl.u32 %v2598_v43, 16  ;;  %v420_v45 = vsel %vm7409_vm6, 0, %v419_v58  ;;  %v3088_v23 = vrot.slane %v3001_v52, 5 }
 0x139   :  { %v1634_v1 = vpop.f32.mrf.mxu3  ;;  %6881 = vmatmul.msk.bf16.gmra.mxu0 %vm738_vm12, %v3127_v54  ;;  %359 = vst [vmem:[#allocation2 + $0x98] sm:$0x1] %v358_v39  ;;  %v2798_v39 = vrot.slane %v2796_v32, 5 }
 0x13a   :  { %v1680_v11 = vadd.f32 %v1664_v38, %v1634_v1  ;;  %v2313_v31 = vpop.f32.mrf.mxu1  ;;  %v2775_v38 = vrot.slane %v2773_v35, 4  ;;  %421 = vst [vmem:[#allocation2 + $0x9c] sm:$0x1] %v420_v45  ;;  %v2789_v18 = vrot.slane %v2787_v0, 4 }
 0x13b   :  { %v2069_v44 = vld [vmem:[#allocation4 + $0x30] sm:$0xff]  ;;  %v1460_v16 = vpop.f32.mrf.mxu2 }
 0x13c   :  { %v2085_v9 = vadd.f32 %v2069_v44, %v2038_v8  ;;  %1696 = vst.msk [vmem:[#allocation4 + $0x38] sm:$0xff] %vm816_vm0, %v1680_v11  ;;  %v1501_v63 = vadd.f32 %v1485_v36, %v1460_v16  ;;  %v2999_v8 = vld [vmem:[#allocation2 + $0x74] sm:$0x1]  ;;  %v6871_v44 = vrot.slane %v2998_v51, 9  ;;  %v2779_v36 = vor.u32 %v2778_v60, %v2775_v38  ;;  %v3003_v60 = vld [vmem:[#allocation2 + $0x84] sm:$0x1] }
 0x13d   :  { %v2346_v22 = vld [vmem:[#allocation4 + $0x28] sm:$0xff]  ;;  %v2793_v7 = vor.u32 %v2792_v62, %v2789_v18 }
 0x13e   :  { %2101 = vst.msk [vmem:[#allocation4 + $0x30] sm:$0xff] %vm816_vm0, %v2085_v9  ;;  %v2362_v61 = vadd.f32 %v2346_v22, %v2313_v31  ;;  %6857 = vmatmul.msk.bf16.gmra.mxu3 %vm738_vm12, %v2850_v5  ;;  %v2040_v33 = vpop.f32.mrf.mxu0  ;;  %v1666_v12 = vld [vmem:[#allocation4 + $0x48] sm:$0xff]  ;;  %v2851_v5 = vpack.c.b16 %v2841_v41, %v2840_v59  ;;  %v3084_v31 = vrot.slane %v2999_v8, 5  ;;  %v2782_v9 = vshll.u32 %v2597_v53, 16  ;;  %v3002_v53 = vld [vmem:[#allocation2 + $0x80] sm:$0xe] }
 0x13f   :  { %1517 = vst.msk [vmem:[#allocation4 + $0x50] sm:$0xff] %vm816_vm0, %v1501_v63  ;;  %v6872_v63 = vrot.slane %v3000_v29, 9  ;;  %v2780_v30 = vrot.slane %v2779_v36, 4  ;;  %v2794_v48 = vrot.slane %v2793_v7, 4  ;;  %v6873_v7 = vrot.slane %v3002_v53, 9 }
 0x140   :  { %2378 = vst.msk [vmem:[#allocation4 + $0x28] sm:$0xff] %vm816_vm0, %v2362_v61  ;;  %v1487_v61 = vld [vmem:[#allocation4 + $0x60] sm:$0xff]  ;;  %v2784_v43 = vrot.slane %v2782_v9, 5  ;;  %v2602_v35 = vld [vmem:[#allocation2 + $0x98] sm:$0xf] }
 0x141   :  { %v1637_v10 = vpop.f32.mrf.mxu3  ;;  %v3089_v3 = vsel %vm7843_vm1, %v6872_v63, %v3088_v23  ;;  %v7133_v58 = vld [vmem:[#allocation2 + $0x94] sm:$0xf0]  ;;  %v2815_v59 = vshrl.u32 %v2602_v35, 16  ;;  %v2818_v51 = vshll.u32 %v2602_v35, 16  ;;  %v2603_v9 = vld [vmem:[#allocation2 + $0x9c] sm:$0x1] }
 0x142   :  { %v1681_v21 = vadd.f32 %v1665_v34, %v1637_v10  ;;  %v2316_v47 = vpop.f32.mrf.mxu1  ;;  %v3085_v34 = vsel %vm7843_vm1, %v6871_v44, %v3084_v31  ;;  %v3119_v0 = vunpack.c.l.b16 %v3089_v3  ;;  %v2785_v37 = vsel %vm7583_vm13, %v2780_v30, %v2784_v43  ;;  %v2601_v31 = vld [vmem:[#allocation2 + $0x94] sm:$0x1]  ;;  %v3006_v53 = vld [vmem:[#allocation2 + $0x90] sm:$0xe] }
 0x143   :  { %v2070_v25 = vld [vmem:[#allocation4 + $0x38] sm:$0xff]  ;;  %v1462_v42 = vpop.f32.mrf.mxu2  ;;  %v3118_v49 = vunpack.c.l.b16 %v3085_v34  ;;  %v2842_v8 = vunpack.c.l.b16 %v2785_v37  ;;  %v2820_v44 = vrot.slane %v2818_v51, 5 }
 0x144   :  { %v2086_v13 = vadd.f32 %v2070_v25, %v2040_v33  ;;  %1697 = vst.msk [vmem:[#allocation4 + $0x40] sm:$0xff] %vm816_vm0, %v1681_v21  ;;  %v1502_v55 = vadd.f32 %v1486_v6, %v1462_v42  ;;  %v2799_v25 = vsel %vm7583_vm13, %v2794_v48, %v2798_v39  ;;  %v2801_v42 = vshrl.u32 %v2600_v40, 16  ;;  %v1490_v51 = vld [vmem:[#allocation4 + $0x78] sm:$0xff] }
 0x145   :  { %v2347_v54 = vld [vmem:[#allocation4 + $0x30] sm:$0xff]  ;;  %v2804_v6 = vshll.u32 %v2600_v40, 16  ;;  %v2843_v38 = vunpack.c.l.b16 %v2799_v25  ;;  %v3129_v62 = vpack.c.b16 %v3119_v0, %v3118_v49 }
 0x146   :  { %2102 = vst.msk [vmem:[#allocation4 + $0x38] sm:$0xff] %vm816_vm0, %v2086_v13  ;;  %v2363_v57 = vadd.f32 %v2347_v54, %v2316_v47  ;;  %v2043_v1 = vpop.f32.mrf.mxu0  ;;  %v1667_v46 = vld [vmem:[#allocation4 + $0x50] sm:$0xff]  ;;  %v2803_v52 = vrot.slane %v2801_v42, 4 }
 0x147   :  { %1518 = vst.msk [vmem:[#allocation4 + $0x58] sm:$0xff] %vm816_vm0, %v1502_v55  ;;  %v6842_v47 = vld [vmem:[#allocation2 + $0x90] sm:$0xf]  ;;  %v1488_v55 = vld [vmem:[#allocation4 + $0x68] sm:$0xff]  ;;  %v2852_v36 = vpack.c.b16 %v2843_v38, %v2842_v8 }
 0x148   :  { %2379 = vst.msk [vmem:[#allocation4 + $0x30] sm:$0xff] %vm816_vm0, %v2363_v57  ;;  %6850 = vmatmul.msk.bf16.gmra.mxu2 %vm738_vm12, %v6839_v19  ;;  %v6843_v57 = vor.u32 %v7133_v58, %v6842_v47 }
 0x149   :  { %v1639_v11 = vpop.f32.mrf.mxu3  ;;  %6882 = vmatmul.msk.bf16.gmra.mxu0 %vm738_vm12, %v3128_v27 }
 0x14a   :  { %v1682_v16 = vadd.f32 %v1666_v12, %v1639_v11  ;;  %v2318_v22 = vpop.f32.mrf.mxu1  ;;  %v3005_v12 = vld [vmem:[#allocation2 + $0x8c] sm:$0x1]  ;;  %v2806_v11 = vrot.slane %v2804_v6, 5 }
 0x14b   :  { %v2071_v20 = vld [vmem:[#allocation4 + $0x40] sm:$0xff]  ;;  %v1465_v50 = vpop.f32.mrf.mxu2  ;;  %v3096_v63 = vrot.slane %v3005_v12, 5 }
 0x14c   :  { %v2087_v24 = vadd.f32 %v2071_v20, %v2043_v1  ;;  %1698 = vst.msk [vmem:[#allocation4 + $0x48] sm:$0xff] %vm816_vm0, %v1682_v16  ;;  %v1503_v33 = vadd.f32 %v1487_v61, %v1465_v50  ;;  %v3004_v1 = vld [vmem:[#allocation2 + $0x88] sm:$0xe]  ;;  %v3092_v20 = vrot.slane %v3003_v60, 5  ;;  %v2807_v50 = vor.u32 %v2806_v11, %v2803_v52  ;;  %v3007_v60 = vld [vmem:[#allocation2 + $0x94] sm:$0x1] }
 0x14d   :  { %v2348_v28 = vld [vmem:[#allocation4 + $0x38] sm:$0xff]  ;;  %v2810_v61 = vshll.u32 %v2601_v31, 16  ;;  %v6875_v11 = vrot.slane %v3006_v53, 9 }
 0x14e   :  { %2103 = vst.msk [vmem:[#allocation4 + $0x40] sm:$0xff] %vm816_vm0, %v2087_v24  ;;  %v2364_v15 = vadd.f32 %v2348_v28, %v2318_v22  ;;  %6858 = vmatmul.msk.bf16.gmra.mxu3 %vm738_vm12, %v2851_v5  ;;  %v2045_v10 = vpop.f32.mrf.mxu0  ;;  %v1668_v29 = vld [vmem:[#allocation4 + $0x58] sm:$0xff]  ;;  %v2817_v5 = vrot.slane %v2815_v59, 4  ;;  %v6874_v22 = vrot.slane %v3004_v1, 9  ;;  %v2808_v35 = vrot.slane %v2807_v50, 4 }
 0x14f   :  { %1519 = vst.msk [vmem:[#allocation4 + $0x60] sm:$0xff] %vm816_vm0, %v1503_v33  ;;  %v2824_v33 = vshll.u32 %v2603_v9, 16 }
 0x150   :  { %2380 = vst.msk [vmem:[#allocation4 + $0x38] sm:$0xff] %vm816_vm0, %v2364_v15  ;;  %v2821_v28 = vor.u32 %v2820_v44, %v2817_v5  ;;  %v1489_v15 = vld [vmem:[#allocation4 + $0x70] sm:$0xff]  ;;  %v3100_v5 = vrot.slane %v3007_v60, 5 }
 0x151   :  { %v1642_v21 = vpop.f32.mrf.mxu3 }
 0x152   :  { %v1683_v2 = vadd.f32 %v1667_v46, %v1642_v21  ;;  %v2321_v27 = vpop.f32.mrf.mxu1  ;;  %v3097_v46 = vsel %vm7843_vm1, %v6874_v22, %v3096_v63  ;;  %v2812_v21 = vrot.slane %v2810_v61, 5  ;;  %v2822_v49 = vrot.slane %v2821_v28, 4 }
 0x153   :  { %v2072_v13 = vld [vmem:[#allocation4 + $0x48] sm:$0xff]  ;;  %v1467_v54 = vpop.f32.mrf.mxu2  ;;  %v3121_v47 = vunpack.c.l.b16 %v3097_v46 }
 0x154   :  { %v2088_v45 = vadd.f32 %v2072_v13, %v2045_v10  ;;  %1699 = vst.msk [vmem:[#allocation4 + $0x50] sm:$0xff] %vm816_vm0, %v1683_v2  ;;  %v1504_v19 = vadd.f32 %v1488_v55, %v1467_v54  ;;  %v3093_v10 = vsel %vm7843_vm1, %v6873_v7, %v3092_v20  ;;  %v2826_v2 = vrot.slane %v2824_v33, 5 }
 0x155   :  { %v2349_v41 = vld [vmem:[#allocation4 + $0x40] sm:$0xff]  ;;  %v3120_v25 = vunpack.c.l.b16 %v3093_v10 }
 0x156   :  { %2104 = vst.msk [vmem:[#allocation4 + $0x48] sm:$0xff] %vm816_vm0, %v2088_v45  ;;  %v2365_v18 = vadd.f32 %v2349_v41, %v2321_v27  ;;  %v2048_v17 = vpop.f32.mrf.mxu0  ;;  %v1669_v40 = vld [vmem:[#allocation4 + $0x60] sm:$0xff]  ;;  %v2813_v27 = vsel %vm7583_vm13, %v2808_v35, %v2812_v21  ;;  %v2827_v42 = vsel %vm7583_vm13, %v2822_v49, %v2826_v2 }
 0x157   :  { %1520 = vst.msk [vmem:[#allocation4 + $0x68] sm:$0xff] %vm816_vm0, %v1504_v19  ;;  %v3130_v41 = vpack.c.b16 %v3121_v47, %v3120_v25  ;;  %v2844_v19 = vunpack.c.l.b16 %v2813_v27  ;;  %v2845_v8 = vunpack.c.l.b16 %v2827_v42  ;;  %v2526_v47 = vld [vmem:[#allocation4 + $0x10] sm:$0xff] }
 0x158   :  { %2381 = vst.msk [vmem:[#allocation4 + $0x40] sm:$0xff] %vm816_vm0, %v2365_v18  ;;  %6851 = vmatmul.msk.bf16.gmra.mxu2 %vm738_vm12, %v6843_v57  ;;  %v3008_v18 = vld [vmem:[#allocation2 + $0x98] sm:$0xe] }
 0x159   :  { %v1644_v16 = vpop.f32.mrf.mxu3  ;;  %6883 = vmatmul.msk.bf16.gmra.mxu0 %vm738_vm12, %v3129_v62  ;;  %v3009_v62 = vld [vmem:[#allocation2 + $0x9c] sm:$0x1]  ;;  %v6876_v44 = vrot.slane %v3008_v18, 9 }
 0x15a   :  { %v1684_v32 = vadd.f32 %v1668_v29, %v1644_v16  ;;  %v2323_v24 = vpop.f32.mrf.mxu1  ;;  %v3104_v31 = vrot.slane %v3009_v62, 5 }
 0x15b   :  { %v2073_v23 = vld [vmem:[#allocation4 + $0x50] sm:$0xff]  ;;  %v1470_v43 = vpop.f32.mrf.mxu2 }
 0x15c   :  { %v2089_v34 = vadd.f32 %v2073_v23, %v2048_v17  ;;  %1700 = vst.msk [vmem:[#allocation4 + $0x58] sm:$0xff] %vm816_vm0, %v1684_v32  ;;  %v1505_v48 = vadd.f32 %v1489_v15, %v1470_v43  ;;  %v2853_v17 = vpack.c.b16 %v2845_v8, %v2844_v19  ;;  %v3101_v23 = vsel %vm7843_vm1, %v6875_v11, %v3100_v5  ;;  %v2527_v19 = vld [vmem:[#allocation4 + $0x18] sm:$0xff] }
 0x15d   :  { %v2350_v30 = vld [vmem:[#allocation4 + $0x48] sm:$0xff]  ;;  %v3122_v28 = vunpack.c.l.b16 %v3101_v23 }
 0x15e   :  { %2105 = vst.msk [vmem:[#allocation4 + $0x50] sm:$0xff] %vm816_vm0, %v2089_v34  ;;  %v2366_v39 = vadd.f32 %v2350_v30, %v2323_v24  ;;  %6859 = vmatmul.msk.bf16.gmra.mxu3 %vm738_vm12, %v2852_v36  ;;  %v2050_v3 = vpop.f32.mrf.mxu0  ;;  %v1670_v57 = vld [vmem:[#allocation4 + $0x68] sm:$0xff]  ;;  %v2524_v36 = vld [vmem:[#allocation4] sm:$0xff]  ;;  %v3105_v24 = vsel %vm7843_vm1, %v6876_v44, %v3104_v31 }
 0x15f   :  { %1521 = vst.msk [vmem:[#allocation4 + $0x70] sm:$0xff] %vm816_vm0, %v1505_v48  ;;  %v3123_v33 = vunpack.c.l.b16 %v3105_v24  ;;  %v2525_v48 = vld [vmem:[#allocation4 + $0x8] sm:$0xff] }
 0x160   :  { %2382 = vst.msk [vmem:[#allocation4 + $0x48] sm:$0xff] %vm816_vm0, %v2366_v39 }
 0x161   :  { %v1647_v0 = vpop.f32.mrf.mxu3 }
 0x162   :  { %v1685_v37 = vadd.f32 %v1669_v40, %v1647_v0  ;;  %v2326_v13 = vpop.f32.mrf.mxu1 }
 0x163   :  { %v2074_v58 = vld [vmem:[#allocation4 + $0x58] sm:$0xff]  ;;  %v1472_v59 = vpop.f32.mrf.mxu2 }
 0x164   :  { %v2090_v6 = vadd.f32 %v2074_v58, %v2050_v3  ;;  %1701 = vst.msk [vmem:[#allocation4 + $0x60] sm:$0xff] %vm816_vm0, %v1685_v37  ;;  %v1506_v54 = vadd.f32 %v1490_v51, %v1472_v59  ;;  %v3131_v3 = vpack.c.b16 %v3123_v33, %v3122_v28 }
 0x165   :  { %v2351_v45 = vld [vmem:[#allocation4 + $0x50] sm:$0xff] }
 0x166   :  { %2106 = vst.msk [vmem:[#allocation4 + $0x58] sm:$0xff] %vm816_vm0, %v2090_v6  ;;  %v2367_v55 = vadd.f32 %v2351_v45, %v2326_v13  ;;  %v2053_v38 = vpop.f32.mrf.mxu0  ;;  %v1671_v63 = vld [vmem:[#allocation4 + $0x70] sm:$0xff] }
 0x167   :  { %1522 = vst.msk [vmem:[#allocation4 + $0x78] sm:$0xff] %vm816_vm0, %v1506_v54 }
 0x168   :  { %2383 = vst.msk [vmem:[#allocation4 + $0x50] sm:$0xff] %vm816_vm0, %v2367_v55 }
 0x169   :  { %v1649_v1 = vpop.f32.mrf.mxu3  ;;  %6884 = vmatmul.msk.bf16.gmra.mxu0 %vm738_vm12, %v3130_v41 }
 0x16a   :  { %v1686_v12 = vadd.f32 %v1670_v57, %v1649_v1  ;;  %v2328_v52 = vpop.f32.mrf.mxu1 }
 0x16b   :  { %v2075_v29 = vld [vmem:[#allocation4 + $0x60] sm:$0xff]  ;;  %v2484_v16 = vpop.f32.mrf.mxu2 }
 0x16c   :  { %v2091_v9 = vadd.f32 %v2075_v29, %v2053_v38  ;;  %1702 = vst.msk [vmem:[#allocation4 + $0x68] sm:$0xff] %vm816_vm0, %v1686_v12  ;;  %v2540_v32 = vadd.f32 %v2524_v36, %v2484_v16 }
 0x16d   :  { %v2352_v7 = vld [vmem:[#allocation4 + $0x58] sm:$0xff] }
 0x16e   :  { %2107 = vst.msk [vmem:[#allocation4 + $0x60] sm:$0xff] %vm816_vm0, %v2091_v9  ;;  %v2368_v20 = vadd.f32 %v2352_v7, %v2328_v52  ;;  %6860 = vmatmul.msk.bf16.gmra.mxu3 %vm738_vm12, %v2853_v17  ;;  %v2055_v22 = vpop.f32.mrf.mxu0  ;;  %v1672_v35 = vld [vmem:[#allocation4 + $0x78] sm:$0xff]  ;;  %v2528_v52 = vld [vmem:[#allocation4 + $0x20] sm:$0xff] }
 0x16f   :  { %2556 = vst.msk [vmem:[#allocation4] sm:$0xff] %vm816_vm0, %v2540_v32 }
 0x170   :  { %2384 = vst.msk [vmem:[#allocation4 + $0x58] sm:$0xff] %vm816_vm0, %v2368_v20 }
 0x171   :  { %v1652_v50 = vpop.f32.mrf.mxu3 }
 0x172   :  { %v1687_v61 = vadd.f32 %v1671_v63, %v1652_v50  ;;  %v2331_v43 = vpop.f32.mrf.mxu1 }
 0x173   :  { %v2076_v34 = vld [vmem:[#allocation4 + $0x68] sm:$0xff]  ;;  %v2486_v30 = vpop.f32.mrf.mxu2 }
 0x174   :  { %v2092_v15 = vadd.f32 %v2076_v34, %v2055_v22  ;;  %1703 = vst.msk [vmem:[#allocation4 + $0x70] sm:$0xff] %vm816_vm0, %v1687_v61  ;;  %v2541_v10 = vadd.f32 %v2525_v48, %v2486_v30  ;;  %v2529_v22 = vld [vmem:[#allocation4 + $0x28] sm:$0xff] }
 0x175   :  { %v2353_v39 = vld [vmem:[#allocation4 + $0x60] sm:$0xff] }
 0x176   :  { %2108 = vst.msk [vmem:[#allocation4 + $0x68] sm:$0xff] %vm816_vm0, %v2092_v15  ;;  %v2369_v46 = vadd.f32 %v2353_v39, %v2331_v43  ;;  %v2058_v40 = vpop.f32.mrf.mxu0  ;;  %v2930_v6 = vld [vmem:[#allocation4] sm:$0xff]  ;;  %v2530_v43 = vld [vmem:[#allocation4 + $0x30] sm:$0xff] }
 0x177   :  { %2557 = vst.msk [vmem:[#allocation4 + $0x8] sm:$0xff] %vm816_vm0, %v2541_v10 }
 0x178   :  { %2385 = vst.msk [vmem:[#allocation4 + $0x60] sm:$0xff] %vm816_vm0, %v2369_v46 }
 0x179   :  { %v1654_v21 = vpop.f32.mrf.mxu3  ;;  %6885 = vmatmul.msk.bf16.gmra.mxu0 %vm738_vm12, %v3131_v3 }
 0x17a   :  { %v1688_v49 = vadd.f32 %v1672_v35, %v1654_v21  ;;  %v2333_v0 = vpop.f32.mrf.mxu1  ;;  %v2531_v35 = vld [vmem:[#allocation4 + $0x38] sm:$0xff] }
 0x17b   :  { %v2077_v2 = vld [vmem:[#allocation4 + $0x70] sm:$0xff]  ;;  %v2489_v25 = vpop.f32.mrf.mxu2 }
 0x17c   :  { %v2093_v37 = vadd.f32 %v2077_v2, %v2058_v40  ;;  %1704 = vst.msk [vmem:[#allocation4 + $0x78] sm:$0xff] %vm816_vm0, %v1688_v49  ;;  %v2542_v13 = vadd.f32 %v2526_v47, %v2489_v25 }
 0x17d   :  { %v2354_v58 = vld [vmem:[#allocation4 + $0x68] sm:$0xff] }
 0x17e   :  { %2109 = vst.msk [vmem:[#allocation4 + $0x70] sm:$0xff] %vm816_vm0, %v2093_v37  ;;  %v2370_v27 = vadd.f32 %v2354_v58, %v2333_v0  ;;  %v2060_v42 = vpop.f32.mrf.mxu0  ;;  %v2931_v60 = vld [vmem:[#allocation4 + $0x8] sm:$0xff] }
 0x17f   :  { %2558 = vst.msk [vmem:[#allocation4 + $0x10] sm:$0xff] %vm816_vm0, %v2542_v13  ;;  %v2532_v13 = vld [vmem:[#allocation4 + $0x40] sm:$0xff] }
 0x180   :  { %2386 = vst.msk [vmem:[#allocation4 + $0x68] sm:$0xff] %vm816_vm0, %v2370_v27 }
 0x181   :  { %v2890_v59 = vpop.f32.mrf.mxu3 }
 0x182   :  { %v2946_v51 = vadd.f32 %v2930_v6, %v2890_v59  ;;  %v2336_v54 = vpop.f32.mrf.mxu1 }
 0x183   :  { %v2078_v45 = vld [vmem:[#allocation4 + $0x78] sm:$0xff]  ;;  %v2491_v41 = vpop.f32.mrf.mxu2 }
 0x184   :  { %v2094_v55 = vadd.f32 %v2078_v45, %v2060_v42  ;;  %2962 = vst.msk [vmem:[#allocation4] sm:$0xff] %vm816_vm0, %v2946_v51  ;;  %v2543_v38 = vadd.f32 %v2527_v19, %v2491_v41  ;;  %v2533_v41 = vld [vmem:[#allocation4 + $0x48] sm:$0xff] }
 0x185   :  { %v2355_v8 = vld [vmem:[#allocation4 + $0x70] sm:$0xff] }
 0x186   :  { %2110 = vst.msk [vmem:[#allocation4 + $0x78] sm:$0xff] %vm816_vm0, %v2094_v55  ;;  %v2371_v57 = vadd.f32 %v2355_v8, %v2336_v54  ;;  %v3168_v53 = vpop.f32.mrf.mxu0  ;;  %v2932_v9 = vld [vmem:[#allocation4 + $0x10] sm:$0xff] }
 0x187   :  { %2559 = vst.msk [vmem:[#allocation4 + $0x18] sm:$0xff] %vm816_vm0, %v2543_v38 }
 0x188   :  { %2387 = vst.msk [vmem:[#allocation4 + $0x70] sm:$0xff] %vm816_vm0, %v2371_v57 }
 0x189   :  { %v2892_v18 = vpop.f32.mrf.mxu3 }
 0x18a   :  { %v2947_v62 = vadd.f32 %v2931_v60, %v2892_v18  ;;  %v2338_v12 = vpop.f32.mrf.mxu1 }
 0x18b   :  { %v3208_v1 = vld [vmem:[#allocation4] sm:$0xff]  ;;  %v2494_v29 = vpop.f32.mrf.mxu2 }
 0x18c   :  { %v3224_v17 = vadd.f32 %v3208_v1, %v3168_v53  ;;  %2963 = vst.msk [vmem:[#allocation4 + $0x8] sm:$0xff] %vm816_vm0, %v2947_v62  ;;  %v2544_v5 = vadd.f32 %v2528_v52, %v2494_v29  ;;  %v2534_v1 = vld [vmem:[#allocation4 + $0x50] sm:$0xff] }
 0x18d   :  { %v2356_v11 = vld [vmem:[#allocation4 + $0x78] sm:$0xff] }
 0x18e   :  { %3240 = vst.msk [vmem:[#allocation4] sm:$0xff] %vm816_vm0, %v3224_v17  ;;  %v2372_v44 = vadd.f32 %v2356_v11, %v2338_v12  ;;  %v3170_v31 = vpop.f32.mrf.mxu0  ;;  %v2933_v24 = vld [vmem:[#allocation4 + $0x18] sm:$0xff] }
 0x18f   :  { %2560 = vst.msk [vmem:[#allocation4 + $0x20] sm:$0xff] %vm816_vm0, %v2544_v5 }
 0x190   :  { %2388 = vst.msk [vmem:[#allocation4 + $0x78] sm:$0xff] %vm816_vm0, %v2372_v44 }
 0x191   :  { %v2895_v16 = vpop.f32.mrf.mxu3 }
 0x192   :  { %v2948_v36 = vadd.f32 %v2932_v9, %v2895_v16  ;;  %v2535_v9 = vld [vmem:[#allocation4 + $0x58] sm:$0xff] }
 0x193   :  { %v3209_v7 = vld [vmem:[#allocation4 + $0x8] sm:$0xff]  ;;  %v2496_v20 = vpop.f32.mrf.mxu2 }
 0x194   :  { %v3225_v32 = vadd.f32 %v3209_v7, %v3170_v31  ;;  %2964 = vst.msk [vmem:[#allocation4 + $0x10] sm:$0xff] %vm816_vm0, %v2948_v36  ;;  %v2545_v63 = vadd.f32 %v2529_v22, %v2496_v20  ;;  %v3862_v20 = vld [vmem:[%s10410_s4] sm:$0xf] }
 0x196   :  { %3241 = vst.msk [vmem:[#allocation4 + $0x8] sm:$0xff] %vm816_vm0, %v3225_v32  ;;  %v3173_v23 = vpop.f32.mrf.mxu0  ;;  %v2934_v48 = vld [vmem:[#allocation4 + $0x20] sm:$0xff] }
 0x197   :  { %2561 = vst.msk [vmem:[#allocation4 + $0x28] sm:$0xff] %vm816_vm0, %v2545_v63  ;;  %v3929_v63 = vsel %vm3927_vm2, %v3862_v20, 0 }
 0x198   :  { %3938 = vmatpush.bf16.msra.mxu1 %v3929_v63 }
 0x199   :  { %v2897_v50 = vpop.f32.mrf.mxu3 }
 0x19a   :  { %v2949_v61 = vadd.f32 %v2933_v24, %v2897_v50 }
 0x19b   :  { %v3210_v28 = vld [vmem:[#allocation4 + $0x10] sm:$0xff]  ;;  %v2499_v34 = vpop.f32.mrf.mxu2 }
 0x19c   :  { %v3226_v33 = vadd.f32 %v3210_v28, %v3173_v23  ;;  %2965 = vst.msk [vmem:[#allocation4 + $0x18] sm:$0xff] %vm816_vm0, %v2949_v61  ;;  %v2546_v15 = vadd.f32 %v2530_v43, %v2499_v34  ;;  %v2536_v61 = vld [vmem:[#allocation4 + $0x60] sm:$0xff] }
 0x19e   :  { %3242 = vst.msk [vmem:[#allocation4 + $0x10] sm:$0xff] %vm816_vm0, %v3226_v33  ;;  %v3175_v30 = vpop.f32.mrf.mxu0  ;;  %v2935_v2 = vld [vmem:[#allocation4 + $0x28] sm:$0xff] }
 0x19f   :  { %2562 = vst.msk [vmem:[#allocation4 + $0x30] sm:$0xff] %vm816_vm0, %v2546_v15 }
 0x1a1   :  { %v2900_v39 = vpop.f32.mrf.mxu3 }
 0x1a2   :  { %v2950_v10 = vadd.f32 %v2934_v48, %v2900_v39 }
 0x1a3   :  { %v3211_v46 = vld [vmem:[#allocation4 + $0x18] sm:$0xff]  ;;  %v2501_v40 = vpop.f32.mrf.mxu2 }
 0x1a4   :  { %v3227_v3 = vadd.f32 %v3211_v46, %v3175_v30  ;;  %2966 = vst.msk [vmem:[#allocation4 + $0x20] sm:$0xff] %vm816_vm0, %v2950_v10  ;;  %v2547_v21 = vadd.f32 %v2531_v35, %v2501_v40  ;;  %v2537_v10 = vld [vmem:[#allocation4 + $0x68] sm:$0xff] }
 0x1a6   :  { %3243 = vst.msk [vmem:[#allocation4 + $0x18] sm:$0xff] %vm816_vm0, %v3227_v3  ;;  %v3178_v49 = vpop.f32.mrf.mxu0  ;;  %v2936_v6 = vld [vmem:[#allocation4 + $0x30] sm:$0xff] }
 0x1a7   :  { %2563 = vst.msk [vmem:[#allocation4 + $0x38] sm:$0xff] %vm816_vm0, %v2547_v21 }
 0x1a9   :  { %v2902_v0 = vpop.f32.mrf.mxu3 }
 0x1aa   :  { %v2951_v37 = vadd.f32 %v2935_v2, %v2902_v0 }
 0x1ab   :  { %v3212_v25 = vld [vmem:[#allocation4 + $0x20] sm:$0xff]  ;;  %v2504_v58 = vpop.f32.mrf.mxu2 }
 0x1ac   :  { %v3228_v47 = vadd.f32 %v3212_v25, %v3178_v49  ;;  %2967 = vst.msk [vmem:[#allocation4 + $0x28] sm:$0xff] %vm816_vm0, %v2951_v37  ;;  %v2548_v27 = vadd.f32 %v2532_v13, %v2504_v58  ;;  %v2538_v37 = vld [vmem:[#allocation4 + $0x70] sm:$0xff] }
 0x1ae   :  { %3244 = vst.msk [vmem:[#allocation4 + $0x20] sm:$0xff] %vm816_vm0, %v3228_v47  ;;  %v3180_v42 = vpop.f32.mrf.mxu0  ;;  %v2937_v38 = vld [vmem:[#allocation4 + $0x38] sm:$0xff] }
 0x1af   :  { %2564 = vst.msk [vmem:[#allocation4 + $0x40] sm:$0xff] %vm816_vm0, %v2548_v27 }
 0x1b1   :  { %v2905_v59 = vpop.f32.mrf.mxu3 }
 0x1b2   :  { %v2952_v51 = vadd.f32 %v2936_v6, %v2905_v59 }
 0x1b3   :  { %v3213_v45 = vld [vmem:[#allocation4 + $0x28] sm:$0xff]  ;;  %v2506_v55 = vpop.f32.mrf.mxu2 }
 0x1b4   :  { %v3229_v54 = vadd.f32 %v3213_v45, %v3180_v42  ;;  %2968 = vst.msk [vmem:[#allocation4 + $0x30] sm:$0xff] %vm816_vm0, %v2952_v51  ;;  %v2549_v19 = vadd.f32 %v2533_v41, %v2506_v55  ;;  %v2539_v51 = vld [vmem:[#allocation4 + $0x78] sm:$0xff] }
 0x1b6   :  { %3245 = vst.msk [vmem:[#allocation4 + $0x28] sm:$0xff] %vm816_vm0, %v3229_v54  ;;  %v3183_v8 = vpop.f32.mrf.mxu0  ;;  %v2938_v29 = vld [vmem:[#allocation4 + $0x40] sm:$0xff] }
 0x1b7   :  { %2565 = vst.msk [vmem:[#allocation4 + $0x48] sm:$0xff] %vm816_vm0, %v2549_v19 }
 0x1b9   :  { %v2907_v57 = vpop.f32.mrf.mxu3 }
 0x1ba   :  { %v2953_v53 = vadd.f32 %v2937_v38, %v2907_v57  ;;  %v8331_v57 = vld [vmem:[#allocation4] sm:$0xff] }
 0x1bb   :  { %v3214_v60 = vld [vmem:[#allocation4 + $0x30] sm:$0xff]  ;;  %v2509_v62 = vpop.f32.mrf.mxu2 }
 0x1bc   :  { %v3230_v18 = vadd.f32 %v3214_v60, %v3183_v8  ;;  %2969 = vst.msk [vmem:[#allocation4 + $0x38] sm:$0xff] %vm816_vm0, %v2953_v53  ;;  %v2550_v12 = vadd.f32 %v2534_v1, %v2509_v62  ;;  %v8329_v8 = vld [vmem:[#allocation4 + $0x8] sm:$0xff]  ;;  %v8334_v60 = vld [vmem:[#allocation4 + $0x10] sm:$0xff]  ;;  %v3309_v62 = vmul.f32 %v8331_v57, %v8331_v57  ;;  %v8341_v1 = vld [vmem:[#allocation4 + $0x18] sm:$0xff] }
 0x1bd   :  { %v8357_v20 = vld [vmem:[#allocation4 + $0x28] sm:$0xff] }
 0x1be   :  { %3246 = vst.msk [vmem:[#allocation4 + $0x30] sm:$0xff] %vm816_vm0, %v3230_v18  ;;  %v3185_v17 = vpop.f32.mrf.mxu0  ;;  %v2939_v7 = vld [vmem:[#allocation4 + $0x48] sm:$0xff]  ;;  %v3310_v18 = vmul.f32 %v8329_v8, %v8329_v8 }
 0x1bf   :  { %2566 = vst.msk [vmem:[#allocation4 + $0x50] sm:$0xff] %vm816_vm0, %v2550_v12 }
 0x1c1   :  { %v2910_v52 = vpop.f32.mrf.mxu3 }
 0x1c2   :  { %v2954_v11 = vadd.f32 %v2938_v29, %v2910_v52  ;;  %v3273_v29 = vsel %vm816_vm0, %v8329_v8, 0.0  ;;  %v3311_v52 = vmul.f32 %v8334_v60, %v8334_v60 }
 0x1c3   :  { %v3215_v5 = vld [vmem:[#allocation4 + $0x38] sm:$0xff]  ;;  %v2511_v31 = vpop.f32.mrf.mxu2 }
 0x1c4   :  { %v3231_v44 = vadd.f32 %v3215_v5, %v3185_v17  ;;  %2970 = vst.msk [vmem:[#allocation4 + $0x40] sm:$0xff] %vm816_vm0, %v2954_v11  ;;  %v2551_v16 = vadd.f32 %v2535_v9, %v2511_v31  ;;  %v3272_v11 = vsel %vm816_vm0, %v8331_v57, 0.0  ;;  %v8349_v5 = vld [vmem:[#allocation4 + $0x20] sm:$0xff]  ;;  %v3326_v31 = vsel %vm816_vm0, %v3310_v18, 0.0 }
 0x1c5   :  { %v3275_v9 = vsel %vm816_vm0, %v8334_v60, 0.0  ;;  %v3328_v63 = vsel %vm816_vm0, %v3311_v52, 0.0 }
 0x1c6   :  { %3247 = vst.msk [vmem:[#allocation4 + $0x38] sm:$0xff] %vm816_vm0, %v3231_v44  ;;  %v3188_v36 = vpop.f32.mrf.mxu0  ;;  %v2940_v34 = vld [vmem:[#allocation4 + $0x50] sm:$0xff] }
 0x1c7   :  { %2567 = vst.msk [vmem:[#allocation4 + $0x58] sm:$0xff] %vm816_vm0, %v2551_v16  ;;  %v3312_v16 = vmul.f32 %v8341_v1, %v8341_v1 }
 0x1c9   :  { %v2912_v32 = vpop.f32.mrf.mxu3 }
 0x1ca   :  { %v2955_v22 = vadd.f32 %v2939_v7, %v2912_v32  ;;  %v3325_v7 = vsel %vm816_vm0, %v3309_v62, 0.0  ;;  %v3274_v32 = vadd.f32 %v3273_v29, %v3272_v11 }
 0x1cb   :  { %v3216_v23 = vld [vmem:[#allocation4 + $0x40] sm:$0xff]  ;;  %v2514_v50 = vpop.f32.mrf.mxu2 }
 0x1cc   :  { %v3232_v24 = vadd.f32 %v3216_v23, %v3188_v36  ;;  %2971 = vst.msk [vmem:[#allocation4 + $0x48] sm:$0xff] %vm816_vm0, %v2955_v22  ;;  %v2552_v28 = vadd.f32 %v2536_v61, %v2514_v50  ;;  %v3277_v23 = vsel %vm816_vm0, %v8341_v1, 0.0  ;;  %v3327_v61 = vadd.f32 %v3326_v31, %v3325_v7 }
 0x1ce   :  { %3248 = vst.msk [vmem:[#allocation4 + $0x40] sm:$0xff] %vm816_vm0, %v3232_v24  ;;  %v3190_v33 = vpop.f32.mrf.mxu0  ;;  %v2941_v40 = vld [vmem:[#allocation4 + $0x58] sm:$0xff]  ;;  %v3313_v24 = vmul.f32 %v8349_v5, %v8349_v5 }
 0x1cf   :  { %2568 = vst.msk [vmem:[#allocation4 + $0x60] sm:$0xff] %vm816_vm0, %v2552_v28  ;;  %v3276_v28 = vadd.f32 %v3275_v9, %v3274_v32 }
 0x1d1   :  { %v2915_v43 = vpop.f32.mrf.mxu3 }
 0x1d2   :  { %v2956_v15 = vadd.f32 %v2940_v34, %v2915_v43  ;;  %v3330_v34 = vsel %vm816_vm0, %v3312_v16, 0.0  ;;  %v3279_v43 = vsel %vm816_vm0, %v8349_v5, 0.0 }
 0x1d3   :  { %v3217_v30 = vld [vmem:[#allocation4 + $0x48] sm:$0xff]  ;;  %v2516_v39 = vpop.f32.mrf.mxu2 }
 0x1d4   :  { %v3233_v48 = vadd.f32 %v3217_v30, %v3190_v33  ;;  %2972 = vst.msk [vmem:[#allocation4 + $0x50] sm:$0xff] %vm816_vm0, %v2956_v15  ;;  %v2553_v46 = vadd.f32 %v2537_v10, %v2516_v39  ;;  %v8365_v33 = vld [vmem:[#allocation4 + $0x30] sm:$0xff]  ;;  %v3314_v15 = vmul.f32 %v8357_v20, %v8357_v20  ;;  %v3329_v30 = vadd.f32 %v3328_v63, %v3327_v61  ;;  %v8373_v39 = vld [vmem:[#allocation4 + $0x38] sm:$0xff] }
 0x1d6   :  { %3249 = vst.msk [vmem:[#allocation4 + $0x48] sm:$0xff] %vm816_vm0, %v3233_v48  ;;  %v3193_v3 = vpop.f32.mrf.mxu0  ;;  %v2942_v58 = vld [vmem:[#allocation4 + $0x60] sm:$0xff]  ;;  %v3278_v48 = vadd.f32 %v3277_v23, %v3276_v28 }
 0x1d7   :  { %2569 = vst.msk [vmem:[#allocation4 + $0x68] sm:$0xff] %vm816_vm0, %v2553_v46  ;;  %v3332_v46 = vsel %vm816_vm0, %v3313_v24, 0.0 }
 0x1d9   :  { %v2917_v35 = vpop.f32.mrf.mxu3 }
 0x1da   :  { %v2957_v21 = vadd.f32 %v2941_v40, %v2917_v35  ;;  %v3315_v40 = vmul.f32 %v8365_v33, %v8365_v33  ;;  %v3331_v35 = vadd.f32 %v3330_v34, %v3329_v30 }
 0x1db   :  { %v3218_v49 = vld [vmem:[#allocation4 + $0x50] sm:$0xff]  ;;  %v2519_v0 = vpop.f32.mrf.mxu2 }
 0x1dc   :  { %v3234_v2 = vadd.f32 %v3218_v49, %v3193_v3  ;;  %2973 = vst.msk [vmem:[#allocation4 + $0x58] sm:$0xff] %vm816_vm0, %v2957_v21  ;;  %v2554_v25 = vadd.f32 %v2538_v37, %v2519_v0  ;;  %v3281_v3 = vsel %vm816_vm0, %v8357_v20, 0.0  ;;  %v3280_v21 = vadd.f32 %v3279_v43, %v3278_v48  ;;  %v8380_v49 = vld [vmem:[#allocation4 + $0x40] sm:$0xff] }
 0x1dd   :  { %v3334_v37 = vsel %vm816_vm0, %v3314_v15, 0.0 }
 0x1de   :  { %3250 = vst.msk [vmem:[#allocation4 + $0x50] sm:$0xff] %vm816_vm0, %v3234_v2  ;;  %v3195_v47 = vpop.f32.mrf.mxu0  ;;  %v2943_v55 = vld [vmem:[#allocation4 + $0x68] sm:$0xff] }
 0x1df   :  { %2570 = vst.msk [vmem:[#allocation4 + $0x70] sm:$0xff] %vm816_vm0, %v2554_v25  ;;  %v3283_v25 = vsel %vm816_vm0, %v8365_v33, 0.0 }
 0x1e1   :  { %v2920_v13 = vpop.f32.mrf.mxu3 }
 0x1e2   :  { %v2958_v27 = vadd.f32 %v2942_v58, %v2920_v13  ;;  %v3333_v13 = vadd.f32 %v3332_v46, %v3331_v35 }
 0x1e3   :  { %v3219_v42 = vld [vmem:[#allocation4 + $0x58] sm:$0xff]  ;;  %v2521_v59 = vpop.f32.mrf.mxu2 }
 0x1e4   :  { %v3235_v6 = vadd.f32 %v3219_v42, %v3195_v47  ;;  %2974 = vst.msk [vmem:[#allocation4 + $0x60] sm:$0xff] %vm816_vm0, %v2958_v27  ;;  %v2555_v45 = vadd.f32 %v2539_v51, %v2521_v59  ;;  %v3316_v47 = vmul.f32 %v8373_v39, %v8373_v39  ;;  %v3282_v27 = vadd.f32 %v3281_v3, %v3280_v21  ;;  %v8387_v42 = vld [vmem:[#allocation4 + $0x48] sm:$0xff] }
 0x1e5   :  { %v3336_v59 = vsel %vm816_vm0, %v3315_v40, 0.0  ;;  %v3285_v51 = vsel %vm816_vm0, %v8373_v39, 0.0  ;;  %v3318_v18 = vmul.f32 %v8387_v42, %v8387_v42  ;;  %v3289_v52 = vsel %vm816_vm0, %v8387_v42, 0.0 }
 0x1e6   :  { %3251 = vst.msk [vmem:[#allocation4 + $0x58] sm:$0xff] %vm816_vm0, %v3235_v6  ;;  %v3198_v54 = vpop.f32.mrf.mxu0  ;;  %v2944_v17 = vld [vmem:[#allocation4 + $0x70] sm:$0xff] }
 0x1e7   :  { %2571 = vst.msk [vmem:[#allocation4 + $0x78] sm:$0xff] %vm816_vm0, %v2555_v45  ;;  %v3317_v45 = vmul.f32 %v8380_v49, %v8380_v49  ;;  %v3342_v16 = vsel %vm816_vm0, %v3318_v18, 0.0 }
 0x1e9   :  { %v2922_v41 = vpop.f32.mrf.mxu3  ;;  %v3340_v29 = vsel %vm816_vm0, %v3317_v45, 0.0 }
 0x1ea   :  { %v2959_v19 = vadd.f32 %v2943_v55, %v2922_v41  ;;  %v3335_v55 = vadd.f32 %v3334_v37, %v3333_v13  ;;  %v3284_v41 = vadd.f32 %v3283_v25, %v3282_v27 }
 0x1eb   :  { %v3220_v38 = vld [vmem:[#allocation4 + $0x60] sm:$0xff] }
 0x1ec   :  { %v3236_v53 = vadd.f32 %v3220_v38, %v3198_v54  ;;  %2975 = vst.msk [vmem:[#allocation4 + $0x68] sm:$0xff] %vm816_vm0, %v2959_v19  ;;  %v8395_v19 = vld [vmem:[#allocation4 + $0x50] sm:$0xff]  ;;  %v3338_v38 = vsel %vm816_vm0, %v3316_v47, 0.0  ;;  %v3337_v62 = vadd.f32 %v3336_v59, %v3335_v55 }
 0x1ed   :  { %v3319_v11 = vmul.f32 %v8395_v19, %v8395_v19 }
 0x1ee   :  { %3252 = vst.msk [vmem:[#allocation4 + $0x60] sm:$0xff] %vm816_vm0, %v3236_v53  ;;  %v3200_v12 = vpop.f32.mrf.mxu0  ;;  %v2945_v10 = vld [vmem:[#allocation4 + $0x78] sm:$0xff]  ;;  %v3287_v53 = vsel %vm816_vm0, %v8380_v49, 0.0 }
 0x1f1   :  { %v2925_v44 = vpop.f32.mrf.mxu3 }
 0x1f2   :  { %v2960_v36 = vadd.f32 %v2944_v17, %v2925_v44  ;;  %v8403_v17 = vld [vmem:[#allocation4 + $0x58] sm:$0xff]  ;;  %v3339_v44 = vadd.f32 %v3338_v38, %v3337_v62 }
 0x1f3   :  { %v3221_v22 = vld [vmem:[#allocation4 + $0x68] sm:$0xff]  ;;  %v3320_v7 = vmul.f32 %v8403_v17, %v8403_v17  ;;  %v3293_v61 = vsel %vm816_vm0, %v8403_v17, 0.0 }
 0x1f4   :  { %v3237_v50 = vadd.f32 %v3221_v22, %v3200_v12  ;;  %2976 = vst.msk [vmem:[#allocation4 + $0x70] sm:$0xff] %vm816_vm0, %v2960_v36  ;;  %v3286_v12 = vadd.f32 %v3285_v51, %v3284_v41  ;;  %v3291_v36 = vsel %vm816_vm0, %v8395_v19, 0.0  ;;  %v3341_v32 = vadd.f32 %v3340_v29, %v3339_v44 }
 0x1f5   :  { %v8410_v9 = vld [vmem:[#allocation4 + $0x60] sm:$0xff]  ;;  %v3346_v48 = vsel %vm816_vm0, %v3320_v7, 0.0 }
 0x1f6   :  { %3253 = vst.msk [vmem:[#allocation4 + $0x68] sm:$0xff] %vm816_vm0, %v3237_v50  ;;  %v3203_v2 = vpop.f32.mrf.mxu0  ;;  %v3288_v31 = vadd.f32 %v3287_v53, %v3286_v12  ;;  %v3344_v50 = vsel %vm816_vm0, %v3319_v11, 0.0  ;;  %v3321_v28 = vmul.f32 %v8410_v9, %v8410_v9  ;;  %v3343_v43 = vadd.f32 %v3342_v16, %v3341_v32 }
 0x1f8   :  { %v3290_v22 = vadd.f32 %v3289_v52, %v3288_v31  ;;  %v3345_v3 = vadd.f32 %v3344_v50, %v3343_v43  ;;  %v3348_v35 = vsel %vm816_vm0, %v3321_v28, 0.0  ;;  %v6951_v43 = vld [vmem:[%s10410_s4 + $0x8] sm:$0xf] }
 0x1f9   :  { %v2927_v0 = vpop.f32.mrf.mxu3 }
 0x1fa   :  { %v2961_v58 = vadd.f32 %v2945_v10, %v2927_v0  ;;  %v3292_v15 = vadd.f32 %v3291_v36, %v3290_v22  ;;  %v3295_v10 = vsel %vm816_vm0, %v8410_v9, 0.0  ;;  %v3347_v0 = vadd.f32 %v3346_v48, %v3345_v3  ;;  %v3453_v3 = vld [vmem:[#allocation3 + $0x8] sm:$0x1] }
 0x1fb   :  { %v3222_v6 = vld [vmem:[#allocation4 + $0x70] sm:$0xff] }
 0x1fc   :  { %v3238_v54 = vadd.f32 %v3222_v6, %v3203_v2  ;;  %2977 = vst.msk [vmem:[#allocation4 + $0x78] sm:$0xff] %vm816_vm0, %v2961_v58  ;;  %v3294_v40 = vadd.f32 %v3293_v61, %v3292_v15  ;;  %v3349_v58 = vadd.f32 %v3348_v35, %v3347_v0  ;;  %v6960_v15 = vld [vmem:[%s10410_s4 + $0xc] sm:$0xf] }
 0x1fd   :  { %v8417_v63 = vld [vmem:[#allocation4 + $0x68] sm:$0xff] }
 0x1fe   :  { %3254 = vst.msk [vmem:[#allocation4 + $0x70] sm:$0xff] %vm816_vm0, %v3238_v54  ;;  %v3205_v23 = vpop.f32.mrf.mxu0  ;;  %v3322_v46 = vmul.f32 %v8417_v63, %v8417_v63  ;;  %v3297_v21 = vsel %vm816_vm0, %v8417_v63, 0.0  ;;  %v3296_v37 = vadd.f32 %v3295_v10, %v3294_v40  ;;  %v4581_v10 = vsel %vm3927_vm2, %v6951_v43, 0 }
 0x1ff   :  { %4590 = vmatpush.bf16.msrb.mxu3 %v4581_v10 }
 0x200   :  { %v3350_v25 = vsel %vm816_vm0, %v3322_v46, 0.0  ;;  %v3298_v13 = vadd.f32 %v3297_v21, %v3296_v37  ;;  %v4763_v46 = vsel %vm3927_vm2, %v6960_v15, 0  ;;  %v3454_v21 = vsel %vm7430_vm8, 0, %v3453_v3  ;;  %v3514_v37 = vld [vmem:[#allocation3 + $0xc] sm:$0x1] }
 0x201   :  { %v3351_v6 = vadd.f32 %v3350_v25, %v3349_v58  ;;  %4772 = vmatpush.bf16.msrb.mxu0 %v4763_v46  ;;  %3455 = vst [vmem:[#allocation3 + $0x8] sm:$0x1] %v3454_v21  ;;  %v3471_v15 = vld [vmem:[#allocation3 + $0x38] sm:$0x1] }
 0x203   :  { %v3223_v24 = vld [vmem:[#allocation4 + $0x78] sm:$0xff] }
 0x204   :  { %v3239_v34 = vadd.f32 %v3223_v24, %v3205_v23 }
 0x205   :  { %v8424_v30 = vld [vmem:[#allocation4 + $0x70] sm:$0xff] }
 0x206   :  { %3255 = vst.msk [vmem:[#allocation4 + $0x78] sm:$0xff] %vm816_vm0, %v3239_v34  ;;  %v3323_v2 = vmul.f32 %v8424_v30, %v8424_v30  ;;  %v3299_v47 = vsel %vm816_vm0, %v8424_v30, 0.0  ;;  %v6926_v34 = vld [vmem:[%s10410_s4 + $0x4] sm:$0xf] }
 0x207   :  { %v3300_v59 = vadd.f32 %v3299_v47, %v3298_v13  ;;  %v4303_v48 = vsel %vm3927_vm2, %v6926_v34, 0  ;;  %v3459_v47 = vld [vmem:[#allocation3 + $0x18] sm:$0x1]  ;;  %v3515_v13 = vsel %vm8466_vm4, 0, %v3514_v37 }
 0x208   :  { %v3352_v27 = vsel %vm816_vm0, %v3323_v2, 0.0  ;;  %4312 = vmatpush.bf16.msrb.mxu2 %v4303_v48  ;;  %v3456_v2 = vld [vmem:[#allocation3 + $0x10] sm:$0x1]  ;;  %3516 = vst [vmem:[#allocation3 + $0xc] sm:$0x1] %v3515_v13 }
 0x209   :  { %v3353_v55 = vadd.f32 %v3352_v27, %v3351_v6  ;;  %v3457_v25 = vsel %vm7430_vm8, 0, %v3456_v2  ;;  %v3462_v27 = vld [vmem:[#allocation3 + $0x20] sm:$0x1] }
 0x20a   :  { %3458 = vst [vmem:[#allocation3 + $0x10] sm:$0x1] %v3457_v25 }
 0x20d   :  { %v8441_v51 = vld [vmem:[#allocation4 + $0x78] sm:$0xff] }
 0x20e   :  { %v3301_v45 = vsel %vm816_vm0, %v8441_v51, 0.0  ;;  %v3324_v54 = vmul.f32 %v8441_v51, %v8441_v51 }
 0x20f   :  { %v3302_v41 = vadd.f32 %v3301_v45, %v3300_v59  ;;  %v3460_v59 = vsel %vm7430_vm8, 0, %v3459_v47  ;;  %v3517_v45 = vld [vmem:[#allocation3 + $0x14] sm:$0x1] }
 0x210   :  { %v3354_v38 = vsel %vm816_vm0, %v3324_v54, 0.0  ;;  %3461 = vst [vmem:[#allocation3 + $0x18] sm:$0x1] %v3460_v59 }
 0x211   :  { %v3303_v53 = vrot.slane %v3302_v41, 4  ;;  %v3355_v18 = vadd.f32 %v3354_v38, %v3353_v55  ;;  %v3450_v55 = vld [vmem:[#allocation3] sm:$0x1]  ;;  %v3463_v38 = vsel %vm7430_vm8, 0, %v3462_v27 }
 0x212   :  { %3464 = vst [vmem:[#allocation3 + $0x20] sm:$0x1] %v3463_v38 }
 0x213   :  { %v3304_v62 = vadd.f32 %v3303_v53, %v3302_v41  ;;  %v3356_v12 = vrot.slane %v3355_v18, 4  ;;  %v3511_v41 = vld [vmem:[#allocation3 + $0x4] sm:$0x1]  ;;  %v3451_v53 = vsel %vm7430_vm8, 0, %v3450_v55 }
 0x214   :  { %v3512_v4 = vsel %vm8466_vm4, 0, %v3511_v41  ;;  %3452 = vst [vmem:[#allocation3] sm:$0x1] %v3451_v53 }
 0x215   :  { %v3305_v29 = vrot.slane %v3304_v62, 2  ;;  %v3357_v52 = vadd.f32 %v3356_v12, %v3355_v18  ;;  %v3520_v18 = vld [vmem:[#allocation3 + $0x1c] sm:$0x1]  ;;  %3513 = vst [vmem:[#allocation3 + $0x4] sm:$0x1] %v3512_v4 }
 0x217   :  { %v3306_v11 = vadd.f32 %v3305_v29, %v3304_v62  ;;  %v3358_v44 = vrot.slane %v3357_v52, 2  ;;  %v3367_v62 = vld [vmem:[%s10411_s2] sm:$0x1]  ;;  %v3465_v29 = vld [vmem:[#allocation3 + $0x28] sm:$0x1] }
 0x219   :  { %v3307_v31 = vrot.slane %v3306_v11, 1  ;;  %v3359_v16 = vadd.f32 %v3358_v44, %v3357_v52  ;;  %v3518_v52 = vsel %vm8466_vm4, 0, %v3517_v45 }
 0x21a   :  { %3519 = vst [vmem:[#allocation3 + $0x14] sm:$0x1] %v3518_v52 }
 0x21b   :  { %v3308_v36 = vadd.f32 %v3307_v31, %v3306_v11  ;;  %v3360_v7 = vrot.slane %v3359_v16, 1  ;;  %v3468_v11 = vld [vmem:[#allocation3 + $0x30] sm:$0x1]  ;;  %v3521_v31 = vsel %vm8466_vm4, 0, %v3520_v18  ;;  %v3996_v25 = vld [vmem:[#allocation3] sm:$0xf] }
 0x21c   :  { %3522 = vst [vmem:[#allocation3 + $0x1c] sm:$0x1] %v3521_v31  ;;  %v8544_v59 = vld [vmem:[#allocation3 + $0x4] sm:$0x1]  ;;  %v4029_v45 = vshrl.u32 %v3996_v25, 16 }
 0x21d   :  { %v3361_v32 = vadd.f32 %v3360_v7, %v3359_v16  ;;  %v8448_v22 = vmul.f32 0.0078125, %v3308_v36  ;;  %v3523_v16 = vld [vmem:[#allocation3 + $0x24] sm:$0x1]  ;;  %v3380_v7 = vld [vmem:[%s10412_s3] sm:$0x1] }
 0x21e   :  { %v3524_v43 = vsel %vm8466_vm4, 0, %v3523_v16  ;;  %v4031_v52 = vrot.slane %v4029_v45, 4 }
 0x21f   :  { %v3363_v23 = vmul.f32 0.0078125, %v3361_v32  ;;  %v3364_v24 = vmul.f32 %v8448_v22, %v8448_v22  ;;  %v7001_v32 = vld [vmem:[%s10410_s4 + $0x10] sm:$0xf]  ;;  %3525 = vst [vmem:[#allocation3 + $0x24] sm:$0x1] %v3524_v43 }
 0x221   :  { %v3365_v50 = vsub.f32 %v3363_v23, %v3364_v24  ;;  %v3466_v23 = vsel %vm7430_vm8, 0, %v3465_v29  ;;  %v5169_v24 = vsel %vm3927_vm2, %v7001_v32, 0 }
 0x222   :  { %5178 = vmatpush.bf16.msrb.mxu1 %v5169_v24  ;;  %3467 = vst [vmem:[#allocation3 + $0x28] sm:$0x1] %v3466_v23 }
 0x223   :  { %v3366_v61 = vmax.f32 %v3365_v50, 0.0  ;;  %v3469_v50 = vsel %vm7430_vm8, 0, %v3468_v11 }
 0x224   :  { %3470 = vst [vmem:[#allocation3 + $0x30] sm:$0x1] %v3469_v50 }
 0x225   :  { %v3368_v28 = vadd.f32 1e-05, %v3366_v61  ;;  %v3526_v61 = vld [vmem:[#allocation3 + $0x2c] sm:$0x1] }
 0x226   :  { %v3527_v46 = vsel %vm8466_vm4, 0, %v3526_v61  ;;  %v3753_v61 = vld [vmem:[#allocation3 + $0xc] sm:$0x1] }
 0x227   :  { %7320 = vrsqrt.f32 %v3368_v28  ;;  %vm3375_vm7 = vweird.f32 %v3368_v28  ;;  %3528 = vst [vmem:[#allocation3 + $0x2c] sm:$0x1] %v3527_v46  ;;  %v3762_v46 = vld [vmem:[#allocation3 + $0x18] sm:$0xf] }
 0x22d   :  { %v7321_v40 = vpop.eup %7320 }
 0x22e   :  { %v3370_v0 = vmul.f32 %v7321_v40, %v3368_v28  ;;  %vm3376_vm6 = vweird.f32 %v7321_v40 }
 0x22f   :  { %vm3377_vm9 = vmor %vm3375_vm7, %vm3376_vm6 }
 0x230   :  { %v3371_v58 = vmul.f32 %v7321_v40, %v3370_v0 }
 0x232   :  { %v3372_v6 = vmul.f32 0.5, %v3371_v58 }
 0x234   :  { %v3373_v54 = vsub.f32 1.5, %v3372_v6  ;;  %v8542_v6 = vld [vmem:[#allocation3] sm:$0xe] }
 0x235   :  { %v6935_v18 = vrot.slane %v8542_v6, 9 }
 0x236   :  { %v3374_v12 = vmul.f32 %v7321_v40, %v3373_v54 }
 0x238   :  { %v3378_v44 = vsel %vm3377_vm9, %v7321_v40, %v3374_v12 }
 0x239   :  { %v3379_v36 = vmul.f32 %v3378_v44, %v3367_v62  ;;  %v4468_v62 = vrot.slane %v8544_v59, 5  ;;  %v3765_v59 = vld [vmem:[#allocation3 + $0x1c] sm:$0x1] }
 0x23b   :  { %v3381_v28 = vmul.f32 %v3379_v36, %v8448_v22  ;;  %v8511_v34 = vperm.slane %v3379_v36, 0  ;;  %v3472_v22 = vsel %vm7430_vm8, 0, %v3471_v15  ;;  %v3750_v36 = vld [vmem:[#allocation3 + $0x8] sm:$0xf] }
 0x23c   :  { %3473 = vst [vmem:[#allocation3 + $0x38] sm:$0x1] %v3472_v22 }
 0x23d   :  { %v3382_v48 = vsub.f32 %v3380_v7, %v3381_v28  ;;  %v3401_v10 = vmul.f32 %v8511_v34, %v8441_v51  ;;  %v3386_v40 = vmul.f32 %v8511_v34, %v8331_v57  ;;  %v3387_v21 = vmul.f32 %v8511_v34, %v8329_v8 }
 0x23e   :  { %v3388_v2 = vmul.f32 %v8511_v34, %v8334_v60  ;;  %v3389_v47 = vmul.f32 %v8511_v34, %v8341_v1  ;;  %v3390_v8 = vmul.f32 %v8511_v34, %v8349_v5  ;;  %v3391_v60 = vmul.f32 %v8511_v34, %v8357_v20 }
 0x23f   :  { %v8521_v3 = vperm.slane %v3382_v48, 0  ;;  %v4032_v5 = vshll.u32 %v3996_v25, 16  ;;  %v3759_v25 = vld [vmem:[#allocation3 + $0x14] sm:$0x1] }
 0x241   :  { %v8530_v51 = vadd.f32 %v8521_v3, %v3401_v10  ;;  %v3405_v0 = vadd.f32 %v8521_v3, %v3386_v40  ;;  %v3406_v37 = vadd.f32 %v8521_v3, %v3387_v21  ;;  %v3407_v57 = vadd.f32 %v8521_v3, %v3388_v2  ;;  %v3756_v10 = vld [vmem:[#allocation3 + $0x10] sm:$0xf]  ;;  %v3997_v2 = vld [vmem:[#allocation3 + $0x4] sm:$0x1] }
 0x242   :  { %v3408_v27 = vadd.f32 %v8521_v3, %v3389_v47  ;;  %v3409_v1 = vadd.f32 %v8521_v3, %v3390_v8  ;;  %v3410_v55 = vadd.f32 %v8521_v3, %v3391_v60  ;;  %v4034_v7 = vrot.slane %v4032_v5, 5 }
 0x243   :  { %v3421_v58 = vmax.f32 %v3405_v0, 0.0  ;;  %v3422_v13 = vmax.f32 %v3406_v37, 0.0  ;;  %v3423_v54 = vmax.f32 %v3407_v57, 0.0  ;;  %v3392_v40 = vmul.f32 %v8511_v34, %v8365_v33 }
 0x244   :  { %v3424_v53 = vmax.f32 %v3408_v27, 0.0  ;;  %v3425_v12 = vmax.f32 %v3409_v1, 0.0  ;;  %v3426_v44 = vmax.f32 %v3410_v55, 0.0  ;;  %v4038_v45 = vshll.u32 %v3997_v2, 16 }
 0x245   :  { %v3571_v41 = vpack.c.bf16 %v3421_v58, %v3421_v58  ;;  %v3572_v38 = vpack.c.bf16 %v3422_v13, %v3422_v13  ;;  %v3573_v4 = vpack.c.bf16 %v3423_v54, %v3423_v54  ;;  %v3768_v54 = vld [vmem:[#allocation3 + $0x20] sm:$0xf] }
 0x246   :  { %v3574_v32 = vpack.c.bf16 %v3424_v53, %v3424_v53  ;;  %v3575_v22 = vpack.c.bf16 %v3425_v12, %v3425_v12  ;;  %v3576_v47 = vpack.c.bf16 %v3426_v44, %v3426_v44  ;;  %v3411_v53 = vadd.f32 %v8521_v3, %v3392_v40  ;;  %v6888_v12 = vld [vmem:[#allocation3] sm:$0xf] }
 0x247   :  { %v3588_v20 = vshrl.u32 %v3571_v41, 16  ;;  %v3596_v29 = vshrl.u32 %v3572_v38, 16  ;;  %v3604_v11 = vshrl.u32 %v3573_v4, 16  ;;  %v3591_v16 = vshll.u32 %v3571_v41, 16 }
 0x248   :  { %v3599_v50 = vshll.u32 %v3572_v38, 16  ;;  %v3607_v43 = vshll.u32 %v3573_v4, 16  ;;  %v3612_v37 = vshrl.u32 %v3574_v32, 16  ;;  %v3615_v6 = vshll.u32 %v3574_v32, 16 }
 0x249   :  { %v3590_v31 = vrot.slane %v3588_v20, 7  ;;  %v3598_v24 = vrot.slane %v3596_v29, 7  ;;  %v3606_v28 = vrot.slane %v3604_v11, 7  ;;  %v3620_v55 = vshrl.u32 %v3575_v22, 16 }
 0x24a   :  { %v8566_v27 = vrot.slane %v3612_v37, 7  ;;  %v4035_v41 = vor.u32 %v4034_v7, %v4031_v52  ;;  %v3628_v5 = vshrl.u32 %v3576_v47, 16  ;;  %v4469_v29 = vsel %vm7843_vm1, %v6935_v18, %v4468_v62 }
 0x24b   :  { %v3593_v15 = vor.u32 %v3591_v16, %v3590_v31  ;;  %v3594_v48 = vrot.slane %v3590_v31, 4  ;;  %v3601_v21 = vor.u32 %v3599_v50, %v3598_v24  ;;  %v3609_v0 = vor.u32 %v3607_v43, %v3606_v28  ;;  %v8582_v50 = vld [vmem:[#allocation3 + $0x40] sm:$0x1] }
 0x24c   :  { %v3610_v60 = vrot.slane %v3606_v28, 4  ;;  %v3602_v58 = vrot.slane %v3598_v24, 4  ;;  %v3617_v38 = vor.u32 %v3615_v6, %v8566_v27  ;;  %v4040_v11 = vrot.slane %v4038_v45, 5  ;;  %v3780_v6 = vld [vmem:[#allocation3 + $0x30] sm:$0xf] }
 0x24d   :  { %v3751_v57 = vsel %vm8552_vm10, %v3593_v15, %v3750_v36  ;;  %v3754_v8 = vsel %vm7430_vm8, %v3594_v48, %v3753_v61  ;;  %v3757_v13 = vsel %vm8552_vm10, %v3601_v21, %v3756_v10  ;;  %v3763_v33 = vsel %vm8552_vm10, %v3609_v0, %v3762_v46  ;;  %v8584_v61 = vld [vmem:[#allocation3 + $0x34] sm:$0x1] }
 0x24e   :  { %3752 = vst [vmem:[#allocation3 + $0x8] sm:$0xf] %v3751_v57  ;;  %v3760_v1 = vsel %vm7430_vm8, %v3602_v58, %v3759_v25  ;;  %v3766_v4 = vsel %vm7430_vm8, %v3610_v60, %v3765_v59  ;;  %v3769_v20 = vsel %vm8552_vm10, %v3617_v38, %v3768_v54  ;;  %v8578_v52 = vrot.slane %v3620_v55, 7  ;;  %v3774_v25 = vld [vmem:[#allocation3 + $0x28] sm:$0xf] }
 0x24f   :  { %3758 = vst [vmem:[#allocation3 + $0x10] sm:$0xf] %v3757_v13  ;;  %v4036_v44 = vrot.slane %v4035_v41, 4  ;;  %v3623_v31 = vshll.u32 %v3575_v22, 16  ;;  %v8580_v16 = vrot.slane %v3628_v5, 7  ;;  %v3427_v36 = vmax.f32 %v3411_v53, 0.0 }
 0x250   :  { %3755 = vst [vmem:[#allocation3 + $0xc] sm:$0x1] %v3754_v8  ;;  %v4532_v62 = vunpack.c.l.b16 %v4469_v29  ;;  %v3631_v48 = vshll.u32 %v3576_v47, 16  ;;  %v8591_v60 = vld [vmem:[#allocation3 + $0x3c] sm:$0x1]  ;;  %v3626_v45 = vrot.slane %v8578_v52, 4 }
 0x251   :  { %3764 = vst [vmem:[#allocation3 + $0x18] sm:$0xf] %v3763_v33  ;;  %v3625_v2 = vor.u32 %v3623_v31, %v8578_v52  ;;  %v8589_v8 = vpack.c.bf16 %v3427_v36, %v3427_v36  ;;  %v4041_v47 = vsel %vm7583_vm13, %v4036_v44, %v4040_v11  ;;  %v3618_v33 = vrot.slane %v8566_v27, 4  ;;  %v3771_v54 = vld [vmem:[#allocation3 + $0x24] sm:$0x1] }
 0x252   :  { %3761 = vst [vmem:[#allocation3 + $0x14] sm:$0x1] %v3760_v1  ;;  %v3633_v57 = vor.u32 %v3631_v48, %v8580_v16  ;;  %v3475_v1 = vsel %vm7430_vm8, 0, %v8582_v50  ;;  %v3530_v55 = vsel %vm8466_vm4, 0, %v8584_v61  ;;  %v3777_v53 = vld [vmem:[#allocation3 + $0x2c] sm:$0x1]  ;;  %v4254_v50 = vunpack.c.l.b16 %v4041_v47 }
 0x253   :  { %3770 = vst [vmem:[#allocation3 + $0x20] sm:$0xf] %v3769_v20  ;;  %v3775_v27 = vsel %vm8552_vm10, %v3625_v2, %v3774_v25  ;;  %v3636_v52 = vshrl.u32 %v8589_v8, 16 }
 0x254   :  { %3767 = vst [vmem:[#allocation3 + $0x1c] sm:$0x1] %v3766_v4  ;;  %v3533_v4 = vsel %vm8466_vm4, 0, %v8591_v60  ;;  %v3781_v11 = vsel %vm8552_vm10, %v3633_v57, %v3780_v6  ;;  %v3393_v6 = vmul.f32 %v8511_v34, %v8373_v39 }
 0x255   :  { %v7134_v7 = vld [vmem:[#allocation3 + $0x4] sm:$0xf0]  ;;  %3776 = vst [vmem:[#allocation3 + $0x28] sm:$0xf] %v3775_v27 }
 0x256   :  { %v6963_v32 = vld [vmem:[#allocation3 + $0x8] sm:$0xf]  ;;  %v6889_v28 = vor.u32 %v7134_v7, %v6888_v12  ;;  %v7142_v43 = vld [vmem:[#allocation3 + $0xc] sm:$0xf0]  ;;  %3782 = vst [vmem:[#allocation3 + $0x30] sm:$0xf] %v3781_v11 }
 0x257   :  { %v4404_v24 = vld [vmem:[#allocation3 + $0x8] sm:$0xe]  ;;  %v6964_v10 = vor.u32 %v7142_v43, %v6963_v32  ;;  %v4405_v46 = vld [vmem:[#allocation3 + $0xc] sm:$0x1]  ;;  %v4406_v5 = vld [vmem:[#allocation3 + $0x10] sm:$0xe] }
 0x258   :  { %v6936_v18 = vrot.slane %v4404_v24, 9  ;;  %v3998_v15 = vld [vmem:[#allocation3 + $0x8] sm:$0xf]  ;;  %v3999_v40 = vld [vmem:[#allocation3 + $0xc] sm:$0x1]  ;;  %6918 = vmatmul.msk.bf16.vlgmr.msra.gmra.mxu1 %vm816_vm0, %v6889_v28  ;;  %v4472_v0 = vrot.slane %v4405_v46, 5  ;;  %v3772_v24 = vsel %vm7430_vm8, %v3618_v33, %v3771_v54 }
 0x259   :  { %v4043_v22 = vshrl.u32 %v3998_v15, 16  ;;  %v4046_v21 = vshll.u32 %v3998_v15, 16  ;;  %v4052_v37 = vshll.u32 %v3999_v40, 16  ;;  %6993 = vmatmul.msk.bf16.vlgmr.msrb.gmra.mxu0 %vm816_vm0, %v6964_v10  ;;  %v4407_v12 = vld [vmem:[#allocation3 + $0x14] sm:$0x1]  ;;  %v6937_v28 = vrot.slane %v4406_v5, 9 }
 0x25a   :  { %v4473_v59 = vsel %vm7843_vm1, %v6936_v18, %v4472_v0  ;;  %v4000_v29 = vld [vmem:[#allocation3 + $0x10] sm:$0xf]  ;;  %v4408_v36 = vld [vmem:[#allocation3 + $0x18] sm:$0xe]  ;;  %v3778_v18 = vsel %vm7430_vm8, %v3626_v45, %v3777_v53  ;;  %v4476_v15 = vrot.slane %v4407_v12, 5  ;;  %v3638_v33 = vrot.slane %v3636_v52, 7 }
 0x25b   :  { %v4045_v58 = vrot.slane %v4043_v22, 4  ;;  %v4048_v13 = vrot.slane %v4046_v21, 5  ;;  %v4533_v41 = vunpack.c.l.b16 %v4473_v59  ;;  %v4054_v20 = vrot.slane %v4052_v37, 5  ;;  %v4002_v7 = vld [vmem:[#allocation3 + $0x18] sm:$0xf] }
 0x25c   :  { %v4057_v32 = vshrl.u32 %v4000_v29, 16  ;;  %v4409_v61 = vld [vmem:[#allocation3 + $0x1c] sm:$0x1]  ;;  %v4060_v43 = vshll.u32 %v4000_v29, 16  ;;  %v4071_v10 = vshrl.u32 %v4002_v7, 16  ;;  %v6938_v40 = vrot.slane %v4408_v36, 9 }
 0x25d   :  { %v4049_v38 = vor.u32 %v4048_v13, %v4045_v58  ;;  %v4548_v44 = vpack.c.b16 %v4533_v41, %v4532_v62  ;;  %v4074_v21 = vshll.u32 %v4002_v7, 16  ;;  %3773 = vst [vmem:[#allocation3 + $0x24] sm:$0x1] %v3772_v24  ;;  %v6892_v2 = vld [vmem:[#allocation3 + $0x10] sm:$0xf]  ;;  %v4480_v37 = vrot.slane %v4409_v61, 5 }
 0x25e   :  { %v4059_v48 = vrot.slane %v4057_v32, 4  ;;  %v4062_v22 = vrot.slane %v4060_v43, 5  ;;  %v7135_v0 = vld [vmem:[#allocation3 + $0x14] sm:$0xf0]  ;;  %v4001_v25 = vld [vmem:[#allocation3 + $0x14] sm:$0x1]  ;;  %v3397_v41 = vmul.f32 %v8511_v34, %v8403_v17  ;;  %v4477_v5 = vsel %vm7843_vm1, %v6937_v28, %v4476_v15 }
 0x25f   :  { %v4050_v31 = vrot.slane %v4049_v38, 4  ;;  %6952 = vmatmul.msk.bf16.vlgmr.msrb.gmra.mxu3 %vm816_vm0, %v4548_v44  ;;  %v4073_v57 = vrot.slane %v4071_v10, 4  ;;  %3779 = vst [vmem:[#allocation3 + $0x2c] sm:$0x1] %v3778_v18  ;;  %v6967_v47 = vld [vmem:[#allocation3 + $0x18] sm:$0xf]  ;;  %v4481_v39 = vsel %vm7843_vm1, %v6938_v40, %v4480_v37  ;;  %v6893_v17 = vor.u32 %v7135_v0, %v6892_v2 }
 0x260   :  { %v4003_v58 = vld [vmem:[#allocation3 + $0x1c] sm:$0x1]  ;;  %v4076_v13 = vrot.slane %v4074_v21, 5  ;;  %3476 = vst [vmem:[#allocation3 + $0x40] sm:$0x1] %v3475_v1  ;;  %v4063_v59 = vor.u32 %v4062_v22, %v4059_v48  ;;  %v3639_v54 = vshll.u32 %v8589_v8, 16  ;;  %v8633_v12 = vadd.f32 %v8521_v3, %v3397_v41 }
 0x261   :  { %v4055_v62 = vsel %vm7583_vm13, %v4050_v31, %v4054_v20  ;;  %v4004_v45 = vld [vmem:[#allocation3 + $0x20] sm:$0xf]  ;;  %3531 = vst [vmem:[#allocation3 + $0x34] sm:$0x1] %v3530_v55  ;;  %v4066_v27 = vshll.u32 %v4001_v25, 16  ;;  %v3412_v20 = vadd.f32 %v8521_v3, %v3393_v6  ;;  %v4080_v1 = vshll.u32 %v4003_v58, 16 }
 0x262   :  { %v4255_v46 = vunpack.c.l.b16 %v4055_v62  ;;  %v7143_v38 = vld [vmem:[#allocation3 + $0x1c] sm:$0xf0]  ;;  %v4077_v53 = vor.u32 %v4076_v13, %v4073_v57  ;;  %3534 = vst [vmem:[#allocation3 + $0x3c] sm:$0x1] %v3533_v4  ;;  %v3641_v8 = vor.u32 %v3639_v54, %v3638_v33  ;;  %v3786_v55 = vld [vmem:[#allocation3 + $0x38] sm:$0xf]  ;;  %v3394_v4 = vmul.f32 %v8511_v34, %v8380_v49 }
 0x263   :  { %v3634_v29 = vrot.slane %v8580_v16, 4  ;;  %v4006_v11 = vld [vmem:[#allocation3 + $0x28] sm:$0xf]  ;;  %v4085_v52 = vshrl.u32 %v4004_v45, 16  ;;  %v4088_v44 = vshll.u32 %v4004_v45, 16  ;;  %v6968_v31 = vor.u32 %v7143_v38, %v6967_v47 }
 0x264   :  { %v4270_v60 = vpack.c.b16 %v4255_v46, %v4254_v50  ;;  %v4064_v36 = vrot.slane %v4063_v59, 4  ;;  %v4078_v7 = vrot.slane %v4077_v53, 4  ;;  %v4534_v32 = vunpack.c.l.b16 %v4477_v5  ;;  %v8639_v61 = vld [vmem:[#allocation3 + $0x20] sm:$0xe]  ;;  %v4411_v40 = vld [vmem:[#allocation3 + $0x24] sm:$0x1] }
 0x265   :  { %v4535_v24 = vunpack.c.l.b16 %v4481_v39  ;;  %v4068_v50 = vrot.slane %v4066_v27, 5  ;;  %v3787_v28 = vsel %vm8552_vm10, %v3641_v8, %v3786_v55  ;;  %v4082_v16 = vrot.slane %v4080_v1, 5  ;;  %v4005_v57 = vld [vmem:[#allocation3 + $0x24] sm:$0x1]  ;;  %v4412_v58 = vld [vmem:[#allocation3 + $0x28] sm:$0xe] }
 0x266   :  { %6927 = vmatmul.msk.bf16.vlgmr.msrb.gmra.mxu2 %vm816_vm0, %v4270_v60  ;;  %v4099_v43 = vshrl.u32 %v4006_v11, 16  ;;  %v3642_v18 = vrot.slane %v3638_v33, 4  ;;  %3788 = vst [vmem:[#allocation3 + $0x38] sm:$0xf] %v3787_v28  ;;  %v3428_v62 = vmax.f32 %v3412_v20, 0.0  ;;  %v4087_v15 = vrot.slane %v4085_v52, 4 }
 0x267   :  { %v4090_v48 = vrot.slane %v4088_v44, 5  ;;  %v4102_v49 = vshll.u32 %v4006_v11, 16  ;;  %v4069_v10 = vsel %vm7583_vm13, %v4064_v36, %v4068_v50  ;;  %v4083_v46 = vsel %vm7583_vm13, %v4078_v7, %v4082_v16  ;;  %v4413_v13 = vld [vmem:[#allocation3 + $0x2c] sm:$0x1]  ;;  %v4008_v20 = vld [vmem:[#allocation3 + $0x30] sm:$0xf] }
 0x268   :  { %6919 = vmatmul.msk.bf16.gmra.mxu1 %vm816_vm0, %v6893_v17  ;;  %v3783_v22 = vld [vmem:[#allocation3 + $0x34] sm:$0x1]  ;;  %v3413_v2 = vadd.f32 %v8521_v3, %v3394_v4  ;;  %v3395_v0 = vmul.f32 %v8511_v34, %v8387_v42  ;;  %v4549_v37 = vpack.c.b16 %v4535_v24, %v4534_v32  ;;  %v6939_v25 = vrot.slane %v8639_v61, 9  ;;  %v4007_v38 = vld [vmem:[#allocation3 + $0x2c] sm:$0x1] }
 0x269   :  { %6994 = vmatmul.msk.bf16.gmra.mxu0 %vm816_vm0, %v6968_v31  ;;  %v3789_v21 = vld [vmem:[#allocation3 + $0x3c] sm:$0x1]  ;;  %v4101_v60 = vrot.slane %v4099_v43, 4  ;;  %v4104_v47 = vrot.slane %v4102_v49, 5  ;;  %v3578_v33 = vpack.c.bf16 %v3428_v62, %v3428_v62  ;;  %v3784_v6 = vsel %vm7430_vm8, %v3634_v29, %v3783_v22  ;;  %v6896_v8 = vld [vmem:[#allocation3 + $0x20] sm:$0xf] }
 0x26a   :  { %v3790_v59 = vsel %vm7430_vm8, %v3642_v18, %v3789_v21  ;;  %v3398_v45 = vmul.f32 %v8511_v34, %v8410_v9  ;;  %v4256_v54 = vunpack.c.l.b16 %v4069_v10  ;;  %v4257_v42 = vunpack.c.l.b16 %v4083_v46  ;;  %3785 = vst [vmem:[#allocation3 + $0x34] sm:$0x1] %v3784_v6  ;;  %v7136_v9 = vld [vmem:[#allocation3 + $0x24] sm:$0xf0]  ;;  %v3483_v11 = vld [vmem:[#allocation3 + $0x58] sm:$0x1] }
 0x26b   :  { %v4484_v41 = vrot.slane %v4411_v40, 5  ;;  %v4091_v5 = vor.u32 %v4090_v48, %v4087_v15  ;;  %v4094_v27 = vshll.u32 %v4005_v57, 16  ;;  %v3644_v53 = vshrl.u32 %v3578_v33, 16  ;;  %3791 = vst [vmem:[#allocation3 + $0x3c] sm:$0x1] %v3790_v59 }
 0x26c   :  { %v8660_v39 = vadd.f32 %v8521_v3, %v3395_v0  ;;  %v3396_v1 = vmul.f32 %v8511_v34, %v8395_v19  ;;  %v6940_v55 = vrot.slane %v4412_v58, 9  ;;  %v4488_v17 = vrot.slane %v4413_v13, 5  ;;  %v3480_v4 = vld [vmem:[#allocation3 + $0x50] sm:$0x1]  ;;  %v3792_v50 = vld [vmem:[#allocation3 + $0x40] sm:$0xf] }
 0x26d   :  { %v4105_v29 = vor.u32 %v4104_v47, %v4101_v60  ;;  %v8665_v52 = vadd.f32 %v8521_v3, %v3398_v45  ;;  %v4108_v44 = vshll.u32 %v4007_v38, 16  ;;  %v8667_v31 = vrot.slane %v3644_v53, 7  ;;  %v6971_v16 = vld [vmem:[#allocation3 + $0x28] sm:$0xf]  ;;  %v7144_v15 = vld [vmem:[#allocation3 + $0x2c] sm:$0xf0] }
 0x26e   :  { %v3647_v36 = vshll.u32 %v3578_v33, 16  ;;  %v3429_v7 = vmax.f32 %v3413_v2, 0.0  ;;  %v4271_v32 = vpack.c.b16 %v4257_v42, %v4256_v54  ;;  %v4092_v24 = vrot.slane %v4091_v5, 4  ;;  %v4010_v10 = vld [vmem:[#allocation3 + $0x38] sm:$0xf] }
 0x26f   :  { %6953 = vmatmul.msk.bf16.gmra.mxu3 %vm816_vm0, %v4549_v37  ;;  %v4113_v61 = vshrl.u32 %v4008_v20, 16  ;;  %v4116_v19 = vshll.u32 %v4008_v20, 16  ;;  %v6897_v28 = vor.u32 %v7136_v9, %v6896_v8  ;;  %v4485_v43 = vsel %vm7843_vm1, %v6939_v25, %v4484_v41  ;;  %v8681_v2 = vld [vmem:[#allocation3 + $0x30] sm:$0xe]  ;;  %v8687_v57 = vld [vmem:[#allocation3 + $0x38] sm:$0xe] }
 0x270   :  { %v4096_v18 = vrot.slane %v4094_v27, 5  ;;  %v3649_v62 = vor.u32 %v3647_v36, %v8667_v31  ;;  %v4489_v48 = vsel %vm7843_vm1, %v6940_v55, %v4488_v17  ;;  %v4106_v49 = vrot.slane %v4105_v29, 4  ;;  %v3486_v58 = vld [vmem:[#allocation3 + $0x60] sm:$0x1]  ;;  %v3541_v59 = vld [vmem:[#allocation3 + $0x54] sm:$0x1] }
 0x271   :  { %v3481_v46 = vsel %vm7430_vm8, 0, %v3480_v4  ;;  %v3399_v40 = vmul.f32 %v8511_v34, %v8417_v63  ;;  %v4110_v22 = vrot.slane %v4108_v44, 5  ;;  %v3484_v0 = vsel %vm7430_vm8, 0, %v3483_v11  ;;  %v3544_v5 = vld [vmem:[#allocation3 + $0x5c] sm:$0x1] }
 0x272   :  { %v3793_v21 = vsel %vm8552_vm10, %v3649_v62, %v3792_v50  ;;  %v3579_v37 = vpack.c.bf16 %v3429_v7, %v3429_v7  ;;  %v4097_v25 = vsel %vm7583_vm13, %v4092_v24, %v4096_v18  ;;  %v4115_v60 = vrot.slane %v4113_v61, 4  ;;  %3482 = vst [vmem:[#allocation3 + $0x50] sm:$0x1] %v3481_v46  ;;  %v4415_v9 = vld [vmem:[#allocation3 + $0x34] sm:$0x1] }
 0x273   :  { %3794 = vst [vmem:[#allocation3 + $0x40] sm:$0xf] %v3793_v21  ;;  %v4118_v47 = vrot.slane %v4116_v19, 5  ;;  %v8690_v63 = vadd.f32 %v8521_v3, %v3399_v40  ;;  %v3436_v13 = vmax.f32 %v8530_v51, 0.0  ;;  %v6972_v33 = vor.u32 %v7144_v15, %v6971_v16  ;;  %v4417_v44 = vld [vmem:[#allocation3 + $0x3c] sm:$0x1] }
 0x274   :  { %v4127_v6 = vshrl.u32 %v4010_v10, 16  ;;  %v3415_v45 = vadd.f32 %v8521_v3, %v3396_v1  ;;  %v4536_v54 = vunpack.c.l.b16 %v4485_v43  ;;  %v4111_v42 = vsel %vm7583_vm13, %v4106_v49, %v4110_v22  ;;  %3485 = vst [vmem:[#allocation3 + $0x58] sm:$0x1] %v3484_v0  ;;  %v3489_v16 = vld [vmem:[#allocation3 + $0x68] sm:$0x1] }
 0x275   :  { %v4130_v41 = vshll.u32 %v4010_v10, 16  ;;  %v3652_v38 = vshrl.u32 %v3579_v37, 16  ;;  %v4537_v27 = vunpack.c.l.b16 %v4489_v48  ;;  %v4258_v53 = vunpack.c.l.b16 %v4097_v25  ;;  %v3492_v43 = vld [vmem:[#allocation3 + $0x70] sm:$0x1]  ;;  %v4011_v10 = vld [vmem:[#allocation3 + $0x3c] sm:$0x1] }
 0x276   :  { %6928 = vmatmul.msk.bf16.gmra.mxu2 %vm816_vm0, %v4271_v32  ;;  %v6941_v20 = vrot.slane %v8681_v2, 9  ;;  %v6942_v8 = vrot.slane %v8687_v57, 9  ;;  %v4119_v1 = vor.u32 %v4118_v47, %v4115_v60  ;;  %v3655_v17 = vshll.u32 %v3579_v37, 16  ;;  %v4009_v32 = vld [vmem:[#allocation3 + $0x34] sm:$0x1] }
 0x277   :  { %v8700_v55 = vrot.slane %v3652_v38, 7  ;;  %v3430_v29 = vmax.f32 %v8660_v39, 0.0  ;;  %v4259_v11 = vunpack.c.l.b16 %v4111_v42  ;;  %v3487_v36 = vsel %vm7430_vm8, 0, %v3486_v58  ;;  %v7137_v22 = vld [vmem:[#allocation3 + $0x34] sm:$0xf0] }
 0x278   :  { %6920 = vmatmul.msk.bf16.gmra.mxu1 %vm816_vm0, %v6897_v28  ;;  %v3542_v7 = vsel %vm8466_vm4, 0, %v3541_v59  ;;  %v3545_v4 = vsel %vm8466_vm4, 0, %v3544_v5  ;;  %v4129_v24 = vrot.slane %v4127_v6, 4  ;;  %v4132_v50 = vrot.slane %v4130_v41, 5  ;;  %3488 = vst [vmem:[#allocation3 + $0x60] sm:$0x1] %v3487_v36 }
 0x279   :  { %6995 = vmatmul.msk.bf16.gmra.mxu0 %vm816_vm0, %v6972_v33  ;;  %v3657_v61 = vor.u32 %v3655_v17, %v8700_v55  ;;  %v3400_v39 = vmul.f32 %v8511_v34, %v8424_v30  ;;  %v4550_v19 = vpack.c.b16 %v4537_v27, %v4536_v54  ;;  %v3580_v28 = vpack.c.bf16 %v3430_v29, %v3430_v29  ;;  %v6900_v34 = vld [vmem:[#allocation3 + $0x30] sm:$0xf]  ;;  %v6975_v47 = vld [vmem:[#allocation3 + $0x38] sm:$0xf] }
 0x27a   :  { %3543 = vst [vmem:[#allocation3 + $0x54] sm:$0x1] %v3542_v7  ;;  %v4492_v18 = vrot.slane %v4415_v9, 5  ;;  %v4496_v62 = vrot.slane %v4417_v44, 5  ;;  %v8712_v15 = vrot.slane %v4119_v1, 4  ;;  %v4272_v49 = vpack.c.b16 %v4259_v11, %v4258_v53 }
 0x27b   :  { %3546 = vst [vmem:[#allocation3 + $0x5c] sm:$0x1] %v3545_v4  ;;  %v8715_v48 = vadd.f32 %v8521_v3, %v3400_v39  ;;  %v4122_v46 = vshll.u32 %v4009_v32, 16  ;;  %v3798_v40 = vld [vmem:[#allocation3 + $0x58] sm:$0xf]  ;;  %v3660_v30 = vshrl.u32 %v3580_v28, 16  ;;  %v4133_v21 = vor.u32 %v4132_v50, %v4129_v24 }
 0x27c   :  { %v3799_v2 = vsel %vm8552_vm10, %v3657_v61, %v3798_v40  ;;  %v3431_v0 = vmax.f32 %v3415_v45, 0.0  ;;  %v3490_v37 = vsel %vm7430_vm8, 0, %v3489_v16  ;;  %v3663_v25 = vshll.u32 %v3580_v28, 16  ;;  %v7145_v5 = vld [vmem:[#allocation3 + $0x3c] sm:$0xf0] }
 0x27d   :  { %3800 = vst [vmem:[#allocation3 + $0x58] sm:$0xf] %v3799_v2  ;;  %v8722_v3 = vrot.slane %v3660_v30, 7  ;;  %v3432_v57 = vmax.f32 %v8633_v12, 0.0  ;;  %v3493_v60 = vsel %vm7430_vm8, 0, %v3492_v43  ;;  %v4493_v58 = vsel %vm7843_vm1, %v6941_v20, %v4492_v18 }
 0x27e   :  { %v4136_v33 = vshll.u32 %v4011_v10, 16  ;;  %v3658_v6 = vrot.slane %v8700_v55, 4  ;;  %3491 = vst [vmem:[#allocation3 + $0x68] sm:$0x1] %v3490_v37  ;;  %v3581_v59 = vpack.c.bf16 %v3431_v0, %v3431_v0  ;;  %v4497_v45 = vsel %vm7843_vm1, %v6942_v8, %v4496_v62  ;;  %v3547_v53 = vld [vmem:[#allocation3 + $0x64] sm:$0x1] }
 0x27f   :  { %6954 = vmatmul.msk.bf16.gmra.mxu3 %vm816_vm0, %v4550_v19  ;;  %v4124_v54 = vrot.slane %v4122_v46, 5  ;;  %v3665_v42 = vor.u32 %v3663_v25, %v8722_v3  ;;  %v3804_v41 = vld [vmem:[#allocation3 + $0x60] sm:$0xf]  ;;  %3494 = vst [vmem:[#allocation3 + $0x70] sm:$0x1] %v3493_v60  ;;  %v3582_v12 = vpack.c.bf16 %v3432_v57, %v3432_v57  ;;  %v6901_v38 = vor.u32 %v7137_v22, %v6900_v34 }
 0x280   :  { %v3668_v27 = vshrl.u32 %v3581_v59, 16  ;;  %v3433_v20 = vmax.f32 %v8665_v52, 0.0  ;;  %v4538_v9 = vunpack.c.l.b16 %v4493_v58  ;;  %v4134_v1 = vrot.slane %v4133_v21, 4  ;;  %v4012_v17 = vld [vmem:[#allocation3 + $0x50] sm:$0xf] }
 0x281   :  { %v3805_v55 = vsel %vm8552_vm10, %v3665_v42, %v3804_v41  ;;  %v3676_v29 = vshrl.u32 %v3582_v12, 16  ;;  %v4539_v11 = vunpack.c.l.b16 %v4497_v45  ;;  %v3671_v7 = vshll.u32 %v3581_v59, 16  ;;  %v3550_v4 = vld [vmem:[#allocation3 + $0x6c] sm:$0x1]  ;;  %v8753_v43 = vld [vmem:[#allocation3 + $0x50] sm:$0xe] }
 0x282   :  { %v3801_v8 = vld [vmem:[#allocation3 + $0x5c] sm:$0x1]  ;;  %3806 = vst [vmem:[#allocation3 + $0x60] sm:$0xf] %v3805_v55  ;;  %v8739_v36 = vrot.slane %v3668_v27, 7  ;;  %v6976_v32 = vor.u32 %v7145_v5, %v6975_v47  ;;  %v4138_v24 = vrot.slane %v4136_v33, 5  ;;  %v8747_v28 = vpack.c.bf16 %v3433_v20, %v3433_v20 }
 0x283   :  { %v3802_v44 = vsel %vm7430_vm8, %v3658_v6, %v3801_v8  ;;  %v8741_v52 = vrot.slane %v3676_v29, 7  ;;  %v3548_v50 = vsel %vm8466_vm4, 0, %v3547_v53  ;;  %v4141_v61 = vshrl.u32 %v4012_v17, 16  ;;  %v3495_v34 = vld [vmem:[#allocation3 + $0x78] sm:$0x1] }
 0x284   :  { %3803 = vst [vmem:[#allocation3 + $0x5c] sm:$0x1] %v3802_v44  ;;  %v4144_v39 = vshll.u32 %v4012_v17, 16  ;;  %v3673_v19 = vor.u32 %v3671_v7, %v8739_v36  ;;  %v4125_v16 = vsel %vm7583_vm13, %v8712_v15, %v4124_v54  ;;  %v4014_v18 = vld [vmem:[#allocation3 + $0x58] sm:$0xf]  ;;  %v3551_v10 = vsel %vm8466_vm4, 0, %v3550_v4 }
 0x285   :  { %v3810_v62 = vld [vmem:[#allocation3 + $0x68] sm:$0xf]  ;;  %v4139_v46 = vsel %vm7583_vm13, %v4134_v1, %v4138_v24  ;;  %3549 = vst [vmem:[#allocation3 + $0x64] sm:$0x1] %v3548_v50  ;;  %v4551_v22 = vpack.c.b16 %v4539_v11, %v4538_v9  ;;  %v4155_v21 = vshrl.u32 %v4014_v18, 16  ;;  %v4158_v15 = vshll.u32 %v4014_v18, 16 }
 0x286   :  { %6929 = vmatmul.msk.bf16.gmra.mxu2 %vm816_vm0, %v4272_v49  ;;  %v3679_v49 = vshll.u32 %v3582_v12, 16  ;;  %v3811_v40 = vsel %vm8552_vm10, %v3673_v19, %v3810_v62  ;;  %v3816_v30 = vld [vmem:[#allocation3 + $0x70] sm:$0xf]  ;;  %v3498_v0 = vld [vmem:[#allocation3 + $0x80] sm:$0x1]  ;;  %v4260_v37 = vunpack.c.l.b16 %v4125_v16  ;;  %v4143_v25 = vrot.slane %v4141_v61, 4 }
 0x287   :  { %3812 = vst [vmem:[#allocation3 + $0x68] sm:$0xf] %v3811_v40  ;;  %v3684_v57 = vshrl.u32 %v8747_v28, 16  ;;  %v3434_v60 = vmax.f32 %v8690_v63, 0.0  ;;  %v4261_v47 = vunpack.c.l.b16 %v4139_v46  ;;  %v4419_v58 = vld [vmem:[#allocation3 + $0x54] sm:$0x1]  ;;  %v8775_v63 = vpack.c.bf16 %v3436_v13, %v3436_v13 }
 0x288   :  { %6921 = vmatmul.msk.bf16.gmra.mxu1 %vm816_vm0, %v6901_v38  ;;  %v3681_v2 = vor.u32 %v3679_v49, %v8741_v52  ;;  %3552 = vst [vmem:[#allocation3 + $0x6c] sm:$0x1] %v3551_v10  ;;  %v4013_v33 = vld [vmem:[#allocation3 + $0x54] sm:$0x1]  ;;  %v4146_v6 = vrot.slane %v4144_v39, 5  ;;  %v3496_v45 = vsel %vm7430_vm8, 0, %v3495_v34 }
 0x289   :  { %6996 = vmatmul.msk.bf16.gmra.mxu0 %vm816_vm0, %v6976_v32  ;;  %v3666_v54 = vrot.slane %v8722_v3, 4  ;;  %v6943_v42 = vrot.slane %v8753_v43, 9  ;;  %v3499_v41 = vsel %vm7430_vm8, 0, %v3498_v0  ;;  %v4420_v12 = vld [vmem:[#allocation3 + $0x58] sm:$0xe]  ;;  %v4157_v5 = vrot.slane %v4155_v21, 4 }
 0x28a   :  { %v3817_v59 = vsel %vm8552_vm10, %v3681_v2, %v3816_v30  ;;  %v4160_v27 = vrot.slane %v4158_v15, 5  ;;  %v3584_v53 = vpack.c.bf16 %v3434_v60, %v3434_v60  ;;  %v4500_v20 = vrot.slane %v4419_v58, 5  ;;  %3497 = vst [vmem:[#allocation3 + $0x78] sm:$0x1] %v3496_v45  ;;  %v6904_v8 = vld [vmem:[#allocation3 + $0x50] sm:$0xf] }
 0x28b   :  { %3818 = vst [vmem:[#allocation3 + $0x70] sm:$0xf] %v3817_v59  ;;  %v4421_v38 = vld [vmem:[#allocation3 + $0x5c] sm:$0x1]  ;;  %v4150_v3 = vshll.u32 %v4013_v33, 16  ;;  %v3674_v9 = vrot.slane %v8739_v36, 4  ;;  %v4273_v55 = vpack.c.b16 %v4261_v47, %v4260_v37  ;;  %v4147_v17 = vor.u32 %v4146_v6, %v4143_v25 }
 0x28c   :  { %v8779_v1 = vrot.slane %v3684_v57, 7  ;;  %v7138_v51 = vld [vmem:[#allocation3 + $0x54] sm:$0xf0]  ;;  %v3807_v13 = vld [vmem:[#allocation3 + $0x64] sm:$0x1]  ;;  %v6944_v29 = vrot.slane %v4420_v12, 9  ;;  %v4161_v36 = vor.u32 %v4160_v27, %v4157_v5  ;;  %v4501_v18 = vsel %vm7843_vm1, %v6943_v42, %v4500_v20 }
 0x28d   :  { %3500 = vst [vmem:[#allocation3 + $0x80] sm:$0x1] %v3499_v41  ;;  %v4504_v11 = vrot.slane %v4421_v38, 5  ;;  %v4015_v44 = vld [vmem:[#allocation3 + $0x5c] sm:$0x1]  ;;  %v3808_v7 = vsel %vm7430_vm8, %v3666_v54, %v3807_v13  ;;  %v3687_v4 = vshll.u32 %v8747_v28, 16  ;;  %v6905_v46 = vor.u32 %v7138_v51, %v6904_v8 }
 0x28e   :  { %v3708_v32 = vshrl.u32 %v8775_v63, 16  ;;  %3809 = vst [vmem:[#allocation3 + $0x64] sm:$0x1] %v3808_v7  ;;  %v3692_v50 = vshrl.u32 %v3584_v53, 16  ;;  %v3553_v61 = vld [vmem:[#allocation3 + $0x74] sm:$0x1]  ;;  %v4540_v33 = vunpack.c.l.b16 %v4501_v18 }
 0x28f   :  { %6955 = vmatmul.msk.bf16.gmra.mxu3 %vm816_vm0, %v4551_v22  ;;  %v3813_v24 = vld [vmem:[#allocation3 + $0x6c] sm:$0x1]  ;;  %v6979_v39 = vld [vmem:[#allocation3 + $0x58] sm:$0xf]  ;;  %v7146_v19 = vld [vmem:[#allocation3 + $0x5c] sm:$0xf0]  ;;  %v3689_v28 = vor.u32 %v3687_v4, %v8779_v1  ;;  %v4505_v40 = vsel %vm7843_vm1, %v6944_v29, %v4504_v11 }
 0x290   :  { %v3814_v16 = vsel %vm7430_vm8, %v3674_v9, %v3813_v24  ;;  %v7026_v43 = vld [vmem:[%s10410_s4 + $0x14] sm:$0xf]  ;;  %v4148_v62 = vrot.slane %v4147_v17, 4  ;;  %v4164_v49 = vshll.u32 %v4015_v44, 16  ;;  %v3556_v10 = vld [vmem:[#allocation3 + $0x7c] sm:$0x1]  ;;  %v6980_v21 = vor.u32 %v7146_v19, %v6979_v39 }
 0x291   :  { %3815 = vst [vmem:[#allocation3 + $0x6c] sm:$0x1] %v3814_v16  ;;  %v4152_v30 = vrot.slane %v4150_v3, 5  ;;  %v4016_v34 = vld [vmem:[#allocation3 + $0x60] sm:$0xf]  ;;  %v5447_v22 = vsel %vm3927_vm2, %v7026_v43, 0  ;;  %v4541_v6 = vunpack.c.l.b16 %v4505_v40 }
 0x292   :  { %v4162_v15 = vrot.slane %v4161_v36, 4  ;;  %5456 = vmatpush.bf16.msra.mxu2 %v5447_v22  ;;  %v3822_v2 = vld [vmem:[#allocation3 + $0x78] sm:$0xf]  ;;  %v8797_v0 = vrot.slane %v3692_v50, 7  ;;  %v3695_v37 = vshll.u32 %v3584_v53, 16  ;;  %v3554_v47 = vsel %vm8466_vm4, 0, %v3553_v61 }
 0x293   :  { %v4018_v25 = vld [vmem:[#allocation3 + $0x68] sm:$0xf]  ;;  %v3823_v57 = vsel %vm8552_vm10, %v3689_v28, %v3822_v2  ;;  %v3557_v58 = vsel %vm8466_vm4, 0, %v3556_v10  ;;  %v4166_v59 = vrot.slane %v4164_v49, 5  ;;  %v8807_v45 = vld [vmem:[#allocation3 + $0x60] sm:$0xe]  ;;  %v4153_v41 = vsel %vm7583_vm13, %v4148_v62, %v4152_v30 }
 0x294   :  { %v3828_v60 = vld [vmem:[#allocation3 + $0x80] sm:$0xf]  ;;  %3824 = vst [vmem:[#allocation3 + $0x78] sm:$0xf] %v3823_v57  ;;  %v3697_v54 = vor.u32 %v3695_v37, %v8797_v0  ;;  %v3711_v42 = vshll.u32 %v8775_v63, 16  ;;  %v4169_v12 = vshrl.u32 %v4016_v34, 16  ;;  %v4552_v8 = vpack.c.b16 %v4541_v6, %v4540_v33 }
 0x295   :  { %v4172_v38 = vshll.u32 %v4016_v34, 16  ;;  %3555 = vst [vmem:[#allocation3 + $0x74] sm:$0x1] %v3554_v47  ;;  %v4167_v5 = vsel %vm7583_vm13, %v4162_v15, %v4166_v59  ;;  %v4183_v27 = vshrl.u32 %v4018_v25, 16  ;;  %v4186_v53 = vshll.u32 %v4018_v25, 16 }
 0x296   :  { %6930 = vmatmul.msk.bf16.gmra.mxu2 %vm816_vm0, %v4273_v55  ;;  %v3829_v20 = vsel %vm8552_vm10, %v3697_v54, %v3828_v60  ;;  %3558 = vst [vmem:[#allocation3 + $0x7c] sm:$0x1] %v3557_v58  ;;  %v3682_v3 = vrot.slane %v8741_v52, 4  ;;  %v6945_v9 = vrot.slane %v8807_v45, 9  ;;  %v3501_v55 = vld [vmem:[#allocation3 + $0x88] sm:$0x1]  ;;  %v4262_v51 = vunpack.c.l.b16 %v4153_v41 }
 0x297   :  { %3830 = vst [vmem:[#allocation3 + $0x80] sm:$0xf] %v3829_v20  ;;  %v4423_v17 = vld [vmem:[#allocation3 + $0x64] sm:$0x1]  ;;  %v4424_v13 = vld [vmem:[#allocation3 + $0x68] sm:$0xe]  ;;  %v4263_v11 = vunpack.c.l.b16 %v4167_v5 }
 0x298   :  { %6922 = vmatmul.msk.bf16.gmra.mxu1 %vm816_vm0, %v6905_v46  ;;  %v4017_v29 = vld [vmem:[#allocation3 + $0x64] sm:$0x1]  ;;  %v4425_v44 = vld [vmem:[#allocation3 + $0x6c] sm:$0x1]  ;;  %v4171_v7 = vrot.slane %v4169_v12, 4  ;;  %v3690_v4 = vrot.slane %v8779_v1, 4 }
 0x299   :  { %6997 = vmatmul.msk.bf16.gmra.mxu0 %vm816_vm0, %v6980_v21  ;;  %v3435_v36 = vmax.f32 %v8715_v48, 0.0  ;;  %v6908_v24 = vld [vmem:[#allocation3 + $0x60] sm:$0xf]  ;;  %v4174_v52 = vrot.slane %v4172_v38, 5  ;;  %v4185_v50 = vrot.slane %v4183_v27, 4  ;;  %v4188_v61 = vrot.slane %v4186_v53, 5 }
 0x29a   :  { %v7035_v39 = vld [vmem:[%s10410_s4 + $0x18] sm:$0xf]  ;;  %v3502_v19 = vsel %vm7430_vm8, 0, %v3501_v55  ;;  %v7139_v16 = vld [vmem:[#allocation3 + $0x64] sm:$0xf0]  ;;  %v4508_v43 = vrot.slane %v4423_v17, 5  ;;  %v4274_v46 = vpack.c.b16 %v4263_v11, %v4262_v51 }
 0x29b   :  { %v6946_v28 = vrot.slane %v4424_v13, 9  ;;  %v4178_v18 = vshll.u32 %v4017_v29, 16  ;;  %v3585_v1 = vpack.c.bf16 %v3435_v36, %v3435_v36  ;;  %v4512_v62 = vrot.slane %v4425_v44, 5  ;;  %v4019_v48 = vld [vmem:[#allocation3 + $0x6c] sm:$0x1] }
 0x29c   :  { %v3819_v49 = vld [vmem:[#allocation3 + $0x74] sm:$0x1]  ;;  %v5630_v10 = vsel %vm3927_vm2, %v7035_v39, 0  ;;  %v6983_v40 = vld [vmem:[#allocation3 + $0x68] sm:$0xf]  ;;  %v4175_v21 = vor.u32 %v4174_v52, %v4171_v7  ;;  %v4189_v15 = vor.u32 %v4188_v61, %v4185_v50  ;;  %v8834_v57 = vrot.slane %v3708_v32, 7 }
 0x29d   :  { %v3820_v30 = vsel %vm7430_vm8, %v3682_v3, %v3819_v49  ;;  %v3825_v34 = vld [vmem:[#allocation3 + $0x7c] sm:$0x1]  ;;  %5639 = vmatpush.bf16.msra.mxu3 %v5630_v10  ;;  %3503 = vst [vmem:[#allocation3 + $0x88] sm:$0x1] %v3502_v19  ;;  %v3504_v22 = vld [vmem:[#allocation3 + $0x90] sm:$0x1]  ;;  %v6909_v60 = vor.u32 %v7139_v16, %v6908_v24  ;;  %v4509_v33 = vsel %vm7843_vm1, %v6945_v9, %v4508_v43 }
 0x29e   :  { %3821 = vst [vmem:[#allocation3 + $0x74] sm:$0x1] %v3820_v30  ;;  %v3826_v2 = vsel %vm7430_vm8, %v3690_v4, %v3825_v34  ;;  %v3559_v37 = vld [vmem:[#allocation3 + $0x84] sm:$0x1]  ;;  %v3562_v25 = vld [vmem:[#allocation3 + $0x8c] sm:$0x1]  ;;  %v4513_v6 = vsel %vm7843_vm1, %v6946_v28, %v4512_v62  ;;  %v4542_v9 = vunpack.c.l.b16 %v4509_v33  ;;  %v3713_v7 = vor.u32 %v3711_v42, %v8834_v57 }
 0x29f   :  { %6956 = vmatmul.msk.bf16.gmra.mxu3 %vm816_vm0, %v4552_v8  ;;  %v7147_v47 = vld [vmem:[#allocation3 + $0x6c] sm:$0xf0]  ;;  %3827 = vst [vmem:[#allocation3 + $0x7c] sm:$0x1] %v3826_v2  ;;  %v3700_v58 = vshrl.u32 %v3585_v1, 16  ;;  %v4192_v59 = vshll.u32 %v4019_v48, 16  ;;  %v4543_v55 = vunpack.c.l.b16 %v4513_v6 }
 0x2a0   :  { %v4020_v45 = vld [vmem:[#allocation3 + $0x70] sm:$0xf]  ;;  %v4022_v54 = vld [vmem:[#allocation3 + $0x78] sm:$0xf]  ;;  %v3505_v41 = vsel %vm7430_vm8, 0, %v3504_v22  ;;  %v3703_v12 = vshll.u32 %v3585_v1, 16  ;;  %v6984_v27 = vor.u32 %v7147_v47, %v6983_v40 }
 0x2a1   :  { %v3702_v32 = vrot.slane %v3700_v58, 7  ;;  %3506 = vst [vmem:[#allocation3 + $0x90] sm:$0x1] %v3505_v41  ;;  %v3560_v38 = vsel %vm8466_vm4, 0, %v3559_v37  ;;  %v3563_v5 = vsel %vm8466_vm4, 0, %v3562_v25  ;;  %v4176_v53 = vrot.slane %v4175_v21, 4 }
 0x2a2   :  { %v4180_v20 = vrot.slane %v4178_v18, 5  ;;  %v4190_v3 = vrot.slane %v4189_v15, 4  ;;  %3561 = vst [vmem:[#allocation3 + $0x84] sm:$0x1] %v3560_v38  ;;  %v4197_v8 = vshrl.u32 %v4020_v45, 16  ;;  %v4194_v17 = vrot.slane %v4192_v59, 5 }
 0x2a3   :  { %v3705_v51 = vor.u32 %v3703_v12, %v3702_v32  ;;  %3564 = vst [vmem:[#allocation3 + $0x8c] sm:$0x1] %v3563_v5  ;;  %v4200_v13 = vshll.u32 %v4020_v45, 16  ;;  %v4211_v29 = vshrl.u32 %v4022_v54, 16  ;;  %v4214_v11 = vshll.u32 %v4022_v54, 16 }
 0x2a4   :  { %v3834_v44 = vld [vmem:[#allocation3 + $0x88] sm:$0xf]  ;;  %v4181_v36 = vsel %vm7583_vm13, %v4176_v53, %v4180_v20  ;;  %v4195_v24 = vsel %vm7583_vm13, %v4190_v3, %v4194_v17  ;;  %v3698_v52 = vrot.slane %v8797_v0, 4  ;;  %v4553_v50 = vpack.c.b16 %v4543_v55, %v4542_v9  ;;  %v4426_v61 = vld [vmem:[#allocation3 + $0x70] sm:$0xe] }
 0x2a5   :  { %v3835_v4 = vsel %vm8552_vm10, %v3705_v51, %v3834_v44  ;;  %v4428_v39 = vld [vmem:[#allocation3 + $0x78] sm:$0xe]  ;;  %v3706_v19 = vrot.slane %v3702_v32, 4  ;;  %v4199_v16 = vrot.slane %v4197_v8, 4  ;;  %v4202_v43 = vrot.slane %v4200_v13, 5 }
 0x2a6   :  { %6931 = vmatmul.msk.bf16.gmra.mxu2 %vm816_vm0, %v4274_v46  ;;  %3836 = vst [vmem:[#allocation3 + $0x88] sm:$0xf] %v3835_v4  ;;  %v4213_v63 = vrot.slane %v4211_v29, 4  ;;  %v4216_v42 = vrot.slane %v4214_v11, 5  ;;  %v4264_v18 = vunpack.c.l.b16 %v4181_v36  ;;  %v4265_v1 = vunpack.c.l.b16 %v4195_v24  ;;  %v4427_v62 = vld [vmem:[#allocation3 + $0x74] sm:$0x1] }
 0x2a7   :  { %v4429_v48 = vld [vmem:[#allocation3 + $0x7c] sm:$0x1]  ;;  %v6912_v30 = vld [vmem:[#allocation3 + $0x70] sm:$0xf]  ;;  %v7140_v22 = vld [vmem:[#allocation3 + $0x74] sm:$0xf0]  ;;  %v4203_v58 = vor.u32 %v4202_v43, %v4199_v16 }
 0x2a8   :  { %6923 = vmatmul.msk.bf16.gmra.mxu1 %vm816_vm0, %v6909_v60  ;;  %v3840_v28 = vld [vmem:[#allocation3 + $0x90] sm:$0xf]  ;;  %v7076_v40 = vld [vmem:[%s10410_s4 + $0x1c] sm:$0xf]  ;;  %v6947_v21 = vrot.slane %v4426_v61, 9  ;;  %v6948_v15 = vrot.slane %v4428_v39, 9  ;;  %v4275_v2 = vpack.c.b16 %v4265_v1, %v4264_v18  ;;  %v4217_v33 = vor.u32 %v4216_v42, %v4213_v63 }
 0x2a9   :  { %6998 = vmatmul.msk.bf16.gmra.mxu0 %vm816_vm0, %v6984_v27  ;;  %v3841_v49 = vsel %vm8552_vm10, %v3713_v7, %v3840_v28  ;;  %v3831_v10 = vld [vmem:[#allocation3 + $0x84] sm:$0x1]  ;;  %v6036_v23 = vsel %vm3927_vm2, %v7076_v40, 0  ;;  %v4516_v37 = vrot.slane %v4427_v62, 5  ;;  %v4520_v25 = vrot.slane %v4429_v48, 5 }
 0x2aa   :  { %3842 = vst [vmem:[#allocation3 + $0x90] sm:$0xf] %v3841_v49  ;;  %v3832_v0 = vsel %vm7430_vm8, %v3698_v52, %v3831_v10  ;;  %v3837_v46 = vld [vmem:[#allocation3 + $0x8c] sm:$0x1]  ;;  %6045 = vmatpush.bf16.msra.mxu0 %v6036_v23  ;;  %v4021_v60 = vld [vmem:[#allocation3 + $0x74] sm:$0x1]  ;;  %v6913_v54 = vor.u32 %v7140_v22, %v6912_v30 }
 0x2ab   :  { %3833 = vst [vmem:[#allocation3 + $0x84] sm:$0x1] %v3832_v0  ;;  %v3838_v34 = vsel %vm7430_vm8, %v3706_v19, %v3837_v46  ;;  %v4023_v47 = vld [vmem:[#allocation3 + $0x7c] sm:$0x1]  ;;  %v4024_v6 = vld [vmem:[#allocation3 + $0x80] sm:$0xf]  ;;  %v4517_v5 = vsel %vm7843_vm1, %v6947_v21, %v4516_v37  ;;  %v4521_v27 = vsel %vm7843_vm1, %v6948_v15, %v4520_v25 }
 0x2ac   :  { %3839 = vst [vmem:[#allocation3 + $0x8c] sm:$0x1] %v3838_v34  ;;  %v6987_v59 = vld [vmem:[#allocation3 + $0x78] sm:$0xf]  ;;  %v7148_v45 = vld [vmem:[#allocation3 + $0x7c] sm:$0xf0]  ;;  %v4544_v11 = vunpack.c.l.b16 %v4517_v5  ;;  %v4545_v44 = vunpack.c.l.b16 %v4521_v27 }
 0x2ad   :  { %v4206_v41 = vshll.u32 %v4021_v60, 16  ;;  %v4220_v32 = vshll.u32 %v4023_v47, 16  ;;  %v8871_v12 = vld [vmem:[#allocation3 + $0x80] sm:$0xe]  ;;  %v4862_v38 = vld [vmem:[#allocation3 + $0x8] sm:$0xf]  ;;  %v6988_v3 = vor.u32 %v7148_v45, %v6987_v59 }
 0x2ae   :  { %v4225_v53 = vshrl.u32 %v4024_v6, 16  ;;  %v4228_v20 = vshll.u32 %v4024_v6, 16  ;;  %v4204_v9 = vrot.slane %v4203_v58, 4  ;;  %v4218_v55 = vrot.slane %v4217_v33, 4  ;;  %v4026_v8 = vld [vmem:[#allocation3 + $0x88] sm:$0xf] }
 0x2af   :  { %6957 = vmatmul.msk.bf16.gmra.mxu3 %vm816_vm0, %v4553_v50  ;;  %v6949_v51 = vrot.slane %v8871_v12, 9  ;;  %v4864_v17 = vld [vmem:[#allocation3 + $0x10] sm:$0xf]  ;;  %v4895_v13 = vshrl.u32 %v4862_v38, 16  ;;  %v4898_v29 = vshll.u32 %v4862_v38, 16  ;;  %v4208_v7 = vrot.slane %v4206_v41, 5 }
 0x2b0   :  { %v4222_v4 = vrot.slane %v4220_v32, 5  ;;  %v4227_v36 = vrot.slane %v4225_v53, 4  ;;  %v4230_v24 = vrot.slane %v4228_v20, 5  ;;  %v4239_v52 = vshrl.u32 %v4026_v8, 16  ;;  %v5729_v61 = vld [vmem:[#allocation3 + $0x10] sm:$0xf] }
 0x2b1   :  { %v4242_v50 = vshll.u32 %v4026_v8, 16  ;;  %v4209_v39 = vsel %vm7583_vm13, %v4204_v9, %v4208_v7  ;;  %v4909_v16 = vshrl.u32 %v4864_v17, 16  ;;  %v4912_v43 = vshll.u32 %v4864_v17, 16  ;;  %v4863_v63 = vld [vmem:[#allocation3 + $0xc] sm:$0x1] }
 0x2b2   :  { %v4223_v19 = vsel %vm7583_vm13, %v4218_v55, %v4222_v4  ;;  %v4897_v42 = vrot.slane %v4895_v13, 4  ;;  %v4900_v28 = vrot.slane %v4898_v29, 5  ;;  %v7101_v18 = vld [vmem:[%s10410_s4 + $0x20] sm:$0xf]  ;;  %v4554_v1 = vpack.c.b16 %v4545_v44, %v4544_v11  ;;  %v4431_v62 = vld [vmem:[#allocation3 + $0x84] sm:$0x1] }
 0x2b3   :  { %v5731_v48 = vld [vmem:[#allocation3 + $0x18] sm:$0xf]  ;;  %v5762_v49 = vshrl.u32 %v5729_v61, 16  ;;  %v5765_v10 = vshll.u32 %v5729_v61, 16  ;;  %v4266_v0 = vunpack.c.l.b16 %v4209_v39  ;;  %v4267_v46 = vunpack.c.l.b16 %v4223_v19  ;;  %v4432_v40 = vld [vmem:[#allocation3 + $0x88] sm:$0xe] }
 0x2b4   :  { %v4241_v30 = vrot.slane %v4239_v52, 4  ;;  %v4244_v34 = vrot.slane %v4242_v50, 5  ;;  %v4865_v23 = vld [vmem:[#allocation3 + $0x14] sm:$0x1]  ;;  %v4433_v22 = vld [vmem:[#allocation3 + $0x8c] sm:$0x1]  ;;  %v4231_v21 = vor.u32 %v4230_v24, %v4227_v36  ;;  %v4901_v59 = vor.u32 %v4900_v28, %v4897_v42 }
 0x2b5   :  { %v4911_v15 = vrot.slane %v4909_v16, 4  ;;  %v6314_v37 = vsel %vm3927_vm2, %v7101_v18, 0  ;;  %v4524_v25 = vrot.slane %v4431_v62, 5  ;;  %v4025_v60 = vld [vmem:[#allocation3 + $0x84] sm:$0x1]  ;;  %v4904_v47 = vshll.u32 %v4863_v63, 16 }
 0x2b6   :  { %6932 = vmatmul.msk.bf16.gmra.mxu2 %vm816_vm0, %v4275_v2  ;;  %v4914_v2 = vrot.slane %v4912_v43, 5  ;;  %v5776_v58 = vshrl.u32 %v5731_v48, 16  ;;  %v5779_v33 = vshll.u32 %v5731_v48, 16  ;;  %6323 = vmatpush.bf16.msra.mxu1 %v6314_v37  ;;  %v4027_v6 = vld [vmem:[#allocation3 + $0x8c] sm:$0x1]  ;;  %v4918_v45 = vshll.u32 %v4865_v23, 16 }
 0x2b7   :  { %v5767_v41 = vrot.slane %v5765_v10, 5  ;;  %v4276_v32 = vpack.c.b16 %v4267_v46, %v4266_v0  ;;  %v6916_v38 = vld [vmem:[#allocation3 + $0x80] sm:$0xf]  ;;  %v7141_v5 = vld [vmem:[#allocation3 + $0x84] sm:$0xf0]  ;;  %v6950_v27 = vrot.slane %v4432_v40, 9  ;;  %v4245_v20 = vor.u32 %v4244_v34, %v4241_v30 }
 0x2b8   :  { %6924 = vmatmul.msk.bf16.gmra.mxu1 %vm816_vm0, %v6913_v54  ;;  %v5764_v54 = vrot.slane %v5762_v49, 4  ;;  %v4528_v53 = vrot.slane %v4433_v22, 5  ;;  %v4232_v9 = vrot.slane %v4231_v21, 4  ;;  %v4234_v55 = vshll.u32 %v4025_v60, 16  ;;  %v5730_v17 = vld [vmem:[#allocation3 + $0x14] sm:$0x1] }
 0x2b9   :  { %6999 = vmatmul.msk.bf16.gmra.mxu0 %vm816_vm0, %v6988_v3  ;;  %v6991_v3 = vld [vmem:[#allocation3 + $0x88] sm:$0xf]  ;;  %v4915_v8 = vor.u32 %v4914_v2, %v4911_v15  ;;  %v7149_v13 = vld [vmem:[#allocation3 + $0x8c] sm:$0xf0]  ;;  %v4525_v29 = vsel %vm7843_vm1, %v6949_v51, %v4524_v25  ;;  %v4248_v11 = vshll.u32 %v4027_v6, 16  ;;  %v5778_v44 = vrot.slane %v5776_v58, 4 }
 0x2ba   :  { %v5781_v7 = vrot.slane %v5779_v33, 5  ;;  %v6917_v4 = vor.u32 %v7141_v5, %v6916_v38  ;;  %v4902_v36 = vrot.slane %v4901_v59, 4  ;;  %v4906_v24 = vrot.slane %v4904_v47, 5  ;;  %v4866_v50 = vld [vmem:[#allocation3 + $0x18] sm:$0xf] }
 0x2bb   :  { %v5768_v52 = vor.u32 %v5767_v41, %v5764_v54  ;;  %v4529_v61 = vsel %vm7843_vm1, %v6950_v27, %v4528_v53  ;;  %v4246_v39 = vrot.slane %v4245_v20, 4  ;;  %v4920_v19 = vrot.slane %v4918_v45, 5  ;;  %v5732_v16 = vld [vmem:[#allocation3 + $0x1c] sm:$0x1]  ;;  %v5268_v34 = vld [vmem:[#allocation3 + $0x8] sm:$0xe] }
 0x2bc   :  { %v5771_v43 = vshll.u32 %v5730_v17, 16  ;;  %v6992_v63 = vor.u32 %v7149_v13, %v6991_v3  ;;  %v4546_v12 = vunpack.c.l.b16 %v4525_v29  ;;  %v4236_v42 = vrot.slane %v4234_v55, 5  ;;  %v5269_v23 = vld [vmem:[#allocation3 + $0xc] sm:$0x1]  ;;  %v5270_v22 = vld [vmem:[#allocation3 + $0x10] sm:$0xe] }
 0x2bd   :  { %v4916_v28 = vrot.slane %v4915_v8, 4  ;;  %v4250_v51 = vrot.slane %v4248_v11, 5  ;;  %v5782_v18 = vor.u32 %v5781_v7, %v5778_v44  ;;  %v4923_v62 = vshrl.u32 %v4866_v50, 16  ;;  %v5271_v2 = vld [vmem:[#allocation3 + $0x14] sm:$0x1] }
 0x2be   :  { %v4926_v48 = vshll.u32 %v4866_v50, 16  ;;  %v4547_v49 = vunpack.c.l.b16 %v4529_v61  ;;  %v4237_v10 = vsel %vm7583_vm13, %v4232_v9, %v4236_v42  ;;  %v5769_v0 = vrot.slane %v5768_v52, 4  ;;  %v5733_v6 = vld [vmem:[#allocation3 + $0x20] sm:$0xf]  ;;  %v4867_v20 = vld [vmem:[#allocation3 + $0x1c] sm:$0x1] }
 0x2bf   :  { %6958 = vmatmul.msk.bf16.gmra.mxu3 %vm816_vm0, %v4554_v1  ;;  %v4868_v1 = vld [vmem:[#allocation3 + $0x20] sm:$0xf]  ;;  %v5785_v46 = vshll.u32 %v5732_v16, 16  ;;  %v4251_v40 = vsel %vm7583_vm13, %v4246_v39, %v4250_v51  ;;  %v4907_v30 = vsel %vm7583_vm13, %v4902_v36, %v4906_v24  ;;  %v4921_v21 = vsel %vm7583_vm13, %v4916_v28, %v4920_v19  ;;  %v4869_v50 = vld [vmem:[#allocation3 + $0x24] sm:$0x1] }
 0x2c0   :  { %v5773_v15 = vrot.slane %v5771_v43, 5  ;;  %v4937_v37 = vshrl.u32 %v4868_v1, 16  ;;  %v4940_v25 = vshll.u32 %v4868_v1, 16  ;;  %v4268_v60 = vunpack.c.l.b16 %v4237_v10  ;;  %v5736_v10 = vld [vmem:[#allocation3 + $0x2c] sm:$0x1] }
 0x2c1   :  { %v5783_v47 = vrot.slane %v5782_v18, 4  ;;  %v4925_v58 = vrot.slane %v4923_v62, 4  ;;  %v4928_v33 = vrot.slane %v4926_v48, 5  ;;  %v4555_v59 = vpack.c.b16 %v4547_v49, %v4546_v12  ;;  %v5734_v12 = vld [vmem:[#allocation3 + $0x24] sm:$0x1] }
 0x2c2   :  { %v4269_v45 = vunpack.c.l.b16 %v4251_v40  ;;  %v5774_v54 = vsel %vm7583_vm13, %v5769_v0, %v5773_v15  ;;  %v5787_v41 = vrot.slane %v5785_v46, 5  ;;  %v7010_v38 = vrot.slane %v5268_v34, 9  ;;  %v7038_v46 = vld [vmem:[#allocation3 + $0x10] sm:$0xf]  ;;  %v7150_v40 = vld [vmem:[#allocation3 + $0x14] sm:$0xf0] }
 0x2c3   :  { %v5334_v5 = vrot.slane %v5269_v23, 5  ;;  %v7011_v27 = vrot.slane %v5270_v22, 9  ;;  %v5338_v53 = vrot.slane %v5271_v2, 5  ;;  %v4939_v3 = vrot.slane %v4937_v37, 4 }
 0x2c4   :  { %v4942_v9 = vrot.slane %v4940_v25, 5  ;;  %v5790_v55 = vshrl.u32 %v5733_v6, 16  ;;  %v5793_v8 = vshll.u32 %v5733_v6, 16  ;;  %v5788_v17 = vsel %vm7583_vm13, %v5783_v47, %v5787_v41  ;;  %v4870_v25 = vld [vmem:[#allocation3 + $0x28] sm:$0xf] }
 0x2c5   :  { %v4929_v13 = vor.u32 %v4928_v33, %v4925_v58  ;;  %v4277_v44 = vpack.c.b16 %v4269_v45, %v4268_v60  ;;  %v5120_v7 = vunpack.c.l.b16 %v4907_v30  ;;  %v5987_v36 = vunpack.c.l.b16 %v5774_v54  ;;  %v3535_v60 = vld [vmem:[#allocation3 + $0x44] sm:$0x1]  ;;  %v5272_v33 = vld [vmem:[#allocation3 + $0x18] sm:$0xe]  ;;  %v5273_v6 = vld [vmem:[#allocation3 + $0x1c] sm:$0x1] }
 0x2c6   :  { %6933 = vmatmul.msk.bf16.gmra.mxu2 %vm816_vm0, %v4276_v32  ;;  %v5735_v32 = vld [vmem:[#allocation3 + $0x28] sm:$0xf]  ;;  %v5335_v24 = vsel %vm7843_vm1, %v7010_v38, %v5334_v5  ;;  %v5339_v52 = vsel %vm7843_vm1, %v7011_v27, %v5338_v53  ;;  %v4932_v61 = vshll.u32 %v4867_v20, 16  ;;  %v5988_v39 = vunpack.c.l.b16 %v5788_v17  ;;  %v5737_v45 = vld [vmem:[#allocation3 + $0x30] sm:$0xf] }
 0x2c7   :  { %v5804_v29 = vshrl.u32 %v5735_v32, 16  ;;  %v5807_v11 = vshll.u32 %v5735_v32, 16  ;;  %v4943_v19 = vor.u32 %v4942_v9, %v4939_v3  ;;  %v5792_v16 = vrot.slane %v5790_v55, 4  ;;  %v5274_v5 = vld [vmem:[#allocation3 + $0x20] sm:$0xe] }
 0x2c8   :  { %6925 = vmatmul.msk.bf16.gmra.mxu1 %vm816_vm0, %v6917_v4  ;;  %v5121_v4 = vunpack.c.l.b16 %v4921_v21  ;;  %v5795_v43 = vrot.slane %v5793_v8, 5  ;;  %v4946_v18 = vshll.u32 %v4869_v50, 16  ;;  %v5398_v62 = vunpack.c.l.b16 %v5335_v24  ;;  %v5739_v27 = vld [vmem:[#allocation3 + $0x38] sm:$0xf]  ;;  %v5275_v20 = vld [vmem:[#allocation3 + $0x24] sm:$0x1] }
 0x2c9   :  { %7000 = vmatmul.msk.bf16.gmra.mxu0 %vm816_vm0, %v6992_v63  ;;  %v4930_v63 = vrot.slane %v4929_v13, 4  ;;  %v5806_v42 = vrot.slane %v5804_v29, 4  ;;  %v5809_v28 = vrot.slane %v5807_v11, 5  ;;  %v5399_v48 = vunpack.c.l.b16 %v5339_v52  ;;  %v3477_v24 = vld [vmem:[#allocation3 + $0x48] sm:$0x1] }
 0x2ca   :  { %v5136_v1 = vpack.c.b16 %v5121_v4, %v5120_v7  ;;  %v4934_v49 = vrot.slane %v4932_v61, 5  ;;  %v6003_v0 = vpack.c.b16 %v5988_v39, %v5987_v36  ;;  %v4944_v30 = vrot.slane %v4943_v19, 4  ;;  %v3538_v19 = vld [vmem:[#allocation3 + $0x4c] sm:$0x1] }
 0x2cb   :  { %v5796_v34 = vor.u32 %v5795_v43, %v5792_v16  ;;  %v5799_v23 = vshll.u32 %v5734_v12, 16  ;;  %v3650_v22 = vrot.slane %v8667_v31, 4  ;;  %v5810_v15 = vor.u32 %v5809_v28, %v5806_v42 }
 0x2cc   :  { %v4935_v21 = vsel %vm7583_vm13, %v4930_v63, %v4934_v49  ;;  %v4948_v2 = vrot.slane %v4946_v18, 5  ;;  %v5813_v37 = vshll.u32 %v5736_v10, 16  ;;  %v7039_v47 = vor.u32 %v7150_v40, %v7038_v46  ;;  %v4871_v40 = vld [vmem:[#allocation3 + $0x2c] sm:$0x1] }
 0x2cd   :  { %v5414_v58 = vpack.c.b16 %v5399_v48, %v5398_v62  ;;  %v8927_v41 = vunpack.c.l.b16 %v4935_v21  ;;  %v5797_v32 = vrot.slane %v5796_v34, 4  ;;  %v5801_v38 = vrot.slane %v5799_v23, 5 }
 0x2ce   :  { %v4949_v54 = vsel %vm7583_vm13, %v4944_v30, %v4948_v2  ;;  %v5811_v53 = vrot.slane %v5810_v15, 4  ;;  %v4951_v3 = vshrl.u32 %v4870_v25, 16  ;;  %v4954_v9 = vshll.u32 %v4870_v25, 16  ;;  %v4873_v15 = vld [vmem:[#allocation3 + $0x34] sm:$0x1] }
 0x2cf   :  { %6959 = vmatmul.msk.bf16.gmra.mxu3 %vm816_vm0, %v4555_v59  ;;  %v4872_v59 = vld [vmem:[#allocation3 + $0x30] sm:$0xf]  ;;  %v3536_v55 = vsel %vm8466_vm4, 0, %v3535_v60  ;;  %v5815_v17 = vrot.slane %v5813_v37, 5  ;;  %v5818_v11 = vshrl.u32 %v5737_v45, 16  ;;  %v5821_v7 = vshll.u32 %v5737_v45, 16 }
 0x2d0   :  { %v4965_v13 = vshrl.u32 %v4872_v59, 16  ;;  %v4968_v29 = vshll.u32 %v4872_v59, 16  ;;  %3537 = vst [vmem:[#allocation3 + $0x44] sm:$0x1] %v3536_v55  ;;  %v5832_v4 = vshrl.u32 %v5739_v27, 16  ;;  %v5835_v36 = vshll.u32 %v5739_v27, 16 }
 0x2d1   :  { %v7012_v52 = vrot.slane %v5272_v33, 9  ;;  %v5342_v50 = vrot.slane %v5273_v6, 5  ;;  %v7013_v61 = vrot.slane %v5274_v5, 9  ;;  %v5346_v39 = vrot.slane %v5275_v20, 5  ;;  %v5738_v37 = vld [vmem:[#allocation3 + $0x34] sm:$0x1] }
 0x2d2   :  { %v5802_v16 = vsel %vm7583_vm13, %v5797_v32, %v5801_v38  ;;  %v5816_v43 = vsel %vm7583_vm13, %v5811_v53, %v5815_v17  ;;  %v4953_v63 = vrot.slane %v4951_v3, 4  ;;  %v4956_v12 = vrot.slane %v4954_v9, 5  ;;  %v5740_v25 = vld [vmem:[#allocation3 + $0x3c] sm:$0x1]  ;;  %v4874_v5 = vld [vmem:[#allocation3 + $0x38] sm:$0xf] }
 0x2d3   :  { %v4967_v42 = vrot.slane %v4965_v13, 4  ;;  %v4970_v28 = vrot.slane %v4968_v29, 5  ;;  %v3478_v18 = vsel %vm7430_vm8, 0, %v3477_v24  ;;  %v5823_v62 = vrot.slane %v5821_v7, 5  ;;  %v7042_v27 = vld [vmem:[#allocation3 + $0x20] sm:$0xf] }
 0x2d4   :  { %v5834_v48 = vrot.slane %v5832_v4, 4  ;;  %v5837_v49 = vrot.slane %v5835_v36, 5  ;;  %3479 = vst [vmem:[#allocation3 + $0x48] sm:$0x1] %v3478_v18  ;;  %v3539_v10 = vsel %vm8466_vm4, 0, %v3538_v19  ;;  %v5990_v46 = vunpack.c.l.b16 %v5816_v43 }
 0x2d5   :  { %v3940_v51 = vpop.f32.mrf.mxu1  ;;  %3540 = vst [vmem:[#allocation3 + $0x4c] sm:$0x1] %v3539_v10  ;;  %v5343_v21 = vsel %vm7843_vm1, %v7012_v52, %v5342_v50  ;;  %v4957_v2 = vor.u32 %v4956_v12, %v4953_v63  ;;  %v5827_v32 = vshll.u32 %v5738_v37, 16  ;;  %v5841_v38 = vshll.u32 %v5740_v25, 16  ;;  %v7151_v55 = vld [vmem:[#allocation3 + $0x24] sm:$0xf0] }
 0x2d6   :  { %6934 = vmatmul.msk.bf16.gmra.mxu2 %vm816_vm0, %v4277_v44  ;;  %3980 = vst.msk [vmem:[%s10413_s7] sm:$0xff] %vm816_vm0, %v3940_v51  ;;  %v5123_v44 = vunpack.c.l.b16 %v4949_v54  ;;  %v5820_v51 = vrot.slane %v5818_v11, 4  ;;  %v5838_v6 = vor.u32 %v5837_v49, %v5834_v48  ;;  %v4960_v54 = vshll.u32 %v4871_v40, 16  ;;  %v4876_v11 = vld [vmem:[#allocation3 + $0x40] sm:$0xf] }
 0x2d7   :  { %v3795_v30 = vld [vmem:[#allocation3 + $0x44] sm:$0x1]  ;;  %v5400_v53 = vunpack.c.l.b16 %v5343_v21  ;;  %v4958_v3 = vrot.slane %v4957_v2, 4  ;;  %v4982_v7 = vshll.u32 %v4874_v5, 16  ;;  %v5829_v36 = vrot.slane %v5827_v32, 5 }
 0x2d8   :  { %7002 = vmatmul.msk.bf16.vlgmr.msrb.gmra.mxu1 %vm816_vm0, %v5136_v1  ;;  %v5137_v23 = vpack.c.b16 %v5123_v44, %v8927_v41  ;;  %v3796_v60 = vsel %vm7430_vm8, %v3650_v22, %v3795_v30  ;;  %v5824_v33 = vor.u32 %v5823_v62, %v5820_v51  ;;  %v4974_v41 = vshll.u32 %v4873_v15, 16  ;;  %v5741_v52 = vld [vmem:[#allocation3 + $0x40] sm:$0xf]  ;;  %v5277_v43 = vld [vmem:[#allocation3 + $0x2c] sm:$0x1] }
 0x2d9   :  { %7077 = vmatmul.msk.bf16.vlgmr.msra.gmra.mxu0 %vm816_vm0, %v6003_v0  ;;  %v5989_v0 = vunpack.c.l.b16 %v5802_v16  ;;  %3797 = vst [vmem:[#allocation3 + $0x44] sm:$0x1] %v3796_v60  ;;  %v5839_v13 = vrot.slane %v5838_v6, 4  ;;  %v4962_v29 = vrot.slane %v4960_v54, 5  ;;  %v4979_v44 = vshrl.u32 %v4874_v5, 16 }
 0x2da   :  { %v5825_v17 = vrot.slane %v5824_v33, 4  ;;  %v4976_v4 = vrot.slane %v4974_v41, 5  ;;  %v5843_v24 = vrot.slane %v5841_v38, 5  ;;  %v5276_v16 = vld [vmem:[#allocation3 + $0x28] sm:$0xe]  ;;  %v4993_v62 = vshrl.u32 %v4876_v11, 16 }
 0x2db   :  { %v6004_v31 = vpack.c.b16 %v5990_v46, %v5989_v0  ;;  %v4963_v19 = vsel %vm7583_vm13, %v4958_v3, %v4962_v29  ;;  %v5743_v63 = vld [vmem:[#allocation3 + $0x48] sm:$0xf]  ;;  %v5278_v51 = vld [vmem:[#allocation3 + $0x30] sm:$0xe]  ;;  %v5279_v18 = vld [vmem:[#allocation3 + $0x34] sm:$0x1] }
 0x2dc   :  { %v4981_v10 = vrot.slane %v4979_v44, 4  ;;  %v4984_v0 = vrot.slane %v4982_v7, 5  ;;  %v4996_v46 = vshll.u32 %v4876_v11, 16  ;;  %v5846_v40 = vshrl.u32 %v5741_v52, 16  ;;  %v4878_v38 = vld [vmem:[#allocation3 + $0x58] sm:$0xf] }
 0x2dd   :  { %v3942_v8 = vpop.f32.mrf.mxu1  ;;  %v4354_v45 = vld [vmem:[%s10413_s7] sm:$0xff]  ;;  %v5863_v21 = vshll.u32 %v5743_v63, 16  ;;  %v5124_v2 = vunpack.c.l.b16 %v4963_v19  ;;  %v7014_v37 = vrot.slane %v5276_v16, 9  ;;  %v5350_v25 = vrot.slane %v5277_v43, 5  ;;  %v7046_v3 = vld [vmem:[#allocation3 + $0x30] sm:$0xf] }
 0x2de   :  { %3981 = vst.msk [vmem:[%s10413_s7 + $0x8] sm:$0xff] %vm816_vm0, %v3942_v8  ;;  %v7015_v60 = vrot.slane %v5278_v51, 9  ;;  %v4995_v41 = vrot.slane %v4993_v62, 4  ;;  %v4998_v32 = vrot.slane %v4996_v46, 5 }
 0x2df   :  { %7068 = vmatmul.msk.bf16.vlgmr.msra.gmra.mxu3 %vm816_vm0, %v7039_v47  ;;  %v5347_v47 = vsel %vm7843_vm1, %v7013_v61, %v5346_v39  ;;  %v7043_v61 = vor.u32 %v7151_v55, %v7042_v27  ;;  %v5351_v29 = vsel %vm7843_vm1, %v7014_v37, %v5350_v25 }
 0x2e0   :  { %v5401_v20 = vunpack.c.l.b16 %v5347_v47  ;;  %v8990_v47 = vpop.f32.mrf.mxu0  ;;  %v4877_v44 = vld [vmem:[#allocation3 + $0x44] sm:$0x1] }
 0x2e2   :  { %v8942_v1 = vpop.f32.mrf.mxu3  ;;  %v5415_v39 = vpack.c.b16 %v5401_v20, %v5400_v53  ;;  %v5865_v53 = vrot.slane %v5863_v21, 5 }
 0x2e5   :  { %v3945_v34 = vpop.f32.mrf.mxu1  ;;  %v4355_v49 = vld [vmem:[%s10413_s7 + $0x8] sm:$0xff] }
 0x2e6   :  { %7027 = vmatmul.msk.bf16.vlgmr.msra.gmra.mxu2 %vm816_vm0, %v5414_v58  ;;  %3982 = vst.msk [vmem:[%s10413_s7 + $0x10] sm:$0xff] %vm816_vm0, %v3945_v34  ;;  %v4971_v58 = vor.u32 %v4970_v28, %v4967_v42  ;;  %v5830_v42 = vsel %vm7583_vm13, %v5825_v17, %v5829_v36  ;;  %v5844_v28 = vsel %vm7583_vm13, %v5839_v13, %v5843_v24  ;;  %v5849_v34 = vshll.u32 %v5741_v52, 16  ;;  %v7152_v13 = vld [vmem:[#allocation3 + $0x34] sm:$0xf0] }
 0x2e7   :  { %v5992_v54 = vunpack.c.l.b16 %v5844_v28  ;;  %v4999_v52 = vor.u32 %v4998_v32, %v4995_v41  ;;  %v5010_v28 = vshll.u32 %v4878_v38, 16  ;;  %v7047_v62 = vor.u32 %v7152_v13, %v7046_v3  ;;  %v5282_v13 = vld [vmem:[#allocation3 + $0x40] sm:$0xe] }
 0x2e8   :  { %7003 = vmatmul.msk.bf16.gmra.mxu1 %vm816_vm0, %v5137_v23  ;;  %v4972_v8 = vrot.slane %v4971_v58, 4  ;;  %v5860_v23 = vshrl.u32 %v5743_v63, 16  ;;  %v5851_v5 = vrot.slane %v5849_v34, 5  ;;  %v5747_v34 = vld [vmem:[#allocation3 + $0x68] sm:$0xf] }
 0x2e9   :  { %v4314_v59 = vpop.f32.mrf.mxu2  ;;  %7078 = vmatmul.msk.bf16.gmra.mxu0 %vm816_vm0, %v6004_v31  ;;  %v4875_v31 = vld [vmem:[#allocation3 + $0x3c] sm:$0x1] }
 0x2ea   :  { %v4370_v22 = vadd.f32 %v4354_v45, %v4314_v59  ;;  %v8969_v9 = vpop.f32.mrf.mxu3  ;;  %v4977_v12 = vsel %vm7583_vm13, %v4972_v8, %v4976_v4  ;;  %v5991_v59 = vunpack.c.l.b16 %v5830_v42  ;;  %v5354_v45 = vrot.slane %v5279_v18, 5  ;;  %v5744_v8 = vld [vmem:[#allocation3 + $0x4c] sm:$0x1] }
 0x2eb   :  { %v5125_v6 = vunpack.c.l.b16 %v4977_v12  ;;  %v5862_v27 = vrot.slane %v5860_v23, 4  ;;  %v4988_v55 = vshll.u32 %v4875_v31, 16  ;;  %v5869_v43 = vshll.u32 %v5744_v8, 16  ;;  %v9029_v23 = vpop.f32.mrf.mxu0  ;;  %v5281_v8 = vld [vmem:[#allocation3 + $0x3c] sm:$0x1] }
 0x2ec   :  { %4386 = vst.msk [vmem:[%s10413_s7] sm:$0xff] %vm816_vm0, %v4370_v22  ;;  %v4985_v22 = vor.u32 %v4984_v0, %v4981_v10  ;;  %v5355_v11 = vsel %vm7843_vm1, %v7015_v60, %v5354_v45  ;;  %v6005_v36 = vpack.c.b16 %v5992_v54, %v5991_v59  ;;  %v5002_v42 = vshll.u32 %v4877_v44, 16  ;;  %v4879_v45 = vld [vmem:[#allocation3 + $0x5c] sm:$0x1] }
 0x2ed   :  { %v3947_v50 = vpop.f32.mrf.mxu1  ;;  %v5138_v17 = vpack.c.b16 %v5125_v6, %v5124_v2  ;;  %v4356_v4 = vld [vmem:[%s10413_s7 + $0x10] sm:$0xff]  ;;  %v5866_v16 = vor.u32 %v5865_v53, %v5862_v27  ;;  %v4990_v12 = vrot.slane %v4988_v55, 5  ;;  %v5402_v10 = vunpack.c.l.b16 %v5351_v29  ;;  %v5280_v55 = vld [vmem:[#allocation3 + $0x38] sm:$0xe] }
 0x2ee   :  { %3983 = vst.msk [vmem:[%s10413_s7 + $0x18] sm:$0xff] %vm816_vm0, %v3947_v50  ;;  %v4986_v24 = vrot.slane %v4985_v22, 4  ;;  %v5742_v50 = vld [vmem:[#allocation3 + $0x44] sm:$0x1]  ;;  %v5403_v0 = vunpack.c.l.b16 %v5355_v11  ;;  %v5004_v25 = vrot.slane %v5002_v42, 5  ;;  %v5012_v60 = vrot.slane %v5010_v28, 5 }
 0x2ef   :  { %7069 = vmatmul.msk.bf16.gmra.mxu3 %vm816_vm0, %v7043_v61  ;;  %v5007_v61 = vshrl.u32 %v4878_v38, 16  ;;  %v5867_v21 = vrot.slane %v5866_v16, 4  ;;  %v5016_v11 = vshll.u32 %v4879_v45, 16  ;;  %v7017_v28 = vrot.slane %v5282_v13, 9  ;;  %v7050_v45 = vld [vmem:[#allocation3 + $0x40] sm:$0xf] }
 0x2f0   :  { %v4991_v46 = vsel %vm7583_vm13, %v4986_v24, %v4990_v12  ;;  %v5416_v32 = vpack.c.b16 %v5403_v0, %v5402_v10  ;;  %v4881_v12 = vld [vmem:[#allocation3 + $0x64] sm:$0x1] }
 0x2f1   :  { %v4316_v48 = vpop.f32.mrf.mxu2  ;;  %v5009_v2 = vrot.slane %v5007_v61, 4  ;;  %v5126_v53 = vunpack.c.l.b16 %v4991_v46  ;;  %v5748_v46 = vld [vmem:[#allocation3 + $0x6c] sm:$0x1] }
 0x2f2   :  { %v4371_v30 = vadd.f32 %v4355_v49, %v4316_v48  ;;  %v8997_v33 = vpop.f32.mrf.mxu3  ;;  %v5855_v48 = vshll.u32 %v5742_v50, 16  ;;  %v4880_v49 = vld [vmem:[#allocation3 + $0x60] sm:$0xf] }
 0x2f3   :  { %v4632_v15 = vld [vmem:[%s10413_s7] sm:$0xff]  ;;  %v5024_v6 = vshll.u32 %v4880_v49, 16  ;;  %v5013_v29 = vor.u32 %v5012_v60, %v5009_v2  ;;  %v9064_v10 = vpop.f32.mrf.mxu0  ;;  %v4882_v2 = vld [vmem:[#allocation3 + $0x68] sm:$0xf]  ;;  %v5030_v60 = vshll.u32 %v4881_v12, 16 }
 0x2f4   :  { %v4648_v58 = vadd.f32 %v4632_v15, %v8942_v1  ;;  %4387 = vst.msk [vmem:[%s10413_s7 + $0x8] sm:$0xff] %vm816_vm0, %v4371_v30  ;;  %v5848_v1 = vrot.slane %v5846_v40, 4  ;;  %v5000_v40 = vrot.slane %v4999_v52, 4  ;;  %v5745_v30 = vld [vmem:[#allocation3 + $0x60] sm:$0xf]  ;;  %v5871_v15 = vrot.slane %v5869_v43, 5 }
 0x2f5   :  { %v3950_v20 = vpop.f32.mrf.mxu1  ;;  %v5857_v59 = vrot.slane %v5855_v48, 5  ;;  %v5874_v31 = vshrl.u32 %v5745_v30, 16  ;;  %v5877_v54 = vshll.u32 %v5745_v30, 16  ;;  %v4357_v41 = vld [vmem:[%s10413_s7 + $0x18] sm:$0xff]  ;;  %v5283_v52 = vld [vmem:[#allocation3 + $0x44] sm:$0x1] }
 0x2f6   :  { %4664 = vst.msk [vmem:[%s10413_s7] sm:$0xff] %vm816_vm0, %v4648_v58  ;;  %7028 = vmatmul.msk.bf16.gmra.mxu2 %vm816_vm0, %v5415_v39  ;;  %v5852_v19 = vor.u32 %v5851_v5, %v5848_v1  ;;  %v5021_v58 = vshrl.u32 %v4880_v49, 16  ;;  %v5005_v38 = vsel %vm7583_vm13, %v5000_v40, %v5004_v25  ;;  %v5888_v1 = vshrl.u32 %v5747_v34, 16  ;;  %v5746_v49 = vld [vmem:[#allocation3 + $0x64] sm:$0x1] }
 0x2f7   :  { %3984 = vst.msk [vmem:[%s10413_s7 + $0x20] sm:$0xff] %vm816_vm0, %v3950_v20  ;;  %v5891_v5 = vshll.u32 %v5747_v34, 16  ;;  %v5872_v3 = vsel %vm7583_vm13, %v5867_v21, %v5871_v15  ;;  %v5127_v24 = vunpack.c.l.b16 %v5005_v38  ;;  %v5876_v50 = vrot.slane %v5874_v31, 4 }
 0x2f8   :  { %7004 = vmatmul.msk.bf16.gmra.mxu1 %vm816_vm0, %v5138_v17  ;;  %v5023_v44 = vrot.slane %v5021_v58, 4  ;;  %v5879_v61 = vrot.slane %v5877_v54, 5  ;;  %v5890_v16 = vrot.slane %v5888_v1, 4  ;;  %v5018_v21 = vrot.slane %v5016_v11, 5  ;;  %v7153_v1 = vld [vmem:[#allocation3 + $0x44] sm:$0xf0] }
 0x2f9   :  { %v4319_v7 = vpop.f32.mrf.mxu2  ;;  %7079 = vmatmul.msk.bf16.gmra.mxu0 %vm816_vm0, %v6005_v36  ;;  %v5893_v43 = vrot.slane %v5891_v5, 5  ;;  %v5139_v0 = vpack.c.b16 %v5127_v24, %v5126_v53  ;;  %v5883_v58 = vshll.u32 %v5746_v49, 16  ;;  %v5038_v53 = vshll.u32 %v4882_v2, 16  ;;  %v5749_v11 = vld [vmem:[#allocation3 + $0x70] sm:$0xf] }
 0x2fa   :  { %v4372_v39 = vadd.f32 %v4356_v4, %v4319_v7  ;;  %v9025_v18 = vpop.f32.mrf.mxu3  ;;  %v5026_v7 = vrot.slane %v5024_v6, 5  ;;  %v5880_v40 = vor.u32 %v5879_v61, %v5876_v50  ;;  %v4884_v6 = vld [vmem:[#allocation3 + $0x70] sm:$0xf]  ;;  %v5285_v50 = vld [vmem:[#allocation3 + $0x5c] sm:$0x1] }
 0x2fb   :  { %v4633_v63 = vld [vmem:[%s10413_s7 + $0x8] sm:$0xff]  ;;  %v5894_v15 = vor.u32 %v5893_v43, %v5890_v16  ;;  %v5885_v13 = vrot.slane %v5883_v58, 5  ;;  %v5751_v61 = vld [vmem:[#allocation3 + $0x78] sm:$0xf]  ;;  %v5286_v16 = vld [vmem:[#allocation3 + $0x60] sm:$0xe]  ;;  %v9112_v49 = vpop.f32.mrf.mxu0 }
 0x2fc   :  { %v4649_v51 = vadd.f32 %v4633_v63, %v8969_v9  ;;  %4388 = vst.msk [vmem:[%s10413_s7 + $0x10] sm:$0xff] %vm816_vm0, %v4372_v39  ;;  %v5853_v9 = vrot.slane %v5852_v19, 4  ;;  %v5994_v19 = vunpack.c.l.b16 %v5872_v3  ;;  %v5358_v63 = vrot.slane %v5281_v8, 5 }
 0x2fd   :  { %v3952_v37 = vpop.f32.mrf.mxu1  ;;  %v5027_v48 = vor.u32 %v5026_v7, %v5023_v44  ;;  %v5881_v5 = vrot.slane %v5880_v40, 4  ;;  %v5049_v3 = vshrl.u32 %v4884_v6, 16  ;;  %v3714_v8 = vrot.slane %v8834_v57, 4 }
 0x2fe   :  { %4665 = vst.msk [vmem:[%s10413_s7 + $0x8] sm:$0xff] %vm816_vm0, %v4649_v51  ;;  %v5858_v20 = vsel %vm7583_vm13, %v5853_v9, %v5857_v59  ;;  %v5362_v51 = vrot.slane %v5283_v52, 5  ;;  %v4358_v34 = vld [vmem:[%s10413_s7 + $0x20] sm:$0xff]  ;;  %v7051_v7 = vor.u32 %v7153_v1, %v7050_v45  ;;  %v5916_v40 = vshrl.u32 %v5751_v61, 16  ;;  %v4883_v45 = vld [vmem:[#allocation3 + $0x6c] sm:$0x1] }
 0x2ff   :  { %3985 = vst.msk [vmem:[%s10413_s7 + $0x28] sm:$0xff] %vm816_vm0, %v3952_v37  ;;  %7070 = vmatmul.msk.bf16.gmra.mxu3 %vm816_vm0, %v7047_v62  ;;  %v5993_v39 = vunpack.c.l.b16 %v5858_v20  ;;  %v5014_v62 = vrot.slane %v5013_v29, 4  ;;  %v5895_v20 = vrot.slane %v5894_v15, 4  ;;  %v5284_v29 = vld [vmem:[#allocation3 + $0x58] sm:$0xe] }
 0x300   :  { %v5363_v31 = vsel %vm7843_vm1, %v7017_v28, %v5362_v51  ;;  %v5287_v28 = vld [vmem:[#allocation3 + $0x64] sm:$0x1]  ;;  %v5051_v51 = vrot.slane %v5049_v3, 4  ;;  %v7018_v15 = vrot.slane %v5284_v29, 9  ;;  %v7054_v3 = vld [vmem:[#allocation3 + $0x60] sm:$0xf] }
 0x301   :  { %v4321_v22 = vpop.f32.mrf.mxu2  ;;  %v6006_v9 = vpack.c.b16 %v5994_v19, %v5993_v39  ;;  %v5019_v54 = vsel %vm7583_vm13, %v5014_v62, %v5018_v21  ;;  %v5886_v19 = vsel %vm7583_vm13, %v5881_v5, %v5885_v13  ;;  %v5918_v5 = vrot.slane %v5916_v40, 4 }
 0x302   :  { %v4373_v27 = vadd.f32 %v4357_v41, %v4321_v22  ;;  %v9057_v36 = vpop.f32.mrf.mxu3  ;;  %v5028_v22 = vrot.slane %v5027_v48, 4  ;;  %v5897_v41 = vshll.u32 %v5748_v46, 16  ;;  %v9096_v24 = vunpack.c.l.b16 %v5019_v54  ;;  %v4885_v54 = vld [vmem:[#allocation3 + $0x74] sm:$0x1] }
 0x303   :  { %v4634_v17 = vld [vmem:[%s10413_s7 + $0x10] sm:$0xff]  ;;  %v5902_v48 = vshrl.u32 %v5749_v11, 16  ;;  %v5905_v46 = vshll.u32 %v5749_v11, 16  ;;  %v5995_v58 = vunpack.c.l.b16 %v5886_v19  ;;  %v5044_v13 = vshll.u32 %v4883_v45, 16  ;;  %v3507_v11 = vld [vmem:[#allocation3 + $0x98] sm:$0x1] }
 0x304   :  { %v4650_v4 = vadd.f32 %v4634_v17, %v8997_v33  ;;  %4389 = vst.msk [vmem:[%s10413_s7 + $0x18] sm:$0xff] %vm816_vm0, %v4373_v27  ;;  %v7016_v33 = vrot.slane %v5280_v55, 9  ;;  %v5035_v27 = vshrl.u32 %v4882_v2, 16  ;;  %v5052_v55 = vshll.u32 %v4884_v6, 16 }
 0x305   :  { %v3955_v42 = vpop.f32.mrf.mxu1  ;;  %v5032_v17 = vrot.slane %v5030_v60, 5  ;;  %v5899_v52 = vrot.slane %v5897_v41, 5  ;;  %v5366_v2 = vrot.slane %v5285_v50, 5  ;;  %v7019_v6 = vrot.slane %v5286_v16, 9 }
 0x306   :  { %4666 = vst.msk [vmem:[%s10413_s7 + $0x10] sm:$0xff] %vm816_vm0, %v4650_v4  ;;  %7029 = vmatmul.msk.bf16.gmra.mxu2 %vm816_vm0, %v5416_v32  ;;  %v5359_v25 = vsel %vm7843_vm1, %v7016_v33, %v5358_v63  ;;  %v5405_v4 = vunpack.c.l.b16 %v5363_v31  ;;  %v5037_v43 = vrot.slane %v5035_v27, 4  ;;  %v5040_v33 = vrot.slane %v5038_v53, 5  ;;  %v4359_v12 = vld [vmem:[%s10413_s7 + $0x28] sm:$0xff] }
 0x307   :  { %3986 = vst.msk [vmem:[%s10413_s7 + $0x30] sm:$0xff] %vm816_vm0, %v3955_v42  ;;  %v5033_v39 = vsel %vm7583_vm13, %v5028_v22, %v5032_v17  ;;  %v5900_v42 = vsel %vm7583_vm13, %v5895_v20, %v5899_v52  ;;  %v5054_v62 = vrot.slane %v5052_v55, 5  ;;  %v5904_v1 = vrot.slane %v5902_v48, 4  ;;  %v7154_v55 = vld [vmem:[#allocation3 + $0x64] sm:$0xf0] }
 0x308   :  { %7005 = vmatmul.msk.bf16.gmra.mxu1 %vm816_vm0, %v5139_v0  ;;  %v5129_v21 = vunpack.c.l.b16 %v5033_v39  ;;  %v5996_v31 = vunpack.c.l.b16 %v5900_v42  ;;  %v5041_v22 = vor.u32 %v5040_v33, %v5037_v43  ;;  %v5367_v17 = vsel %vm7843_vm1, %v7018_v15, %v5366_v2  ;;  %v3568_v33 = vld [vmem:[#allocation3 + $0x9c] sm:$0x1]  ;;  %v4886_v42 = vld [vmem:[#allocation3 + $0x78] sm:$0xf]  ;;  %v5755_v2 = vld [vmem:[#allocation3 + $0x88] sm:$0xf] }
 0x309   :  { %v4324_v30 = vpop.f32.mrf.mxu2  ;;  %7080 = vmatmul.msk.bf16.gmra.mxu0 %vm816_vm0, %v6006_v9  ;;  %v5055_v41 = vor.u32 %v5054_v62, %v5051_v51  ;;  %v5058_v29 = vshll.u32 %v4885_v54, 16  ;;  %v3508_v51 = vsel %vm7430_vm8, 0, %v3507_v11  ;;  %v9150_v62 = vpop.f32.mrf.mxu0  ;;  %v5066_v54 = vshll.u32 %v4886_v42, 16 }
 0x30a   :  { %v4374_v37 = vadd.f32 %v4358_v34, %v4324_v30  ;;  %v9089_v38 = vpop.f32.mrf.mxu3  ;;  %v5919_v30 = vshll.u32 %v5751_v61, 16  ;;  %v5042_v50 = vrot.slane %v5041_v22, 4  ;;  %v5752_v61 = vld [vmem:[#allocation3 + $0x7c] sm:$0x1]  ;;  %3509 = vst [vmem:[#allocation3 + $0x98] sm:$0x1] %v3508_v51 }
 0x30b   :  { %v4635_v59 = vld [vmem:[%s10413_s7 + $0x18] sm:$0xff]  ;;  %v5060_v40 = vrot.slane %v5058_v29, 5  ;;  %v5944_v26 = vshrl.u32 %v5755_v2, 16  ;;  %v5289_v29 = vld [vmem:[#allocation3 + $0x6c] sm:$0x1] }
 0x30c   :  { %v4651_v32 = vadd.f32 %v4635_v59, %v9025_v18  ;;  %4390 = vst.msk [vmem:[%s10413_s7 + $0x20] sm:$0xff] %vm816_vm0, %v4374_v37  ;;  %v5404_v18 = vunpack.c.l.b16 %v5359_v25  ;;  %v3565_v37 = vld [vmem:[#allocation3 + $0x94] sm:$0x1]  ;;  %v5370_v59 = vrot.slane %v5287_v28, 5  ;;  %v5921_v27 = vrot.slane %v5919_v30, 5 }
 0x30d   :  { %v3957_v44 = vpop.f32.mrf.mxu1  ;;  %v3566_v53 = vsel %vm8466_vm4, 0, %v3565_v37  ;;  %v4888_v28 = vld [vmem:[#allocation3 + $0x80] sm:$0xf]  ;;  %v5925_v30 = vshll.u32 %v5752_v61, 16  ;;  %v3569_v37 = vsel %vm8466_vm4, 0, %v3568_v33  ;;  %v5946_v33 = vrot.slane %v5944_v26, 4 }
 0x30e   :  { %4667 = vst.msk [vmem:[%s10413_s7 + $0x18] sm:$0xff] %vm816_vm0, %v4651_v32  ;;  %v5417_v9 = vpack.c.b16 %v5405_v4, %v5404_v18  ;;  %v5750_v32 = vld [vmem:[#allocation3 + $0x74] sm:$0x1]  ;;  %v5140_v18 = vpack.c.b16 %v5129_v21, %v9096_v24  ;;  %v6007_v4 = vpack.c.b16 %v5996_v31, %v5995_v58  ;;  %v5371_v52 = vsel %vm7843_vm1, %v7019_v6, %v5370_v59 }
 0x30f   :  { %3987 = vst.msk [vmem:[%s10413_s7 + $0x38] sm:$0xff] %vm816_vm0, %v3957_v44  ;;  %7071 = vmatmul.msk.bf16.gmra.mxu3 %vm816_vm0, %v7051_v7  ;;  %v4360_v7 = vld [vmem:[%s10413_s7 + $0x30] sm:$0xff]  ;;  %v5911_v39 = vshll.u32 %v5750_v32, 16  ;;  %v5056_v24 = vrot.slane %v5055_v41, 4  ;;  %v5922_v43 = vor.u32 %v5921_v27, %v5918_v5  ;;  %v5407_v21 = vunpack.c.l.b16 %v5371_v52 }
 0x310   :  { %3567 = vst [vmem:[#allocation3 + $0x94] sm:$0x1] %v3566_v53  ;;  %v5063_v31 = vshrl.u32 %v4886_v42, 16  ;;  %v5077_v22 = vshrl.u32 %v4888_v28, 16  ;;  %v5927_v41 = vrot.slane %v5925_v30, 5  ;;  %v5080_v32 = vshll.u32 %v4888_v28, 16 }
 0x311   :  { %v4326_v63 = vpop.f32.mrf.mxu2  ;;  %v5913_v15 = vrot.slane %v5911_v39, 5  ;;  %v5923_v6 = vrot.slane %v5922_v43, 4  ;;  %3570 = vst [vmem:[#allocation3 + $0x9c] sm:$0x1] %v3569_v37  ;;  %v5291_v43 = vld [vmem:[#allocation3 + $0x74] sm:$0x1] }
 0x312   :  { %v4375_v0 = vadd.f32 %v4359_v12, %v4326_v63  ;;  %v9122_v60 = vpop.f32.mrf.mxu3  ;;  %v7055_v12 = vor.u32 %v7154_v55, %v7054_v3  ;;  %v5065_v11 = vrot.slane %v5063_v31, 4  ;;  %v5082_v61 = vrot.slane %v5080_v32, 5  ;;  %v4889_v42 = vld [vmem:[#allocation3 + $0x84] sm:$0x1] }
 0x313   :  { %v4636_v34 = vld [vmem:[%s10413_s7 + $0x20] sm:$0xff]  ;;  %v5928_v55 = vsel %vm7583_vm13, %v5923_v6, %v5927_v41  ;;  %v5086_v31 = vshll.u32 %v4889_v42, 16 }
 0x314   :  { %v4652_v25 = vadd.f32 %v4636_v34, %v9057_v36  ;;  %4391 = vst.msk [vmem:[%s10413_s7 + $0x28] sm:$0xff] %vm816_vm0, %v4375_v0  ;;  %v5907_v36 = vrot.slane %v5905_v46, 5  ;;  %v5046_v46 = vrot.slane %v5044_v13, 5  ;;  %v5753_v34 = vld [vmem:[#allocation3 + $0x80] sm:$0xf] }
 0x315   :  { %v3960_v20 = vpop.f32.mrf.mxu1  ;;  %v5754_v30 = vld [vmem:[#allocation3 + $0x84] sm:$0x1] }
 0x316   :  { %4668 = vst.msk [vmem:[%s10413_s7 + $0x20] sm:$0xff] %vm816_vm0, %v4652_v25  ;;  %7030 = vmatmul.msk.bf16.gmra.mxu2 %vm816_vm0, %v5417_v9  ;;  %v5908_v16 = vor.u32 %v5907_v36, %v5904_v1  ;;  %v5406_v9 = vunpack.c.l.b16 %v5367_v17  ;;  %v5061_v25 = vsel %vm7583_vm13, %v5056_v24, %v5060_v40  ;;  %v5930_v1 = vshrl.u32 %v5753_v34, 16  ;;  %v4361_v57 = vld [vmem:[%s10413_s7 + $0x38] sm:$0xff] }
 0x317   :  { %3988 = vst.msk [vmem:[%s10413_s7 + $0x40] sm:$0xff] %vm816_vm0, %v3960_v20  ;;  %v3843_v59 = vld [vmem:[#allocation3 + $0x94] sm:$0x1]  ;;  %v5933_v36 = vshll.u32 %v5753_v34, 16  ;;  %v5131_v13 = vunpack.c.l.b16 %v5061_v25 }
 0x318   :  { %7006 = vmatmul.msk.bf16.gmra.mxu1 %vm816_vm0, %v5140_v18  ;;  %v5909_v58 = vrot.slane %v5908_v16, 4  ;;  %v3844_v35 = vsel %vm7430_vm8, %v3714_v8, %v3843_v59  ;;  %v5418_v27 = vpack.c.b16 %v5407_v21, %v5406_v9  ;;  %v5947_v8 = vshll.u32 %v5755_v2, 16  ;;  %v5288_v18 = vld [vmem:[#allocation3 + $0x68] sm:$0xe] }
 0x319   :  { %v4329_v44 = vpop.f32.mrf.mxu2  ;;  %7081 = vmatmul.msk.bf16.gmra.mxu0 %vm816_vm0, %v6007_v4  ;;  %3845 = vst [vmem:[#allocation3 + $0x94] sm:$0x1] %v3844_v35  ;;  %v5932_v39 = vrot.slane %v5930_v1, 4  ;;  %v5998_v16 = vunpack.c.l.b16 %v5928_v55  ;;  %v7020_v51 = vrot.slane %v5288_v18, 9  ;;  %v5378_v9 = vrot.slane %v5291_v43, 5 }
 0x31a   :  { %v4376_v19 = vadd.f32 %v4360_v7, %v4329_v44  ;;  %v9157_v0 = vpop.f32.mrf.mxu3  ;;  %v5914_v3 = vsel %vm7583_vm13, %v5909_v58, %v5913_v15  ;;  %v5068_v44 = vrot.slane %v5066_v54, 5  ;;  %v5079_v7 = vrot.slane %v5077_v22, 4  ;;  %v5756_v15 = vld [vmem:[#allocation3 + $0x8c] sm:$0x1]  ;;  %v7155_v35 = vld [vmem:[#allocation3 + $0x74] sm:$0xf0] }
 0x31b   :  { %v4637_v63 = vld [vmem:[%s10413_s7 + $0x28] sm:$0xff]  ;;  %v5997_v24 = vunpack.c.l.b16 %v5914_v3  ;;  %v5939_v54 = vshll.u32 %v5754_v30, 16  ;;  %v5953_v1 = vshll.u32 %v5756_v15, 16  ;;  %v4892_v3 = vld [vmem:[#allocation3 + $0x90] sm:$0xf]  ;;  %v5088_v55 = vrot.slane %v5086_v31, 5 }
 0x31c   :  { %v4653_v48 = vadd.f32 %v4637_v63, %v9089_v38  ;;  %4392 = vst.msk [vmem:[%s10413_s7 + $0x30] sm:$0xff] %vm816_vm0, %v4376_v19  ;;  %v5047_v38 = vsel %vm7583_vm13, %v5042_v50, %v5046_v46  ;;  %v5290_v50 = vld [vmem:[#allocation3 + $0x70] sm:$0xe]  ;;  %v5935_v19 = vrot.slane %v5933_v36, 5  ;;  %v5949_v63 = vrot.slane %v5947_v8, 5 }
 0x31d   :  { %v3962_v45 = vpop.f32.mrf.mxu1  ;;  %v5130_v20 = vunpack.c.l.b16 %v5047_v38  ;;  %v7021_v46 = vrot.slane %v5290_v50, 9  ;;  %v5069_v40 = vor.u32 %v5068_v44, %v5065_v11  ;;  %v5083_v21 = vor.u32 %v5082_v61, %v5079_v7 }
 0x31e   :  { %4669 = vst.msk [vmem:[%s10413_s7 + $0x28] sm:$0xff] %vm816_vm0, %v4653_v48  ;;  %v5374_v48 = vrot.slane %v5289_v29, 5  ;;  %v5936_v2 = vor.u32 %v5935_v19, %v5932_v39  ;;  %v4362_v38 = vld [vmem:[%s10413_s7 + $0x40] sm:$0xff]  ;;  %v6008_v25 = vpack.c.b16 %v5998_v16, %v5997_v24  ;;  %v5950_v6 = vor.u32 %v5949_v63, %v5946_v33 }
 0x31f   :  { %3989 = vst.msk [vmem:[%s10413_s7 + $0x48] sm:$0xff] %vm816_vm0, %v3962_v45  ;;  %7072 = vmatmul.msk.bf16.gmra.mxu3 %vm816_vm0, %v7055_v12  ;;  %v9195_v12 = vpop.f32.mrf.mxu0  ;;  %v5141_v34 = vpack.c.b16 %v5131_v13, %v5130_v20  ;;  %v7058_v45 = vld [vmem:[#allocation3 + $0x70] sm:$0xf]  ;;  %v5070_v32 = vrot.slane %v5069_v40, 4  ;;  %v4890_v20 = vld [vmem:[#allocation3 + $0x88] sm:$0xf] }
 0x320   :  { %v5375_v41 = vsel %vm7843_vm1, %v7020_v51, %v5374_v48  ;;  %v5937_v26 = vrot.slane %v5936_v2, 4  ;;  %v5941_v18 = vrot.slane %v5939_v54, 5  ;;  %v5955_v7 = vrot.slane %v5953_v1, 5  ;;  %v4891_v1 = vld [vmem:[#allocation3 + $0x8c] sm:$0x1] }
 0x321   :  { %v4331_v5 = vpop.f32.mrf.mxu2  ;;  %v5408_v29 = vunpack.c.l.b16 %v5375_v41  ;;  %v5091_v19 = vshrl.u32 %v4890_v20, 16  ;;  %v5094_v24 = vshll.u32 %v4890_v20, 16  ;;  %v5105_v63 = vshrl.u32 %v4892_v3, 16 }
 0x322   :  { %v4377_v53 = vadd.f32 %v4361_v57, %v4331_v5  ;;  %v9193_v52 = vpop.f32.mrf.mxu3  ;;  %v5379_v57 = vsel %vm7843_vm1, %v7021_v46, %v5378_v9  ;;  %v5942_v39 = vsel %vm7583_vm13, %v5937_v26, %v5941_v18  ;;  %v5292_v9 = vld [vmem:[#allocation3 + $0x78] sm:$0xe] }
 0x323   :  { %v4638_v17 = vld [vmem:[%s10413_s7 + $0x30] sm:$0xff]  ;;  %v5409_v11 = vunpack.c.l.b16 %v5379_v57  ;;  %v5107_v31 = vrot.slane %v5105_v63, 4 }
 0x324   :  { %v4654_v4 = vadd.f32 %v4638_v17, %v9122_v60  ;;  %4393 = vst.msk [vmem:[%s10413_s7 + $0x38] sm:$0xff] %vm816_vm0, %v4377_v53  ;;  %v4887_v60 = vld [vmem:[#allocation3 + $0x7c] sm:$0x1]  ;;  %v5951_v53 = vrot.slane %v5950_v6, 4  ;;  %v5757_v17 = vld [vmem:[#allocation3 + $0x90] sm:$0xf] }
 0x325   :  { %v3965_v28 = vpop.f32.mrf.mxu1  ;;  %v5072_v58 = vshll.u32 %v4887_v60, 16  ;;  %v5108_v60 = vshll.u32 %v4892_v3, 16  ;;  %v5958_v42 = vshrl.u32 %v5757_v17, 16  ;;  %v5961_v51 = vshll.u32 %v5757_v17, 16 }
 0x326   :  { %4670 = vst.msk [vmem:[%s10413_s7 + $0x30] sm:$0xff] %vm816_vm0, %v4654_v4  ;;  %7031 = vmatmul.msk.bf16.gmra.mxu2 %vm816_vm0, %v5418_v27  ;;  %v5084_v27 = vrot.slane %v5083_v21, 4  ;;  %v5759_v4 = vld [vmem:[#allocation3 + $0x98] sm:$0xf]  ;;  %v4363_v43 = vld [vmem:[%s10413_s7 + $0x48] sm:$0xff]  ;;  %v5956_v33 = vsel %vm7583_vm13, %v5951_v53, %v5955_v7  ;;  %v5419_v30 = vpack.c.b16 %v5409_v11, %v5408_v29 }
 0x327   :  { %3990 = vst.msk [vmem:[%s10413_s7 + $0x50] sm:$0xff] %vm816_vm0, %v3965_v28  ;;  %v5074_v8 = vrot.slane %v5072_v58, 5  ;;  %v9231_v50 = vpop.f32.mrf.mxu0  ;;  %v5972_v48 = vshrl.u32 %v5759_v4, 16  ;;  %v5975_v46 = vshll.u32 %v5759_v4, 16  ;;  %v5093_v58 = vrot.slane %v5091_v19, 4 }
 0x328   :  { %7007 = vmatmul.msk.bf16.gmra.mxu1 %vm816_vm0, %v5141_v34  ;;  %v5089_v61 = vsel %vm7583_vm13, %v5084_v27, %v5088_v55  ;;  %v6000_v6 = vunpack.c.l.b16 %v5956_v33  ;;  %v5110_v54 = vrot.slane %v5108_v60, 5  ;;  %v7022_v27 = vrot.slane %v5292_v9, 9  ;;  %v4893_v53 = vld [vmem:[#allocation3 + $0x94] sm:$0x1]  ;;  %v7156_v33 = vld [vmem:[#allocation3 + $0x84] sm:$0xf0] }
 0x329   :  { %v4334_v37 = vpop.f32.mrf.mxu2  ;;  %7082 = vmatmul.msk.bf16.gmra.mxu0 %vm816_vm0, %v6008_v25  ;;  %v5075_v44 = vsel %vm7583_vm13, %v5070_v32, %v5074_v8  ;;  %v5133_v2 = vunpack.c.l.b16 %v5089_v61  ;;  %v5294_v25 = vld [vmem:[#allocation3 + $0x80] sm:$0xe]  ;;  %v5977_v41 = vrot.slane %v5975_v46, 5  ;;  %v5114_v19 = vshll.u32 %v4893_v53, 16  ;;  %v4815_v53 = vld [vmem:[%s10413_s7 + $0x8] sm:$0xff] }
 0x32a   :  { %v4378_v59 = vadd.f32 %v4362_v38, %v4334_v37  ;;  %v9221_v5 = vpop.f32.mrf.mxu3  ;;  %v5132_v34 = vunpack.c.l.b16 %v5075_v44  ;;  %v5999_v37 = vunpack.c.l.b16 %v5942_v39  ;;  %v5293_v38 = vld [vmem:[#allocation3 + $0x7c] sm:$0x1]  ;;  %v7023_v8 = vrot.slane %v5294_v25, 9 }
 0x32b   :  { %v4639_v22 = vld [vmem:[%s10413_s7 + $0x38] sm:$0xff]  ;;  %v5382_v26 = vrot.slane %v5293_v38, 5  ;;  %v5111_v17 = vor.u32 %v5110_v54, %v5107_v31  ;;  %v5100_v39 = vshll.u32 %v4891_v1, 16 }
 0x32c   :  { %v4655_v36 = vadd.f32 %v4639_v22, %v9157_v0  ;;  %4394 = vst.msk [vmem:[%s10413_s7 + $0x40] sm:$0xff] %vm816_vm0, %v4378_v59  ;;  %v7059_v0 = vor.u32 %v7155_v35, %v7058_v45  ;;  %v5295_v59 = vld [vmem:[#allocation3 + $0x84] sm:$0x1]  ;;  %v5096_v45 = vrot.slane %v5094_v24, 5  ;;  %v5963_v22 = vrot.slane %v5961_v51, 5 }
 0x32d   :  { %v3967_v13 = vpop.f32.mrf.mxu1  ;;  %v5974_v35 = vrot.slane %v5972_v48, 4  ;;  %v5142_v57 = vpack.c.b16 %v5133_v2, %v5132_v34  ;;  %v5386_v55 = vrot.slane %v5295_v59, 5  ;;  %v5383_v60 = vsel %vm7843_vm1, %v7022_v27, %v5382_v26  ;;  %v5296_v27 = vld [vmem:[#allocation3 + $0x88] sm:$0xe]  ;;  %v5297_v26 = vld [vmem:[#allocation3 + $0x8c] sm:$0x1] }
 0x32e   :  { %4671 = vst.msk [vmem:[%s10413_s7 + $0x38] sm:$0xff] %vm816_vm0, %v4655_v36  ;;  %v5760_v36 = vld [vmem:[#allocation3 + $0x9c] sm:$0x1]  ;;  %v4364_v3 = vld [vmem:[%s10413_s7 + $0x50] sm:$0xff]  ;;  %v5097_v18 = vor.u32 %v5096_v45, %v5093_v58  ;;  %v5112_v51 = vrot.slane %v5111_v17, 4  ;;  %v5102_v9 = vrot.slane %v5100_v39, 5 }
 0x32f   :  { %3991 = vst.msk [vmem:[%s10413_s7 + $0x58] sm:$0xff] %vm816_vm0, %v3967_v13  ;;  %7073 = vmatmul.msk.bf16.gmra.mxu3 %vm816_vm0, %v7059_v0  ;;  %v6009_v0 = vpack.c.b16 %v6000_v6, %v5999_v37  ;;  %v5758_v13 = vld [vmem:[#allocation3 + $0x94] sm:$0x1]  ;;  %v9269_v29 = vpop.f32.mrf.mxu0  ;;  %v5978_v7 = vor.u32 %v5977_v41, %v5974_v35  ;;  %v5981_v4 = vshll.u32 %v5760_v36, 16  ;;  %v5410_v37 = vunpack.c.l.b16 %v5383_v60  ;;  %v6137_v39 = vld [vmem:[#allocation3 + $0x18] sm:$0xe] }
 0x330   :  { %v5967_v63 = vshll.u32 %v5758_v13, 16  ;;  %v7157_v60 = vld [vmem:[#allocation3 + $0x94] sm:$0xf0] }
 0x331   :  { %v4336_v16 = vpop.f32.mrf.mxu2  ;;  %v5979_v48 = vrot.slane %v5978_v7, 4  ;;  %v5983_v46 = vrot.slane %v5981_v4, 5  ;;  %v6135_v4 = vld [vmem:[#allocation3 + $0x10] sm:$0xe] }
 0x332   :  { %v4379_v28 = vadd.f32 %v4363_v43, %v4336_v16  ;;  %v9255_v15 = vpop.f32.mrf.mxu3  ;;  %v7062_v43 = vld [vmem:[#allocation3 + $0x80] sm:$0xf]  ;;  %v5969_v25 = vrot.slane %v5967_v63, 5  ;;  %v7066_v63 = vld [vmem:[#allocation3 + $0x90] sm:$0xf] }
 0x333   :  { %v4640_v40 = vld [vmem:[%s10413_s7 + $0x40] sm:$0xff]  ;;  %v7063_v34 = vor.u32 %v7156_v33, %v7062_v43  ;;  %v5984_v54 = vsel %vm7583_vm13, %v5979_v48, %v5983_v46  ;;  %v7086_v48 = vrot.slane %v6137_v39, 9 }
 0x334   :  { %v4656_v21 = vadd.f32 %v4640_v40, %v9193_v52  ;;  %4395 = vst.msk [vmem:[%s10413_s7 + $0x48] sm:$0xff] %vm816_vm0, %v4379_v28  ;;  %v5960_v52 = vrot.slane %v5958_v42, 4  ;;  %v5387_v42 = vsel %vm7843_vm1, %v7023_v8, %v5386_v55  ;;  %v5098_v28 = vrot.slane %v5097_v18, 4  ;;  %v4814_v40 = vld [vmem:[%s10413_s7] sm:$0xff]  ;;  %v5299_v8 = vld [vmem:[#allocation3 + $0x94] sm:$0x1] }
 0x335   :  { %v3970_v32 = vpop.f32.mrf.mxu1  ;;  %v4830_v2 = vadd.f32 %v4814_v40, %v8990_v47  ;;  %v5411_v38 = vunpack.c.l.b16 %v5387_v42  ;;  %v6002_v14 = vunpack.c.l.b16 %v5984_v54  ;;  %v7024_v55 = vrot.slane %v5296_v27, 9 }
 0x336   :  { %4672 = vst.msk [vmem:[%s10413_s7 + $0x40] sm:$0xff] %vm816_vm0, %v4656_v21  ;;  %7032 = vmatmul.msk.bf16.gmra.mxu2 %vm816_vm0, %v5419_v30  ;;  %v5964_v44 = vor.u32 %v5963_v22, %v5960_v52  ;;  %v5116_v21 = vrot.slane %v5114_v19, 5  ;;  %v4365_v6 = vld [vmem:[%s10413_s7 + $0x58] sm:$0xff]  ;;  %v5103_v59 = vsel %vm7583_vm13, %v5098_v28, %v5102_v9  ;;  %v5390_v18 = vrot.slane %v5297_v26, 5  ;;  %v6139_v26 = vld [vmem:[#allocation3 + $0x20] sm:$0xe] }
 0x337   :  { %3992 = vst.msk [vmem:[%s10413_s7 + $0x60] sm:$0xff] %vm816_vm0, %v3970_v32  ;;  %v9318_v22 = vpop.f32.mrf.mxu0  ;;  %v5420_v32 = vpack.c.b16 %v5411_v38, %v5410_v37  ;;  %v5134_v1 = vunpack.c.l.b16 %v5103_v59  ;;  %v5394_v7 = vrot.slane %v5299_v8, 5  ;;  %v6138_v19 = vld [vmem:[#allocation3 + $0x1c] sm:$0x1]  ;;  %v7085_v28 = vrot.slane %v6135_v4, 9 }
 0x338   :  { %7008 = vmatmul.msk.bf16.gmra.mxu1 %vm816_vm0, %v5142_v57  ;;  %v5117_v47 = vsel %vm7583_vm13, %v5112_v51, %v5116_v21  ;;  %4846 = vst.msk [vmem:[%s10413_s7] sm:$0xff] %vm816_vm0, %v4830_v2  ;;  %v5391_v42 = vsel %vm7843_vm1, %v7024_v55, %v5390_v18  ;;  %v6205_v46 = vrot.slane %v6138_v19, 5  ;;  %v6141_v8 = vld [vmem:[#allocation3 + $0x28] sm:$0xe]  ;;  %v7087_v55 = vrot.slane %v6139_v26, 9 }
 0x339   :  { %v4339_v20 = vpop.f32.mrf.mxu2  ;;  %7083 = vmatmul.msk.bf16.gmra.mxu0 %vm816_vm0, %v6009_v0  ;;  %v5135_v36 = vunpack.c.l.b16 %v5117_v47  ;;  %v5412_v21 = vunpack.c.l.b16 %v5391_v42 }
 0x33a   :  { %v4380_v11 = vadd.f32 %v4364_v3, %v4339_v20  ;;  %v9281_v16 = vpop.f32.mrf.mxu3  ;;  %v4831_v3 = vadd.f32 %v4815_v53, %v9029_v23  ;;  %v6142_v53 = vld [vmem:[#allocation3 + $0x2c] sm:$0x1] }
 0x33b   :  { %v4641_v61 = vld [vmem:[%s10413_s7 + $0x48] sm:$0xff]  ;;  %v5143_v0 = vpack.c.b16 %v5135_v36, %v5134_v1 }
 0x33c   :  { %v4657_v24 = vadd.f32 %v4641_v61, %v9221_v5  ;;  %4396 = vst.msk [vmem:[%s10413_s7 + $0x50] sm:$0xff] %vm816_vm0, %v4380_v11  ;;  %v5965_v5 = vrot.slane %v5964_v44, 4  ;;  %v6136_v61 = vld [vmem:[#allocation3 + $0x14] sm:$0x1] }
 0x33d   :  { %v3972_v30 = vpop.f32.mrf.mxu1  ;;  %4847 = vst.msk [vmem:[%s10413_s7 + $0x8] sm:$0xff] %vm816_vm0, %v4831_v3 }
 0x33e   :  { %4673 = vst.msk [vmem:[%s10413_s7 + $0x48] sm:$0xff] %vm816_vm0, %v4657_v24  ;;  %v5970_v31 = vsel %vm7583_vm13, %v5965_v5, %v5969_v25  ;;  %v4366_v13 = vld [vmem:[%s10413_s7 + $0x60] sm:$0xff]  ;;  %v6201_v5 = vrot.slane %v6136_v61, 5 }
 0x33f   :  { %3993 = vst.msk [vmem:[%s10413_s7 + $0x68] sm:$0xff] %vm816_vm0, %v3972_v30  ;;  %7074 = vmatmul.msk.bf16.gmra.mxu3 %vm816_vm0, %v7063_v34  ;;  %v6001_v57 = vunpack.c.l.b16 %v5970_v31  ;;  %v9359_v40 = vpop.f32.mrf.mxu0  ;;  %v7067_v34 = vor.u32 %v7157_v60, %v7066_v63 }
 0x340   :  { %v6202_v25 = vsel %vm7843_vm1, %v7085_v28, %v6201_v5 }
 0x341   :  { %v4341_v58 = vpop.f32.mrf.mxu2  ;;  %v6010_v11 = vpack.c.b16 %v6002_v14, %v6001_v57  ;;  %v6265_v31 = vunpack.c.l.b16 %v6202_v25 }
 0x342   :  { %v4381_v45 = vadd.f32 %v4365_v6, %v4341_v58  ;;  %v4622_v41 = vpop.f32.mrf.mxu3 }
 0x343   :  { %v4642_v52 = vld [vmem:[%s10413_s7 + $0x50] sm:$0xff] }
 0x344   :  { %v4658_v35 = vadd.f32 %v4642_v52, %v9255_v15  ;;  %4397 = vst.msk [vmem:[%s10413_s7 + $0x58] sm:$0xff] %vm816_vm0, %v4381_v45  ;;  %v5298_v15 = vld [vmem:[#allocation3 + $0x90] sm:$0xe]  ;;  %v4817_v52 = vld [vmem:[%s10413_s7 + $0x18] sm:$0xff] }
 0x345   :  { %v3975_v20 = vpop.f32.mrf.mxu1  ;;  %v7025_v44 = vrot.slane %v5298_v15, 9  ;;  %v6140_v15 = vld [vmem:[#allocation3 + $0x24] sm:$0x1] }
 0x346   :  { %4674 = vst.msk [vmem:[%s10413_s7 + $0x50] sm:$0xff] %vm816_vm0, %v4658_v35  ;;  %7033 = vmatmul.msk.bf16.gmra.mxu2 %vm816_vm0, %v5420_v32  ;;  %v4367_v38 = vld [vmem:[%s10413_s7 + $0x68] sm:$0xff]  ;;  %v4833_v32 = vadd.f32 %v4817_v52, %v9112_v49  ;;  %v6209_v18 = vrot.slane %v6140_v15, 5 }
 0x347   :  { %3994 = vst.msk [vmem:[%s10413_s7 + $0x70] sm:$0xff] %vm816_vm0, %v3975_v20  ;;  %v5395_v51 = vsel %vm7843_vm1, %v7025_v44, %v5394_v7  ;;  %v9404_v1 = vpop.f32.mrf.mxu0  ;;  %v5221_v7 = vld [vmem:[%s10413_s7 + $0x8] sm:$0xff] }
 0x348   :  { %7009 = vmatmul.msk.bf16.gmra.mxu1 %vm816_vm0, %v5143_v0  ;;  %v5413_v2 = vunpack.c.l.b16 %v5395_v51  ;;  %4849 = vst.msk [vmem:[%s10413_s7 + $0x18] sm:$0xff] %vm816_vm0, %v4833_v32  ;;  %v6210_v19 = vsel %vm7843_vm1, %v7087_v55, %v6209_v18  ;;  %v4819_v51 = vld [vmem:[%s10413_s7 + $0x28] sm:$0xff] }
 0x349   :  { %v4344_v17 = vpop.f32.mrf.mxu2  ;;  %7084 = vmatmul.msk.bf16.gmra.mxu0 %vm816_vm0, %v6010_v11  ;;  %v4818_v11 = vld [vmem:[%s10413_s7 + $0x20] sm:$0xff]  ;;  %v6267_v42 = vunpack.c.l.b16 %v6210_v19 }
 0x34a   :  { %v4382_v23 = vadd.f32 %v4366_v13, %v4344_v17  ;;  %v4624_v33 = vpop.f32.mrf.mxu3  ;;  %v5421_v45 = vpack.c.b16 %v5413_v2, %v5412_v21  ;;  %v7088_v17 = vrot.slane %v6141_v8, 9  ;;  %v6213_v13 = vrot.slane %v6142_v53, 5  ;;  %v6143_v21 = vld [vmem:[#allocation3 + $0x30] sm:$0xe]  ;;  %v6144_v2 = vld [vmem:[#allocation3 + $0x34] sm:$0x1] }
 0x34b   :  { %v4643_v24 = vld [vmem:[%s10413_s7 + $0x58] sm:$0xff]  ;;  %v4834_v4 = vadd.f32 %v4818_v11, %v9150_v62 }
 0x34c   :  { %v4659_v43 = vadd.f32 %v4643_v24, %v9281_v16  ;;  %4398 = vst.msk [vmem:[%s10413_s7 + $0x60] sm:$0xff] %vm816_vm0, %v4382_v23  ;;  %v4816_v16 = vld [vmem:[%s10413_s7 + $0x10] sm:$0xff]  ;;  %v6214_v24 = vsel %vm7843_vm1, %v7088_v17, %v6213_v13 }
 0x34d   :  { %v3977_v30 = vpop.f32.mrf.mxu1  ;;  %v4832_v9 = vadd.f32 %v4816_v16, %v9064_v10  ;;  %v6206_v10 = vsel %vm7843_vm1, %v7086_v48, %v6205_v46  ;;  %4850 = vst.msk [vmem:[%s10413_s7 + $0x20] sm:$0xff] %vm816_vm0, %v4834_v4  ;;  %v6268_v28 = vunpack.c.l.b16 %v6214_v24  ;;  %v4835_v46 = vadd.f32 %v4819_v51, %v9195_v12  ;;  %v6148_v4 = vld [vmem:[#allocation3 + $0x44] sm:$0x1] }
 0x34e   :  { %4675 = vst.msk [vmem:[%s10413_s7 + $0x58] sm:$0xff] %vm816_vm0, %v4659_v43  ;;  %v6266_v54 = vunpack.c.l.b16 %v6206_v10  ;;  %v4368_v27 = vld [vmem:[%s10413_s7 + $0x70] sm:$0xff] }
 0x34f   :  { %3995 = vst.msk [vmem:[%s10413_s7 + $0x78] sm:$0xff] %vm816_vm0, %v3977_v30  ;;  %7075 = vmatmul.msk.bf16.gmra.mxu3 %vm816_vm0, %v7067_v34  ;;  %v9447_v43 = vpop.f32.mrf.mxu0  ;;  %v6282_v30 = vpack.c.b16 %v6268_v28, %v6267_v42  ;;  %v4822_v42 = vld [vmem:[%s10413_s7 + $0x40] sm:$0xff] }
 0x350   :  { %4848 = vst.msk [vmem:[%s10413_s7 + $0x10] sm:$0xff] %vm816_vm0, %v4832_v9  ;;  %v6281_v57 = vpack.c.b16 %v6266_v54, %v6265_v31  ;;  %v4820_v54 = vld [vmem:[%s10413_s7 + $0x30] sm:$0xff] }
 0x351   :  { %v4346_v37 = vpop.f32.mrf.mxu2  ;;  %4851 = vst.msk [vmem:[%s10413_s7 + $0x28] sm:$0xff] %vm816_vm0, %v4835_v46 }
 0x352   :  { %v4383_v58 = vadd.f32 %v4367_v38, %v4346_v37  ;;  %v4627_v47 = vpop.f32.mrf.mxu3  ;;  %v6145_v37 = vld [vmem:[#allocation3 + $0x38] sm:$0xe]  ;;  %v6146_v38 = vld [vmem:[#allocation3 + $0x3c] sm:$0x1] }
 0x353   :  { %v4644_v6 = vld [vmem:[%s10413_s7 + $0x60] sm:$0xff]  ;;  %v6221_v31 = vrot.slane %v6146_v38, 5 }
 0x354   :  { %v4660_v59 = vadd.f32 %v4644_v6, %v4622_v41  ;;  %4399 = vst.msk [vmem:[%s10413_s7 + $0x68] sm:$0xff] %vm816_vm0, %v4383_v58  ;;  %v5220_v41 = vld [vmem:[%s10413_s7] sm:$0xff] }
 0x355   :  { %v5180_v35 = vpop.f32.mrf.mxu1  ;;  %v5224_v55 = vld [vmem:[%s10413_s7 + $0x20] sm:$0xff] }
 0x356   :  { %4676 = vst.msk [vmem:[%s10413_s7 + $0x60] sm:$0xff] %vm816_vm0, %v4660_v59  ;;  %7034 = vmatmul.msk.bf16.gmra.mxu2 %vm816_vm0, %v5421_v45  ;;  %v5236_v36 = vadd.f32 %v5220_v41, %v5180_v35  ;;  %v4369_v39 = vld [vmem:[%s10413_s7 + $0x78] sm:$0xff]  ;;  %v7089_v59 = vrot.slane %v6143_v21, 9  ;;  %v7090_v45 = vrot.slane %v6145_v37, 9  ;;  %v4836_v41 = vadd.f32 %v4820_v54, %v9231_v50 }
 0x357   :  { %v5222_v48 = vld [vmem:[%s10413_s7 + $0x10] sm:$0xff]  ;;  %v9486_v10 = vpop.f32.mrf.mxu0  ;;  %v5223_v35 = vld [vmem:[%s10413_s7 + $0x18] sm:$0xff] }
 0x358   :  { %5252 = vst.msk [vmem:[%s10413_s7] sm:$0xff] %vm816_vm0, %v5236_v36  ;;  %7102 = vmatmul.msk.bf16.vlgmr.msra.gmra.mxu1 %vm816_vm0, %v6281_v57  ;;  %v5225_v51 = vld [vmem:[%s10413_s7 + $0x28] sm:$0xff] }
 0x359   :  { %v4349_v14 = vpop.f32.mrf.mxu2  ;;  %4852 = vst.msk [vmem:[%s10413_s7 + $0x30] sm:$0xff] %vm816_vm0, %v4836_v41 }
 0x35a   :  { %v4384_v49 = vadd.f32 %v4368_v27, %v4349_v14  ;;  %v4629_v0 = vpop.f32.mrf.mxu3  ;;  %v6222_v27 = vsel %vm7843_vm1, %v7090_v45, %v6221_v31 }
 0x35b   :  { %v4645_v20 = vld [vmem:[%s10413_s7 + $0x68] sm:$0xff]  ;;  %v6270_v53 = vunpack.c.l.b16 %v6222_v27 }
 0x35c   :  { %v4661_v3 = vadd.f32 %v4645_v20, %v4624_v33  ;;  %4400 = vst.msk [vmem:[%s10413_s7 + $0x70] sm:$0xff] %vm816_vm0, %v4384_v49 }
 0x35d   :  { %v5182_v44 = vpop.f32.mrf.mxu1 }
 0x35e   :  { %4677 = vst.msk [vmem:[%s10413_s7 + $0x68] sm:$0xff] %vm816_vm0, %v4661_v3  ;;  %v5237_v23 = vadd.f32 %v5221_v7, %v5182_v44  ;;  %v4821_v3 = vld [vmem:[%s10413_s7 + $0x38] sm:$0xff]  ;;  %v6147_v7 = vld [vmem:[#allocation3 + $0x40] sm:$0xe] }
 0x35f   :  { %v5498_v9 = vld [vmem:[%s10413_s7] sm:$0xff]  ;;  %v9525_v20 = vpop.f32.mrf.mxu0  ;;  %v4837_v18 = vadd.f32 %v4821_v3, %v9269_v29 }
 0x360   :  { %5253 = vst.msk [vmem:[%s10413_s7 + $0x8] sm:$0xff] %vm816_vm0, %v5237_v23  ;;  %v6149_v23 = vld [vmem:[#allocation3 + $0x48] sm:$0xe] }
 0x361   :  { %v4351_v61 = vpop.f32.mrf.mxu2  ;;  %4853 = vst.msk [vmem:[%s10413_s7 + $0x38] sm:$0xff] %vm816_vm0, %v4837_v18 }
 0x362   :  { %v4385_v62 = vadd.f32 %v4369_v39, %v4351_v61  ;;  %v5641_v60 = vpop.f32.mrf.mxu3  ;;  %v6150_v61 = vld [vmem:[#allocation3 + $0x4c] sm:$0x1] }
 0x363   :  { %v4646_v33 = vld [vmem:[%s10413_s7 + $0x70] sm:$0xff] }
 0x364   :  { %v4662_v63 = vadd.f32 %v4646_v33, %v4627_v47  ;;  %4401 = vst.msk [vmem:[%s10413_s7 + $0x78] sm:$0xff] %vm816_vm0, %v4385_v62  ;;  %v6217_v47 = vrot.slane %v6144_v2, 5  ;;  %v7091_v62 = vrot.slane %v6147_v7, 9  ;;  %v6225_v33 = vrot.slane %v6148_v4, 5 }
 0x365   :  { %v5185_v5 = vpop.f32.mrf.mxu1 }
 0x366   :  { %4678 = vst.msk [vmem:[%s10413_s7 + $0x70] sm:$0xff] %vm816_vm0, %v4662_v63  ;;  %v5238_v16 = vadd.f32 %v5222_v48, %v5185_v5  ;;  %v6218_v14 = vsel %vm7843_vm1, %v7089_v59, %v6217_v47  ;;  %v7092_v63 = vrot.slane %v6149_v23, 9  ;;  %v4838_v5 = vadd.f32 %v4822_v42, %v9318_v22 }
 0x367   :  { %v5499_v57 = vld [vmem:[%s10413_s7 + $0x8] sm:$0xff]  ;;  %v6269_v8 = vunpack.c.l.b16 %v6218_v14  ;;  %v9568_v48 = vpop.f32.mrf.mxu0 }
 0x368   :  { %5254 = vst.msk [vmem:[%s10413_s7 + $0x10] sm:$0xff] %vm816_vm0, %v5238_v16  ;;  %7103 = vmatmul.msk.bf16.gmra.mxu1 %vm816_vm0, %v6282_v30  ;;  %v5227_v3 = vld [vmem:[%s10413_s7 + $0x38] sm:$0xff] }
 0x369   :  { %v5458_v34 = vpop.f32.mrf.mxu2  ;;  %v6283_v13 = vpack.c.b16 %v6270_v53, %v6269_v8  ;;  %4854 = vst.msk [vmem:[%s10413_s7 + $0x40] sm:$0xff] %vm816_vm0, %v4838_v5  ;;  %v4824_v8 = vld [vmem:[%s10413_s7 + $0x50] sm:$0xff]  ;;  %v6157_v5 = vld [vmem:[#allocation3 + $0x78] sm:$0xe] }
 0x36a   :  { %v5514_v12 = vadd.f32 %v5498_v9, %v5458_v34  ;;  %v5643_v6 = vpop.f32.mrf.mxu3  ;;  %v6226_v34 = vsel %vm7843_vm1, %v7091_v62, %v6225_v33 }
 0x36b   :  { %v4647_v25 = vld [vmem:[%s10413_s7 + $0x78] sm:$0xff]  ;;  %v6271_v37 = vunpack.c.l.b16 %v6226_v34 }
 0x36c   :  { %v4663_v58 = vadd.f32 %v4647_v25, %v4629_v0  ;;  %5530 = vst.msk [vmem:[%s10413_s7] sm:$0xff] %vm816_vm0, %v5514_v12  ;;  %v4823_v25 = vld [vmem:[%s10413_s7 + $0x48] sm:$0xff] }
 0x36d   :  { %v5187_v52 = vpop.f32.mrf.mxu1  ;;  %v4839_v59 = vadd.f32 %v4823_v25, %v9359_v40 }
 0x36e   :  { %4679 = vst.msk [vmem:[%s10413_s7 + $0x78] sm:$0xff] %vm816_vm0, %v4663_v58  ;;  %v5239_v32 = vadd.f32 %v5223_v35, %v5187_v52  ;;  %v6151_v52 = vld [vmem:[#allocation3 + $0x60] sm:$0xe]  ;;  %v6152_v35 = vld [vmem:[#allocation3 + $0x64] sm:$0x1] }
 0x36f   :  { %v5500_v44 = vld [vmem:[%s10413_s7 + $0x10] sm:$0xff]  ;;  %4855 = vst.msk [vmem:[%s10413_s7 + $0x48] sm:$0xff] %vm816_vm0, %v4839_v59  ;;  %v9610_v41 = vpop.f32.mrf.mxu0 }
 0x370   :  { %5255 = vst.msk [vmem:[%s10413_s7 + $0x18] sm:$0xff] %vm816_vm0, %v5239_v32  ;;  %v6153_v32 = vld [vmem:[#allocation3 + $0x68] sm:$0xe] }
 0x371   :  { %v5460_v36 = vpop.f32.mrf.mxu2 }
 0x372   :  { %v5515_v50 = vadd.f32 %v5499_v57, %v5460_v36  ;;  %v5646_v49 = vpop.f32.mrf.mxu3  ;;  %v6154_v36 = vld [vmem:[#allocation3 + $0x6c] sm:$0x1] }
 0x373   :  { %v5681_v26 = vld [vmem:[%s10413_s7] sm:$0xff] }
 0x374   :  { %v5697_v15 = vadd.f32 %v5681_v26, %v5641_v60  ;;  %5531 = vst.msk [vmem:[%s10413_s7 + $0x8] sm:$0xff] %vm816_vm0, %v5515_v50  ;;  %v6229_v60 = vrot.slane %v6150_v61, 5  ;;  %v7093_v50 = vrot.slane %v6151_v52, 9  ;;  %v6233_v26 = vrot.slane %v6152_v35, 5 }
 0x375   :  { %v5190_v0 = vpop.f32.mrf.mxu1 }
 0x376   :  { %5713 = vst.msk [vmem:[%s10413_s7] sm:$0xff] %vm816_vm0, %v5697_v15  ;;  %v5240_v17 = vadd.f32 %v5224_v55, %v5190_v0  ;;  %v6230_v9 = vsel %vm7843_vm1, %v7092_v63, %v6229_v60  ;;  %v7094_v15 = vrot.slane %v6153_v32, 9  ;;  %v4840_v0 = vadd.f32 %v4824_v8, %v9404_v1  ;;  %v5229_v25 = vld [vmem:[%s10413_s7 + $0x48] sm:$0xff] }
 0x377   :  { %v5501_v30 = vld [vmem:[%s10413_s7 + $0x18] sm:$0xff]  ;;  %v6272_v38 = vunpack.c.l.b16 %v6230_v9  ;;  %v9653_v7 = vpop.f32.mrf.mxu0 }
 0x378   :  { %5256 = vst.msk [vmem:[%s10413_s7 + $0x20] sm:$0xff] %vm816_vm0, %v5240_v17  ;;  %7104 = vmatmul.msk.bf16.gmra.mxu1 %vm816_vm0, %v6283_v13  ;;  %v6234_v13 = vsel %vm7843_vm1, %v7093_v50, %v6233_v26 }
 0x379   :  { %v5463_v11 = vpop.f32.mrf.mxu2  ;;  %v6284_v45 = vpack.c.b16 %v6272_v38, %v6271_v37  ;;  %4856 = vst.msk [vmem:[%s10413_s7 + $0x50] sm:$0xff] %vm816_vm0, %v4840_v0  ;;  %v6273_v23 = vunpack.c.l.b16 %v6234_v13  ;;  %v4826_v37 = vld [vmem:[%s10413_s7 + $0x60] sm:$0xff]  ;;  %v6161_v0 = vld [vmem:[#allocation3 + $0x88] sm:$0xe] }
 0x37a   :  { %v5516_v29 = vadd.f32 %v5500_v44, %v5463_v11  ;;  %v5648_v24 = vpop.f32.mrf.mxu3 }
 0x37b   :  { %v5682_v39 = vld [vmem:[%s10413_s7 + $0x8] sm:$0xff] }
 0x37c   :  { %v5698_v19 = vadd.f32 %v5682_v39, %v5643_v6  ;;  %5532 = vst.msk [vmem:[%s10413_s7 + $0x10] sm:$0xff] %vm816_vm0, %v5516_v29  ;;  %v5226_v6 = vld [vmem:[%s10413_s7 + $0x30] sm:$0xff]  ;;  %v4825_v39 = vld [vmem:[%s10413_s7 + $0x58] sm:$0xff] }
 0x37d   :  { %v5192_v28 = vpop.f32.mrf.mxu1  ;;  %v4841_v62 = vadd.f32 %v4825_v39, %v9447_v43 }
 0x37e   :  { %5714 = vst.msk [vmem:[%s10413_s7 + $0x8] sm:$0xff] %vm816_vm0, %v5698_v19  ;;  %v5241_v46 = vadd.f32 %v5225_v51, %v5192_v28  ;;  %v6155_v28 = vld [vmem:[#allocation3 + $0x70] sm:$0xe]  ;;  %v6156_v51 = vld [vmem:[#allocation3 + $0x74] sm:$0x1] }
 0x37f   :  { %v5502_v54 = vld [vmem:[%s10413_s7 + $0x20] sm:$0xff]  ;;  %4857 = vst.msk [vmem:[%s10413_s7 + $0x58] sm:$0xff] %vm816_vm0, %v4841_v62  ;;  %v7095_v9 = vrot.slane %v6155_v28, 9 }
 0x380   :  { %5257 = vst.msk [vmem:[%s10413_s7 + $0x28] sm:$0xff] %vm816_vm0, %v5241_v46  ;;  %v6158_v46 = vld [vmem:[#allocation3 + $0x7c] sm:$0x1] }
 0x381   :  { %v5465_v16 = vpop.f32.mrf.mxu2 }
 0x382   :  { %v5517_v22 = vadd.f32 %v5501_v30, %v5465_v16  ;;  %v5651_v12 = vpop.f32.mrf.mxu3 }
 0x383   :  { %v5683_v21 = vld [vmem:[%s10413_s7 + $0x10] sm:$0xff] }
 0x384   :  { %v5699_v2 = vadd.f32 %v5683_v21, %v5646_v49  ;;  %5533 = vst.msk [vmem:[%s10413_s7 + $0x18] sm:$0xff] %vm816_vm0, %v5517_v22  ;;  %v6237_v49 = vrot.slane %v6154_v36, 5  ;;  %v6241_v22 = vrot.slane %v6156_v51, 5  ;;  %v7096_v21 = vrot.slane %v6157_v5, 9  ;;  %v4827_v36 = vld [vmem:[%s10413_s7 + $0x68] sm:$0xff]  ;;  %v4829_v5 = vld [vmem:[%s10413_s7 + $0x78] sm:$0xff] }
 0x385   :  { %v5195_v58 = vpop.f32.mrf.mxu1 }
 0x386   :  { %5715 = vst.msk [vmem:[%s10413_s7 + $0x10] sm:$0xff] %vm816_vm0, %v5699_v2  ;;  %v5242_v47 = vadd.f32 %v5226_v6, %v5195_v58  ;;  %v6238_v11 = vsel %vm7843_vm1, %v7094_v15, %v6237_v49  ;;  %v6245_v2 = vrot.slane %v6158_v46, 5  ;;  %v4842_v58 = vadd.f32 %v4826_v37, %v9486_v10  ;;  %v6163_v37 = vld [vmem:[#allocation3 + $0x90] sm:$0xe] }
 0x387   :  { %v5503_v17 = vld [vmem:[%s10413_s7 + $0x28] sm:$0xff]  ;;  %v6274_v61 = vunpack.c.l.b16 %v6238_v11 }
 0x388   :  { %5258 = vst.msk [vmem:[%s10413_s7 + $0x30] sm:$0xff] %vm816_vm0, %v5242_v47  ;;  %7105 = vmatmul.msk.bf16.gmra.mxu1 %vm816_vm0, %v6284_v45  ;;  %v6242_v45 = vsel %vm7843_vm1, %v7095_v9, %v6241_v22 }
 0x389   :  { %v5468_v31 = vpop.f32.mrf.mxu2  ;;  %v6285_v63 = vpack.c.b16 %v6274_v61, %v6273_v23  ;;  %4858 = vst.msk [vmem:[%s10413_s7 + $0x60] sm:$0xff] %vm816_vm0, %v4842_v58  ;;  %v6275_v35 = vunpack.c.l.b16 %v6242_v45  ;;  %v5231_v61 = vld [vmem:[%s10413_s7 + $0x58] sm:$0xff]  ;;  %v7099_v45 = vrot.slane %v6163_v37, 9 }
 0x38a   :  { %v5518_v40 = vadd.f32 %v5502_v54, %v5468_v31  ;;  %v5653_v27 = vpop.f32.mrf.mxu3  ;;  %v6246_v31 = vsel %vm7843_vm1, %v7096_v21, %v6245_v2  ;;  %v6166_v58 = vld [vmem:[#allocation3 + $0x9c] sm:$0x1] }
 0x38b   :  { %v5684_v57 = vld [vmem:[%s10413_s7 + $0x18] sm:$0xff] }
 0x38c   :  { %v5700_v14 = vadd.f32 %v5684_v57, %v5648_v24  ;;  %5534 = vst.msk [vmem:[%s10413_s7 + $0x20] sm:$0xff] %vm816_vm0, %v5518_v40  ;;  %v5228_v24 = vld [vmem:[%s10413_s7 + $0x40] sm:$0xff]  ;;  %v6276_v40 = vunpack.c.l.b16 %v6246_v31 }
 0x38d   :  { %v5197_v53 = vpop.f32.mrf.mxu1 }
 0x38e   :  { %5716 = vst.msk [vmem:[%s10413_s7 + $0x18] sm:$0xff] %vm816_vm0, %v5700_v14  ;;  %v5243_v55 = vadd.f32 %v5227_v3, %v5197_v53  ;;  %v5230_v14 = vld [vmem:[%s10413_s7 + $0x50] sm:$0xff]  ;;  %v6286_v15 = vpack.c.b16 %v6276_v40, %v6275_v35  ;;  %v6159_v53 = vld [vmem:[#allocation3 + $0x80] sm:$0xe]  ;;  %v6160_v3 = vld [vmem:[#allocation3 + $0x84] sm:$0x1] }
 0x38f   :  { %v5504_v42 = vld [vmem:[%s10413_s7 + $0x30] sm:$0xff]  ;;  %v7097_v13 = vrot.slane %v6159_v53, 9  ;;  %v6249_v11 = vrot.slane %v6160_v3, 5 }
 0x390   :  { %5259 = vst.msk [vmem:[%s10413_s7 + $0x38] sm:$0xff] %vm816_vm0, %v5243_v55  ;;  %v6162_v55 = vld [vmem:[#allocation3 + $0x8c] sm:$0x1] }
 0x391   :  { %v5470_v18 = vpop.f32.mrf.mxu2 }
 0x392   :  { %v5519_v1 = vadd.f32 %v5503_v17, %v5470_v18  ;;  %v5656_v29 = vpop.f32.mrf.mxu3 }
 0x393   :  { %v5685_v44 = vld [vmem:[%s10413_s7 + $0x20] sm:$0xff] }
 0x394   :  { %v5701_v4 = vadd.f32 %v5685_v44, %v5651_v12  ;;  %5535 = vst.msk [vmem:[%s10413_s7 + $0x28] sm:$0xff] %vm816_vm0, %v5519_v1  ;;  %v9689_v12 = vpop.f32.mrf.mxu0  ;;  %v7098_v1 = vrot.slane %v6161_v0, 9  ;;  %v6253_v44 = vrot.slane %v6162_v55, 5 }
 0x395   :  { %v5200_v19 = vpop.f32.mrf.mxu1 }
 0x396   :  { %5717 = vst.msk [vmem:[%s10413_s7 + $0x20] sm:$0xff] %vm816_vm0, %v5701_v4  ;;  %v5244_v33 = vadd.f32 %v5228_v24, %v5200_v19  ;;  %v4828_v4 = vld [vmem:[%s10413_s7 + $0x70] sm:$0xff] }
 0x397   :  { %v5505_v47 = vld [vmem:[%s10413_s7 + $0x38] sm:$0xff]  ;;  %v4844_v39 = vadd.f32 %v4828_v4, %v9568_v48 }
 0x398   :  { %5260 = vst.msk [vmem:[%s10413_s7 + $0x40] sm:$0xff] %vm816_vm0, %v5244_v33  ;;  %7106 = vmatmul.msk.bf16.gmra.mxu1 %vm816_vm0, %v6285_v63  ;;  %v6250_v33 = vsel %vm7843_vm1, %v7097_v13, %v6249_v11  ;;  %v6254_v63 = vsel %vm7843_vm1, %v7098_v1, %v6253_v44 }
 0x399   :  { %v5473_v60 = vpop.f32.mrf.mxu2  ;;  %4860 = vst.msk [vmem:[%s10413_s7 + $0x70] sm:$0xff] %vm816_vm0, %v4844_v39  ;;  %v6277_v51 = vunpack.c.l.b16 %v6250_v33 }
 0x39a   :  { %v5520_v43 = vadd.f32 %v5504_v42, %v5473_v60  ;;  %v5658_v34 = vpop.f32.mrf.mxu3 }
 0x39b   :  { %v5686_v16 = vld [vmem:[%s10413_s7 + $0x28] sm:$0xff] }
 0x39c   :  { %v5702_v30 = vadd.f32 %v5686_v16, %v5653_v27  ;;  %5536 = vst.msk [vmem:[%s10413_s7 + $0x30] sm:$0xff] %vm816_vm0, %v5520_v43  ;;  %v4843_v27 = vadd.f32 %v4827_v36, %v9525_v20  ;;  %v9735_v50 = vpop.f32.mrf.mxu0  ;;  %v6278_v43 = vunpack.c.l.b16 %v6254_v63  ;;  %v5232_v16 = vld [vmem:[%s10413_s7 + $0x60] sm:$0xff] }
 0x39d   :  { %v5202_v38 = vpop.f32.mrf.mxu1 }
 0x39e   :  { %5718 = vst.msk [vmem:[%s10413_s7 + $0x28] sm:$0xff] %vm816_vm0, %v5702_v30  ;;  %v5245_v6 = vadd.f32 %v5229_v25, %v5202_v38  ;;  %v4845_v30 = vadd.f32 %v4829_v5, %v9610_v41  ;;  %v6287_v9 = vpack.c.b16 %v6278_v43, %v6277_v51  ;;  %v6164_v38 = vld [vmem:[#allocation3 + $0x94] sm:$0x1]  ;;  %v6165_v25 = vld [vmem:[#allocation3 + $0x98] sm:$0xe] }
 0x39f   :  { %v5506_v8 = vld [vmem:[%s10413_s7 + $0x40] sm:$0xff]  ;;  %4859 = vst.msk [vmem:[%s10413_s7 + $0x68] sm:$0xff] %vm816_vm0, %v4843_v27  ;;  %v6257_v31 = vrot.slane %v6164_v38, 5 }
 0x3a0   :  { %5261 = vst.msk [vmem:[%s10413_s7 + $0x48] sm:$0xff] %vm816_vm0, %v5245_v6  ;;  %v5234_v55 = vld [vmem:[%s10413_s7 + $0x70] sm:$0xff] }
 0x3a1   :  { %v5475_v59 = vpop.f32.mrf.mxu2  ;;  %4861 = vst.msk [vmem:[%s10413_s7 + $0x78] sm:$0xff] %vm816_vm0, %v4845_v30  ;;  %v6258_v27 = vsel %vm7843_vm1, %v7099_v45, %v6257_v31 }
 0x3a2   :  { %v5521_v10 = vadd.f32 %v5505_v47, %v5475_v59  ;;  %v5661_v32 = vpop.f32.mrf.mxu3  ;;  %v6279_v56 = vunpack.c.l.b16 %v6258_v27 }
 0x3a3   :  { %v5687_v54 = vld [vmem:[%s10413_s7 + $0x30] sm:$0xff] }
 0x3a4   :  { %v5703_v52 = vadd.f32 %v5687_v54, %v5656_v29  ;;  %5537 = vst.msk [vmem:[%s10413_s7 + $0x38] sm:$0xff] %vm816_vm0, %v5521_v10  ;;  %v9778_v60 = vpop.f32.mrf.mxu0  ;;  %v7100_v10 = vrot.slane %v6165_v25, 9  ;;  %v6261_v54 = vrot.slane %v6166_v58, 5 }
 0x3a5   :  { %v5205_v57 = vpop.f32.mrf.mxu1 }
 0x3a6   :  { %5719 = vst.msk [vmem:[%s10413_s7 + $0x30] sm:$0xff] %vm816_vm0, %v5703_v52  ;;  %v5246_v26 = vadd.f32 %v5230_v14, %v5205_v57  ;;  %v6087_v52 = vld [vmem:[%s10413_s7] sm:$0xff]  ;;  %v5233_v40 = vld [vmem:[%s10413_s7 + $0x68] sm:$0xff] }
 0x3a7   :  { %v5507_v62 = vld [vmem:[%s10413_s7 + $0x48] sm:$0xff] }
 0x3a8   :  { %5262 = vst.msk [vmem:[%s10413_s7 + $0x50] sm:$0xff] %vm816_vm0, %v5246_v26  ;;  %7107 = vmatmul.msk.bf16.gmra.mxu1 %vm816_vm0, %v6286_v15  ;;  %v6262_v26 = vsel %vm7843_vm1, %v7100_v10, %v6261_v54  ;;  %v5235_v39 = vld [vmem:[%s10413_s7 + $0x78] sm:$0xff]  ;;  %v6092_v54 = vld [vmem:[%s10413_s7 + $0x28] sm:$0xff] }
 0x3a9   :  { %v5478_v49 = vpop.f32.mrf.mxu2  ;;  %v6280_v53 = vunpack.c.l.b16 %v6262_v26 }
 0x3aa   :  { %v5522_v20 = vadd.f32 %v5506_v8, %v5478_v49  ;;  %v5663_v29 = vpop.f32.mrf.mxu3 }
 0x3ab   :  { %v5688_v18 = vld [vmem:[%s10413_s7 + $0x38] sm:$0xff]  ;;  %v6288_v13 = vpack.c.b16 %v6280_v53, %v6279_v56 }
 0x3ac   :  { %v5704_v17 = vadd.f32 %v5688_v18, %v5658_v34  ;;  %5538 = vst.msk [vmem:[%s10413_s7 + $0x40] sm:$0xff] %vm816_vm0, %v5522_v20  ;;  %v9817_v59 = vpop.f32.mrf.mxu0  ;;  %v6088_v20 = vld [vmem:[%s10413_s7 + $0x8] sm:$0xff] }
 0x3ad   :  { %v5207_v23 = vpop.f32.mrf.mxu1  ;;  %v6104_v18 = vadd.f32 %v6088_v20, %v9689_v12  ;;  %v6093_v27 = vld [vmem:[%s10413_s7 + $0x30] sm:$0xff] }
 0x3ae   :  { %5720 = vst.msk [vmem:[%s10413_s7 + $0x38] sm:$0xff] %vm816_vm0, %v5704_v17  ;;  %v5247_v19 = vadd.f32 %v5231_v61, %v5207_v23  ;;  %v6089_v23 = vld [vmem:[%s10413_s7 + $0x10] sm:$0xff] }
 0x3af   :  { %v5508_v2 = vld [vmem:[%s10413_s7 + $0x50] sm:$0xff]  ;;  %6120 = vst.msk [vmem:[%s10413_s7 + $0x8] sm:$0xff] %vm816_vm0, %v6104_v18 }
 0x3b0   :  { %5263 = vst.msk [vmem:[%s10413_s7 + $0x58] sm:$0xff] %vm816_vm0, %v5247_v19  ;;  %v6105_v19 = vadd.f32 %v6089_v23, %v9735_v50 }
 0x3b1   :  { %v5480_v24 = vpop.f32.mrf.mxu2 }
 0x3b2   :  { %v5523_v48 = vadd.f32 %v5507_v62, %v5480_v24  ;;  %v5666_v22 = vpop.f32.mrf.mxu3  ;;  %6121 = vst.msk [vmem:[%s10413_s7 + $0x10] sm:$0xff] %vm816_vm0, %v6105_v19 }
 0x3b3   :  { %v5689_v42 = vld [vmem:[%s10413_s7 + $0x40] sm:$0xff] }
 0x3b4   :  { %v5705_v28 = vadd.f32 %v5689_v42, %v5661_v32  ;;  %5539 = vst.msk [vmem:[%s10413_s7 + $0x48] sm:$0xff] %vm816_vm0, %v5523_v48  ;;  %v6103_v32 = vadd.f32 %v6087_v52, %v9653_v7  ;;  %v9856_v3 = vpop.f32.mrf.mxu0 }
 0x3b5   :  { %v5210_v46 = vpop.f32.mrf.mxu1  ;;  %v6108_v52 = vadd.f32 %v6092_v54, %v9856_v3  ;;  %v6094_v56 = vld [vmem:[%s10413_s7 + $0x38] sm:$0xff] }
 0x3b6   :  { %5721 = vst.msk [vmem:[%s10413_s7 + $0x40] sm:$0xff] %vm816_vm0, %v5705_v28  ;;  %v5248_v34 = vadd.f32 %v5232_v16, %v5210_v46  ;;  %v6090_v28 = vld [vmem:[%s10413_s7 + $0x18] sm:$0xff] }
 0x3b7   :  { %v5509_v14 = vld [vmem:[%s10413_s7 + $0x58] sm:$0xff]  ;;  %6119 = vst.msk [vmem:[%s10413_s7] sm:$0xff] %vm816_vm0, %v6103_v32  ;;  %v6106_v51 = vadd.f32 %v6090_v28, %v9778_v60 }
 0x3b8   :  { %5264 = vst.msk [vmem:[%s10413_s7 + $0x60] sm:$0xff] %vm816_vm0, %v5248_v34  ;;  %7108 = vmatmul.msk.bf16.gmra.mxu1 %vm816_vm0, %v6287_v9 }
 0x3b9   :  { %v5483_v21 = vpop.f32.mrf.mxu2  ;;  %6122 = vst.msk [vmem:[%s10413_s7 + $0x18] sm:$0xff] %vm816_vm0, %v6106_v51 }
 0x3ba   :  { %v5524_v41 = vadd.f32 %v5508_v2, %v5483_v21  ;;  %v5668_v49 = vpop.f32.mrf.mxu3  ;;  %v6091_v2 = vld [vmem:[%s10413_s7 + $0x20] sm:$0xff]  ;;  %6124 = vst.msk [vmem:[%s10413_s7 + $0x28] sm:$0xff] %vm816_vm0, %v6108_v52 }
 0x3bb   :  { %v5690_v6 = vld [vmem:[%s10413_s7 + $0x48] sm:$0xff]  ;;  %v6107_v37 = vadd.f32 %v6091_v2, %v9817_v59 }
 0x3bc   :  { %v5706_v47 = vadd.f32 %v5690_v6, %v5663_v29  ;;  %5540 = vst.msk [vmem:[%s10413_s7 + $0x50] sm:$0xff] %vm816_vm0, %v5524_v41  ;;  %v6062_v24 = vpop.f32.mrf.mxu0  ;;  %v6366_v41 = vld [vmem:[%s10413_s7 + $0x8] sm:$0xff] }
 0x3bd   :  { %v5212_v35 = vpop.f32.mrf.mxu1  ;;  %6123 = vst.msk [vmem:[%s10413_s7 + $0x20] sm:$0xff] %vm816_vm0, %v6107_v37  ;;  %v6095_v18 = vld [vmem:[%s10413_s7 + $0x40] sm:$0xff] }
 0x3be   :  { %5722 = vst.msk [vmem:[%s10413_s7 + $0x48] sm:$0xff] %vm816_vm0, %v5706_v47  ;;  %v5249_v36 = vadd.f32 %v5233_v40, %v5212_v35  ;;  %v6365_v46 = vld [vmem:[%s10413_s7] sm:$0xff]  ;;  %v6367_v40 = vld [vmem:[%s10413_s7 + $0x10] sm:$0xff] }
 0x3bf   :  { %v5510_v1 = vld [vmem:[%s10413_s7 + $0x60] sm:$0xff] }
 0x3c0   :  { %5265 = vst.msk [vmem:[%s10413_s7 + $0x68] sm:$0xff] %vm816_vm0, %v5249_v36 }
 0x3c1   :  { %v5485_v57 = vpop.f32.mrf.mxu2 }
 0x3c2   :  { %v5525_v7 = vadd.f32 %v5509_v14, %v5485_v57  ;;  %v5671_v29 = vpop.f32.mrf.mxu3 }
 0x3c3   :  { %v5691_v15 = vld [vmem:[%s10413_s7 + $0x50] sm:$0xff] }
 0x3c4   :  { %v5707_v8 = vadd.f32 %v5691_v15, %v5666_v22  ;;  %5541 = vst.msk [vmem:[%s10413_s7 + $0x58] sm:$0xff] %vm816_vm0, %v5525_v7  ;;  %v6064_v9 = vpop.f32.mrf.mxu0  ;;  %v6109_v7 = vadd.f32 %v6093_v27, %v6062_v24  ;;  %v6369_v20 = vld [vmem:[%s10413_s7 + $0x20] sm:$0xff] }
 0x3c5   :  { %v5215_v0 = vpop.f32.mrf.mxu1  ;;  %v6110_v53 = vadd.f32 %v6094_v56, %v6064_v9 }
 0x3c6   :  { %5723 = vst.msk [vmem:[%s10413_s7 + $0x50] sm:$0xff] %vm816_vm0, %v5707_v8  ;;  %v5250_v17 = vadd.f32 %v5234_v55, %v5215_v0 }
 0x3c7   :  { %v5511_v63 = vld [vmem:[%s10413_s7 + $0x68] sm:$0xff]  ;;  %6125 = vst.msk [vmem:[%s10413_s7 + $0x30] sm:$0xff] %vm816_vm0, %v6109_v7 }
 0x3c8   :  { %5266 = vst.msk [vmem:[%s10413_s7 + $0x70] sm:$0xff] %vm816_vm0, %v5250_v17  ;;  %7109 = vmatmul.msk.bf16.gmra.mxu1 %vm816_vm0, %v6288_v13 }
 0x3c9   :  { %v5488_v11 = vpop.f32.mrf.mxu2  ;;  %6126 = vst.msk [vmem:[%s10413_s7 + $0x38] sm:$0xff] %vm816_vm0, %v6110_v53 }
 0x3ca   :  { %v5526_v44 = vadd.f32 %v5510_v1, %v5488_v11  ;;  %v5673_v43 = vpop.f32.mrf.mxu3  ;;  %v6370_v11 = vld [vmem:[%s10413_s7 + $0x28] sm:$0xff] }
 0x3cb   :  { %v5692_v12 = vld [vmem:[%s10413_s7 + $0x58] sm:$0xff] }
 0x3cc   :  { %v5708_v4 = vadd.f32 %v5692_v12, %v5668_v49  ;;  %5542 = vst.msk [vmem:[%s10413_s7 + $0x60] sm:$0xff] %vm816_vm0, %v5526_v44  ;;  %v6067_v31 = vpop.f32.mrf.mxu0  ;;  %v6368_v49 = vld [vmem:[%s10413_s7 + $0x18] sm:$0xff]  ;;  %v6096_v12 = vld [vmem:[%s10413_s7 + $0x48] sm:$0xff] }
 0x3cd   :  { %v5217_v61 = vpop.f32.mrf.mxu1  ;;  %v6111_v17 = vadd.f32 %v6095_v18, %v6067_v31 }
 0x3ce   :  { %5724 = vst.msk [vmem:[%s10413_s7 + $0x58] sm:$0xff] %vm816_vm0, %v5708_v4  ;;  %v5251_v62 = vadd.f32 %v5235_v39, %v5217_v61  ;;  %v6371_v23 = vld [vmem:[%s10413_s7 + $0x30] sm:$0xff] }
 0x3cf   :  { %v5512_v34 = vld [vmem:[%s10413_s7 + $0x70] sm:$0xff]  ;;  %6127 = vst.msk [vmem:[%s10413_s7 + $0x40] sm:$0xff] %vm816_vm0, %v6111_v17 }
 0x3d0   :  { %5267 = vst.msk [vmem:[%s10413_s7 + $0x78] sm:$0xff] %vm816_vm0, %v5251_v62  ;;  %v6097_v39 = vld [vmem:[%s10413_s7 + $0x50] sm:$0xff] }
 0x3d1   :  { %v5490_v33 = vpop.f32.mrf.mxu2 }
 0x3d2   :  { %v5527_v48 = vadd.f32 %v5511_v63, %v5490_v33  ;;  %v5676_v58 = vpop.f32.mrf.mxu3  ;;  %v6372_v33 = vld [vmem:[%s10413_s7 + $0x38] sm:$0xff] }
 0x3d3   :  { %v5693_v50 = vld [vmem:[%s10413_s7 + $0x60] sm:$0xff] }
 0x3d4   :  { %v5709_v42 = vadd.f32 %v5693_v50, %v5671_v29  ;;  %5543 = vst.msk [vmem:[%s10413_s7 + $0x68] sm:$0xff] %vm816_vm0, %v5527_v48  ;;  %v6069_v26 = vpop.f32.mrf.mxu0 }
 0x3d5   :  { %v6325_v5 = vpop.f32.mrf.mxu1  ;;  %v6112_v4 = vadd.f32 %v6096_v12, %v6069_v26  ;;  %v6098_v48 = vld [vmem:[%s10413_s7 + $0x58] sm:$0xff] }
 0x3d6   :  { %5725 = vst.msk [vmem:[%s10413_s7 + $0x60] sm:$0xff] %vm816_vm0, %v5709_v42  ;;  %v6381_v16 = vadd.f32 %v6365_v46, %v6325_v5  ;;  %v6373_v5 = vld [vmem:[%s10413_s7 + $0x40] sm:$0xff] }
 0x3d7   :  { %v5513_v47 = vld [vmem:[%s10413_s7 + $0x78] sm:$0xff]  ;;  %6128 = vst.msk [vmem:[%s10413_s7 + $0x48] sm:$0xff] %vm816_vm0, %v6112_v4 }
 0x3d8   :  { %6397 = vst.msk [vmem:[%s10413_s7] sm:$0xff] %vm816_vm0, %v6381_v16 }
 0x3d9   :  { %v5493_v30 = vpop.f32.mrf.mxu2 }
 0x3da   :  { %v5528_v60 = vadd.f32 %v5512_v34, %v5493_v30  ;;  %v5678_v36 = vpop.f32.mrf.mxu3 }
 0x3db   :  { %v5694_v22 = vld [vmem:[%s10413_s7 + $0x68] sm:$0xff] }
 0x3dc   :  { %v5710_v21 = vadd.f32 %v5694_v22, %v5673_v43  ;;  %5544 = vst.msk [vmem:[%s10413_s7 + $0x70] sm:$0xff] %vm816_vm0, %v5528_v60  ;;  %v6072_v0 = vpop.f32.mrf.mxu0 }
 0x3dd   :  { %v6327_v38 = vpop.f32.mrf.mxu1  ;;  %v6113_v19 = vadd.f32 %v6097_v39, %v6072_v0  ;;  %v6099_v42 = vld [vmem:[%s10413_s7 + $0x60] sm:$0xff] }
 0x3de   :  { %5726 = vst.msk [vmem:[%s10413_s7 + $0x68] sm:$0xff] %vm816_vm0, %v5710_v21  ;;  %v6382_v25 = vadd.f32 %v6366_v41, %v6327_v38  ;;  %v6374_v9 = vld [vmem:[%s10413_s7 + $0x48] sm:$0xff] }
 0x3df   :  { %6129 = vst.msk [vmem:[%s10413_s7 + $0x50] sm:$0xff] %vm816_vm0, %v6113_v19  ;;  %v10145_v52 = vld [vmem:[%s10413_s7] sm:$0xff] }
 0x3e0   :  { %6398 = vst.msk [vmem:[%s10413_s7 + $0x8] sm:$0xff] %vm816_vm0, %v6382_v25  ;;  %v6429_v7 = vsel %vm816_vm0, %v10145_v52, 0.0 }
 0x3e1   :  { %v5495_v6 = vpop.f32.mrf.mxu2 }
 0x3e2   :  { %v5529_v59 = vadd.f32 %v5513_v47, %v5495_v6 }
 0x3e3   :  { %v5695_v45 = vld [vmem:[%s10413_s7 + $0x70] sm:$0xff] }
 0x3e4   :  { %v5711_v10 = vadd.f32 %v5695_v45, %v5676_v58  ;;  %5545 = vst.msk [vmem:[%s10413_s7 + $0x78] sm:$0xff] %vm816_vm0, %v5529_v59  ;;  %v6074_v44 = vpop.f32.mrf.mxu0 }
 0x3e5   :  { %v6330_v35 = vpop.f32.mrf.mxu1  ;;  %v6114_v50 = vadd.f32 %v6098_v48, %v6074_v44  ;;  %v6100_v16 = vld [vmem:[%s10413_s7 + $0x68] sm:$0xff] }
 0x3e6   :  { %5727 = vst.msk [vmem:[%s10413_s7 + $0x70] sm:$0xff] %vm816_vm0, %v5711_v10  ;;  %v6383_v32 = vadd.f32 %v6367_v40, %v6330_v35  ;;  %v6375_v38 = vld [vmem:[%s10413_s7 + $0x50] sm:$0xff] }
 0x3e7   :  { %6130 = vst.msk [vmem:[%s10413_s7 + $0x58] sm:$0xff] %vm816_vm0, %v6114_v50  ;;  %v10137_v31 = vld [vmem:[%s10413_s7 + $0x8] sm:$0xff] }
 0x3e8   :  { %6399 = vst.msk [vmem:[%s10413_s7 + $0x10] sm:$0xff] %vm816_vm0, %v6383_v32  ;;  %v6467_v32 = vmul.f32 %v10137_v31, %v10137_v31 }
 0x3eb   :  { %v5696_v57 = vld [vmem:[%s10413_s7 + $0x78] sm:$0xff] }
 0x3ec   :  { %v5712_v14 = vadd.f32 %v5696_v57, %v5678_v36  ;;  %v6077_v24 = vpop.f32.mrf.mxu0  ;;  %v6466_v36 = vmul.f32 %v10145_v52, %v10145_v52 }
 0x3ed   :  { %v6332_v15 = vpop.f32.mrf.mxu1  ;;  %v6115_v28 = vadd.f32 %v6099_v42, %v6077_v24  ;;  %v6101_v21 = vld [vmem:[%s10413_s7 + $0x70] sm:$0xff] }
 0x3ee   :  { %5728 = vst.msk [vmem:[%s10413_s7 + $0x78] sm:$0xff] %vm816_vm0, %v5712_v14  ;;  %v6384_v8 = vadd.f32 %v6368_v49, %v6332_v15  ;;  %v6376_v59 = vld [vmem:[%s10413_s7 + $0x58] sm:$0xff]  ;;  %v6430_v14 = vsel %vm816_vm0, %v10137_v31, 0.0  ;;  %v6483_v15 = vsel %vm816_vm0, %v6467_v32, 0.0  ;;  %v6482_v56 = vsel %vm816_vm0, %v6466_v36, 0.0 }
 0x3ef   :  { %6131 = vst.msk [vmem:[%s10413_s7 + $0x60] sm:$0xff] %vm816_vm0, %v6115_v28  ;;  %v10150_v40 = vld [vmem:[%s10413_s7 + $0x10] sm:$0xff]  ;;  %v6431_v53 = vadd.f32 %v6430_v14, %v6429_v7 }
 0x3f0   :  { %6400 = vst.msk [vmem:[%s10413_s7 + $0x18] sm:$0xff] %vm816_vm0, %v6384_v8  ;;  %v6468_v27 = vmul.f32 %v10150_v40, %v10150_v40  ;;  %v6432_v49 = vsel %vm816_vm0, %v10150_v40, 0.0 }
 0x3f4   :  { %v6079_v51 = vpop.f32.mrf.mxu0 }
 0x3f5   :  { %v6335_v3 = vpop.f32.mrf.mxu1  ;;  %v6116_v30 = vadd.f32 %v6100_v16, %v6079_v51  ;;  %v6102_v58 = vld [vmem:[%s10413_s7 + $0x78] sm:$0xff] }
 0x3f6   :  { %v6385_v55 = vadd.f32 %v6369_v20, %v6335_v3  ;;  %v6377_v54 = vld [vmem:[%s10413_s7 + $0x60] sm:$0xff] }
 0x3f7   :  { %6132 = vst.msk [vmem:[%s10413_s7 + $0x68] sm:$0xff] %vm816_vm0, %v6116_v30  ;;  %v10163_v57 = vld [vmem:[%s10413_s7 + $0x18] sm:$0xff] }
 0x3f8   :  { %6401 = vst.msk [vmem:[%s10413_s7 + $0x20] sm:$0xff] %vm816_vm0, %v6385_v55  ;;  %v6469_v8 = vmul.f32 %v10163_v57, %v10163_v57  ;;  %v6485_v55 = vsel %vm816_vm0, %v6468_v27, 0.0  ;;  %v6434_v18 = vsel %vm816_vm0, %v10163_v57, 0.0 }
 0x3fa   :  { %v6487_v12 = vsel %vm816_vm0, %v6469_v8, 0.0 }
 0x3fc   :  { %v6082_v60 = vpop.f32.mrf.mxu0 }
 0x3fd   :  { %v6337_v13 = vpop.f32.mrf.mxu1  ;;  %v6117_v2 = vadd.f32 %v6101_v21, %v6082_v60 }
 0x3fe   :  { %v6386_v1 = vadd.f32 %v6370_v11, %v6337_v13  ;;  %v6378_v0 = vld [vmem:[%s10413_s7 + $0x68] sm:$0xff]  ;;  %v6484_v11 = vadd.f32 %v6483_v15, %v6482_v56 }
 0x3ff   :  { %6133 = vst.msk [vmem:[%s10413_s7 + $0x70] sm:$0xff] %vm816_vm0, %v6117_v2  ;;  %v10172_v26 = vld [vmem:[%s10413_s7 + $0x20] sm:$0xff] }
 0x400   :  { %6402 = vst.msk [vmem:[%s10413_s7 + $0x28] sm:$0xff] %vm816_vm0, %v6386_v1  ;;  %v6470_v17 = vmul.f32 %v10172_v26, %v10172_v26  ;;  %v6433_v1 = vadd.f32 %v6432_v49, %v6431_v53  ;;  %v6436_v4 = vsel %vm816_vm0, %v10172_v26, 0.0 }
 0x402   :  { %v6489_v19 = vsel %vm816_vm0, %v6470_v17, 0.0 }
 0x404   :  { %v6084_v25 = vpop.f32.mrf.mxu0 }
 0x405   :  { %v6340_v29 = vpop.f32.mrf.mxu1  ;;  %v6118_v6 = vadd.f32 %v6102_v58, %v6084_v25 }
 0x406   :  { %v6387_v61 = vadd.f32 %v6371_v23, %v6340_v29  ;;  %v6486_v23 = vadd.f32 %v6485_v55, %v6484_v11  ;;  %v6379_v16 = vld [vmem:[%s10413_s7 + $0x70] sm:$0xff] }
 0x407   :  { %6134 = vst.msk [vmem:[%s10413_s7 + $0x78] sm:$0xff] %vm816_vm0, %v6118_v6  ;;  %v10185_v3 = vld [vmem:[%s10413_s7 + $0x28] sm:$0xff] }
 0x408   :  { %6403 = vst.msk [vmem:[%s10413_s7 + $0x30] sm:$0xff] %vm816_vm0, %v6387_v61  ;;  %v6471_v29 = vmul.f32 %v10185_v3, %v10185_v3  ;;  %v6435_v61 = vadd.f32 %v6434_v18, %v6433_v1  ;;  %v6438_v24 = vsel %vm816_vm0, %v10185_v3, 0.0 }
 0x40a   :  { %v6491_v50 = vsel %vm816_vm0, %v6471_v29, 0.0 }
 0x40d   :  { %v6342_v62 = vpop.f32.mrf.mxu1 }
 0x40e   :  { %v6388_v63 = vadd.f32 %v6372_v33, %v6342_v62  ;;  %v6488_v33 = vadd.f32 %v6487_v12, %v6486_v23  ;;  %v6380_v7 = vld [vmem:[%s10413_s7 + $0x78] sm:$0xff] }
 0x40f   :  { %v10198_v44 = vld [vmem:[%s10413_s7 + $0x30] sm:$0xff] }
 0x410   :  { %6404 = vst.msk [vmem:[%s10413_s7 + $0x38] sm:$0xff] %vm816_vm0, %v6388_v63  ;;  %v6472_v62 = vmul.f32 %v10198_v44, %v10198_v44  ;;  %v6437_v63 = vadd.f32 %v6436_v4, %v6435_v61  ;;  %v6440_v42 = vsel %vm816_vm0, %v10198_v44, 0.0  ;;  %v6490_v51 = vadd.f32 %v6489_v19, %v6488_v33 }
 0x412   :  { %v6493_v30 = vsel %vm816_vm0, %v6472_v62, 0.0 }
 0x415   :  { %v6345_v43 = vpop.f32.mrf.mxu1 }
 0x416   :  { %v6389_v46 = vadd.f32 %v6373_v5, %v6345_v43  ;;  %v6439_v43 = vadd.f32 %v6438_v24, %v6437_v63 }
 0x417   :  { %v10212_v39 = vld [vmem:[%s10413_s7 + $0x38] sm:$0xff] }
 0x418   :  { %6405 = vst.msk [vmem:[%s10413_s7 + $0x40] sm:$0xff] %vm816_vm0, %v6389_v46  ;;  %v6473_v28 = vmul.f32 %v10212_v39, %v10212_v39  ;;  %v6442_v60 = vsel %vm816_vm0, %v10212_v39, 0.0  ;;  %v6441_v2 = vadd.f32 %v6440_v42, %v6439_v43 }
 0x41a   :  { %v6443_v58 = vadd.f32 %v6442_v60, %v6441_v2 }
 0x41d   :  { %v6347_v34 = vpop.f32.mrf.mxu1 }
 0x41e   :  { %v6390_v22 = vadd.f32 %v6374_v9, %v6347_v34 }
 0x41f   :  { %v10222_v48 = vld [vmem:[%s10413_s7 + $0x40] sm:$0xff] }
 0x420   :  { %6406 = vst.msk [vmem:[%s10413_s7 + $0x48] sm:$0xff] %vm816_vm0, %v6390_v22  ;;  %v6474_v34 = vmul.f32 %v10222_v48, %v10222_v48  ;;  %v6492_v22 = vadd.f32 %v6491_v50, %v6490_v51 }
 0x422   :  { %v6494_v6 = vadd.f32 %v6493_v30, %v6492_v22 }
 0x425   :  { %v6350_v37 = vpop.f32.mrf.mxu1 }
 0x426   :  { %v6391_v41 = vadd.f32 %v6375_v38, %v6350_v37  ;;  %v6444_v37 = vsel %vm816_vm0, %v10222_v48, 0.0 }
 0x427   :  { %v10232_v5 = vld [vmem:[%s10413_s7 + $0x48] sm:$0xff] }
 0x428   :  { %6407 = vst.msk [vmem:[%s10413_s7 + $0x50] sm:$0xff] %vm816_vm0, %v6391_v41  ;;  %v6475_v38 = vmul.f32 %v10232_v5, %v10232_v5  ;;  %v6495_v41 = vsel %vm816_vm0, %v6473_v28, 0.0 }
 0x42a   :  { %v6499_v14 = vsel %vm816_vm0, %v6475_v38, 0.0 }
 0x42d   :  { %v6352_v47 = vpop.f32.mrf.mxu1 }
 0x42e   :  { %v6392_v45 = vadd.f32 %v6376_v59, %v6352_v47  ;;  %v6446_v47 = vsel %vm816_vm0, %v10232_v5, 0.0 }
 0x42f   :  { %v10245_v21 = vld [vmem:[%s10413_s7 + $0x50] sm:$0xff] }
 0x430   :  { %6408 = vst.msk [vmem:[%s10413_s7 + $0x58] sm:$0xff] %vm816_vm0, %v6392_v45  ;;  %v6476_v59 = vmul.f32 %v10245_v21, %v10245_v21  ;;  %v6497_v45 = vsel %vm816_vm0, %v6474_v34, 0.0  ;;  %v6448_v32 = vsel %vm816_vm0, %v10245_v21, 0.0 }
 0x435   :  { %v6355_v10 = vpop.f32.mrf.mxu1 }
 0x436   :  { %v6393_v35 = vadd.f32 %v6377_v54, %v6355_v10  ;;  %v6445_v54 = vadd.f32 %v6444_v37, %v6443_v58 }
 0x437   :  { %v10259_v25 = vld [vmem:[%s10413_s7 + $0x58] sm:$0xff] }
 0x438   :  { %6409 = vst.msk [vmem:[%s10413_s7 + $0x60] sm:$0xff] %vm816_vm0, %v6393_v35  ;;  %v6496_v35 = vadd.f32 %v6495_v41, %v6494_v6  ;;  %v6477_v36 = vmul.f32 %v10259_v25, %v10259_v25  ;;  %v6447_v49 = vadd.f32 %v6446_v47, %v6445_v54  ;;  %v6450_v53 = vsel %vm816_vm0, %v10259_v25, 0.0 }
 0x43a   :  { %v6498_v8 = vadd.f32 %v6497_v45, %v6496_v35  ;;  %v6449_v18 = vadd.f32 %v6448_v32, %v6447_v49  ;;  %v6503_v1 = vsel %vm816_vm0, %v6477_v36, 0.0 }
 0x43c   :  { %v6500_v17 = vadd.f32 %v6499_v14, %v6498_v8  ;;  %v6451_v12 = vadd.f32 %v6450_v53, %v6449_v18  ;;  %v6524_v18 = vld [vmem:[%s10414_s5] sm:$0x1] }
 0x43d   :  { %v6357_v20 = vpop.f32.mrf.mxu1 }
 0x43e   :  { %v6394_v13 = vadd.f32 %v6378_v0, %v6357_v20  ;;  %v6501_v0 = vsel %vm816_vm0, %v6476_v59, 0.0 }
 0x43f   :  { %v10269_v10 = vld [vmem:[%s10413_s7 + $0x60] sm:$0xff]  ;;  %v6502_v4 = vadd.f32 %v6501_v0, %v6500_v17 }
 0x440   :  { %6410 = vst.msk [vmem:[%s10413_s7 + $0x68] sm:$0xff] %vm816_vm0, %v6394_v13  ;;  %v6478_v20 = vmul.f32 %v10269_v10, %v10269_v10  ;;  %v6452_v13 = vsel %vm816_vm0, %v10269_v10, 0.0 }
 0x441   :  { %v6453_v19 = vadd.f32 %v6452_v13, %v6451_v12  ;;  %v6504_v24 = vadd.f32 %v6503_v1, %v6502_v4  ;;  %v6537_v1 = vld [vmem:[%s10415_s6] sm:$0x1] }
 0x442   :  { %v6505_v61 = vsel %vm816_vm0, %v6478_v20, 0.0 }
 0x443   :  { %v6506_v50 = vadd.f32 %v6505_v61, %v6504_v24 }
 0x445   :  { %v6360_v46 = vpop.f32.mrf.mxu1 }
 0x446   :  { %v6395_v9 = vadd.f32 %v6379_v16, %v6360_v46 }
 0x447   :  { %v10282_v15 = vld [vmem:[%s10413_s7 + $0x68] sm:$0xff] }
 0x448   :  { %6411 = vst.msk [vmem:[%s10413_s7 + $0x70] sm:$0xff] %vm816_vm0, %v6395_v9  ;;  %v6479_v11 = vmul.f32 %v10282_v15, %v10282_v15  ;;  %v6454_v29 = vsel %vm816_vm0, %v10282_v15, 0.0 }
 0x449   :  { %v6455_v63 = vadd.f32 %v6454_v29, %v6453_v19 }
 0x44a   :  { %v6507_v33 = vsel %vm816_vm0, %v6479_v11, 0.0 }
 0x44b   :  { %v6508_v43 = vadd.f32 %v6507_v33, %v6506_v50 }
 0x44d   :  { %v6362_v27 = vpop.f32.mrf.mxu1 }
 0x44e   :  { %v6396_v56 = vadd.f32 %v6380_v7, %v6362_v27 }
 0x44f   :  { %v10292_v55 = vld [vmem:[%s10413_s7 + $0x70] sm:$0xff] }
 0x450   :  { %6412 = vst.msk [vmem:[%s10413_s7 + $0x78] sm:$0xff] %vm816_vm0, %v6396_v56  ;;  %v6480_v23 = vmul.f32 %v10292_v55, %v10292_v55  ;;  %v6456_v62 = vsel %vm816_vm0, %v10292_v55, 0.0 }
 0x451   :  { %v6457_v51 = vadd.f32 %v6456_v62, %v6455_v63 }
 0x452   :  { %v6509_v42 = vsel %vm816_vm0, %v6480_v23, 0.0 }
 0x453   :  { %v6510_v34 = vadd.f32 %v6509_v42, %v6508_v43 }
 0x457   :  { %v10315_v28 = vld [vmem:[%s10413_s7 + $0x78] sm:$0xff] }
 0x458   :  { %v6458_v46 = vsel %vm816_vm0, %v10315_v28, 0.0  ;;  %v6481_v16 = vmul.f32 %v10315_v28, %v10315_v28 }
 0x459   :  { %v6459_v30 = vadd.f32 %v6458_v46, %v6457_v51 }
 0x45a   :  { %v6511_v9 = vsel %vm816_vm0, %v6481_v16, 0.0 }
 0x45b   :  { %v6460_v60 = vrot.slane %v6459_v30, 4  ;;  %v6512_v22 = vadd.f32 %v6511_v9, %v6510_v34 }
 0x45d   :  { %v6461_v2 = vadd.f32 %v6460_v60, %v6459_v30  ;;  %v6513_v37 = vrot.slane %v6512_v22, 4 }
 0x45f   :  { %v6462_v38 = vrot.slane %v6461_v2, 2  ;;  %v6514_v41 = vadd.f32 %v6513_v37, %v6512_v22 }
 0x461   :  { %v6463_v58 = vadd.f32 %v6462_v38, %v6461_v2  ;;  %v6515_v6 = vrot.slane %v6514_v41, 2 }
 0x463   :  { %v6464_v47 = vrot.slane %v6463_v58, 1  ;;  %v6516_v59 = vadd.f32 %v6515_v6, %v6514_v41 }
 0x465   :  { %v6465_v45 = vadd.f32 %v6464_v47, %v6463_v58  ;;  %v6517_v54 = vrot.slane %v6516_v59, 1 }
 0x467   :  { %v6518_v35 = vadd.f32 %v6517_v54, %v6516_v59  ;;  %v6519_v32 = vmul.f32 0.0078125, %v6465_v45 }
 0x469   :  { %v6520_v36 = vmul.f32 0.0078125, %v6518_v35  ;;  %v6521_v14 = vmul.f32 %v6519_v32, %v6519_v32 }
 0x46b   :  { %v6522_v27 = vsub.f32 %v6520_v36, %v6521_v14 }
 0x46d   :  { %v6523_v7 = vmax.f32 %v6522_v27, 0.0 }
 0x46f   :  { %v6525_v49 = vadd.f32 1e-05, %v6523_v7 }
 0x471   :  { %7322 = vrsqrt.f32 %v6525_v49  ;;  %vm6532_vm8 = vweird.f32 %v6525_v49 }
 0x477   :  { %v7323_v8 = vpop.eup %7322 }
 0x478   :  { %v6527_v56 = vmul.f32 %v7323_v8, %v6525_v49  ;;  %vm6533_vm5 = vweird.f32 %v7323_v8 }
 0x479   :  { %vm6534_vm11 = vmor %vm6532_vm8, %vm6533_vm5 }
 0x47a   :  { %v6528_v53 = vmul.f32 %v7323_v8, %v6527_v56 }
 0x47c   :  { %v6529_v20 = vmul.f32 0.5, %v6528_v53 }
 0x47e   :  { %v6530_v0 = vsub.f32 1.5, %v6529_v20 }
 0x480   :  { %v6531_v17 = vmul.f32 %v7323_v8, %v6530_v0 }
 0x482   :  { %v6535_v13 = vsel %vm6534_vm11, %v7323_v8, %v6531_v17 }
 0x483   :  { %v6536_v11 = vmul.f32 %v6535_v13, %v6524_v18 }
 0x485   :  { %v6538_v12 = vmul.f32 %v6536_v11, %v6519_v32  ;;  %v6541_v29 = vperm.slane %v6536_v11, 0 }
 0x487   :  { %v6539_v4 = vsub.f32 %v6537_v1, %v6538_v12  ;;  %v6543_v23 = vmul.f32 %v6541_v29, %v10145_v52  ;;  %v6544_v61 = vmul.f32 %v6541_v29, %v10137_v31  ;;  %v6545_v19 = vmul.f32 %v6541_v29, %v10150_v40 }
 0x488   :  { %v6546_v62 = vmul.f32 %v6541_v29, %v10163_v57  ;;  %v6547_v33 = vmul.f32 %v6541_v29, %v10172_v26  ;;  %v6548_v51 = vmul.f32 %v6541_v29, %v10185_v3  ;;  %v6549_v46 = vmul.f32 %v6541_v29, %v10198_v44 }
 0x489   :  { %v6560_v24 = vperm.slane %v6539_v4, 0  ;;  %v6550_v52 = vmul.f32 %v6541_v29, %v10212_v39  ;;  %v6551_v31 = vmul.f32 %v6541_v29, %v10222_v48  ;;  %v6552_v26 = vmul.f32 %v6541_v29, %v10232_v5 }
 0x48a   :  { %v6553_v2 = vmul.f32 %v6541_v29, %v10245_v21  ;;  %v6554_v44 = vmul.f32 %v6541_v29, %v10259_v25  ;;  %v6555_v5 = vmul.f32 %v6541_v29, %v10269_v10  ;;  %v6556_v41 = vmul.f32 %v6541_v29, %v10282_v15 }
 0x48b   :  { %v6562_v63 = vadd.f32 %v6560_v24, %v6543_v23  ;;  %v6563_v50 = vadd.f32 %v6560_v24, %v6544_v61  ;;  %v6564_v42 = vadd.f32 %v6560_v24, %v6545_v19  ;;  %v6565_v43 = vadd.f32 %v6560_v24, %v6546_v62 }
 0x48c   :  { %v6566_v16 = vadd.f32 %v6560_v24, %v6547_v33  ;;  %v6567_v30 = vadd.f32 %v6560_v24, %v6548_v51  ;;  %v6568_v40 = vadd.f32 %v6560_v24, %v6549_v46  ;;  %v6569_v60 = vadd.f32 %v6560_v24, %v6550_v52 }
 0x48d   :  { %v6578_v34 = vmax.f32 %v6562_v63, 0.0  ;;  %v6579_v9 = vmax.f32 %v6563_v50, 0.0  ;;  %v6580_v57 = vmax.f32 %v6564_v42, 0.0  ;;  %v6581_v22 = vmax.f32 %v6565_v43, 0.0 }
 0x48e   :  { %v6570_v3 = vadd.f32 %v6560_v24, %v6551_v31  ;;  %v6582_v37 = vmax.f32 %v6566_v16, 0.0  ;;  %v6571_v39 = vadd.f32 %v6560_v24, %v6552_v26  ;;  %v6583_v48 = vmax.f32 %v6567_v30, 0.0 }
 0x48f   :  { %6594 = vst.msk [vmem:[%s10413_s7] sm:$0xff] %vm816_vm0, %v6578_v34  ;;  %v6572_v38 = vadd.f32 %v6560_v24, %v6553_v2  ;;  %v6584_v21 = vmax.f32 %v6568_v40, 0.0  ;;  %v6573_v58 = vadd.f32 %v6560_v24, %v6554_v44  ;;  %v6585_v25 = vmax.f32 %v6569_v60, 0.0 }
 0x490   :  { %6595 = vst.msk [vmem:[%s10413_s7 + $0x8] sm:$0xff] %vm816_vm0, %v6579_v9  ;;  %v6557_v6 = vmul.f32 %v6541_v29, %v10292_v55  ;;  %v6574_v47 = vadd.f32 %v6560_v24, %v6555_v5  ;;  %v6586_v10 = vmax.f32 %v6570_v3, 0.0  ;;  %v6558_v59 = vmul.f32 %v6541_v29, %v10315_v28 }
 0x491   :  { %6596 = vst.msk [vmem:[%s10413_s7 + $0x10] sm:$0xff] %vm816_vm0, %v6580_v57  ;;  %v6575_v45 = vadd.f32 %v6560_v24, %v6556_v41  ;;  %v6587_v15 = vmax.f32 %v6571_v39, 0.0  ;;  %v6588_v35 = vmax.f32 %v6572_v38, 0.0  ;;  %v6589_v32 = vmax.f32 %v6573_v58, 0.0 }
 0x492   :  { %6597 = vst.msk [vmem:[%s10413_s7 + $0x18] sm:$0xff] %vm816_vm0, %v6581_v22  ;;  %v6576_v54 = vadd.f32 %v6560_v24, %v6557_v6  ;;  %v6577_v55 = vadd.f32 %v6560_v24, %v6558_v59  ;;  %v6590_v28 = vmax.f32 %v6574_v47, 0.0 }
 0x493   :  { %6598 = vst.msk [vmem:[%s10413_s7 + $0x20] sm:$0xff] %vm816_vm0, %v6582_v37  ;;  %v6591_v36 = vmax.f32 %v6575_v45, 0.0 }
 0x494   :  { %6599 = vst.msk [vmem:[%s10413_s7 + $0x28] sm:$0xff] %vm816_vm0, %v6583_v48  ;;  %v6592_v14 = vmax.f32 %v6576_v54, 0.0  ;;  %v6593_v27 = vmax.f32 %v6577_v55, 0.0 }
 0x495   :  { %6600 = vst.msk [vmem:[%s10413_s7 + $0x30] sm:$0xff] %vm816_vm0, %v6584_v21 }
 0x496   :  { %6601 = vst.msk [vmem:[%s10413_s7 + $0x38] sm:$0xff] %vm816_vm0, %v6585_v25 }
 0x497   :  { %6602 = vst.msk [vmem:[%s10413_s7 + $0x40] sm:$0xff] %vm816_vm0, %v6586_v10 }
 0x498   :  { %6603 = vst.msk [vmem:[%s10413_s7 + $0x48] sm:$0xff] %vm816_vm0, %v6587_v15 }
 0x499   :  { %6604 = vst.msk [vmem:[%s10413_s7 + $0x50] sm:$0xff] %vm816_vm0, %v6588_v35 }
 0x49a   :  { %6605 = vst.msk [vmem:[%s10413_s7 + $0x58] sm:$0xff] %vm816_vm0, %v6589_v32 }
 0x49b   :  { %6606 = vst.msk [vmem:[%s10413_s7 + $0x60] sm:$0xff] %vm816_vm0, %v6590_v28 }
 0x49c   :  { %6607 = vst.msk [vmem:[%s10413_s7 + $0x68] sm:$0xff] %vm816_vm0, %v6591_v36 }
 0x49d   :  { %6608 = vst.msk [vmem:[%s10413_s7 + $0x70] sm:$0xff] %vm816_vm0, %v6592_v14 }
 0x49e   :  { %6609 = vst.msk [vmem:[%s10413_s7 + $0x78] sm:$0xff] %vm816_vm0, %v6593_v27 }

</bundles_post_ra>
